<compile_context>
chip_gen: v5e
topology: v5e:2x2
jax: 0.10.0
libtpu: 0.0.40
codegen_flags: <defaults>
</compile_context>

<pallas_src>
import math

import jax
import jax.numpy as jnp
from jax.experimental import pallas as pl
from jax.experimental.pallas import tpu as pltpu

# ----------------------------- model config ---------------------------------
EMBED_DIM = 32
NUM_HEADS = 4
FF_DIM = 64
NUM_ENC_LAYERS = 2
NUM_DEC_LAYERS = 2
SRC_VOCAB = 50
TGT_VOCAB = 60
MAX_SEQ_LEN = 64
HEAD_DIM = EMBED_DIM // NUM_HEADS
VOCAB_PAD = 128                       # lane-dense padded width of final projection
LN_EPS = 1e-5
ATTN_SCALE = 1.0 / math.sqrt(HEAD_DIM)

# weight ordering inside the fused kernel (must match the wrapper)
ENC_KEYS = ("wqkv", "bqkv", "wo", "bo", "ln1_g", "ln1_b",
            "w1", "b1", "w2", "b2", "ln2_g", "ln2_b")
DEC_KEYS = ("wqkv_s", "bqkv_s", "wo_s", "bo_s", "ln1_g", "ln1_b",
            "wq_c", "bq_c", "wkv_c", "bkv_c", "wo_c", "bo_c", "ln2_g", "ln2_b",
            "w1", "b1", "w2", "b2", "ln3_g", "ln3_b")
ENC_W_PER_LAYER = len(ENC_KEYS)       # 12
DEC_W_PER_LAYER = len(DEC_KEYS)       # 20


# --------------------------- in-kernel helpers --------------------------------
def _bf16(x):
    return x.astype(jnp.bfloat16)


def _layernorm(h, g, b):
    mean = jnp.mean(h, axis=-1, keepdims=True)
    var = jnp.mean((h - mean) ** 2, axis=-1, keepdims=True)
    return (h - mean) * jax.lax.rsqrt(var + LN_EPS) * g + b


def _mha(q, k, v, wo, bo, *, causal):
    """Multi-head attention. q:(Sq,E) k,v:(Sk,E) f32; wo:(E,E) bf16; bo:(1,E) f32."""
    Sq, Sk = q.shape[0], k.shape[0]

    # per-head QK^T (MXU), scores stacked along sublanes for one batched softmax
    scores = []
    for h in range(NUM_HEADS):                                   # static unroll, H=4
        lo, hi = h * HEAD_DIM, (h + 1) * HEAD_DIM
        s_h = jax.lax.dot_general(_bf16(q[:, lo:hi]), _bf16(k[:, lo:hi]),
                                  (((1,), (1,)), ((), ())),
                                  preferred_element_type=jnp.float32)
        scores.append(s_h)
    s = jnp.concatenate(scores, axis=0) * ATTN_SCALE             # (H*Sq, Sk) f32

    if causal:
        row = jax.lax.broadcasted_iota(jnp.int32, (Sq, Sk), 0)
        col = jax.lax.broadcasted_iota(jnp.int32, (Sq, Sk), 1)
        neg = jnp.where(col > row, -1e30, 0.0).astype(jnp.float32)
        s = s + jnp.concatenate([neg] * NUM_HEADS, axis=0)

    # batched softmax over all heads at once (f32 element-wise; EUP recip)
    s = s - jnp.max(s, axis=-1, keepdims=True)
    p = jnp.exp(s)
    p = p * pl.reciprocal(jnp.sum(p, axis=-1, keepdims=True), approx=True)

    # per-head PV, head outputs concatenated along lanes -> ONE out-projection
    outs = []
    for h in range(NUM_HEADS):
        lo, hi = h * HEAD_DIM, (h + 1) * HEAD_DIM
        p_h = p[h * Sq:(h + 1) * Sq, :]
        outs.append(jnp.dot(_bf16(p_h), _bf16(v[:, lo:hi]),
                            preferred_element_type=jnp.float32))
    attn = jnp.concatenate(outs, axis=-1)                        # (Sq, E) f32
    return jnp.dot(_bf16(attn), wo, preferred_element_type=jnp.float32) + bo


def _encoder_layer(x, w):
    (wqkv, bqkv, wo, bo, ln1g, ln1b, w1, b1, w2, b2, ln2g, ln2b) = w
    E = EMBED_DIM
    qkv = jnp.dot(_bf16(x), wqkv, preferred_element_type=jnp.float32) + bqkv
    q, k, v = qkv[:, :E], qkv[:, E:2 * E], qkv[:, 2 * E:]
    attn = _mha(q, k, v, wo, bo, causal=False)
    h1 = _layernorm(x + attn, ln1g, ln1b)
    ff = jnp.maximum(jnp.dot(_bf16(h1), w1, preferred_element_type=jnp.float32) + b1, 0.0)
    ff2 = jnp.dot(_bf16(ff), w2, preferred_element_type=jnp.float32) + b2
    return _layernorm(h1 + ff2, ln2g, ln2b)


def _decoder_layer(y, enc, w):
    (wqkv_s, bqkv_s, wo_s, bo_s, ln1g, ln1b,
     wq_c, bq_c, wkv_c, bkv_c, wo_c, bo_c, ln2g, ln2b,
     w1, b1, w2, b2, ln3g, ln3b) = w
    E = EMBED_DIM
    # masked self-attention (causal mask generated in-kernel)
    qkv = jnp.dot(_bf16(y), wqkv_s, preferred_element_type=jnp.float32) + bqkv_s
    q, k, v = qkv[:, :E], qkv[:, E:2 * E], qkv[:, 2 * E:]
    sa = _mha(q, k, v, wo_s, bo_s, causal=True)
    h1 = _layernorm(y + sa, ln1g, ln1b)
    # cross-attention (query from decoder, key/value from encoder output)
    qc = jnp.dot(_bf16(h1), wq_c, preferred_element_type=jnp.float32) + bq_c
    kv = jnp.dot(_bf16(enc), wkv_c, preferred_element_type=jnp.float32) + bkv_c
    kc, vc = kv[:, :E], kv[:, E:]
    ca = _mha(qc, kc, vc, wo_c, bo_c, causal=False)
    h2 = _layernorm(h1 + ca, ln2g, ln2b)
    # FFN
    ff = jnp.maximum(jnp.dot(_bf16(h2), w1, preferred_element_type=jnp.float32) + b1, 0.0)
    ff2 = jnp.dot(_bf16(ff), w2, preferred_element_type=jnp.float32) + b2
    return _layernorm(h2 + ff2, ln3g, ln3b)


# ----------------------------- fused kernel -----------------------------------
def _fused_transformer_kernel(*refs):
    x_ref, y_ref = refs[0], refs[1]
    o_ref = refs[-1]
    w = [r[...] for r in refs[2:-1]]

    idx = 0
    enc_ws = []
    for _ in range(NUM_ENC_LAYERS):
        enc_ws.append(tuple(w[idx:idx + ENC_W_PER_LAYER])); idx += ENC_W_PER_LAYER
    dec_ws = []
    for _ in range(NUM_DEC_LAYERS):
        dec_ws.append(tuple(w[idx:idx + DEC_W_PER_LAYER])); idx += DEC_W_PER_LAYER
    out_w, out_b = w[idx], w[idx + 1]

    x = x_ref[0]                                                  # (Ss, E) f32
    y = y_ref[0]                                                  # (St, E) f32

    # encoder stack (static unroll, activations never leave VMEM)
    for lw in enc_ws:
        x = _encoder_layer(x, lw)
    enc_out = x

    # decoder stack
    for lw in dec_ws:
        y = _decoder_layer(y, enc_out, lw)

    # final vocab projection, lane-dense padded to 128 (unmasked store)
    o_ref[0] = jnp.dot(_bf16(y), out_w, preferred_element_type=jnp.float32) + out_b


# ----------------------------- wrapper -----------------------------------------
def transformer_forward(params, src, tgt):
    E = EMBED_DIM
    B, Ss = src.shape
    _, St = tgt.shape
    pe = positional_encoding(MAX_SEQ_LEN, E)

    # embedding gather + positional encoding (JAX glue)
    x = params["src_emb"][src] * math.sqrt(E) + pe[None, :Ss]
    y = params["tgt_emb"][tgt] * math.sqrt(E) + pe[None, :St]

    flat_w = []
    for blk in params["enc"]:
        flat_w += [blk[k] for k in ENC_KEYS]
    for blk in params["dec"]:
        flat_w += [blk[k] for k in DEC_KEYS]
    flat_w += [params["out_w"], params["out_b"]]

    def whole(a):
        nd = a.ndim
        return pl.BlockSpec(a.shape, lambda b, nd=nd: (0,) * nd)

    in_specs = ([pl.BlockSpec((1, Ss, E), lambda b: (b, 0, 0)),
                 pl.BlockSpec((1, St, E), lambda b: (b, 0, 0))]
                + [whole(a) for a in flat_w])

    logits_pad = pl.pallas_call(
        _fused_transformer_kernel,
        grid=(B,),
        in_specs=in_specs,
        out_specs=pl.BlockSpec((1, St, VOCAB_PAD), lambda b: (b, 0, 0)),
        out_shape=jax.ShapeDtypeStruct((B, St, VOCAB_PAD), jnp.float32),
        compiler_params=pltpu.CompilerParams(dimension_semantics=("parallel",)),
    )(x, y, *flat_w)

    return logits_pad[:, :, :TGT_VOCAB]


# ----------------------------- parameters ------------------------------------
def init_params(key):
    keys = iter(jax.random.split(key, 256))
    bf = jnp.bfloat16

    def xavier(shape):  # torch convention: weight shape = (out, in)
        fan_out, fan_in = shape[0], shape[1]
        limit = math.sqrt(6.0 / (fan_in + fan_out))
        return jax.random.uniform(next(keys), shape, jnp.float32, -limit, limit)

    E = EMBED_DIM

    def self_attn():
        in_proj = xavier((3 * E, E))                  # nn.MultiheadAttention.in_proj_weight
        wo = xavier((E, E))                           # out_proj.weight
        return dict(wqkv=in_proj.T.astype(bf),        # (E, 3E), x @ wqkv -> [q|k|v]
                    bqkv=jnp.zeros((1, 3 * E), jnp.float32),
                    wo=wo.T.astype(bf),               # (E, E), (in, out)
                    bo=jnp.zeros((1, E), jnp.float32))

    def cross_attn():
        in_proj = xavier((3 * E, E))
        wo = xavier((E, E))
        return dict(wq=in_proj[:E].T.astype(bf),      # (E, E)
                    bq=jnp.zeros((1, E), jnp.float32),
                    wkv=in_proj[E:].T.astype(bf),     # (E, 2E), enc @ wkv -> [k|v]
                    bkv=jnp.zeros((1, 2 * E), jnp.float32),
                    wo=wo.T.astype(bf),
                    bo=jnp.zeros((1, E), jnp.float32))

    def ln():
        return jnp.ones((1, E), jnp.float32), jnp.zeros((1, E), jnp.float32)

    def ffn():
        return dict(w1=xavier((FF_DIM, E)).T.astype(bf), b1=jnp.zeros((1, FF_DIM), jnp.float32),
                    w2=xavier((E, FF_DIM)).T.astype(bf), b2=jnp.zeros((1, E), jnp.float32))

    def enc_block():
        sa = self_attn()
        g1, b1 = ln()
        g2, b2 = ln()
        f = ffn()
        return dict(wqkv=sa["wqkv"], bqkv=sa["bqkv"], wo=sa["wo"], bo=sa["bo"],
                    ln1_g=g1, ln1_b=b1,
                    w1=f["w1"], b1=f["b1"], w2=f["w2"], b2=f["b2"],
                    ln2_g=g2, ln2_b=b2)

    def dec_block():
        sa = self_attn()
        ca = cross_attn()
        g1, b1 = ln()
        g2, b2 = ln()
        g3, b3 = ln()
        f = ffn()
        return dict(wqkv_s=sa["wqkv"], bqkv_s=sa["bqkv"], wo_s=sa["wo"], bo_s=sa["bo"],
                    ln1_g=g1, ln1_b=b1,
                    wq_c=ca["wq"], bq_c=ca["bq"], wkv_c=ca["wkv"], bkv_c=ca["bkv"],
                    wo_c=ca["wo"], bo_c=ca["bo"], ln2_g=g2, ln2_b=b2,
                    w1=f["w1"], b1=f["b1"], w2=f["w2"], b2=f["b2"],
                    ln3_g=g3, ln3_b=b3)

    # final output projection, padded to a lane-dense (E, 128) weight
    out_w = xavier((TGT_VOCAB, E)).T                  # (E, TGT_VOCAB)
    out_w_pad = jnp.zeros((E, VOCAB_PAD), jnp.float32).at[:, :TGT_VOCAB].set(out_w)
    out_b_pad = jnp.zeros((1, VOCAB_PAD), jnp.float32)

    return dict(
        src_emb=xavier((SRC_VOCAB, E)),
        tgt_emb=xavier((TGT_VOCAB, E)),
        enc=[enc_block() for _ in range(NUM_ENC_LAYERS)],
        dec=[dec_block() for _ in range(NUM_DEC_LAYERS)],
        out_w=out_w_pad.astype(jnp.bfloat16),
        out_b=out_b_pad,
    )


def positional_encoding(max_len, embed_dim):
    pos = jnp.arange(max_len, dtype=jnp.float32)[:, None]
    div = jnp.exp(jnp.arange(0, embed_dim, 2, dtype=jnp.float32)
                  * -(math.log(10000.0) / embed_dim))
    pe = jnp.zeros((max_len, embed_dim), jnp.float32)
    pe = pe.at[:, 0::2].set(jnp.sin(pos * div))
    pe = pe.at[:, 1::2].set(jnp.cos(pos * div))
    return pe


# ----------------------------- main -------------------------------------------
if __name__ == "__main__":
    key = jax.random.PRNGKey(0)
    pkey, skey, tkey = jax.random.split(key, 3)

    params = init_params(pkey)

    batch, src_len, tgt_len = 2, 8, 8
    src = jax.random.randint(skey, (batch, src_len), 0, SRC_VOCAB, dtype=jnp.int32)
    tgt = jax.random.randint(tkey, (batch, tgt_len), 0, TGT_VOCAB, dtype=jnp.int32)

    logits = transformer_forward(params, src, tgt)
    logits = jax.block_until_ready(logits)

    assert logits.shape == (batch, tgt_len, TGT_VOCAB)
    assert bool(jnp.all(jnp.isfinite(logits)))
    print("KERNEL_OK")
</pallas_src>

<mosaic_0001>
module attributes {stable_mosaic.version = 11 : i64} {
  func.func @_fused_transformer_kernel(%arg0: i32, %arg1: memref<1x8x32xf32, #tpu.memory_space<vmem>>, %arg2: memref<1x8x32xf32, #tpu.memory_space<vmem>>, %arg3: memref<32x96xbf16, #tpu.memory_space<vmem>>, %arg4: memref<1x96xf32, #tpu.memory_space<vmem>>, %arg5: memref<32x32xbf16, #tpu.memory_space<vmem>>, %arg6: memref<1x32xf32, #tpu.memory_space<vmem>>, %arg7: memref<1x32xf32, #tpu.memory_space<vmem>>, %arg8: memref<1x32xf32, #tpu.memory_space<vmem>>, %arg9: memref<32x64xbf16, #tpu.memory_space<vmem>>, %arg10: memref<1x64xf32, #tpu.memory_space<vmem>>, %arg11: memref<64x32xbf16, #tpu.memory_space<vmem>>, %arg12: memref<1x32xf32, #tpu.memory_space<vmem>>, %arg13: memref<1x32xf32, #tpu.memory_space<vmem>>, %arg14: memref<1x32xf32, #tpu.memory_space<vmem>>, %arg15: memref<32x96xbf16, #tpu.memory_space<vmem>>, %arg16: memref<1x96xf32, #tpu.memory_space<vmem>>, %arg17: memref<32x32xbf16, #tpu.memory_space<vmem>>, %arg18: memref<1x32xf32, #tpu.memory_space<vmem>>, %arg19: memref<1x32xf32, #tpu.memory_space<vmem>>, %arg20: memref<1x32xf32, #tpu.memory_space<vmem>>, %arg21: memref<32x64xbf16, #tpu.memory_space<vmem>>, %arg22: memref<1x64xf32, #tpu.memory_space<vmem>>, %arg23: memref<64x32xbf16, #tpu.memory_space<vmem>>, %arg24: memref<1x32xf32, #tpu.memory_space<vmem>>, %arg25: memref<1x32xf32, #tpu.memory_space<vmem>>, %arg26: memref<1x32xf32, #tpu.memory_space<vmem>>, %arg27: memref<32x96xbf16, #tpu.memory_space<vmem>>, %arg28: memref<1x96xf32, #tpu.memory_space<vmem>>, %arg29: memref<32x32xbf16, #tpu.memory_space<vmem>>, %arg30: memref<1x32xf32, #tpu.memory_space<vmem>>, %arg31: memref<1x32xf32, #tpu.memory_space<vmem>>, %arg32: memref<1x32xf32, #tpu.memory_space<vmem>>, %arg33: memref<32x32xbf16, #tpu.memory_space<vmem>>, %arg34: memref<1x32xf32, #tpu.memory_space<vmem>>, %arg35: memref<32x64xbf16, #tpu.memory_space<vmem>>, %arg36: memref<1x64xf32, #tpu.memory_space<vmem>>, %arg37: memref<32x32xbf16, #tpu.memory_space<vmem>>, %arg38: memref<1x32xf32, #tpu.memory_space<vmem>>, %arg39: memref<1x32xf32, #tpu.memory_space<vmem>>, %arg40: memref<1x32xf32, #tpu.memory_space<vmem>>, %arg41: memref<32x64xbf16, #tpu.memory_space<vmem>>, %arg42: memref<1x64xf32, #tpu.memory_space<vmem>>, %arg43: memref<64x32xbf16, #tpu.memory_space<vmem>>, %arg44: memref<1x32xf32, #tpu.memory_space<vmem>>, %arg45: memref<1x32xf32, #tpu.memory_space<vmem>>, %arg46: memref<1x32xf32, #tpu.memory_space<vmem>>, %arg47: memref<32x96xbf16, #tpu.memory_space<vmem>>, %arg48: memref<1x96xf32, #tpu.memory_space<vmem>>, %arg49: memref<32x32xbf16, #tpu.memory_space<vmem>>, %arg50: memref<1x32xf32, #tpu.memory_space<vmem>>, %arg51: memref<1x32xf32, #tpu.memory_space<vmem>>, %arg52: memref<1x32xf32, #tpu.memory_space<vmem>>, %arg53: memref<32x32xbf16, #tpu.memory_space<vmem>>, %arg54: memref<1x32xf32, #tpu.memory_space<vmem>>, %arg55: memref<32x64xbf16, #tpu.memory_space<vmem>>, %arg56: memref<1x64xf32, #tpu.memory_space<vmem>>, %arg57: memref<32x32xbf16, #tpu.memory_space<vmem>>, %arg58: memref<1x32xf32, #tpu.memory_space<vmem>>, %arg59: memref<1x32xf32, #tpu.memory_space<vmem>>, %arg60: memref<1x32xf32, #tpu.memory_space<vmem>>, %arg61: memref<32x64xbf16, #tpu.memory_space<vmem>>, %arg62: memref<1x64xf32, #tpu.memory_space<vmem>>, %arg63: memref<64x32xbf16, #tpu.memory_space<vmem>>, %arg64: memref<1x32xf32, #tpu.memory_space<vmem>>, %arg65: memref<1x32xf32, #tpu.memory_space<vmem>>, %arg66: memref<1x32xf32, #tpu.memory_space<vmem>>, %arg67: memref<32x128xbf16, #tpu.memory_space<vmem>>, %arg68: memref<1x128xf32, #tpu.memory_space<vmem>>, %arg69: memref<1x8x128xf32, #tpu.memory_space<vmem>>) attributes {dimension_semantics = [#tpu.dimension_semantics<parallel>], iteration_bounds = array<i64: 2>, scalar_prefetch = 0 : i64, scratch_operands = 0 : i64, tpu.core_type = #tpu.core_type<tc>, window_params = [{transform_indices = @transform_0, window_bounds = array<i64: 1, 8, 32>}, {transform_indices = @transform_1, window_bounds = array<i64: 1, 8, 32>}, {pipeline_mode = #tpu.pipeline_mode<synchronous>, transform_indices = @transform_2, window_bounds = array<i64: 32, 96>}, {pipeline_mode = #tpu.pipeline_mode<synchronous>, transform_indices = @transform_3, window_bounds = array<i64: 1, 96>}, {pipeline_mode = #tpu.pipeline_mode<synchronous>, transform_indices = @transform_4, window_bounds = array<i64: 32, 32>}, {pipeline_mode = #tpu.pipeline_mode<synchronous>, transform_indices = @transform_5, window_bounds = array<i64: 1, 32>}, {pipeline_mode = #tpu.pipeline_mode<synchronous>, transform_indices = @transform_6, window_bounds = array<i64: 1, 32>}, {pipeline_mode = #tpu.pipeline_mode<synchronous>, transform_indices = @transform_7, window_bounds = array<i64: 1, 32>}, {pipeline_mode = #tpu.pipeline_mode<synchronous>, transform_indices = @transform_8, window_bounds = array<i64: 32, 64>}, {pipeline_mode = #tpu.pipeline_mode<synchronous>, transform_indices = @transform_9, window_bounds = array<i64: 1, 64>}, {pipeline_mode = #tpu.pipeline_mode<synchronous>, transform_indices = @transform_10, window_bounds = array<i64: 64, 32>}, {pipeline_mode = #tpu.pipeline_mode<synchronous>, transform_indices = @transform_11, window_bounds = array<i64: 1, 32>}, {pipeline_mode = #tpu.pipeline_mode<synchronous>, transform_indices = @transform_12, window_bounds = array<i64: 1, 32>}, {pipeline_mode = #tpu.pipeline_mode<synchronous>, transform_indices = @transform_13, window_bounds = array<i64: 1, 32>}, {pipeline_mode = #tpu.pipeline_mode<synchronous>, transform_indices = @transform_14, window_bounds = array<i64: 32, 96>}, {pipeline_mode = #tpu.pipeline_mode<synchronous>, transform_indices = @transform_15, window_bounds = array<i64: 1, 96>}, {pipeline_mode = #tpu.pipeline_mode<synchronous>, transform_indices = @transform_16, window_bounds = array<i64: 32, 32>}, {pipeline_mode = #tpu.pipeline_mode<synchronous>, transform_indices = @transform_17, window_bounds = array<i64: 1, 32>}, {pipeline_mode = #tpu.pipeline_mode<synchronous>, transform_indices = @transform_18, window_bounds = array<i64: 1, 32>}, {pipeline_mode = #tpu.pipeline_mode<synchronous>, transform_indices = @transform_19, window_bounds = array<i64: 1, 32>}, {pipeline_mode = #tpu.pipeline_mode<synchronous>, transform_indices = @transform_20, window_bounds = array<i64: 32, 64>}, {pipeline_mode = #tpu.pipeline_mode<synchronous>, transform_indices = @transform_21, window_bounds = array<i64: 1, 64>}, {pipeline_mode = #tpu.pipeline_mode<synchronous>, transform_indices = @transform_22, window_bounds = array<i64: 64, 32>}, {pipeline_mode = #tpu.pipeline_mode<synchronous>, transform_indices = @transform_23, window_bounds = array<i64: 1, 32>}, {pipeline_mode = #tpu.pipeline_mode<synchronous>, transform_indices = @transform_24, window_bounds = array<i64: 1, 32>}, {pipeline_mode = #tpu.pipeline_mode<synchronous>, transform_indices = @transform_25, window_bounds = array<i64: 1, 32>}, {pipeline_mode = #tpu.pipeline_mode<synchronous>, transform_indices = @transform_26, window_bounds = array<i64: 32, 96>}, {pipeline_mode = #tpu.pipeline_mode<synchronous>, transform_indices = @transform_27, window_bounds = array<i64: 1, 96>}, {pipeline_mode = #tpu.pipeline_mode<synchronous>, transform_indices = @transform_28, window_bounds = array<i64: 32, 32>}, {pipeline_mode = #tpu.pipeline_mode<synchronous>, transform_indices = @transform_29, window_bounds = array<i64: 1, 32>}, {pipeline_mode = #tpu.pipeline_mode<synchronous>, transform_indices = @transform_30, window_bounds = array<i64: 1, 32>}, {pipeline_mode = #tpu.pipeline_mode<synchronous>, transform_indices = @transform_31, window_bounds = array<i64: 1, 32>}, {pipeline_mode = #tpu.pipeline_mode<synchronous>, transform_indices = @transform_32, window_bounds = array<i64: 32, 32>}, {pipeline_mode = #tpu.pipeline_mode<synchronous>, transform_indices = @transform_33, window_bounds = array<i64: 1, 32>}, {pipeline_mode = #tpu.pipeline_mode<synchronous>, transform_indices = @transform_34, window_bounds = array<i64: 32, 64>}, {pipeline_mode = #tpu.pipeline_mode<synchronous>, transform_indices = @transform_35, window_bounds = array<i64: 1, 64>}, {pipeline_mode = #tpu.pipeline_mode<synchronous>, transform_indices = @transform_36, window_bounds = array<i64: 32, 32>}, {pipeline_mode = #tpu.pipeline_mode<synchronous>, transform_indices = @transform_37, window_bounds = array<i64: 1, 32>}, {pipeline_mode = #tpu.pipeline_mode<synchronous>, transform_indices = @transform_38, window_bounds = array<i64: 1, 32>}, {pipeline_mode = #tpu.pipeline_mode<synchronous>, transform_indices = @transform_39, window_bounds = array<i64: 1, 32>}, {pipeline_mode = #tpu.pipeline_mode<synchronous>, transform_indices = @transform_40, window_bounds = array<i64: 32, 64>}, {pipeline_mode = #tpu.pipeline_mode<synchronous>, transform_indices = @transform_41, window_bounds = array<i64: 1, 64>}, {pipeline_mode = #tpu.pipeline_mode<synchronous>, transform_indices = @transform_42, window_bounds = array<i64: 64, 32>}, {pipeline_mode = #tpu.pipeline_mode<synchronous>, transform_indices = @transform_43, window_bounds = array<i64: 1, 32>}, {pipeline_mode = #tpu.pipeline_mode<synchronous>, transform_indices = @transform_44, window_bounds = array<i64: 1, 32>}, {pipeline_mode = #tpu.pipeline_mode<synchronous>, transform_indices = @transform_45, window_bounds = array<i64: 1, 32>}, {pipeline_mode = #tpu.pipeline_mode<synchronous>, transform_indices = @transform_46, window_bounds = array<i64: 32, 96>}, {pipeline_mode = #tpu.pipeline_mode<synchronous>, transform_indices = @transform_47, window_bounds = array<i64: 1, 96>}, {pipeline_mode = #tpu.pipeline_mode<synchronous>, transform_indices = @transform_48, window_bounds = array<i64: 32, 32>}, {pipeline_mode = #tpu.pipeline_mode<synchronous>, transform_indices = @transform_49, window_bounds = array<i64: 1, 32>}, {pipeline_mode = #tpu.pipeline_mode<synchronous>, transform_indices = @transform_50, window_bounds = array<i64: 1, 32>}, {pipeline_mode = #tpu.pipeline_mode<synchronous>, transform_indices = @transform_51, window_bounds = array<i64: 1, 32>}, {pipeline_mode = #tpu.pipeline_mode<synchronous>, transform_indices = @transform_52, window_bounds = array<i64: 32, 32>}, {pipeline_mode = #tpu.pipeline_mode<synchronous>, transform_indices = @transform_53, window_bounds = array<i64: 1, 32>}, {pipeline_mode = #tpu.pipeline_mode<synchronous>, transform_indices = @transform_54, window_bounds = array<i64: 32, 64>}, {pipeline_mode = #tpu.pipeline_mode<synchronous>, transform_indices = @transform_55, window_bounds = array<i64: 1, 64>}, {pipeline_mode = #tpu.pipeline_mode<synchronous>, transform_indices = @transform_56, window_bounds = array<i64: 32, 32>}, {pipeline_mode = #tpu.pipeline_mode<synchronous>, transform_indices = @transform_57, window_bounds = array<i64: 1, 32>}, {pipeline_mode = #tpu.pipeline_mode<synchronous>, transform_indices = @transform_58, window_bounds = array<i64: 1, 32>}, {pipeline_mode = #tpu.pipeline_mode<synchronous>, transform_indices = @transform_59, window_bounds = array<i64: 1, 32>}, {pipeline_mode = #tpu.pipeline_mode<synchronous>, transform_indices = @transform_60, window_bounds = array<i64: 32, 64>}, {pipeline_mode = #tpu.pipeline_mode<synchronous>, transform_indices = @transform_61, window_bounds = array<i64: 1, 64>}, {pipeline_mode = #tpu.pipeline_mode<synchronous>, transform_indices = @transform_62, window_bounds = array<i64: 64, 32>}, {pipeline_mode = #tpu.pipeline_mode<synchronous>, transform_indices = @transform_63, window_bounds = array<i64: 1, 32>}, {pipeline_mode = #tpu.pipeline_mode<synchronous>, transform_indices = @transform_64, window_bounds = array<i64: 1, 32>}, {pipeline_mode = #tpu.pipeline_mode<synchronous>, transform_indices = @transform_65, window_bounds = array<i64: 1, 32>}, {pipeline_mode = #tpu.pipeline_mode<synchronous>, transform_indices = @transform_66, window_bounds = array<i64: 32, 128>}, {pipeline_mode = #tpu.pipeline_mode<synchronous>, transform_indices = @transform_67, window_bounds = array<i64: 1, 128>}, {transform_indices = @transform_68, window_bounds = array<i64: 1, 8, 128>}]} {
    %c0 = arith.constant 0 : index
    %c0_0 = arith.constant 0 : index
    %0 = vector.load %arg3[%c0, %c0_0] : memref<32x96xbf16, #tpu.memory_space<vmem>>, vector<32x96xbf16>
    %c0_1 = arith.constant 0 : index
    %c0_2 = arith.constant 0 : index
    %1 = vector.load %arg4[%c0_1, %c0_2] : memref<1x96xf32, #tpu.memory_space<vmem>>, vector<1x96xf32>
    %c0_3 = arith.constant 0 : index
    %c0_4 = arith.constant 0 : index
    %2 = vector.load %arg5[%c0_3, %c0_4] : memref<32x32xbf16, #tpu.memory_space<vmem>>, vector<32x32xbf16>
    %c0_5 = arith.constant 0 : index
    %c0_6 = arith.constant 0 : index
    %3 = vector.load %arg6[%c0_5, %c0_6] : memref<1x32xf32, #tpu.memory_space<vmem>>, vector<1x32xf32>
    %c0_7 = arith.constant 0 : index
    %c0_8 = arith.constant 0 : index
    %4 = vector.load %arg7[%c0_7, %c0_8] : memref<1x32xf32, #tpu.memory_space<vmem>>, vector<1x32xf32>
    %c0_9 = arith.constant 0 : index
    %c0_10 = arith.constant 0 : index
    %5 = vector.load %arg8[%c0_9, %c0_10] : memref<1x32xf32, #tpu.memory_space<vmem>>, vector<1x32xf32>
    %c0_11 = arith.constant 0 : index
    %c0_12 = arith.constant 0 : index
    %6 = vector.load %arg9[%c0_11, %c0_12] : memref<32x64xbf16, #tpu.memory_space<vmem>>, vector<32x64xbf16>
    %c0_13 = arith.constant 0 : index
    %c0_14 = arith.constant 0 : index
    %7 = vector.load %arg10[%c0_13, %c0_14] : memref<1x64xf32, #tpu.memory_space<vmem>>, vector<1x64xf32>
    %c0_15 = arith.constant 0 : index
    %c0_16 = arith.constant 0 : index
    %8 = vector.load %arg11[%c0_15, %c0_16] : memref<64x32xbf16, #tpu.memory_space<vmem>>, vector<64x32xbf16>
    %c0_17 = arith.constant 0 : index
    %c0_18 = arith.constant 0 : index
    %9 = vector.load %arg12[%c0_17, %c0_18] : memref<1x32xf32, #tpu.memory_space<vmem>>, vector<1x32xf32>
    %c0_19 = arith.constant 0 : index
    %c0_20 = arith.constant 0 : index
    %10 = vector.load %arg13[%c0_19, %c0_20] : memref<1x32xf32, #tpu.memory_space<vmem>>, vector<1x32xf32>
    %c0_21 = arith.constant 0 : index
    %c0_22 = arith.constant 0 : index
    %11 = vector.load %arg14[%c0_21, %c0_22] : memref<1x32xf32, #tpu.memory_space<vmem>>, vector<1x32xf32>
    %c0_23 = arith.constant 0 : index
    %c0_24 = arith.constant 0 : index
    %12 = vector.load %arg15[%c0_23, %c0_24] : memref<32x96xbf16, #tpu.memory_space<vmem>>, vector<32x96xbf16>
    %c0_25 = arith.constant 0 : index
    %c0_26 = arith.constant 0 : index
    %13 = vector.load %arg16[%c0_25, %c0_26] : memref<1x96xf32, #tpu.memory_space<vmem>>, vector<1x96xf32>
    %c0_27 = arith.constant 0 : index
    %c0_28 = arith.constant 0 : index
    %14 = vector.load %arg17[%c0_27, %c0_28] : memref<32x32xbf16, #tpu.memory_space<vmem>>, vector<32x32xbf16>
    %c0_29 = arith.constant 0 : index
    %c0_30 = arith.constant 0 : index
    %15 = vector.load %arg18[%c0_29, %c0_30] : memref<1x32xf32, #tpu.memory_space<vmem>>, vector<1x32xf32>
    %c0_31 = arith.constant 0 : index
    %c0_32 = arith.constant 0 : index
    %16 = vector.load %arg19[%c0_31, %c0_32] : memref<1x32xf32, #tpu.memory_space<vmem>>, vector<1x32xf32>
    %c0_33 = arith.constant 0 : index
    %c0_34 = arith.constant 0 : index
    %17 = vector.load %arg20[%c0_33, %c0_34] : memref<1x32xf32, #tpu.memory_space<vmem>>, vector<1x32xf32>
    %c0_35 = arith.constant 0 : index
    %c0_36 = arith.constant 0 : index
    %18 = vector.load %arg21[%c0_35, %c0_36] : memref<32x64xbf16, #tpu.memory_space<vmem>>, vector<32x64xbf16>
    %c0_37 = arith.constant 0 : index
    %c0_38 = arith.constant 0 : index
    %19 = vector.load %arg22[%c0_37, %c0_38] : memref<1x64xf32, #tpu.memory_space<vmem>>, vector<1x64xf32>
    %c0_39 = arith.constant 0 : index
    %c0_40 = arith.constant 0 : index
    %20 = vector.load %arg23[%c0_39, %c0_40] : memref<64x32xbf16, #tpu.memory_space<vmem>>, vector<64x32xbf16>
    %c0_41 = arith.constant 0 : index
    %c0_42 = arith.constant 0 : index
    %21 = vector.load %arg24[%c0_41, %c0_42] : memref<1x32xf32, #tpu.memory_space<vmem>>, vector<1x32xf32>
    %c0_43 = arith.constant 0 : index
    %c0_44 = arith.constant 0 : index
    %22 = vector.load %arg25[%c0_43, %c0_44] : memref<1x32xf32, #tpu.memory_space<vmem>>, vector<1x32xf32>
    %c0_45 = arith.constant 0 : index
    %c0_46 = arith.constant 0 : index
    %23 = vector.load %arg26[%c0_45, %c0_46] : memref<1x32xf32, #tpu.memory_space<vmem>>, vector<1x32xf32>
    %c0_47 = arith.constant 0 : index
    %c0_48 = arith.constant 0 : index
    %24 = vector.load %arg27[%c0_47, %c0_48] : memref<32x96xbf16, #tpu.memory_space<vmem>>, vector<32x96xbf16>
    %c0_49 = arith.constant 0 : index
    %c0_50 = arith.constant 0 : index
    %25 = vector.load %arg28[%c0_49, %c0_50] : memref<1x96xf32, #tpu.memory_space<vmem>>, vector<1x96xf32>
    %c0_51 = arith.constant 0 : index
    %c0_52 = arith.constant 0 : index
    %26 = vector.load %arg29[%c0_51, %c0_52] : memref<32x32xbf16, #tpu.memory_space<vmem>>, vector<32x32xbf16>
    %c0_53 = arith.constant 0 : index
    %c0_54 = arith.constant 0 : index
    %27 = vector.load %arg30[%c0_53, %c0_54] : memref<1x32xf32, #tpu.memory_space<vmem>>, vector<1x32xf32>
    %c0_55 = arith.constant 0 : index
    %c0_56 = arith.constant 0 : index
    %28 = vector.load %arg31[%c0_55, %c0_56] : memref<1x32xf32, #tpu.memory_space<vmem>>, vector<1x32xf32>
    %c0_57 = arith.constant 0 : index
    %c0_58 = arith.constant 0 : index
    %29 = vector.load %arg32[%c0_57, %c0_58] : memref<1x32xf32, #tpu.memory_space<vmem>>, vector<1x32xf32>
    %c0_59 = arith.constant 0 : index
    %c0_60 = arith.constant 0 : index
    %30 = vector.load %arg33[%c0_59, %c0_60] : memref<32x32xbf16, #tpu.memory_space<vmem>>, vector<32x32xbf16>
    %c0_61 = arith.constant 0 : index
    %c0_62 = arith.constant 0 : index
    %31 = vector.load %arg34[%c0_61, %c0_62] : memref<1x32xf32, #tpu.memory_space<vmem>>, vector<1x32xf32>
    %c0_63 = arith.constant 0 : index
    %c0_64 = arith.constant 0 : index
    %32 = vector.load %arg35[%c0_63, %c0_64] : memref<32x64xbf16, #tpu.memory_space<vmem>>, vector<32x64xbf16>
    %c0_65 = arith.constant 0 : index
    %c0_66 = arith.constant 0 : index
    %33 = vector.load %arg36[%c0_65, %c0_66] : memref<1x64xf32, #tpu.memory_space<vmem>>, vector<1x64xf32>
    %c0_67 = arith.constant 0 : index
    %c0_68 = arith.constant 0 : index
    %34 = vector.load %arg37[%c0_67, %c0_68] : memref<32x32xbf16, #tpu.memory_space<vmem>>, vector<32x32xbf16>
    %c0_69 = arith.constant 0 : index
    %c0_70 = arith.constant 0 : index
    %35 = vector.load %arg38[%c0_69, %c0_70] : memref<1x32xf32, #tpu.memory_space<vmem>>, vector<1x32xf32>
    %c0_71 = arith.constant 0 : index
    %c0_72 = arith.constant 0 : index
    %36 = vector.load %arg39[%c0_71, %c0_72] : memref<1x32xf32, #tpu.memory_space<vmem>>, vector<1x32xf32>
    %c0_73 = arith.constant 0 : index
    %c0_74 = arith.constant 0 : index
    %37 = vector.load %arg40[%c0_73, %c0_74] : memref<1x32xf32, #tpu.memory_space<vmem>>, vector<1x32xf32>
    %c0_75 = arith.constant 0 : index
    %c0_76 = arith.constant 0 : index
    %38 = vector.load %arg41[%c0_75, %c0_76] : memref<32x64xbf16, #tpu.memory_space<vmem>>, vector<32x64xbf16>
    %c0_77 = arith.constant 0 : index
    %c0_78 = arith.constant 0 : index
    %39 = vector.load %arg42[%c0_77, %c0_78] : memref<1x64xf32, #tpu.memory_space<vmem>>, vector<1x64xf32>
    %c0_79 = arith.constant 0 : index
    %c0_80 = arith.constant 0 : index
    %40 = vector.load %arg43[%c0_79, %c0_80] : memref<64x32xbf16, #tpu.memory_space<vmem>>, vector<64x32xbf16>
    %c0_81 = arith.constant 0 : index
    %c0_82 = arith.constant 0 : index
    %41 = vector.load %arg44[%c0_81, %c0_82] : memref<1x32xf32, #tpu.memory_space<vmem>>, vector<1x32xf32>
    %c0_83 = arith.constant 0 : index
    %c0_84 = arith.constant 0 : index
    %42 = vector.load %arg45[%c0_83, %c0_84] : memref<1x32xf32, #tpu.memory_space<vmem>>, vector<1x32xf32>
    %c0_85 = arith.constant 0 : index
    %c0_86 = arith.constant 0 : index
    %43 = vector.load %arg46[%c0_85, %c0_86] : memref<1x32xf32, #tpu.memory_space<vmem>>, vector<1x32xf32>
    %c0_87 = arith.constant 0 : index
    %c0_88 = arith.constant 0 : index
    %44 = vector.load %arg47[%c0_87, %c0_88] : memref<32x96xbf16, #tpu.memory_space<vmem>>, vector<32x96xbf16>
    %c0_89 = arith.constant 0 : index
    %c0_90 = arith.constant 0 : index
    %45 = vector.load %arg48[%c0_89, %c0_90] : memref<1x96xf32, #tpu.memory_space<vmem>>, vector<1x96xf32>
    %c0_91 = arith.constant 0 : index
    %c0_92 = arith.constant 0 : index
    %46 = vector.load %arg49[%c0_91, %c0_92] : memref<32x32xbf16, #tpu.memory_space<vmem>>, vector<32x32xbf16>
    %c0_93 = arith.constant 0 : index
    %c0_94 = arith.constant 0 : index
    %47 = vector.load %arg50[%c0_93, %c0_94] : memref<1x32xf32, #tpu.memory_space<vmem>>, vector<1x32xf32>
    %c0_95 = arith.constant 0 : index
    %c0_96 = arith.constant 0 : index
    %48 = vector.load %arg51[%c0_95, %c0_96] : memref<1x32xf32, #tpu.memory_space<vmem>>, vector<1x32xf32>
    %c0_97 = arith.constant 0 : index
    %c0_98 = arith.constant 0 : index
    %49 = vector.load %arg52[%c0_97, %c0_98] : memref<1x32xf32, #tpu.memory_space<vmem>>, vector<1x32xf32>
    %c0_99 = arith.constant 0 : index
    %c0_100 = arith.constant 0 : index
    %50 = vector.load %arg53[%c0_99, %c0_100] : memref<32x32xbf16, #tpu.memory_space<vmem>>, vector<32x32xbf16>
    %c0_101 = arith.constant 0 : index
    %c0_102 = arith.constant 0 : index
    %51 = vector.load %arg54[%c0_101, %c0_102] : memref<1x32xf32, #tpu.memory_space<vmem>>, vector<1x32xf32>
    %c0_103 = arith.constant 0 : index
    %c0_104 = arith.constant 0 : index
    %52 = vector.load %arg55[%c0_103, %c0_104] : memref<32x64xbf16, #tpu.memory_space<vmem>>, vector<32x64xbf16>
    %c0_105 = arith.constant 0 : index
    %c0_106 = arith.constant 0 : index
    %53 = vector.load %arg56[%c0_105, %c0_106] : memref<1x64xf32, #tpu.memory_space<vmem>>, vector<1x64xf32>
    %c0_107 = arith.constant 0 : index
    %c0_108 = arith.constant 0 : index
    %54 = vector.load %arg57[%c0_107, %c0_108] : memref<32x32xbf16, #tpu.memory_space<vmem>>, vector<32x32xbf16>
    %c0_109 = arith.constant 0 : index
    %c0_110 = arith.constant 0 : index
    %55 = vector.load %arg58[%c0_109, %c0_110] : memref<1x32xf32, #tpu.memory_space<vmem>>, vector<1x32xf32>
    %c0_111 = arith.constant 0 : index
    %c0_112 = arith.constant 0 : index
    %56 = vector.load %arg59[%c0_111, %c0_112] : memref<1x32xf32, #tpu.memory_space<vmem>>, vector<1x32xf32>
    %c0_113 = arith.constant 0 : index
    %c0_114 = arith.constant 0 : index
    %57 = vector.load %arg60[%c0_113, %c0_114] : memref<1x32xf32, #tpu.memory_space<vmem>>, vector<1x32xf32>
    %c0_115 = arith.constant 0 : index
    %c0_116 = arith.constant 0 : index
    %58 = vector.load %arg61[%c0_115, %c0_116] : memref<32x64xbf16, #tpu.memory_space<vmem>>, vector<32x64xbf16>
    %c0_117 = arith.constant 0 : index
    %c0_118 = arith.constant 0 : index
    %59 = vector.load %arg62[%c0_117, %c0_118] : memref<1x64xf32, #tpu.memory_space<vmem>>, vector<1x64xf32>
    %c0_119 = arith.constant 0 : index
    %c0_120 = arith.constant 0 : index
    %60 = vector.load %arg63[%c0_119, %c0_120] : memref<64x32xbf16, #tpu.memory_space<vmem>>, vector<64x32xbf16>
    %c0_121 = arith.constant 0 : index
    %c0_122 = arith.constant 0 : index
    %61 = vector.load %arg64[%c0_121, %c0_122] : memref<1x32xf32, #tpu.memory_space<vmem>>, vector<1x32xf32>
    %c0_123 = arith.constant 0 : index
    %c0_124 = arith.constant 0 : index
    %62 = vector.load %arg65[%c0_123, %c0_124] : memref<1x32xf32, #tpu.memory_space<vmem>>, vector<1x32xf32>
    %c0_125 = arith.constant 0 : index
    %c0_126 = arith.constant 0 : index
    %63 = vector.load %arg66[%c0_125, %c0_126] : memref<1x32xf32, #tpu.memory_space<vmem>>, vector<1x32xf32>
    %c0_127 = arith.constant 0 : index
    %c0_128 = arith.constant 0 : index
    %64 = vector.load %arg67[%c0_127, %c0_128] : memref<32x128xbf16, #tpu.memory_space<vmem>>, vector<32x128xbf16>
    %c0_129 = arith.constant 0 : index
    %c0_130 = arith.constant 0 : index
    %65 = vector.load %arg68[%c0_129, %c0_130] : memref<1x128xf32, #tpu.memory_space<vmem>>, vector<1x128xf32>
    %c0_131 = arith.constant 0 : index
    %c0_132 = arith.constant 0 : index
    %c0_133 = arith.constant 0 : index
    %66 = vector.load %arg1[%c0_131, %c0_132, %c0_133] : memref<1x8x32xf32, #tpu.memory_space<vmem>>, vector<1x8x32xf32>
    %67 = vector.shape_cast %66 : vector<1x8x32xf32> to vector<8x32xf32>
    %c0_134 = arith.constant 0 : index
    %c0_135 = arith.constant 0 : index
    %c0_136 = arith.constant 0 : index
    %68 = vector.load %arg2[%c0_134, %c0_135, %c0_136] : memref<1x8x32xf32, #tpu.memory_space<vmem>>, vector<1x8x32xf32>
    %69 = vector.shape_cast %68 : vector<1x8x32xf32> to vector<8x32xf32>
    %70 = arith.truncf %67 : vector<8x32xf32> to vector<8x32xbf16>
    %cst = arith.constant dense<0.000000e+00> : vector<8x96xf32>
    %71 = tpu.matmul %70, %0, %cst {dimension_numbers = #tpu.dot_dimension_numbers<[1], [0], [0], [1], [0, 0, 1, 1], [], []>} : vector<8x32xbf16>, vector<32x96xbf16>, vector<8x96xf32> -> vector<8x96xf32>
    %72 = vector.broadcast %1 : vector<1x96xf32> to vector<8x96xf32>
    %73 = arith.addf %71, %72 : vector<8x96xf32>
    %74 = vector.extract_strided_slice %73 {offsets = [0, 0], sizes = [8, 32], strides = [1, 1]} : vector<8x96xf32> to vector<8x32xf32>
    %75 = vector.extract_strided_slice %73 {offsets = [0, 32], sizes = [8, 32], strides = [1, 1]} : vector<8x96xf32> to vector<8x32xf32>
    %76 = vector.extract_strided_slice %73 {offsets = [0, 64], sizes = [8, 32], strides = [1, 1]} : vector<8x96xf32> to vector<8x32xf32>
    %77 = vector.extract_strided_slice %74 {offsets = [0, 0], sizes = [8, 8], strides = [1, 1]} : vector<8x32xf32> to vector<8x8xf32>
    %78 = arith.truncf %77 : vector<8x8xf32> to vector<8x8xbf16>
    %79 = vector.extract_strided_slice %75 {offsets = [0, 0], sizes = [8, 8], strides = [1, 1]} : vector<8x32xf32> to vector<8x8xf32>
    %80 = arith.truncf %79 : vector<8x8xf32> to vector<8x8xbf16>
    %cst_137 = arith.constant dense<0.000000e+00> : vector<8x8xf32>
    %81 = tpu.matmul %78, %80, %cst_137 {dimension_numbers = #tpu.dot_dimension_numbers<[1], [1], [0], [0], [0, 0, 1, 0], [], []>} : vector<8x8xbf16>, vector<8x8xbf16>, vector<8x8xf32> -> vector<8x8xf32>
    %82 = vector.extract_strided_slice %74 {offsets = [0, 8], sizes = [8, 8], strides = [1, 1]} : vector<8x32xf32> to vector<8x8xf32>
    %83 = arith.truncf %82 : vector<8x8xf32> to vector<8x8xbf16>
    %84 = vector.extract_strided_slice %75 {offsets = [0, 8], sizes = [8, 8], strides = [1, 1]} : vector<8x32xf32> to vector<8x8xf32>
    %85 = arith.truncf %84 : vector<8x8xf32> to vector<8x8xbf16>
    %cst_138 = arith.constant dense<0.000000e+00> : vector<8x8xf32>
    %86 = tpu.matmul %83, %85, %cst_138 {dimension_numbers = #tpu.dot_dimension_numbers<[1], [1], [0], [0], [0, 0, 1, 0], [], []>} : vector<8x8xbf16>, vector<8x8xbf16>, vector<8x8xf32> -> vector<8x8xf32>
    %87 = vector.extract_strided_slice %74 {offsets = [0, 16], sizes = [8, 8], strides = [1, 1]} : vector<8x32xf32> to vector<8x8xf32>
    %88 = arith.truncf %87 : vector<8x8xf32> to vector<8x8xbf16>
    %89 = vector.extract_strided_slice %75 {offsets = [0, 16], sizes = [8, 8], strides = [1, 1]} : vector<8x32xf32> to vector<8x8xf32>
    %90 = arith.truncf %89 : vector<8x8xf32> to vector<8x8xbf16>
    %cst_139 = arith.constant dense<0.000000e+00> : vector<8x8xf32>
    %91 = tpu.matmul %88, %90, %cst_139 {dimension_numbers = #tpu.dot_dimension_numbers<[1], [1], [0], [0], [0, 0, 1, 0], [], []>} : vector<8x8xbf16>, vector<8x8xbf16>, vector<8x8xf32> -> vector<8x8xf32>
    %92 = vector.extract_strided_slice %74 {offsets = [0, 24], sizes = [8, 8], strides = [1, 1]} : vector<8x32xf32> to vector<8x8xf32>
    %93 = arith.truncf %92 : vector<8x8xf32> to vector<8x8xbf16>
    %94 = vector.extract_strided_slice %75 {offsets = [0, 24], sizes = [8, 8], strides = [1, 1]} : vector<8x32xf32> to vector<8x8xf32>
    %95 = arith.truncf %94 : vector<8x8xf32> to vector<8x8xbf16>
    %cst_140 = arith.constant dense<0.000000e+00> : vector<8x8xf32>
    %96 = tpu.matmul %93, %95, %cst_140 {dimension_numbers = #tpu.dot_dimension_numbers<[1], [1], [0], [0], [0, 0, 1, 0], [], []>} : vector<8x8xbf16>, vector<8x8xbf16>, vector<8x8xf32> -> vector<8x8xf32>
    %97 = tpu.concatenate %81, %86, %91, %96 in 0 : vector<8x8xf32>, vector<8x8xf32>, vector<8x8xf32>, vector<8x8xf32> -> vector<32x8xf32>
    %cst_141 = arith.constant 0.353553385 : f32
    %98 = vector.broadcast %cst_141 : f32 to vector<32x8xf32>
    %99 = arith.mulf %97, %98 : vector<32x8xf32>
    %cst_142 = arith.constant dense<0xFF800000> : vector<32xf32>
    %100 = vector.multi_reduction <maximumf>, %99, %cst_142 [1] : vector<32x8xf32> to vector<32xf32>
    %101 = vector.shape_cast %100 : vector<32xf32> to vector<32x1xf32>
    %102 = vector.broadcast %101 : vector<32x1xf32> to vector<32x8xf32>
    %103 = arith.subf %99, %102 : vector<32x8xf32>
    %104 = math.exp %103 : vector<32x8xf32>
    %cst_143 = arith.constant dense<0.000000e+00> : vector<32xf32>
    %105 = vector.multi_reduction <add>, %104, %cst_143 [1] : vector<32x8xf32> to vector<32xf32>
    %106 = vector.shape_cast %105 : vector<32xf32> to vector<32x1xf32>
    %107 = tpu.reciprocal %106 {approx = true} : vector<32x1xf32> -> vector<32x1xf32>
    %108 = vector.broadcast %107 : vector<32x1xf32> to vector<32x8xf32>
    %109 = arith.mulf %104, %108 : vector<32x8xf32>
    %110 = vector.extract_strided_slice %109 {offsets = [0, 0], sizes = [8, 8], strides = [1, 1]} : vector<32x8xf32> to vector<8x8xf32>
    %111 = arith.truncf %110 : vector<8x8xf32> to vector<8x8xbf16>
    %112 = vector.extract_strided_slice %76 {offsets = [0, 0], sizes = [8, 8], strides = [1, 1]} : vector<8x32xf32> to vector<8x8xf32>
    %113 = arith.truncf %112 : vector<8x8xf32> to vector<8x8xbf16>
    %cst_144 = arith.constant dense<0.000000e+00> : vector<8x8xf32>
    %114 = tpu.matmul %111, %113, %cst_144 {dimension_numbers = #tpu.dot_dimension_numbers<[1], [0], [0], [1], [0, 0, 1, 1], [], []>} : vector<8x8xbf16>, vector<8x8xbf16>, vector<8x8xf32> -> vector<8x8xf32>
    %115 = vector.extract_strided_slice %109 {offsets = [8, 0], sizes = [8, 8], strides = [1, 1]} : vector<32x8xf32> to vector<8x8xf32>
    %116 = arith.truncf %115 : vector<8x8xf32> to vector<8x8xbf16>
    %117 = vector.extract_strided_slice %76 {offsets = [0, 8], sizes = [8, 8], strides = [1, 1]} : vector<8x32xf32> to vector<8x8xf32>
    %118 = arith.truncf %117 : vector<8x8xf32> to vector<8x8xbf16>
    %cst_145 = arith.constant dense<0.000000e+00> : vector<8x8xf32>
    %119 = tpu.matmul %116, %118, %cst_145 {dimension_numbers = #tpu.dot_dimension_numbers<[1], [0], [0], [1], [0, 0, 1, 1], [], []>} : vector<8x8xbf16>, vector<8x8xbf16>, vector<8x8xf32> -> vector<8x8xf32>
    %120 = vector.extract_strided_slice %109 {offsets = [16, 0], sizes = [8, 8], strides = [1, 1]} : vector<32x8xf32> to vector<8x8xf32>
    %121 = arith.truncf %120 : vector<8x8xf32> to vector<8x8xbf16>
    %122 = vector.extract_strided_slice %76 {offsets = [0, 16], sizes = [8, 8], strides = [1, 1]} : vector<8x32xf32> to vector<8x8xf32>
    %123 = arith.truncf %122 : vector<8x8xf32> to vector<8x8xbf16>
    %cst_146 = arith.constant dense<0.000000e+00> : vector<8x8xf32>
    %124 = tpu.matmul %121, %123, %cst_146 {dimension_numbers = #tpu.dot_dimension_numbers<[1], [0], [0], [1], [0, 0, 1, 1], [], []>} : vector<8x8xbf16>, vector<8x8xbf16>, vector<8x8xf32> -> vector<8x8xf32>
    %125 = vector.extract_strided_slice %109 {offsets = [24, 0], sizes = [8, 8], strides = [1, 1]} : vector<32x8xf32> to vector<8x8xf32>
    %126 = arith.truncf %125 : vector<8x8xf32> to vector<8x8xbf16>
    %127 = vector.extract_strided_slice %76 {offsets = [0, 24], sizes = [8, 8], strides = [1, 1]} : vector<8x32xf32> to vector<8x8xf32>
    %128 = arith.truncf %127 : vector<8x8xf32> to vector<8x8xbf16>
    %cst_147 = arith.constant dense<0.000000e+00> : vector<8x8xf32>
    %129 = tpu.matmul %126, %128, %cst_147 {dimension_numbers = #tpu.dot_dimension_numbers<[1], [0], [0], [1], [0, 0, 1, 1], [], []>} : vector<8x8xbf16>, vector<8x8xbf16>, vector<8x8xf32> -> vector<8x8xf32>
    %130 = tpu.concatenate %114, %119, %124, %129 in 1 : vector<8x8xf32>, vector<8x8xf32>, vector<8x8xf32>, vector<8x8xf32> -> vector<8x32xf32>
    %131 = arith.truncf %130 : vector<8x32xf32> to vector<8x32xbf16>
    %cst_148 = arith.constant dense<0.000000e+00> : vector<8x32xf32>
    %132 = tpu.matmul %131, %2, %cst_148 {dimension_numbers = #tpu.dot_dimension_numbers<[1], [0], [0], [1], [0, 0, 1, 1], [], []>} : vector<8x32xbf16>, vector<32x32xbf16>, vector<8x32xf32> -> vector<8x32xf32>
    %133 = vector.broadcast %3 : vector<1x32xf32> to vector<8x32xf32>
    %134 = arith.addf %132, %133 : vector<8x32xf32>
    %135 = arith.addf %67, %134 : vector<8x32xf32>
    %cst_149 = arith.constant dense<0.000000e+00> : vector<8xf32>
    %136 = vector.multi_reduction <add>, %135, %cst_149 [1] : vector<8x32xf32> to vector<8xf32>
    %137 = vector.shape_cast %136 : vector<8xf32> to vector<8x1xf32>
    %cst_150 = arith.constant 3.200000e+01 : f32
    %138 = vector.broadcast %cst_150 : f32 to vector<8x1xf32>
    %139 = arith.divf %137, %138 : vector<8x1xf32>
    %140 = vector.broadcast %139 : vector<8x1xf32> to vector<8x32xf32>
    %141 = arith.subf %135, %140 : vector<8x32xf32>
    %142 = arith.mulf %141, %141 : vector<8x32xf32>
    %cst_151 = arith.constant dense<0.000000e+00> : vector<8xf32>
    %143 = vector.multi_reduction <add>, %142, %cst_151 [1] : vector<8x32xf32> to vector<8xf32>
    %144 = vector.shape_cast %143 : vector<8xf32> to vector<8x1xf32>
    %cst_152 = arith.constant 3.200000e+01 : f32
    %145 = vector.broadcast %cst_152 : f32 to vector<8x1xf32>
    %146 = arith.divf %144, %145 : vector<8x1xf32>
    %147 = vector.broadcast %139 : vector<8x1xf32> to vector<8x32xf32>
    %148 = arith.subf %135, %147 : vector<8x32xf32>
    %cst_153 = arith.constant 9.99999974E-6 : f32
    %149 = vector.broadcast %cst_153 : f32 to vector<8x1xf32>
    %150 = arith.addf %146, %149 : vector<8x1xf32>
    %151 = math.rsqrt %150 : vector<8x1xf32>
    %152 = vector.broadcast %151 : vector<8x1xf32> to vector<8x32xf32>
    %153 = arith.mulf %148, %152 : vector<8x32xf32>
    %154 = vector.broadcast %4 : vector<1x32xf32> to vector<8x32xf32>
    %155 = arith.mulf %153, %154 : vector<8x32xf32>
    %156 = vector.broadcast %5 : vector<1x32xf32> to vector<8x32xf32>
    %157 = arith.addf %155, %156 : vector<8x32xf32>
    %158 = arith.truncf %157 : vector<8x32xf32> to vector<8x32xbf16>
    %cst_154 = arith.constant dense<0.000000e+00> : vector<8x64xf32>
    %159 = tpu.matmul %158, %6, %cst_154 {dimension_numbers = #tpu.dot_dimension_numbers<[1], [0], [0], [1], [0, 0, 1, 1], [], []>} : vector<8x32xbf16>, vector<32x64xbf16>, vector<8x64xf32> -> vector<8x64xf32>
    %160 = vector.broadcast %7 : vector<1x64xf32> to vector<8x64xf32>
    %161 = arith.addf %159, %160 : vector<8x64xf32>
    %cst_155 = arith.constant 0.000000e+00 : f32
    %162 = vector.broadcast %cst_155 : f32 to vector<8x64xf32>
    %163 = arith.maximumf %161, %162 : vector<8x64xf32>
    %164 = arith.truncf %163 : vector<8x64xf32> to vector<8x64xbf16>
    %cst_156 = arith.constant dense<0.000000e+00> : vector<8x32xf32>
    %165 = tpu.matmul %164, %8, %cst_156 {dimension_numbers = #tpu.dot_dimension_numbers<[1], [0], [0], [1], [0, 0, 1, 1], [], []>} : vector<8x64xbf16>, vector<64x32xbf16>, vector<8x32xf32> -> vector<8x32xf32>
    %166 = vector.broadcast %9 : vector<1x32xf32> to vector<8x32xf32>
    %167 = arith.addf %165, %166 : vector<8x32xf32>
    %168 = arith.addf %157, %167 : vector<8x32xf32>
    %cst_157 = arith.constant dense<0.000000e+00> : vector<8xf32>
    %169 = vector.multi_reduction <add>, %168, %cst_157 [1] : vector<8x32xf32> to vector<8xf32>
    %170 = vector.shape_cast %169 : vector<8xf32> to vector<8x1xf32>
    %cst_158 = arith.constant 3.200000e+01 : f32
    %171 = vector.broadcast %cst_158 : f32 to vector<8x1xf32>
    %172 = arith.divf %170, %171 : vector<8x1xf32>
    %173 = vector.broadcast %172 : vector<8x1xf32> to vector<8x32xf32>
    %174 = arith.subf %168, %173 : vector<8x32xf32>
    %175 = arith.mulf %174, %174 : vector<8x32xf32>
    %cst_159 = arith.constant dense<0.000000e+00> : vector<8xf32>
    %176 = vector.multi_reduction <add>, %175, %cst_159 [1] : vector<8x32xf32> to vector<8xf32>
    %177 = vector.shape_cast %176 : vector<8xf32> to vector<8x1xf32>
    %cst_160 = arith.constant 3.200000e+01 : f32
    %178 = vector.broadcast %cst_160 : f32 to vector<8x1xf32>
    %179 = arith.divf %177, %178 : vector<8x1xf32>
    %180 = vector.broadcast %172 : vector<8x1xf32> to vector<8x32xf32>
    %181 = arith.subf %168, %180 : vector<8x32xf32>
    %cst_161 = arith.constant 9.99999974E-6 : f32
    %182 = vector.broadcast %cst_161 : f32 to vector<8x1xf32>
    %183 = arith.addf %179, %182 : vector<8x1xf32>
    %184 = math.rsqrt %183 : vector<8x1xf32>
    %185 = vector.broadcast %184 : vector<8x1xf32> to vector<8x32xf32>
    %186 = arith.mulf %181, %185 : vector<8x32xf32>
    %187 = vector.broadcast %10 : vector<1x32xf32> to vector<8x32xf32>
    %188 = arith.mulf %186, %187 : vector<8x32xf32>
    %189 = vector.broadcast %11 : vector<1x32xf32> to vector<8x32xf32>
    %190 = arith.addf %188, %189 : vector<8x32xf32>
    %191 = arith.truncf %190 : vector<8x32xf32> to vector<8x32xbf16>
    %cst_162 = arith.constant dense<0.000000e+00> : vector<8x96xf32>
    %192 = tpu.matmul %191, %12, %cst_162 {dimension_numbers = #tpu.dot_dimension_numbers<[1], [0], [0], [1], [0, 0, 1, 1], [], []>} : vector<8x32xbf16>, vector<32x96xbf16>, vector<8x96xf32> -> vector<8x96xf32>
    %193 = vector.broadcast %13 : vector<1x96xf32> to vector<8x96xf32>
    %194 = arith.addf %192, %193 : vector<8x96xf32>
    %195 = vector.extract_strided_slice %194 {offsets = [0, 0], sizes = [8, 32], strides = [1, 1]} : vector<8x96xf32> to vector<8x32xf32>
    %196 = vector.extract_strided_slice %194 {offsets = [0, 32], sizes = [8, 32], strides = [1, 1]} : vector<8x96xf32> to vector<8x32xf32>
    %197 = vector.extract_strided_slice %194 {offsets = [0, 64], sizes = [8, 32], strides = [1, 1]} : vector<8x96xf32> to vector<8x32xf32>
    %198 = vector.extract_strided_slice %195 {offsets = [0, 0], sizes = [8, 8], strides = [1, 1]} : vector<8x32xf32> to vector<8x8xf32>
    %199 = arith.truncf %198 : vector<8x8xf32> to vector<8x8xbf16>
    %200 = vector.extract_strided_slice %196 {offsets = [0, 0], sizes = [8, 8], strides = [1, 1]} : vector<8x32xf32> to vector<8x8xf32>
    %201 = arith.truncf %200 : vector<8x8xf32> to vector<8x8xbf16>
    %cst_163 = arith.constant dense<0.000000e+00> : vector<8x8xf32>
    %202 = tpu.matmul %199, %201, %cst_163 {dimension_numbers = #tpu.dot_dimension_numbers<[1], [1], [0], [0], [0, 0, 1, 0], [], []>} : vector<8x8xbf16>, vector<8x8xbf16>, vector<8x8xf32> -> vector<8x8xf32>
    %203 = vector.extract_strided_slice %195 {offsets = [0, 8], sizes = [8, 8], strides = [1, 1]} : vector<8x32xf32> to vector<8x8xf32>
    %204 = arith.truncf %203 : vector<8x8xf32> to vector<8x8xbf16>
    %205 = vector.extract_strided_slice %196 {offsets = [0, 8], sizes = [8, 8], strides = [1, 1]} : vector<8x32xf32> to vector<8x8xf32>
    %206 = arith.truncf %205 : vector<8x8xf32> to vector<8x8xbf16>
    %cst_164 = arith.constant dense<0.000000e+00> : vector<8x8xf32>
    %207 = tpu.matmul %204, %206, %cst_164 {dimension_numbers = #tpu.dot_dimension_numbers<[1], [1], [0], [0], [0, 0, 1, 0], [], []>} : vector<8x8xbf16>, vector<8x8xbf16>, vector<8x8xf32> -> vector<8x8xf32>
    %208 = vector.extract_strided_slice %195 {offsets = [0, 16], sizes = [8, 8], strides = [1, 1]} : vector<8x32xf32> to vector<8x8xf32>
    %209 = arith.truncf %208 : vector<8x8xf32> to vector<8x8xbf16>
    %210 = vector.extract_strided_slice %196 {offsets = [0, 16], sizes = [8, 8], strides = [1, 1]} : vector<8x32xf32> to vector<8x8xf32>
    %211 = arith.truncf %210 : vector<8x8xf32> to vector<8x8xbf16>
    %cst_165 = arith.constant dense<0.000000e+00> : vector<8x8xf32>
    %212 = tpu.matmul %209, %211, %cst_165 {dimension_numbers = #tpu.dot_dimension_numbers<[1], [1], [0], [0], [0, 0, 1, 0], [], []>} : vector<8x8xbf16>, vector<8x8xbf16>, vector<8x8xf32> -> vector<8x8xf32>
    %213 = vector.extract_strided_slice %195 {offsets = [0, 24], sizes = [8, 8], strides = [1, 1]} : vector<8x32xf32> to vector<8x8xf32>
    %214 = arith.truncf %213 : vector<8x8xf32> to vector<8x8xbf16>
    %215 = vector.extract_strided_slice %196 {offsets = [0, 24], sizes = [8, 8], strides = [1, 1]} : vector<8x32xf32> to vector<8x8xf32>
    %216 = arith.truncf %215 : vector<8x8xf32> to vector<8x8xbf16>
    %cst_166 = arith.constant dense<0.000000e+00> : vector<8x8xf32>
    %217 = tpu.matmul %214, %216, %cst_166 {dimension_numbers = #tpu.dot_dimension_numbers<[1], [1], [0], [0], [0, 0, 1, 0], [], []>} : vector<8x8xbf16>, vector<8x8xbf16>, vector<8x8xf32> -> vector<8x8xf32>
    %218 = tpu.concatenate %202, %207, %212, %217 in 0 : vector<8x8xf32>, vector<8x8xf32>, vector<8x8xf32>, vector<8x8xf32> -> vector<32x8xf32>
    %cst_167 = arith.constant 0.353553385 : f32
    %219 = vector.broadcast %cst_167 : f32 to vector<32x8xf32>
    %220 = arith.mulf %218, %219 : vector<32x8xf32>
    %cst_168 = arith.constant dense<0xFF800000> : vector<32xf32>
    %221 = vector.multi_reduction <maximumf>, %220, %cst_168 [1] : vector<32x8xf32> to vector<32xf32>
    %222 = vector.shape_cast %221 : vector<32xf32> to vector<32x1xf32>
    %223 = vector.broadcast %222 : vector<32x1xf32> to vector<32x8xf32>
    %224 = arith.subf %220, %223 : vector<32x8xf32>
    %225 = math.exp %224 : vector<32x8xf32>
    %cst_169 = arith.constant dense<0.000000e+00> : vector<32xf32>
    %226 = vector.multi_reduction <add>, %225, %cst_169 [1] : vector<32x8xf32> to vector<32xf32>
    %227 = vector.shape_cast %226 : vector<32xf32> to vector<32x1xf32>
    %228 = tpu.reciprocal %227 {approx = true} : vector<32x1xf32> -> vector<32x1xf32>
    %229 = vector.broadcast %228 : vector<32x1xf32> to vector<32x8xf32>
    %230 = arith.mulf %225, %229 : vector<32x8xf32>
    %231 = vector.extract_strided_slice %230 {offsets = [0, 0], sizes = [8, 8], strides = [1, 1]} : vector<32x8xf32> to vector<8x8xf32>
    %232 = arith.truncf %231 : vector<8x8xf32> to vector<8x8xbf16>
    %233 = vector.extract_strided_slice %197 {offsets = [0, 0], sizes = [8, 8], strides = [1, 1]} : vector<8x32xf32> to vector<8x8xf32>
    %234 = arith.truncf %233 : vector<8x8xf32> to vector<8x8xbf16>
    %cst_170 = arith.constant dense<0.000000e+00> : vector<8x8xf32>
    %235 = tpu.matmul %232, %234, %cst_170 {dimension_numbers = #tpu.dot_dimension_numbers<[1], [0], [0], [1], [0, 0, 1, 1], [], []>} : vector<8x8xbf16>, vector<8x8xbf16>, vector<8x8xf32> -> vector<8x8xf32>
    %236 = vector.extract_strided_slice %230 {offsets = [8, 0], sizes = [8, 8], strides = [1, 1]} : vector<32x8xf32> to vector<8x8xf32>
    %237 = arith.truncf %236 : vector<8x8xf32> to vector<8x8xbf16>
    %238 = vector.extract_strided_slice %197 {offsets = [0, 8], sizes = [8, 8], strides = [1, 1]} : vector<8x32xf32> to vector<8x8xf32>
    %239 = arith.truncf %238 : vector<8x8xf32> to vector<8x8xbf16>
    %cst_171 = arith.constant dense<0.000000e+00> : vector<8x8xf32>
    %240 = tpu.matmul %237, %239, %cst_171 {dimension_numbers = #tpu.dot_dimension_numbers<[1], [0], [0], [1], [0, 0, 1, 1], [], []>} : vector<8x8xbf16>, vector<8x8xbf16>, vector<8x8xf32> -> vector<8x8xf32>
    %241 = vector.extract_strided_slice %230 {offsets = [16, 0], sizes = [8, 8], strides = [1, 1]} : vector<32x8xf32> to vector<8x8xf32>
    %242 = arith.truncf %241 : vector<8x8xf32> to vector<8x8xbf16>
    %243 = vector.extract_strided_slice %197 {offsets = [0, 16], sizes = [8, 8], strides = [1, 1]} : vector<8x32xf32> to vector<8x8xf32>
    %244 = arith.truncf %243 : vector<8x8xf32> to vector<8x8xbf16>
    %cst_172 = arith.constant dense<0.000000e+00> : vector<8x8xf32>
    %245 = tpu.matmul %242, %244, %cst_172 {dimension_numbers = #tpu.dot_dimension_numbers<[1], [0], [0], [1], [0, 0, 1, 1], [], []>} : vector<8x8xbf16>, vector<8x8xbf16>, vector<8x8xf32> -> vector<8x8xf32>
    %246 = vector.extract_strided_slice %230 {offsets = [24, 0], sizes = [8, 8], strides = [1, 1]} : vector<32x8xf32> to vector<8x8xf32>
    %247 = arith.truncf %246 : vector<8x8xf32> to vector<8x8xbf16>
    %248 = vector.extract_strided_slice %197 {offsets = [0, 24], sizes = [8, 8], strides = [1, 1]} : vector<8x32xf32> to vector<8x8xf32>
    %249 = arith.truncf %248 : vector<8x8xf32> to vector<8x8xbf16>
    %cst_173 = arith.constant dense<0.000000e+00> : vector<8x8xf32>
    %250 = tpu.matmul %247, %249, %cst_173 {dimension_numbers = #tpu.dot_dimension_numbers<[1], [0], [0], [1], [0, 0, 1, 1], [], []>} : vector<8x8xbf16>, vector<8x8xbf16>, vector<8x8xf32> -> vector<8x8xf32>
    %251 = tpu.concatenate %235, %240, %245, %250 in 1 : vector<8x8xf32>, vector<8x8xf32>, vector<8x8xf32>, vector<8x8xf32> -> vector<8x32xf32>
    %252 = arith.truncf %251 : vector<8x32xf32> to vector<8x32xbf16>
    %cst_174 = arith.constant dense<0.000000e+00> : vector<8x32xf32>
    %253 = tpu.matmul %252, %14, %cst_174 {dimension_numbers = #tpu.dot_dimension_numbers<[1], [0], [0], [1], [0, 0, 1, 1], [], []>} : vector<8x32xbf16>, vector<32x32xbf16>, vector<8x32xf32> -> vector<8x32xf32>
    %254 = vector.broadcast %15 : vector<1x32xf32> to vector<8x32xf32>
    %255 = arith.addf %253, %254 : vector<8x32xf32>
    %256 = arith.addf %190, %255 : vector<8x32xf32>
    %cst_175 = arith.constant dense<0.000000e+00> : vector<8xf32>
    %257 = vector.multi_reduction <add>, %256, %cst_175 [1] : vector<8x32xf32> to vector<8xf32>
    %258 = vector.shape_cast %257 : vector<8xf32> to vector<8x1xf32>
    %cst_176 = arith.constant 3.200000e+01 : f32
    %259 = vector.broadcast %cst_176 : f32 to vector<8x1xf32>
    %260 = arith.divf %258, %259 : vector<8x1xf32>
    %261 = vector.broadcast %260 : vector<8x1xf32> to vector<8x32xf32>
    %262 = arith.subf %256, %261 : vector<8x32xf32>
    %263 = arith.mulf %262, %262 : vector<8x32xf32>
    %cst_177 = arith.constant dense<0.000000e+00> : vector<8xf32>
    %264 = vector.multi_reduction <add>, %263, %cst_177 [1] : vector<8x32xf32> to vector<8xf32>
    %265 = vector.shape_cast %264 : vector<8xf32> to vector<8x1xf32>
    %cst_178 = arith.constant 3.200000e+01 : f32
    %266 = vector.broadcast %cst_178 : f32 to vector<8x1xf32>
    %267 = arith.divf %265, %266 : vector<8x1xf32>
    %268 = vector.broadcast %260 : vector<8x1xf32> to vector<8x32xf32>
    %269 = arith.subf %256, %268 : vector<8x32xf32>
    %cst_179 = arith.constant 9.99999974E-6 : f32
    %270 = vector.broadcast %cst_179 : f32 to vector<8x1xf32>
    %271 = arith.addf %267, %270 : vector<8x1xf32>
    %272 = math.rsqrt %271 : vector<8x1xf32>
    %273 = vector.broadcast %272 : vector<8x1xf32> to vector<8x32xf32>
    %274 = arith.mulf %269, %273 : vector<8x32xf32>
    %275 = vector.broadcast %16 : vector<1x32xf32> to vector<8x32xf32>
    %276 = arith.mulf %274, %275 : vector<8x32xf32>
    %277 = vector.broadcast %17 : vector<1x32xf32> to vector<8x32xf32>
    %278 = arith.addf %276, %277 : vector<8x32xf32>
    %279 = arith.truncf %278 : vector<8x32xf32> to vector<8x32xbf16>
    %cst_180 = arith.constant dense<0.000000e+00> : vector<8x64xf32>
    %280 = tpu.matmul %279, %18, %cst_180 {dimension_numbers = #tpu.dot_dimension_numbers<[1], [0], [0], [1], [0, 0, 1, 1], [], []>} : vector<8x32xbf16>, vector<32x64xbf16>, vector<8x64xf32> -> vector<8x64xf32>
    %281 = vector.broadcast %19 : vector<1x64xf32> to vector<8x64xf32>
    %282 = arith.addf %280, %281 : vector<8x64xf32>
    %cst_181 = arith.constant 0.000000e+00 : f32
    %283 = vector.broadcast %cst_181 : f32 to vector<8x64xf32>
    %284 = arith.maximumf %282, %283 : vector<8x64xf32>
    %285 = arith.truncf %284 : vector<8x64xf32> to vector<8x64xbf16>
    %cst_182 = arith.constant dense<0.000000e+00> : vector<8x32xf32>
    %286 = tpu.matmul %285, %20, %cst_182 {dimension_numbers = #tpu.dot_dimension_numbers<[1], [0], [0], [1], [0, 0, 1, 1], [], []>} : vector<8x64xbf16>, vector<64x32xbf16>, vector<8x32xf32> -> vector<8x32xf32>
    %287 = vector.broadcast %21 : vector<1x32xf32> to vector<8x32xf32>
    %288 = arith.addf %286, %287 : vector<8x32xf32>
    %289 = arith.addf %278, %288 : vector<8x32xf32>
    %cst_183 = arith.constant dense<0.000000e+00> : vector<8xf32>
    %290 = vector.multi_reduction <add>, %289, %cst_183 [1] : vector<8x32xf32> to vector<8xf32>
    %291 = vector.shape_cast %290 : vector<8xf32> to vector<8x1xf32>
    %cst_184 = arith.constant 3.200000e+01 : f32
    %292 = vector.broadcast %cst_184 : f32 to vector<8x1xf32>
    %293 = arith.divf %291, %292 : vector<8x1xf32>
    %294 = vector.broadcast %293 : vector<8x1xf32> to vector<8x32xf32>
    %295 = arith.subf %289, %294 : vector<8x32xf32>
    %296 = arith.mulf %295, %295 : vector<8x32xf32>
    %cst_185 = arith.constant dense<0.000000e+00> : vector<8xf32>
    %297 = vector.multi_reduction <add>, %296, %cst_185 [1] : vector<8x32xf32> to vector<8xf32>
    %298 = vector.shape_cast %297 : vector<8xf32> to vector<8x1xf32>
    %cst_186 = arith.constant 3.200000e+01 : f32
    %299 = vector.broadcast %cst_186 : f32 to vector<8x1xf32>
    %300 = arith.divf %298, %299 : vector<8x1xf32>
    %301 = vector.broadcast %293 : vector<8x1xf32> to vector<8x32xf32>
    %302 = arith.subf %289, %301 : vector<8x32xf32>
    %cst_187 = arith.constant 9.99999974E-6 : f32
    %303 = vector.broadcast %cst_187 : f32 to vector<8x1xf32>
    %304 = arith.addf %300, %303 : vector<8x1xf32>
    %305 = math.rsqrt %304 : vector<8x1xf32>
    %306 = vector.broadcast %305 : vector<8x1xf32> to vector<8x32xf32>
    %307 = arith.mulf %302, %306 : vector<8x32xf32>
    %308 = vector.broadcast %22 : vector<1x32xf32> to vector<8x32xf32>
    %309 = arith.mulf %307, %308 : vector<8x32xf32>
    %310 = vector.broadcast %23 : vector<1x32xf32> to vector<8x32xf32>
    %311 = arith.addf %309, %310 : vector<8x32xf32>
    %312 = arith.truncf %69 : vector<8x32xf32> to vector<8x32xbf16>
    %cst_188 = arith.constant dense<0.000000e+00> : vector<8x96xf32>
    %313 = tpu.matmul %312, %24, %cst_188 {dimension_numbers = #tpu.dot_dimension_numbers<[1], [0], [0], [1], [0, 0, 1, 1], [], []>} : vector<8x32xbf16>, vector<32x96xbf16>, vector<8x96xf32> -> vector<8x96xf32>
    %314 = vector.broadcast %25 : vector<1x96xf32> to vector<8x96xf32>
    %315 = arith.addf %313, %314 : vector<8x96xf32>
    %316 = vector.extract_strided_slice %315 {offsets = [0, 0], sizes = [8, 32], strides = [1, 1]} : vector<8x96xf32> to vector<8x32xf32>
    %317 = vector.extract_strided_slice %315 {offsets = [0, 32], sizes = [8, 32], strides = [1, 1]} : vector<8x96xf32> to vector<8x32xf32>
    %318 = vector.extract_strided_slice %315 {offsets = [0, 64], sizes = [8, 32], strides = [1, 1]} : vector<8x96xf32> to vector<8x32xf32>
    %319 = vector.extract_strided_slice %316 {offsets = [0, 0], sizes = [8, 8], strides = [1, 1]} : vector<8x32xf32> to vector<8x8xf32>
    %320 = arith.truncf %319 : vector<8x8xf32> to vector<8x8xbf16>
    %321 = vector.extract_strided_slice %317 {offsets = [0, 0], sizes = [8, 8], strides = [1, 1]} : vector<8x32xf32> to vector<8x8xf32>
    %322 = arith.truncf %321 : vector<8x8xf32> to vector<8x8xbf16>
    %cst_189 = arith.constant dense<0.000000e+00> : vector<8x8xf32>
    %323 = tpu.matmul %320, %322, %cst_189 {dimension_numbers = #tpu.dot_dimension_numbers<[1], [1], [0], [0], [0, 0, 1, 0], [], []>} : vector<8x8xbf16>, vector<8x8xbf16>, vector<8x8xf32> -> vector<8x8xf32>
    %324 = vector.extract_strided_slice %316 {offsets = [0, 8], sizes = [8, 8], strides = [1, 1]} : vector<8x32xf32> to vector<8x8xf32>
    %325 = arith.truncf %324 : vector<8x8xf32> to vector<8x8xbf16>
    %326 = vector.extract_strided_slice %317 {offsets = [0, 8], sizes = [8, 8], strides = [1, 1]} : vector<8x32xf32> to vector<8x8xf32>
    %327 = arith.truncf %326 : vector<8x8xf32> to vector<8x8xbf16>
    %cst_190 = arith.constant dense<0.000000e+00> : vector<8x8xf32>
    %328 = tpu.matmul %325, %327, %cst_190 {dimension_numbers = #tpu.dot_dimension_numbers<[1], [1], [0], [0], [0, 0, 1, 0], [], []>} : vector<8x8xbf16>, vector<8x8xbf16>, vector<8x8xf32> -> vector<8x8xf32>
    %329 = vector.extract_strided_slice %316 {offsets = [0, 16], sizes = [8, 8], strides = [1, 1]} : vector<8x32xf32> to vector<8x8xf32>
    %330 = arith.truncf %329 : vector<8x8xf32> to vector<8x8xbf16>
    %331 = vector.extract_strided_slice %317 {offsets = [0, 16], sizes = [8, 8], strides = [1, 1]} : vector<8x32xf32> to vector<8x8xf32>
    %332 = arith.truncf %331 : vector<8x8xf32> to vector<8x8xbf16>
    %cst_191 = arith.constant dense<0.000000e+00> : vector<8x8xf32>
    %333 = tpu.matmul %330, %332, %cst_191 {dimension_numbers = #tpu.dot_dimension_numbers<[1], [1], [0], [0], [0, 0, 1, 0], [], []>} : vector<8x8xbf16>, vector<8x8xbf16>, vector<8x8xf32> -> vector<8x8xf32>
    %334 = vector.extract_strided_slice %316 {offsets = [0, 24], sizes = [8, 8], strides = [1, 1]} : vector<8x32xf32> to vector<8x8xf32>
    %335 = arith.truncf %334 : vector<8x8xf32> to vector<8x8xbf16>
    %336 = vector.extract_strided_slice %317 {offsets = [0, 24], sizes = [8, 8], strides = [1, 1]} : vector<8x32xf32> to vector<8x8xf32>
    %337 = arith.truncf %336 : vector<8x8xf32> to vector<8x8xbf16>
    %cst_192 = arith.constant dense<0.000000e+00> : vector<8x8xf32>
    %338 = tpu.matmul %335, %337, %cst_192 {dimension_numbers = #tpu.dot_dimension_numbers<[1], [1], [0], [0], [0, 0, 1, 0], [], []>} : vector<8x8xbf16>, vector<8x8xbf16>, vector<8x8xf32> -> vector<8x8xf32>
    %339 = tpu.concatenate %323, %328, %333, %338 in 0 : vector<8x8xf32>, vector<8x8xf32>, vector<8x8xf32>, vector<8x8xf32> -> vector<32x8xf32>
    %cst_193 = arith.constant 0.353553385 : f32
    %340 = vector.broadcast %cst_193 : f32 to vector<32x8xf32>
    %341 = arith.mulf %339, %340 : vector<32x8xf32>
    %342 = tpu.iota {dimensions = array<i32: 0>} : vector<8x8xi32>
    %343 = tpu.iota {dimensions = array<i32: 1>} : vector<8x8xi32>
    %344 = arith.cmpi sgt, %343, %342 : vector<8x8xi32>
    %cst_194 = arith.constant -1.000000e+30 : f32
    %cst_195 = arith.constant 0.000000e+00 : f32
    %345 = vector.broadcast %cst_194 : f32 to vector<8x8xf32>
    %346 = vector.broadcast %cst_195 : f32 to vector<8x8xf32>
    %347 = arith.select %344, %345, %346 : vector<8x8xi1>, vector<8x8xf32>
    %348 = tpu.concatenate %347, %347, %347, %347 in 0 : vector<8x8xf32>, vector<8x8xf32>, vector<8x8xf32>, vector<8x8xf32> -> vector<32x8xf32>
    %349 = arith.addf %341, %348 : vector<32x8xf32>
    %cst_196 = arith.constant dense<0xFF800000> : vector<32xf32>
    %350 = vector.multi_reduction <maximumf>, %349, %cst_196 [1] : vector<32x8xf32> to vector<32xf32>
    %351 = vector.shape_cast %350 : vector<32xf32> to vector<32x1xf32>
    %352 = vector.broadcast %351 : vector<32x1xf32> to vector<32x8xf32>
    %353 = arith.subf %349, %352 : vector<32x8xf32>
    %354 = math.exp %353 : vector<32x8xf32>
    %cst_197 = arith.constant dense<0.000000e+00> : vector<32xf32>
    %355 = vector.multi_reduction <add>, %354, %cst_197 [1] : vector<32x8xf32> to vector<32xf32>
    %356 = vector.shape_cast %355 : vector<32xf32> to vector<32x1xf32>
    %357 = tpu.reciprocal %356 {approx = true} : vector<32x1xf32> -> vector<32x1xf32>
    %358 = vector.broadcast %357 : vector<32x1xf32> to vector<32x8xf32>
    %359 = arith.mulf %354, %358 : vector<32x8xf32>
    %360 = vector.extract_strided_slice %359 {offsets = [0, 0], sizes = [8, 8], strides = [1, 1]} : vector<32x8xf32> to vector<8x8xf32>
    %361 = arith.truncf %360 : vector<8x8xf32> to vector<8x8xbf16>
    %362 = vector.extract_strided_slice %318 {offsets = [0, 0], sizes = [8, 8], strides = [1, 1]} : vector<8x32xf32> to vector<8x8xf32>
    %363 = arith.truncf %362 : vector<8x8xf32> to vector<8x8xbf16>
    %cst_198 = arith.constant dense<0.000000e+00> : vector<8x8xf32>
    %364 = tpu.matmul %361, %363, %cst_198 {dimension_numbers = #tpu.dot_dimension_numbers<[1], [0], [0], [1], [0, 0, 1, 1], [], []>} : vector<8x8xbf16>, vector<8x8xbf16>, vector<8x8xf32> -> vector<8x8xf32>
    %365 = vector.extract_strided_slice %359 {offsets = [8, 0], sizes = [8, 8], strides = [1, 1]} : vector<32x8xf32> to vector<8x8xf32>
    %366 = arith.truncf %365 : vector<8x8xf32> to vector<8x8xbf16>
    %367 = vector.extract_strided_slice %318 {offsets = [0, 8], sizes = [8, 8], strides = [1, 1]} : vector<8x32xf32> to vector<8x8xf32>
    %368 = arith.truncf %367 : vector<8x8xf32> to vector<8x8xbf16>
    %cst_199 = arith.constant dense<0.000000e+00> : vector<8x8xf32>
    %369 = tpu.matmul %366, %368, %cst_199 {dimension_numbers = #tpu.dot_dimension_numbers<[1], [0], [0], [1], [0, 0, 1, 1], [], []>} : vector<8x8xbf16>, vector<8x8xbf16>, vector<8x8xf32> -> vector<8x8xf32>
    %370 = vector.extract_strided_slice %359 {offsets = [16, 0], sizes = [8, 8], strides = [1, 1]} : vector<32x8xf32> to vector<8x8xf32>
    %371 = arith.truncf %370 : vector<8x8xf32> to vector<8x8xbf16>
    %372 = vector.extract_strided_slice %318 {offsets = [0, 16], sizes = [8, 8], strides = [1, 1]} : vector<8x32xf32> to vector<8x8xf32>
    %373 = arith.truncf %372 : vector<8x8xf32> to vector<8x8xbf16>
    %cst_200 = arith.constant dense<0.000000e+00> : vector<8x8xf32>
    %374 = tpu.matmul %371, %373, %cst_200 {dimension_numbers = #tpu.dot_dimension_numbers<[1], [0], [0], [1], [0, 0, 1, 1], [], []>} : vector<8x8xbf16>, vector<8x8xbf16>, vector<8x8xf32> -> vector<8x8xf32>
    %375 = vector.extract_strided_slice %359 {offsets = [24, 0], sizes = [8, 8], strides = [1, 1]} : vector<32x8xf32> to vector<8x8xf32>
    %376 = arith.truncf %375 : vector<8x8xf32> to vector<8x8xbf16>
    %377 = vector.extract_strided_slice %318 {offsets = [0, 24], sizes = [8, 8], strides = [1, 1]} : vector<8x32xf32> to vector<8x8xf32>
    %378 = arith.truncf %377 : vector<8x8xf32> to vector<8x8xbf16>
    %cst_201 = arith.constant dense<0.000000e+00> : vector<8x8xf32>
    %379 = tpu.matmul %376, %378, %cst_201 {dimension_numbers = #tpu.dot_dimension_numbers<[1], [0], [0], [1], [0, 0, 1, 1], [], []>} : vector<8x8xbf16>, vector<8x8xbf16>, vector<8x8xf32> -> vector<8x8xf32>
    %380 = tpu.concatenate %364, %369, %374, %379 in 1 : vector<8x8xf32>, vector<8x8xf32>, vector<8x8xf32>, vector<8x8xf32> -> vector<8x32xf32>
    %381 = arith.truncf %380 : vector<8x32xf32> to vector<8x32xbf16>
    %cst_202 = arith.constant dense<0.000000e+00> : vector<8x32xf32>
    %382 = tpu.matmul %381, %26, %cst_202 {dimension_numbers = #tpu.dot_dimension_numbers<[1], [0], [0], [1], [0, 0, 1, 1], [], []>} : vector<8x32xbf16>, vector<32x32xbf16>, vector<8x32xf32> -> vector<8x32xf32>
    %383 = vector.broadcast %27 : vector<1x32xf32> to vector<8x32xf32>
    %384 = arith.addf %382, %383 : vector<8x32xf32>
    %385 = arith.addf %69, %384 : vector<8x32xf32>
    %cst_203 = arith.constant dense<0.000000e+00> : vector<8xf32>
    %386 = vector.multi_reduction <add>, %385, %cst_203 [1] : vector<8x32xf32> to vector<8xf32>
    %387 = vector.shape_cast %386 : vector<8xf32> to vector<8x1xf32>
    %cst_204 = arith.constant 3.200000e+01 : f32
    %388 = vector.broadcast %cst_204 : f32 to vector<8x1xf32>
    %389 = arith.divf %387, %388 : vector<8x1xf32>
    %390 = vector.broadcast %389 : vector<8x1xf32> to vector<8x32xf32>
    %391 = arith.subf %385, %390 : vector<8x32xf32>
    %392 = arith.mulf %391, %391 : vector<8x32xf32>
    %cst_205 = arith.constant dense<0.000000e+00> : vector<8xf32>
    %393 = vector.multi_reduction <add>, %392, %cst_205 [1] : vector<8x32xf32> to vector<8xf32>
    %394 = vector.shape_cast %393 : vector<8xf32> to vector<8x1xf32>
    %cst_206 = arith.constant 3.200000e+01 : f32
    %395 = vector.broadcast %cst_206 : f32 to vector<8x1xf32>
    %396 = arith.divf %394, %395 : vector<8x1xf32>
    %397 = vector.broadcast %389 : vector<8x1xf32> to vector<8x32xf32>
    %398 = arith.subf %385, %397 : vector<8x32xf32>
    %cst_207 = arith.constant 9.99999974E-6 : f32
    %399 = vector.broadcast %cst_207 : f32 to vector<8x1xf32>
    %400 = arith.addf %396, %399 : vector<8x1xf32>
    %401 = math.rsqrt %400 : vector<8x1xf32>
    %402 = vector.broadcast %401 : vector<8x1xf32> to vector<8x32xf32>
    %403 = arith.mulf %398, %402 : vector<8x32xf32>
    %404 = vector.broadcast %28 : vector<1x32xf32> to vector<8x32xf32>
    %405 = arith.mulf %403, %404 : vector<8x32xf32>
    %406 = vector.broadcast %29 : vector<1x32xf32> to vector<8x32xf32>
    %407 = arith.addf %405, %406 : vector<8x32xf32>
    %408 = arith.truncf %407 : vector<8x32xf32> to vector<8x32xbf16>
    %cst_208 = arith.constant dense<0.000000e+00> : vector<8x32xf32>
    %409 = tpu.matmul %408, %30, %cst_208 {dimension_numbers = #tpu.dot_dimension_numbers<[1], [0], [0], [1], [0, 0, 1, 1], [], []>} : vector<8x32xbf16>, vector<32x32xbf16>, vector<8x32xf32> -> vector<8x32xf32>
    %410 = vector.broadcast %31 : vector<1x32xf32> to vector<8x32xf32>
    %411 = arith.addf %409, %410 : vector<8x32xf32>
    %412 = arith.truncf %311 : vector<8x32xf32> to vector<8x32xbf16>
    %cst_209 = arith.constant dense<0.000000e+00> : vector<8x64xf32>
    %413 = tpu.matmul %412, %32, %cst_209 {dimension_numbers = #tpu.dot_dimension_numbers<[1], [0], [0], [1], [0, 0, 1, 1], [], []>} : vector<8x32xbf16>, vector<32x64xbf16>, vector<8x64xf32> -> vector<8x64xf32>
    %414 = vector.broadcast %33 : vector<1x64xf32> to vector<8x64xf32>
    %415 = arith.addf %413, %414 : vector<8x64xf32>
    %416 = vector.extract_strided_slice %415 {offsets = [0, 0], sizes = [8, 32], strides = [1, 1]} : vector<8x64xf32> to vector<8x32xf32>
    %417 = vector.extract_strided_slice %415 {offsets = [0, 32], sizes = [8, 32], strides = [1, 1]} : vector<8x64xf32> to vector<8x32xf32>
    %418 = vector.extract_strided_slice %411 {offsets = [0, 0], sizes = [8, 8], strides = [1, 1]} : vector<8x32xf32> to vector<8x8xf32>
    %419 = arith.truncf %418 : vector<8x8xf32> to vector<8x8xbf16>
    %420 = vector.extract_strided_slice %416 {offsets = [0, 0], sizes = [8, 8], strides = [1, 1]} : vector<8x32xf32> to vector<8x8xf32>
    %421 = arith.truncf %420 : vector<8x8xf32> to vector<8x8xbf16>
    %cst_210 = arith.constant dense<0.000000e+00> : vector<8x8xf32>
    %422 = tpu.matmul %419, %421, %cst_210 {dimension_numbers = #tpu.dot_dimension_numbers<[1], [1], [0], [0], [0, 0, 1, 0], [], []>} : vector<8x8xbf16>, vector<8x8xbf16>, vector<8x8xf32> -> vector<8x8xf32>
    %423 = vector.extract_strided_slice %411 {offsets = [0, 8], sizes = [8, 8], strides = [1, 1]} : vector<8x32xf32> to vector<8x8xf32>
    %424 = arith.truncf %423 : vector<8x8xf32> to vector<8x8xbf16>
    %425 = vector.extract_strided_slice %416 {offsets = [0, 8], sizes = [8, 8], strides = [1, 1]} : vector<8x32xf32> to vector<8x8xf32>
    %426 = arith.truncf %425 : vector<8x8xf32> to vector<8x8xbf16>
    %cst_211 = arith.constant dense<0.000000e+00> : vector<8x8xf32>
    %427 = tpu.matmul %424, %426, %cst_211 {dimension_numbers = #tpu.dot_dimension_numbers<[1], [1], [0], [0], [0, 0, 1, 0], [], []>} : vector<8x8xbf16>, vector<8x8xbf16>, vector<8x8xf32> -> vector<8x8xf32>
    %428 = vector.extract_strided_slice %411 {offsets = [0, 16], sizes = [8, 8], strides = [1, 1]} : vector<8x32xf32> to vector<8x8xf32>
    %429 = arith.truncf %428 : vector<8x8xf32> to vector<8x8xbf16>
    %430 = vector.extract_strided_slice %416 {offsets = [0, 16], sizes = [8, 8], strides = [1, 1]} : vector<8x32xf32> to vector<8x8xf32>
    %431 = arith.truncf %430 : vector<8x8xf32> to vector<8x8xbf16>
    %cst_212 = arith.constant dense<0.000000e+00> : vector<8x8xf32>
    %432 = tpu.matmul %429, %431, %cst_212 {dimension_numbers = #tpu.dot_dimension_numbers<[1], [1], [0], [0], [0, 0, 1, 0], [], []>} : vector<8x8xbf16>, vector<8x8xbf16>, vector<8x8xf32> -> vector<8x8xf32>
    %433 = vector.extract_strided_slice %411 {offsets = [0, 24], sizes = [8, 8], strides = [1, 1]} : vector<8x32xf32> to vector<8x8xf32>
    %434 = arith.truncf %433 : vector<8x8xf32> to vector<8x8xbf16>
    %435 = vector.extract_strided_slice %416 {offsets = [0, 24], sizes = [8, 8], strides = [1, 1]} : vector<8x32xf32> to vector<8x8xf32>
    %436 = arith.truncf %435 : vector<8x8xf32> to vector<8x8xbf16>
    %cst_213 = arith.constant dense<0.000000e+00> : vector<8x8xf32>
    %437 = tpu.matmul %434, %436, %cst_213 {dimension_numbers = #tpu.dot_dimension_numbers<[1], [1], [0], [0], [0, 0, 1, 0], [], []>} : vector<8x8xbf16>, vector<8x8xbf16>, vector<8x8xf32> -> vector<8x8xf32>
    %438 = tpu.concatenate %422, %427, %432, %437 in 0 : vector<8x8xf32>, vector<8x8xf32>, vector<8x8xf32>, vector<8x8xf32> -> vector<32x8xf32>
    %cst_214 = arith.constant 0.353553385 : f32
    %439 = vector.broadcast %cst_214 : f32 to vector<32x8xf32>
    %440 = arith.mulf %438, %439 : vector<32x8xf32>
    %cst_215 = arith.constant dense<0xFF800000> : vector<32xf32>
    %441 = vector.multi_reduction <maximumf>, %440, %cst_215 [1] : vector<32x8xf32> to vector<32xf32>
    %442 = vector.shape_cast %441 : vector<32xf32> to vector<32x1xf32>
    %443 = vector.broadcast %442 : vector<32x1xf32> to vector<32x8xf32>
    %444 = arith.subf %440, %443 : vector<32x8xf32>
    %445 = math.exp %444 : vector<32x8xf32>
    %cst_216 = arith.constant dense<0.000000e+00> : vector<32xf32>
    %446 = vector.multi_reduction <add>, %445, %cst_216 [1] : vector<32x8xf32> to vector<32xf32>
    %447 = vector.shape_cast %446 : vector<32xf32> to vector<32x1xf32>
    %448 = tpu.reciprocal %447 {approx = true} : vector<32x1xf32> -> vector<32x1xf32>
    %449 = vector.broadcast %448 : vector<32x1xf32> to vector<32x8xf32>
    %450 = arith.mulf %445, %449 : vector<32x8xf32>
    %451 = vector.extract_strided_slice %450 {offsets = [0, 0], sizes = [8, 8], strides = [1, 1]} : vector<32x8xf32> to vector<8x8xf32>
    %452 = arith.truncf %451 : vector<8x8xf32> to vector<8x8xbf16>
    %453 = vector.extract_strided_slice %417 {offsets = [0, 0], sizes = [8, 8], strides = [1, 1]} : vector<8x32xf32> to vector<8x8xf32>
    %454 = arith.truncf %453 : vector<8x8xf32> to vector<8x8xbf16>
    %cst_217 = arith.constant dense<0.000000e+00> : vector<8x8xf32>
    %455 = tpu.matmul %452, %454, %cst_217 {dimension_numbers = #tpu.dot_dimension_numbers<[1], [0], [0], [1], [0, 0, 1, 1], [], []>} : vector<8x8xbf16>, vector<8x8xbf16>, vector<8x8xf32> -> vector<8x8xf32>
    %456 = vector.extract_strided_slice %450 {offsets = [8, 0], sizes = [8, 8], strides = [1, 1]} : vector<32x8xf32> to vector<8x8xf32>
    %457 = arith.truncf %456 : vector<8x8xf32> to vector<8x8xbf16>
    %458 = vector.extract_strided_slice %417 {offsets = [0, 8], sizes = [8, 8], strides = [1, 1]} : vector<8x32xf32> to vector<8x8xf32>
    %459 = arith.truncf %458 : vector<8x8xf32> to vector<8x8xbf16>
    %cst_218 = arith.constant dense<0.000000e+00> : vector<8x8xf32>
    %460 = tpu.matmul %457, %459, %cst_218 {dimension_numbers = #tpu.dot_dimension_numbers<[1], [0], [0], [1], [0, 0, 1, 1], [], []>} : vector<8x8xbf16>, vector<8x8xbf16>, vector<8x8xf32> -> vector<8x8xf32>
    %461 = vector.extract_strided_slice %450 {offsets = [16, 0], sizes = [8, 8], strides = [1, 1]} : vector<32x8xf32> to vector<8x8xf32>
    %462 = arith.truncf %461 : vector<8x8xf32> to vector<8x8xbf16>
    %463 = vector.extract_strided_slice %417 {offsets = [0, 16], sizes = [8, 8], strides = [1, 1]} : vector<8x32xf32> to vector<8x8xf32>
    %464 = arith.truncf %463 : vector<8x8xf32> to vector<8x8xbf16>
    %cst_219 = arith.constant dense<0.000000e+00> : vector<8x8xf32>
    %465 = tpu.matmul %462, %464, %cst_219 {dimension_numbers = #tpu.dot_dimension_numbers<[1], [0], [0], [1], [0, 0, 1, 1], [], []>} : vector<8x8xbf16>, vector<8x8xbf16>, vector<8x8xf32> -> vector<8x8xf32>
    %466 = vector.extract_strided_slice %450 {offsets = [24, 0], sizes = [8, 8], strides = [1, 1]} : vector<32x8xf32> to vector<8x8xf32>
    %467 = arith.truncf %466 : vector<8x8xf32> to vector<8x8xbf16>
    %468 = vector.extract_strided_slice %417 {offsets = [0, 24], sizes = [8, 8], strides = [1, 1]} : vector<8x32xf32> to vector<8x8xf32>
    %469 = arith.truncf %468 : vector<8x8xf32> to vector<8x8xbf16>
    %cst_220 = arith.constant dense<0.000000e+00> : vector<8x8xf32>
    %470 = tpu.matmul %467, %469, %cst_220 {dimension_numbers = #tpu.dot_dimension_numbers<[1], [0], [0], [1], [0, 0, 1, 1], [], []>} : vector<8x8xbf16>, vector<8x8xbf16>, vector<8x8xf32> -> vector<8x8xf32>
    %471 = tpu.concatenate %455, %460, %465, %470 in 1 : vector<8x8xf32>, vector<8x8xf32>, vector<8x8xf32>, vector<8x8xf32> -> vector<8x32xf32>
    %472 = arith.truncf %471 : vector<8x32xf32> to vector<8x32xbf16>
    %cst_221 = arith.constant dense<0.000000e+00> : vector<8x32xf32>
    %473 = tpu.matmul %472, %34, %cst_221 {dimension_numbers = #tpu.dot_dimension_numbers<[1], [0], [0], [1], [0, 0, 1, 1], [], []>} : vector<8x32xbf16>, vector<32x32xbf16>, vector<8x32xf32> -> vector<8x32xf32>
    %474 = vector.broadcast %35 : vector<1x32xf32> to vector<8x32xf32>
    %475 = arith.addf %473, %474 : vector<8x32xf32>
    %476 = arith.addf %407, %475 : vector<8x32xf32>
    %cst_222 = arith.constant dense<0.000000e+00> : vector<8xf32>
    %477 = vector.multi_reduction <add>, %476, %cst_222 [1] : vector<8x32xf32> to vector<8xf32>
    %478 = vector.shape_cast %477 : vector<8xf32> to vector<8x1xf32>
    %cst_223 = arith.constant 3.200000e+01 : f32
    %479 = vector.broadcast %cst_223 : f32 to vector<8x1xf32>
    %480 = arith.divf %478, %479 : vector<8x1xf32>
    %481 = vector.broadcast %480 : vector<8x1xf32> to vector<8x32xf32>
    %482 = arith.subf %476, %481 : vector<8x32xf32>
    %483 = arith.mulf %482, %482 : vector<8x32xf32>
    %cst_224 = arith.constant dense<0.000000e+00> : vector<8xf32>
    %484 = vector.multi_reduction <add>, %483, %cst_224 [1] : vector<8x32xf32> to vector<8xf32>
    %485 = vector.shape_cast %484 : vector<8xf32> to vector<8x1xf32>
    %cst_225 = arith.constant 3.200000e+01 : f32
    %486 = vector.broadcast %cst_225 : f32 to vector<8x1xf32>
    %487 = arith.divf %485, %486 : vector<8x1xf32>
    %488 = vector.broadcast %480 : vector<8x1xf32> to vector<8x32xf32>
    %489 = arith.subf %476, %488 : vector<8x32xf32>
    %cst_226 = arith.constant 9.99999974E-6 : f32
    %490 = vector.broadcast %cst_226 : f32 to vector<8x1xf32>
    %491 = arith.addf %487, %490 : vector<8x1xf32>
    %492 = math.rsqrt %491 : vector<8x1xf32>
    %493 = vector.broadcast %492 : vector<8x1xf32> to vector<8x32xf32>
    %494 = arith.mulf %489, %493 : vector<8x32xf32>
    %495 = vector.broadcast %36 : vector<1x32xf32> to vector<8x32xf32>
    %496 = arith.mulf %494, %495 : vector<8x32xf32>
    %497 = vector.broadcast %37 : vector<1x32xf32> to vector<8x32xf32>
    %498 = arith.addf %496, %497 : vector<8x32xf32>
    %499 = arith.truncf %498 : vector<8x32xf32> to vector<8x32xbf16>
    %cst_227 = arith.constant dense<0.000000e+00> : vector<8x64xf32>
    %500 = tpu.matmul %499, %38, %cst_227 {dimension_numbers = #tpu.dot_dimension_numbers<[1], [0], [0], [1], [0, 0, 1, 1], [], []>} : vector<8x32xbf16>, vector<32x64xbf16>, vector<8x64xf32> -> vector<8x64xf32>
    %501 = vector.broadcast %39 : vector<1x64xf32> to vector<8x64xf32>
    %502 = arith.addf %500, %501 : vector<8x64xf32>
    %cst_228 = arith.constant 0.000000e+00 : f32
    %503 = vector.broadcast %cst_228 : f32 to vector<8x64xf32>
    %504 = arith.maximumf %502, %503 : vector<8x64xf32>
    %505 = arith.truncf %504 : vector<8x64xf32> to vector<8x64xbf16>
    %cst_229 = arith.constant dense<0.000000e+00> : vector<8x32xf32>
    %506 = tpu.matmul %505, %40, %cst_229 {dimension_numbers = #tpu.dot_dimension_numbers<[1], [0], [0], [1], [0, 0, 1, 1], [], []>} : vector<8x64xbf16>, vector<64x32xbf16>, vector<8x32xf32> -> vector<8x32xf32>
    %507 = vector.broadcast %41 : vector<1x32xf32> to vector<8x32xf32>
    %508 = arith.addf %506, %507 : vector<8x32xf32>
    %509 = arith.addf %498, %508 : vector<8x32xf32>
    %cst_230 = arith.constant dense<0.000000e+00> : vector<8xf32>
    %510 = vector.multi_reduction <add>, %509, %cst_230 [1] : vector<8x32xf32> to vector<8xf32>
    %511 = vector.shape_cast %510 : vector<8xf32> to vector<8x1xf32>
    %cst_231 = arith.constant 3.200000e+01 : f32
    %512 = vector.broadcast %cst_231 : f32 to vector<8x1xf32>
    %513 = arith.divf %511, %512 : vector<8x1xf32>
    %514 = vector.broadcast %513 : vector<8x1xf32> to vector<8x32xf32>
    %515 = arith.subf %509, %514 : vector<8x32xf32>
    %516 = arith.mulf %515, %515 : vector<8x32xf32>
    %cst_232 = arith.constant dense<0.000000e+00> : vector<8xf32>
    %517 = vector.multi_reduction <add>, %516, %cst_232 [1] : vector<8x32xf32> to vector<8xf32>
    %518 = vector.shape_cast %517 : vector<8xf32> to vector<8x1xf32>
    %cst_233 = arith.constant 3.200000e+01 : f32
    %519 = vector.broadcast %cst_233 : f32 to vector<8x1xf32>
    %520 = arith.divf %518, %519 : vector<8x1xf32>
    %521 = vector.broadcast %513 : vector<8x1xf32> to vector<8x32xf32>
    %522 = arith.subf %509, %521 : vector<8x32xf32>
    %cst_234 = arith.constant 9.99999974E-6 : f32
    %523 = vector.broadcast %cst_234 : f32 to vector<8x1xf32>
    %524 = arith.addf %520, %523 : vector<8x1xf32>
    %525 = math.rsqrt %524 : vector<8x1xf32>
    %526 = vector.broadcast %525 : vector<8x1xf32> to vector<8x32xf32>
    %527 = arith.mulf %522, %526 : vector<8x32xf32>
    %528 = vector.broadcast %42 : vector<1x32xf32> to vector<8x32xf32>
    %529 = arith.mulf %527, %528 : vector<8x32xf32>
    %530 = vector.broadcast %43 : vector<1x32xf32> to vector<8x32xf32>
    %531 = arith.addf %529, %530 : vector<8x32xf32>
    %532 = arith.truncf %531 : vector<8x32xf32> to vector<8x32xbf16>
    %cst_235 = arith.constant dense<0.000000e+00> : vector<8x96xf32>
    %533 = tpu.matmul %532, %44, %cst_235 {dimension_numbers = #tpu.dot_dimension_numbers<[1], [0], [0], [1], [0, 0, 1, 1], [], []>} : vector<8x32xbf16>, vector<32x96xbf16>, vector<8x96xf32> -> vector<8x96xf32>
    %534 = vector.broadcast %45 : vector<1x96xf32> to vector<8x96xf32>
    %535 = arith.addf %533, %534 : vector<8x96xf32>
    %536 = vector.extract_strided_slice %535 {offsets = [0, 0], sizes = [8, 32], strides = [1, 1]} : vector<8x96xf32> to vector<8x32xf32>
    %537 = vector.extract_strided_slice %535 {offsets = [0, 32], sizes = [8, 32], strides = [1, 1]} : vector<8x96xf32> to vector<8x32xf32>
    %538 = vector.extract_strided_slice %535 {offsets = [0, 64], sizes = [8, 32], strides = [1, 1]} : vector<8x96xf32> to vector<8x32xf32>
    %539 = vector.extract_strided_slice %536 {offsets = [0, 0], sizes = [8, 8], strides = [1, 1]} : vector<8x32xf32> to vector<8x8xf32>
    %540 = arith.truncf %539 : vector<8x8xf32> to vector<8x8xbf16>
    %541 = vector.extract_strided_slice %537 {offsets = [0, 0], sizes = [8, 8], strides = [1, 1]} : vector<8x32xf32> to vector<8x8xf32>
    %542 = arith.truncf %541 : vector<8x8xf32> to vector<8x8xbf16>
    %cst_236 = arith.constant dense<0.000000e+00> : vector<8x8xf32>
    %543 = tpu.matmul %540, %542, %cst_236 {dimension_numbers = #tpu.dot_dimension_numbers<[1], [1], [0], [0], [0, 0, 1, 0], [], []>} : vector<8x8xbf16>, vector<8x8xbf16>, vector<8x8xf32> -> vector<8x8xf32>
    %544 = vector.extract_strided_slice %536 {offsets = [0, 8], sizes = [8, 8], strides = [1, 1]} : vector<8x32xf32> to vector<8x8xf32>
    %545 = arith.truncf %544 : vector<8x8xf32> to vector<8x8xbf16>
    %546 = vector.extract_strided_slice %537 {offsets = [0, 8], sizes = [8, 8], strides = [1, 1]} : vector<8x32xf32> to vector<8x8xf32>
    %547 = arith.truncf %546 : vector<8x8xf32> to vector<8x8xbf16>
    %cst_237 = arith.constant dense<0.000000e+00> : vector<8x8xf32>
    %548 = tpu.matmul %545, %547, %cst_237 {dimension_numbers = #tpu.dot_dimension_numbers<[1], [1], [0], [0], [0, 0, 1, 0], [], []>} : vector<8x8xbf16>, vector<8x8xbf16>, vector<8x8xf32> -> vector<8x8xf32>
    %549 = vector.extract_strided_slice %536 {offsets = [0, 16], sizes = [8, 8], strides = [1, 1]} : vector<8x32xf32> to vector<8x8xf32>
    %550 = arith.truncf %549 : vector<8x8xf32> to vector<8x8xbf16>
    %551 = vector.extract_strided_slice %537 {offsets = [0, 16], sizes = [8, 8], strides = [1, 1]} : vector<8x32xf32> to vector<8x8xf32>
    %552 = arith.truncf %551 : vector<8x8xf32> to vector<8x8xbf16>
    %cst_238 = arith.constant dense<0.000000e+00> : vector<8x8xf32>
    %553 = tpu.matmul %550, %552, %cst_238 {dimension_numbers = #tpu.dot_dimension_numbers<[1], [1], [0], [0], [0, 0, 1, 0], [], []>} : vector<8x8xbf16>, vector<8x8xbf16>, vector<8x8xf32> -> vector<8x8xf32>
    %554 = vector.extract_strided_slice %536 {offsets = [0, 24], sizes = [8, 8], strides = [1, 1]} : vector<8x32xf32> to vector<8x8xf32>
    %555 = arith.truncf %554 : vector<8x8xf32> to vector<8x8xbf16>
    %556 = vector.extract_strided_slice %537 {offsets = [0, 24], sizes = [8, 8], strides = [1, 1]} : vector<8x32xf32> to vector<8x8xf32>
    %557 = arith.truncf %556 : vector<8x8xf32> to vector<8x8xbf16>
    %cst_239 = arith.constant dense<0.000000e+00> : vector<8x8xf32>
    %558 = tpu.matmul %555, %557, %cst_239 {dimension_numbers = #tpu.dot_dimension_numbers<[1], [1], [0], [0], [0, 0, 1, 0], [], []>} : vector<8x8xbf16>, vector<8x8xbf16>, vector<8x8xf32> -> vector<8x8xf32>
    %559 = tpu.concatenate %543, %548, %553, %558 in 0 : vector<8x8xf32>, vector<8x8xf32>, vector<8x8xf32>, vector<8x8xf32> -> vector<32x8xf32>
    %cst_240 = arith.constant 0.353553385 : f32
    %560 = vector.broadcast %cst_240 : f32 to vector<32x8xf32>
    %561 = arith.mulf %559, %560 : vector<32x8xf32>
    %562 = tpu.iota {dimensions = array<i32: 0>} : vector<8x8xi32>
    %563 = tpu.iota {dimensions = array<i32: 1>} : vector<8x8xi32>
    %564 = arith.cmpi sgt, %563, %562 : vector<8x8xi32>
    %cst_241 = arith.constant -1.000000e+30 : f32
    %cst_242 = arith.constant 0.000000e+00 : f32
    %565 = vector.broadcast %cst_241 : f32 to vector<8x8xf32>
    %566 = vector.broadcast %cst_242 : f32 to vector<8x8xf32>
    %567 = arith.select %564, %565, %566 : vector<8x8xi1>, vector<8x8xf32>
    %568 = tpu.concatenate %567, %567, %567, %567 in 0 : vector<8x8xf32>, vector<8x8xf32>, vector<8x8xf32>, vector<8x8xf32> -> vector<32x8xf32>
    %569 = arith.addf %561, %568 : vector<32x8xf32>
    %cst_243 = arith.constant dense<0xFF800000> : vector<32xf32>
    %570 = vector.multi_reduction <maximumf>, %569, %cst_243 [1] : vector<32x8xf32> to vector<32xf32>
    %571 = vector.shape_cast %570 : vector<32xf32> to vector<32x1xf32>
    %572 = vector.broadcast %571 : vector<32x1xf32> to vector<32x8xf32>
    %573 = arith.subf %569, %572 : vector<32x8xf32>
    %574 = math.exp %573 : vector<32x8xf32>
    %cst_244 = arith.constant dense<0.000000e+00> : vector<32xf32>
    %575 = vector.multi_reduction <add>, %574, %cst_244 [1] : vector<32x8xf32> to vector<32xf32>
    %576 = vector.shape_cast %575 : vector<32xf32> to vector<32x1xf32>
    %577 = tpu.reciprocal %576 {approx = true} : vector<32x1xf32> -> vector<32x1xf32>
    %578 = vector.broadcast %577 : vector<32x1xf32> to vector<32x8xf32>
    %579 = arith.mulf %574, %578 : vector<32x8xf32>
    %580 = vector.extract_strided_slice %579 {offsets = [0, 0], sizes = [8, 8], strides = [1, 1]} : vector<32x8xf32> to vector<8x8xf32>
    %581 = arith.truncf %580 : vector<8x8xf32> to vector<8x8xbf16>
    %582 = vector.extract_strided_slice %538 {offsets = [0, 0], sizes = [8, 8], strides = [1, 1]} : vector<8x32xf32> to vector<8x8xf32>
    %583 = arith.truncf %582 : vector<8x8xf32> to vector<8x8xbf16>
    %cst_245 = arith.constant dense<0.000000e+00> : vector<8x8xf32>
    %584 = tpu.matmul %581, %583, %cst_245 {dimension_numbers = #tpu.dot_dimension_numbers<[1], [0], [0], [1], [0, 0, 1, 1], [], []>} : vector<8x8xbf16>, vector<8x8xbf16>, vector<8x8xf32> -> vector<8x8xf32>
    %585 = vector.extract_strided_slice %579 {offsets = [8, 0], sizes = [8, 8], strides = [1, 1]} : vector<32x8xf32> to vector<8x8xf32>
    %586 = arith.truncf %585 : vector<8x8xf32> to vector<8x8xbf16>
    %587 = vector.extract_strided_slice %538 {offsets = [0, 8], sizes = [8, 8], strides = [1, 1]} : vector<8x32xf32> to vector<8x8xf32>
    %588 = arith.truncf %587 : vector<8x8xf32> to vector<8x8xbf16>
    %cst_246 = arith.constant dense<0.000000e+00> : vector<8x8xf32>
    %589 = tpu.matmul %586, %588, %cst_246 {dimension_numbers = #tpu.dot_dimension_numbers<[1], [0], [0], [1], [0, 0, 1, 1], [], []>} : vector<8x8xbf16>, vector<8x8xbf16>, vector<8x8xf32> -> vector<8x8xf32>
    %590 = vector.extract_strided_slice %579 {offsets = [16, 0], sizes = [8, 8], strides = [1, 1]} : vector<32x8xf32> to vector<8x8xf32>
    %591 = arith.truncf %590 : vector<8x8xf32> to vector<8x8xbf16>
    %592 = vector.extract_strided_slice %538 {offsets = [0, 16], sizes = [8, 8], strides = [1, 1]} : vector<8x32xf32> to vector<8x8xf32>
    %593 = arith.truncf %592 : vector<8x8xf32> to vector<8x8xbf16>
    %cst_247 = arith.constant dense<0.000000e+00> : vector<8x8xf32>
    %594 = tpu.matmul %591, %593, %cst_247 {dimension_numbers = #tpu.dot_dimension_numbers<[1], [0], [0], [1], [0, 0, 1, 1], [], []>} : vector<8x8xbf16>, vector<8x8xbf16>, vector<8x8xf32> -> vector<8x8xf32>
    %595 = vector.extract_strided_slice %579 {offsets = [24, 0], sizes = [8, 8], strides = [1, 1]} : vector<32x8xf32> to vector<8x8xf32>
    %596 = arith.truncf %595 : vector<8x8xf32> to vector<8x8xbf16>
    %597 = vector.extract_strided_slice %538 {offsets = [0, 24], sizes = [8, 8], strides = [1, 1]} : vector<8x32xf32> to vector<8x8xf32>
    %598 = arith.truncf %597 : vector<8x8xf32> to vector<8x8xbf16>
    %cst_248 = arith.constant dense<0.000000e+00> : vector<8x8xf32>
    %599 = tpu.matmul %596, %598, %cst_248 {dimension_numbers = #tpu.dot_dimension_numbers<[1], [0], [0], [1], [0, 0, 1, 1], [], []>} : vector<8x8xbf16>, vector<8x8xbf16>, vector<8x8xf32> -> vector<8x8xf32>
    %600 = tpu.concatenate %584, %589, %594, %599 in 1 : vector<8x8xf32>, vector<8x8xf32>, vector<8x8xf32>, vector<8x8xf32> -> vector<8x32xf32>
    %601 = arith.truncf %600 : vector<8x32xf32> to vector<8x32xbf16>
    %cst_249 = arith.constant dense<0.000000e+00> : vector<8x32xf32>
    %602 = tpu.matmul %601, %46, %cst_249 {dimension_numbers = #tpu.dot_dimension_numbers<[1], [0], [0], [1], [0, 0, 1, 1], [], []>} : vector<8x32xbf16>, vector<32x32xbf16>, vector<8x32xf32> -> vector<8x32xf32>
    %603 = vector.broadcast %47 : vector<1x32xf32> to vector<8x32xf32>
    %604 = arith.addf %602, %603 : vector<8x32xf32>
    %605 = arith.addf %531, %604 : vector<8x32xf32>
    %cst_250 = arith.constant dense<0.000000e+00> : vector<8xf32>
    %606 = vector.multi_reduction <add>, %605, %cst_250 [1] : vector<8x32xf32> to vector<8xf32>
    %607 = vector.shape_cast %606 : vector<8xf32> to vector<8x1xf32>
    %cst_251 = arith.constant 3.200000e+01 : f32
    %608 = vector.broadcast %cst_251 : f32 to vector<8x1xf32>
    %609 = arith.divf %607, %608 : vector<8x1xf32>
    %610 = vector.broadcast %609 : vector<8x1xf32> to vector<8x32xf32>
    %611 = arith.subf %605, %610 : vector<8x32xf32>
    %612 = arith.mulf %611, %611 : vector<8x32xf32>
    %cst_252 = arith.constant dense<0.000000e+00> : vector<8xf32>
    %613 = vector.multi_reduction <add>, %612, %cst_252 [1] : vector<8x32xf32> to vector<8xf32>
    %614 = vector.shape_cast %613 : vector<8xf32> to vector<8x1xf32>
    %cst_253 = arith.constant 3.200000e+01 : f32
    %615 = vector.broadcast %cst_253 : f32 to vector<8x1xf32>
    %616 = arith.divf %614, %615 : vector<8x1xf32>
    %617 = vector.broadcast %609 : vector<8x1xf32> to vector<8x32xf32>
    %618 = arith.subf %605, %617 : vector<8x32xf32>
    %cst_254 = arith.constant 9.99999974E-6 : f32
    %619 = vector.broadcast %cst_254 : f32 to vector<8x1xf32>
    %620 = arith.addf %616, %619 : vector<8x1xf32>
    %621 = math.rsqrt %620 : vector<8x1xf32>
    %622 = vector.broadcast %621 : vector<8x1xf32> to vector<8x32xf32>
    %623 = arith.mulf %618, %622 : vector<8x32xf32>
    %624 = vector.broadcast %48 : vector<1x32xf32> to vector<8x32xf32>
    %625 = arith.mulf %623, %624 : vector<8x32xf32>
    %626 = vector.broadcast %49 : vector<1x32xf32> to vector<8x32xf32>
    %627 = arith.addf %625, %626 : vector<8x32xf32>
    %628 = arith.truncf %627 : vector<8x32xf32> to vector<8x32xbf16>
    %cst_255 = arith.constant dense<0.000000e+00> : vector<8x32xf32>
    %629 = tpu.matmul %628, %50, %cst_255 {dimension_numbers = #tpu.dot_dimension_numbers<[1], [0], [0], [1], [0, 0, 1, 1], [], []>} : vector<8x32xbf16>, vector<32x32xbf16>, vector<8x32xf32> -> vector<8x32xf32>
    %630 = vector.broadcast %51 : vector<1x32xf32> to vector<8x32xf32>
    %631 = arith.addf %629, %630 : vector<8x32xf32>
    %632 = arith.truncf %311 : vector<8x32xf32> to vector<8x32xbf16>
    %cst_256 = arith.constant dense<0.000000e+00> : vector<8x64xf32>
    %633 = tpu.matmul %632, %52, %cst_256 {dimension_numbers = #tpu.dot_dimension_numbers<[1], [0], [0], [1], [0, 0, 1, 1], [], []>} : vector<8x32xbf16>, vector<32x64xbf16>, vector<8x64xf32> -> vector<8x64xf32>
    %634 = vector.broadcast %53 : vector<1x64xf32> to vector<8x64xf32>
    %635 = arith.addf %633, %634 : vector<8x64xf32>
    %636 = vector.extract_strided_slice %635 {offsets = [0, 0], sizes = [8, 32], strides = [1, 1]} : vector<8x64xf32> to vector<8x32xf32>
    %637 = vector.extract_strided_slice %635 {offsets = [0, 32], sizes = [8, 32], strides = [1, 1]} : vector<8x64xf32> to vector<8x32xf32>
    %638 = vector.extract_strided_slice %631 {offsets = [0, 0], sizes = [8, 8], strides = [1, 1]} : vector<8x32xf32> to vector<8x8xf32>
    %639 = arith.truncf %638 : vector<8x8xf32> to vector<8x8xbf16>
    %640 = vector.extract_strided_slice %636 {offsets = [0, 0], sizes = [8, 8], strides = [1, 1]} : vector<8x32xf32> to vector<8x8xf32>
    %641 = arith.truncf %640 : vector<8x8xf32> to vector<8x8xbf16>
    %cst_257 = arith.constant dense<0.000000e+00> : vector<8x8xf32>
    %642 = tpu.matmul %639, %641, %cst_257 {dimension_numbers = #tpu.dot_dimension_numbers<[1], [1], [0], [0], [0, 0, 1, 0], [], []>} : vector<8x8xbf16>, vector<8x8xbf16>, vector<8x8xf32> -> vector<8x8xf32>
    %643 = vector.extract_strided_slice %631 {offsets = [0, 8], sizes = [8, 8], strides = [1, 1]} : vector<8x32xf32> to vector<8x8xf32>
    %644 = arith.truncf %643 : vector<8x8xf32> to vector<8x8xbf16>
    %645 = vector.extract_strided_slice %636 {offsets = [0, 8], sizes = [8, 8], strides = [1, 1]} : vector<8x32xf32> to vector<8x8xf32>
    %646 = arith.truncf %645 : vector<8x8xf32> to vector<8x8xbf16>
    %cst_258 = arith.constant dense<0.000000e+00> : vector<8x8xf32>
    %647 = tpu.matmul %644, %646, %cst_258 {dimension_numbers = #tpu.dot_dimension_numbers<[1], [1], [0], [0], [0, 0, 1, 0], [], []>} : vector<8x8xbf16>, vector<8x8xbf16>, vector<8x8xf32> -> vector<8x8xf32>
    %648 = vector.extract_strided_slice %631 {offsets = [0, 16], sizes = [8, 8], strides = [1, 1]} : vector<8x32xf32> to vector<8x8xf32>
    %649 = arith.truncf %648 : vector<8x8xf32> to vector<8x8xbf16>
    %650 = vector.extract_strided_slice %636 {offsets = [0, 16], sizes = [8, 8], strides = [1, 1]} : vector<8x32xf32> to vector<8x8xf32>
    %651 = arith.truncf %650 : vector<8x8xf32> to vector<8x8xbf16>
    %cst_259 = arith.constant dense<0.000000e+00> : vector<8x8xf32>
    %652 = tpu.matmul %649, %651, %cst_259 {dimension_numbers = #tpu.dot_dimension_numbers<[1], [1], [0], [0], [0, 0, 1, 0], [], []>} : vector<8x8xbf16>, vector<8x8xbf16>, vector<8x8xf32> -> vector<8x8xf32>
    %653 = vector.extract_strided_slice %631 {offsets = [0, 24], sizes = [8, 8], strides = [1, 1]} : vector<8x32xf32> to vector<8x8xf32>
    %654 = arith.truncf %653 : vector<8x8xf32> to vector<8x8xbf16>
    %655 = vector.extract_strided_slice %636 {offsets = [0, 24], sizes = [8, 8], strides = [1, 1]} : vector<8x32xf32> to vector<8x8xf32>
    %656 = arith.truncf %655 : vector<8x8xf32> to vector<8x8xbf16>
    %cst_260 = arith.constant dense<0.000000e+00> : vector<8x8xf32>
    %657 = tpu.matmul %654, %656, %cst_260 {dimension_numbers = #tpu.dot_dimension_numbers<[1], [1], [0], [0], [0, 0, 1, 0], [], []>} : vector<8x8xbf16>, vector<8x8xbf16>, vector<8x8xf32> -> vector<8x8xf32>
    %658 = tpu.concatenate %642, %647, %652, %657 in 0 : vector<8x8xf32>, vector<8x8xf32>, vector<8x8xf32>, vector<8x8xf32> -> vector<32x8xf32>
    %cst_261 = arith.constant 0.353553385 : f32
    %659 = vector.broadcast %cst_261 : f32 to vector<32x8xf32>
    %660 = arith.mulf %658, %659 : vector<32x8xf32>
    %cst_262 = arith.constant dense<0xFF800000> : vector<32xf32>
    %661 = vector.multi_reduction <maximumf>, %660, %cst_262 [1] : vector<32x8xf32> to vector<32xf32>
    %662 = vector.shape_cast %661 : vector<32xf32> to vector<32x1xf32>
    %663 = vector.broadcast %662 : vector<32x1xf32> to vector<32x8xf32>
    %664 = arith.subf %660, %663 : vector<32x8xf32>
    %665 = math.exp %664 : vector<32x8xf32>
    %cst_263 = arith.constant dense<0.000000e+00> : vector<32xf32>
    %666 = vector.multi_reduction <add>, %665, %cst_263 [1] : vector<32x8xf32> to vector<32xf32>
    %667 = vector.shape_cast %666 : vector<32xf32> to vector<32x1xf32>
    %668 = tpu.reciprocal %667 {approx = true} : vector<32x1xf32> -> vector<32x1xf32>
    %669 = vector.broadcast %668 : vector<32x1xf32> to vector<32x8xf32>
    %670 = arith.mulf %665, %669 : vector<32x8xf32>
    %671 = vector.extract_strided_slice %670 {offsets = [0, 0], sizes = [8, 8], strides = [1, 1]} : vector<32x8xf32> to vector<8x8xf32>
    %672 = arith.truncf %671 : vector<8x8xf32> to vector<8x8xbf16>
    %673 = vector.extract_strided_slice %637 {offsets = [0, 0], sizes = [8, 8], strides = [1, 1]} : vector<8x32xf32> to vector<8x8xf32>
    %674 = arith.truncf %673 : vector<8x8xf32> to vector<8x8xbf16>
    %cst_264 = arith.constant dense<0.000000e+00> : vector<8x8xf32>
    %675 = tpu.matmul %672, %674, %cst_264 {dimension_numbers = #tpu.dot_dimension_numbers<[1], [0], [0], [1], [0, 0, 1, 1], [], []>} : vector<8x8xbf16>, vector<8x8xbf16>, vector<8x8xf32> -> vector<8x8xf32>
    %676 = vector.extract_strided_slice %670 {offsets = [8, 0], sizes = [8, 8], strides = [1, 1]} : vector<32x8xf32> to vector<8x8xf32>
    %677 = arith.truncf %676 : vector<8x8xf32> to vector<8x8xbf16>
    %678 = vector.extract_strided_slice %637 {offsets = [0, 8], sizes = [8, 8], strides = [1, 1]} : vector<8x32xf32> to vector<8x8xf32>
    %679 = arith.truncf %678 : vector<8x8xf32> to vector<8x8xbf16>
    %cst_265 = arith.constant dense<0.000000e+00> : vector<8x8xf32>
    %680 = tpu.matmul %677, %679, %cst_265 {dimension_numbers = #tpu.dot_dimension_numbers<[1], [0], [0], [1], [0, 0, 1, 1], [], []>} : vector<8x8xbf16>, vector<8x8xbf16>, vector<8x8xf32> -> vector<8x8xf32>
    %681 = vector.extract_strided_slice %670 {offsets = [16, 0], sizes = [8, 8], strides = [1, 1]} : vector<32x8xf32> to vector<8x8xf32>
    %682 = arith.truncf %681 : vector<8x8xf32> to vector<8x8xbf16>
    %683 = vector.extract_strided_slice %637 {offsets = [0, 16], sizes = [8, 8], strides = [1, 1]} : vector<8x32xf32> to vector<8x8xf32>
    %684 = arith.truncf %683 : vector<8x8xf32> to vector<8x8xbf16>
    %cst_266 = arith.constant dense<0.000000e+00> : vector<8x8xf32>
    %685 = tpu.matmul %682, %684, %cst_266 {dimension_numbers = #tpu.dot_dimension_numbers<[1], [0], [0], [1], [0, 0, 1, 1], [], []>} : vector<8x8xbf16>, vector<8x8xbf16>, vector<8x8xf32> -> vector<8x8xf32>
    %686 = vector.extract_strided_slice %670 {offsets = [24, 0], sizes = [8, 8], strides = [1, 1]} : vector<32x8xf32> to vector<8x8xf32>
    %687 = arith.truncf %686 : vector<8x8xf32> to vector<8x8xbf16>
    %688 = vector.extract_strided_slice %637 {offsets = [0, 24], sizes = [8, 8], strides = [1, 1]} : vector<8x32xf32> to vector<8x8xf32>
    %689 = arith.truncf %688 : vector<8x8xf32> to vector<8x8xbf16>
    %cst_267 = arith.constant dense<0.000000e+00> : vector<8x8xf32>
    %690 = tpu.matmul %687, %689, %cst_267 {dimension_numbers = #tpu.dot_dimension_numbers<[1], [0], [0], [1], [0, 0, 1, 1], [], []>} : vector<8x8xbf16>, vector<8x8xbf16>, vector<8x8xf32> -> vector<8x8xf32>
    %691 = tpu.concatenate %675, %680, %685, %690 in 1 : vector<8x8xf32>, vector<8x8xf32>, vector<8x8xf32>, vector<8x8xf32> -> vector<8x32xf32>
    %692 = arith.truncf %691 : vector<8x32xf32> to vector<8x32xbf16>
    %cst_268 = arith.constant dense<0.000000e+00> : vector<8x32xf32>
    %693 = tpu.matmul %692, %54, %cst_268 {dimension_numbers = #tpu.dot_dimension_numbers<[1], [0], [0], [1], [0, 0, 1, 1], [], []>} : vector<8x32xbf16>, vector<32x32xbf16>, vector<8x32xf32> -> vector<8x32xf32>
    %694 = vector.broadcast %55 : vector<1x32xf32> to vector<8x32xf32>
    %695 = arith.addf %693, %694 : vector<8x32xf32>
    %696 = arith.addf %627, %695 : vector<8x32xf32>
    %cst_269 = arith.constant dense<0.000000e+00> : vector<8xf32>
    %697 = vector.multi_reduction <add>, %696, %cst_269 [1] : vector<8x32xf32> to vector<8xf32>
    %698 = vector.shape_cast %697 : vector<8xf32> to vector<8x1xf32>
    %cst_270 = arith.constant 3.200000e+01 : f32
    %699 = vector.broadcast %cst_270 : f32 to vector<8x1xf32>
    %700 = arith.divf %698, %699 : vector<8x1xf32>
    %701 = vector.broadcast %700 : vector<8x1xf32> to vector<8x32xf32>
    %702 = arith.subf %696, %701 : vector<8x32xf32>
    %703 = arith.mulf %702, %702 : vector<8x32xf32>
    %cst_271 = arith.constant dense<0.000000e+00> : vector<8xf32>
    %704 = vector.multi_reduction <add>, %703, %cst_271 [1] : vector<8x32xf32> to vector<8xf32>
    %705 = vector.shape_cast %704 : vector<8xf32> to vector<8x1xf32>
    %cst_272 = arith.constant 3.200000e+01 : f32
    %706 = vector.broadcast %cst_272 : f32 to vector<8x1xf32>
    %707 = arith.divf %705, %706 : vector<8x1xf32>
    %708 = vector.broadcast %700 : vector<8x1xf32> to vector<8x32xf32>
    %709 = arith.subf %696, %708 : vector<8x32xf32>
    %cst_273 = arith.constant 9.99999974E-6 : f32
    %710 = vector.broadcast %cst_273 : f32 to vector<8x1xf32>
    %711 = arith.addf %707, %710 : vector<8x1xf32>
    %712 = math.rsqrt %711 : vector<8x1xf32>
    %713 = vector.broadcast %712 : vector<8x1xf32> to vector<8x32xf32>
    %714 = arith.mulf %709, %713 : vector<8x32xf32>
    %715 = vector.broadcast %56 : vector<1x32xf32> to vector<8x32xf32>
    %716 = arith.mulf %714, %715 : vector<8x32xf32>
    %717 = vector.broadcast %57 : vector<1x32xf32> to vector<8x32xf32>
    %718 = arith.addf %716, %717 : vector<8x32xf32>
    %719 = arith.truncf %718 : vector<8x32xf32> to vector<8x32xbf16>
    %cst_274 = arith.constant dense<0.000000e+00> : vector<8x64xf32>
    %720 = tpu.matmul %719, %58, %cst_274 {dimension_numbers = #tpu.dot_dimension_numbers<[1], [0], [0], [1], [0, 0, 1, 1], [], []>} : vector<8x32xbf16>, vector<32x64xbf16>, vector<8x64xf32> -> vector<8x64xf32>
    %721 = vector.broadcast %59 : vector<1x64xf32> to vector<8x64xf32>
    %722 = arith.addf %720, %721 : vector<8x64xf32>
    %cst_275 = arith.constant 0.000000e+00 : f32
    %723 = vector.broadcast %cst_275 : f32 to vector<8x64xf32>
    %724 = arith.maximumf %722, %723 : vector<8x64xf32>
    %725 = arith.truncf %724 : vector<8x64xf32> to vector<8x64xbf16>
    %cst_276 = arith.constant dense<0.000000e+00> : vector<8x32xf32>
    %726 = tpu.matmul %725, %60, %cst_276 {dimension_numbers = #tpu.dot_dimension_numbers<[1], [0], [0], [1], [0, 0, 1, 1], [], []>} : vector<8x64xbf16>, vector<64x32xbf16>, vector<8x32xf32> -> vector<8x32xf32>
    %727 = vector.broadcast %61 : vector<1x32xf32> to vector<8x32xf32>
    %728 = arith.addf %726, %727 : vector<8x32xf32>
    %729 = arith.addf %718, %728 : vector<8x32xf32>
    %cst_277 = arith.constant dense<0.000000e+00> : vector<8xf32>
    %730 = vector.multi_reduction <add>, %729, %cst_277 [1] : vector<8x32xf32> to vector<8xf32>
    %731 = vector.shape_cast %730 : vector<8xf32> to vector<8x1xf32>
    %cst_278 = arith.constant 3.200000e+01 : f32
    %732 = vector.broadcast %cst_278 : f32 to vector<8x1xf32>
    %733 = arith.divf %731, %732 : vector<8x1xf32>
    %734 = vector.broadcast %733 : vector<8x1xf32> to vector<8x32xf32>
    %735 = arith.subf %729, %734 : vector<8x32xf32>
    %736 = arith.mulf %735, %735 : vector<8x32xf32>
    %cst_279 = arith.constant dense<0.000000e+00> : vector<8xf32>
    %737 = vector.multi_reduction <add>, %736, %cst_279 [1] : vector<8x32xf32> to vector<8xf32>
    %738 = vector.shape_cast %737 : vector<8xf32> to vector<8x1xf32>
    %cst_280 = arith.constant 3.200000e+01 : f32
    %739 = vector.broadcast %cst_280 : f32 to vector<8x1xf32>
    %740 = arith.divf %738, %739 : vector<8x1xf32>
    %741 = vector.broadcast %733 : vector<8x1xf32> to vector<8x32xf32>
    %742 = arith.subf %729, %741 : vector<8x32xf32>
    %cst_281 = arith.constant 9.99999974E-6 : f32
    %743 = vector.broadcast %cst_281 : f32 to vector<8x1xf32>
    %744 = arith.addf %740, %743 : vector<8x1xf32>
    %745 = math.rsqrt %744 : vector<8x1xf32>
    %746 = vector.broadcast %745 : vector<8x1xf32> to vector<8x32xf32>
    %747 = arith.mulf %742, %746 : vector<8x32xf32>
    %748 = vector.broadcast %62 : vector<1x32xf32> to vector<8x32xf32>
    %749 = arith.mulf %747, %748 : vector<8x32xf32>
    %750 = vector.broadcast %63 : vector<1x32xf32> to vector<8x32xf32>
    %751 = arith.addf %749, %750 : vector<8x32xf32>
    %752 = arith.truncf %751 : vector<8x32xf32> to vector<8x32xbf16>
    %cst_282 = arith.constant dense<0.000000e+00> : vector<8x128xf32>
    %753 = tpu.matmul %752, %64, %cst_282 {dimension_numbers = #tpu.dot_dimension_numbers<[1], [0], [0], [1], [0, 0, 1, 1], [], []>} : vector<8x32xbf16>, vector<32x128xbf16>, vector<8x128xf32> -> vector<8x128xf32>
    %754 = vector.broadcast %65 : vector<1x128xf32> to vector<8x128xf32>
    %755 = arith.addf %753, %754 : vector<8x128xf32>
    %c0_283 = arith.constant 0 : index
    %c0_284 = arith.constant 0 : index
    %c0_285 = arith.constant 0 : index
    %756 = vector.load %arg69[%c0_283, %c0_284, %c0_285] : memref<1x8x128xf32, #tpu.memory_space<vmem>>, vector<1x8x128xf32>
    %757 = vector.shape_cast %756 : vector<1x8x128xf32> to vector<8x128xf32>
    %758 = vector.shape_cast %755 : vector<8x128xf32> to vector<1x8x128xf32>
    tpu.vector_store %arg69[%c0_283, %c0_284, %c0_285], %758 {strides = array<i32>} : memref<1x8x128xf32, #tpu.memory_space<vmem>>, vector<1x8x128xf32>,
    return
  }
  func.func @transform_0(%arg0: i32) -> (i32, i32, i32) {
    %c0_i32 = arith.constant 0 : i32
    %c0_i32_0 = arith.constant 0 : i32
    %c0_i32_1 = arith.constant 0 : i32
    return %arg0, %c0_i32, %c0_i32_0 : i32, i32, i32
  }
  func.func @transform_1(%arg0: i32) -> (i32, i32, i32) {
    %c0_i32 = arith.constant 0 : i32
    %c0_i32_0 = arith.constant 0 : i32
    %c0_i32_1 = arith.constant 0 : i32
    return %arg0, %c0_i32, %c0_i32_0 : i32, i32, i32
  }
  func.func @transform_2(%arg0: i32) -> (i32, i32) {
    %c0_i32 = arith.constant 0 : i32
    %c0_i32_0 = arith.constant 0 : i32
    %c0_i32_1 = arith.constant 0 : i32
    return %c0_i32, %c0_i32_0 : i32, i32
  }
  func.func @transform_3(%arg0: i32) -> (i32, i32) {
    %c0_i32 = arith.constant 0 : i32
    %c0_i32_0 = arith.constant 0 : i32
    %c0_i32_1 = arith.constant 0 : i32
    return %c0_i32, %c0_i32_0 : i32, i32
  }
  func.func @transform_4(%arg0: i32) -> (i32, i32) {
    %c0_i32 = arith.constant 0 : i32
    %c0_i32_0 = arith.constant 0 : i32
    %c0_i32_1 = arith.constant 0 : i32
    return %c0_i32, %c0_i32_0 : i32, i32
  }
  func.func @transform_5(%arg0: i32) -> (i32, i32) {
    %c0_i32 = arith.constant 0 : i32
    %c0_i32_0 = arith.constant 0 : i32
    %c0_i32_1 = arith.constant 0 : i32
    return %c0_i32, %c0_i32_0 : i32, i32
  }
  func.func @transform_6(%arg0: i32) -> (i32, i32) {
    %c0_i32 = arith.constant 0 : i32
    %c0_i32_0 = arith.constant 0 : i32
    %c0_i32_1 = arith.constant 0 : i32
    return %c0_i32, %c0_i32_0 : i32, i32
  }
  func.func @transform_7(%arg0: i32) -> (i32, i32) {
    %c0_i32 = arith.constant 0 : i32
    %c0_i32_0 = arith.constant 0 : i32
    %c0_i32_1 = arith.constant 0 : i32
    return %c0_i32, %c0_i32_0 : i32, i32
  }
  func.func @transform_8(%arg0: i32) -> (i32, i32) {
    %c0_i32 = arith.constant 0 : i32
    %c0_i32_0 = arith.constant 0 : i32
    %c0_i32_1 = arith.constant 0 : i32
    return %c0_i32, %c0_i32_0 : i32, i32
  }
  func.func @transform_9(%arg0: i32) -> (i32, i32) {
    %c0_i32 = arith.constant 0 : i32
    %c0_i32_0 = arith.constant 0 : i32
    %c0_i32_1 = arith.constant 0 : i32
    return %c0_i32, %c0_i32_0 : i32, i32
  }
  func.func @transform_10(%arg0: i32) -> (i32, i32) {
    %c0_i32 = arith.constant 0 : i32
    %c0_i32_0 = arith.constant 0 : i32
    %c0_i32_1 = arith.constant 0 : i32
    return %c0_i32, %c0_i32_0 : i32, i32
  }
  func.func @transform_11(%arg0: i32) -> (i32, i32) {
    %c0_i32 = arith.constant 0 : i32
    %c0_i32_0 = arith.constant 0 : i32
    %c0_i32_1 = arith.constant 0 : i32
    return %c0_i32, %c0_i32_0 : i32, i32
  }
  func.func @transform_12(%arg0: i32) -> (i32, i32) {
    %c0_i32 = arith.constant 0 : i32
    %c0_i32_0 = arith.constant 0 : i32
    %c0_i32_1 = arith.constant 0 : i32
    return %c0_i32, %c0_i32_0 : i32, i32
  }
  func.func @transform_13(%arg0: i32) -> (i32, i32) {
    %c0_i32 = arith.constant 0 : i32
    %c0_i32_0 = arith.constant 0 : i32
    %c0_i32_1 = arith.constant 0 : i32
    return %c0_i32, %c0_i32_0 : i32, i32
  }
  func.func @transform_14(%arg0: i32) -> (i32, i32) {
    %c0_i32 = arith.constant 0 : i32
    %c0_i32_0 = arith.constant 0 : i32
    %c0_i32_1 = arith.constant 0 : i32
    return %c0_i32, %c0_i32_0 : i32, i32
  }
  func.func @transform_15(%arg0: i32) -> (i32, i32) {
    %c0_i32 = arith.constant 0 : i32
    %c0_i32_0 = arith.constant 0 : i32
    %c0_i32_1 = arith.constant 0 : i32
    return %c0_i32, %c0_i32_0 : i32, i32
  }
  func.func @transform_16(%arg0: i32) -> (i32, i32) {
    %c0_i32 = arith.constant 0 : i32
    %c0_i32_0 = arith.constant 0 : i32
    %c0_i32_1 = arith.constant 0 : i32
    return %c0_i32, %c0_i32_0 : i32, i32
  }
  func.func @transform_17(%arg0: i32) -> (i32, i32) {
    %c0_i32 = arith.constant 0 : i32
    %c0_i32_0 = arith.constant 0 : i32
    %c0_i32_1 = arith.constant 0 : i32
    return %c0_i32, %c0_i32_0 : i32, i32
  }
  func.func @transform_18(%arg0: i32) -> (i32, i32) {
    %c0_i32 = arith.constant 0 : i32
    %c0_i32_0 = arith.constant 0 : i32
    %c0_i32_1 = arith.constant 0 : i32
    return %c0_i32, %c0_i32_0 : i32, i32
  }
  func.func @transform_19(%arg0: i32) -> (i32, i32) {
    %c0_i32 = arith.constant 0 : i32
    %c0_i32_0 = arith.constant 0 : i32
    %c0_i32_1 = arith.constant 0 : i32
    return %c0_i32, %c0_i32_0 : i32, i32
  }
  func.func @transform_20(%arg0: i32) -> (i32, i32) {
    %c0_i32 = arith.constant 0 : i32
    %c0_i32_0 = arith.constant 0 : i32
    %c0_i32_1 = arith.constant 0 : i32
    return %c0_i32, %c0_i32_0 : i32, i32
  }
  func.func @transform_21(%arg0: i32) -> (i32, i32) {
    %c0_i32 = arith.constant 0 : i32
    %c0_i32_0 = arith.constant 0 : i32
    %c0_i32_1 = arith.constant 0 : i32
    return %c0_i32, %c0_i32_0 : i32, i32
  }
  func.func @transform_22(%arg0: i32) -> (i32, i32) {
    %c0_i32 = arith.constant 0 : i32
    %c0_i32_0 = arith.constant 0 : i32
    %c0_i32_1 = arith.constant 0 : i32
    return %c0_i32, %c0_i32_0 : i32, i32
  }
  func.func @transform_23(%arg0: i32) -> (i32, i32) {
    %c0_i32 = arith.constant 0 : i32
    %c0_i32_0 = arith.constant 0 : i32
    %c0_i32_1 = arith.constant 0 : i32
    return %c0_i32, %c0_i32_0 : i32, i32
  }
  func.func @transform_24(%arg0: i32) -> (i32, i32) {
    %c0_i32 = arith.constant 0 : i32
    %c0_i32_0 = arith.constant 0 : i32
    %c0_i32_1 = arith.constant 0 : i32
    return %c0_i32, %c0_i32_0 : i32, i32
  }
  func.func @transform_25(%arg0: i32) -> (i32, i32) {
    %c0_i32 = arith.constant 0 : i32
    %c0_i32_0 = arith.constant 0 : i32
    %c0_i32_1 = arith.constant 0 : i32
    return %c0_i32, %c0_i32_0 : i32, i32
  }
  func.func @transform_26(%arg0: i32) -> (i32, i32) {
    %c0_i32 = arith.constant 0 : i32
    %c0_i32_0 = arith.constant 0 : i32
    %c0_i32_1 = arith.constant 0 : i32
    return %c0_i32, %c0_i32_0 : i32, i32
  }
  func.func @transform_27(%arg0: i32) -> (i32, i32) {
    %c0_i32 = arith.constant 0 : i32
    %c0_i32_0 = arith.constant 0 : i32
    %c0_i32_1 = arith.constant 0 : i32
    return %c0_i32, %c0_i32_0 : i32, i32
  }
  func.func @transform_28(%arg0: i32) -> (i32, i32) {
    %c0_i32 = arith.constant 0 : i32
    %c0_i32_0 = arith.constant 0 : i32
    %c0_i32_1 = arith.constant 0 : i32
    return %c0_i32, %c0_i32_0 : i32, i32
  }
  func.func @transform_29(%arg0: i32) -> (i32, i32) {
    %c0_i32 = arith.constant 0 : i32
    %c0_i32_0 = arith.constant 0 : i32
    %c0_i32_1 = arith.constant 0 : i32
    return %c0_i32, %c0_i32_0 : i32, i32
  }
  func.func @transform_30(%arg0: i32) -> (i32, i32) {
    %c0_i32 = arith.constant 0 : i32
    %c0_i32_0 = arith.constant 0 : i32
    %c0_i32_1 = arith.constant 0 : i32
    return %c0_i32, %c0_i32_0 : i32, i32
  }
  func.func @transform_31(%arg0: i32) -> (i32, i32) {
    %c0_i32 = arith.constant 0 : i32
    %c0_i32_0 = arith.constant 0 : i32
    %c0_i32_1 = arith.constant 0 : i32
    return %c0_i32, %c0_i32_0 : i32, i32
  }
  func.func @transform_32(%arg0: i32) -> (i32, i32) {
    %c0_i32 = arith.constant 0 : i32
    %c0_i32_0 = arith.constant 0 : i32
    %c0_i32_1 = arith.constant 0 : i32
    return %c0_i32, %c0_i32_0 : i32, i32
  }
  func.func @transform_33(%arg0: i32) -> (i32, i32) {
    %c0_i32 = arith.constant 0 : i32
    %c0_i32_0 = arith.constant 0 : i32
    %c0_i32_1 = arith.constant 0 : i32
    return %c0_i32, %c0_i32_0 : i32, i32
  }
  func.func @transform_34(%arg0: i32) -> (i32, i32) {
    %c0_i32 = arith.constant 0 : i32
    %c0_i32_0 = arith.constant 0 : i32
    %c0_i32_1 = arith.constant 0 : i32
    return %c0_i32, %c0_i32_0 : i32, i32
  }
  func.func @transform_35(%arg0: i32) -> (i32, i32) {
    %c0_i32 = arith.constant 0 : i32
    %c0_i32_0 = arith.constant 0 : i32
    %c0_i32_1 = arith.constant 0 : i32
    return %c0_i32, %c0_i32_0 : i32, i32
  }
  func.func @transform_36(%arg0: i32) -> (i32, i32) {
    %c0_i32 = arith.constant 0 : i32
    %c0_i32_0 = arith.constant 0 : i32
    %c0_i32_1 = arith.constant 0 : i32
    return %c0_i32, %c0_i32_0 : i32, i32
  }
  func.func @transform_37(%arg0: i32) -> (i32, i32) {
    %c0_i32 = arith.constant 0 : i32
    %c0_i32_0 = arith.constant 0 : i32
    %c0_i32_1 = arith.constant 0 : i32
    return %c0_i32, %c0_i32_0 : i32, i32
  }
  func.func @transform_38(%arg0: i32) -> (i32, i32) {
    %c0_i32 = arith.constant 0 : i32
    %c0_i32_0 = arith.constant 0 : i32
    %c0_i32_1 = arith.constant 0 : i32
    return %c0_i32, %c0_i32_0 : i32, i32
  }
  func.func @transform_39(%arg0: i32) -> (i32, i32) {
    %c0_i32 = arith.constant 0 : i32
    %c0_i32_0 = arith.constant 0 : i32
    %c0_i32_1 = arith.constant 0 : i32
    return %c0_i32, %c0_i32_0 : i32, i32
  }
  func.func @transform_40(%arg0: i32) -> (i32, i32) {
    %c0_i32 = arith.constant 0 : i32
    %c0_i32_0 = arith.constant 0 : i32
    %c0_i32_1 = arith.constant 0 : i32
    return %c0_i32, %c0_i32_0 : i32, i32
  }
  func.func @transform_41(%arg0: i32) -> (i32, i32) {
    %c0_i32 = arith.constant 0 : i32
    %c0_i32_0 = arith.constant 0 : i32
    %c0_i32_1 = arith.constant 0 : i32
    return %c0_i32, %c0_i32_0 : i32, i32
  }
  func.func @transform_42(%arg0: i32) -> (i32, i32) {
    %c0_i32 = arith.constant 0 : i32
    %c0_i32_0 = arith.constant 0 : i32
    %c0_i32_1 = arith.constant 0 : i32
    return %c0_i32, %c0_i32_0 : i32, i32
  }
  func.func @transform_43(%arg0: i32) -> (i32, i32) {
    %c0_i32 = arith.constant 0 : i32
    %c0_i32_0 = arith.constant 0 : i32
    %c0_i32_1 = arith.constant 0 : i32
    return %c0_i32, %c0_i32_0 : i32, i32
  }
  func.func @transform_44(%arg0: i32) -> (i32, i32) {
    %c0_i32 = arith.constant 0 : i32
    %c0_i32_0 = arith.constant 0 : i32
    %c0_i32_1 = arith.constant 0 : i32
    return %c0_i32, %c0_i32_0 : i32, i32
  }
  func.func @transform_45(%arg0: i32) -> (i32, i32) {
    %c0_i32 = arith.constant 0 : i32
    %c0_i32_0 = arith.constant 0 : i32
    %c0_i32_1 = arith.constant 0 : i32
    return %c0_i32, %c0_i32_0 : i32, i32
  }
  func.func @transform_46(%arg0: i32) -> (i32, i32) {
    %c0_i32 = arith.constant 0 : i32
    %c0_i32_0 = arith.constant 0 : i32
    %c0_i32_1 = arith.constant 0 : i32
    return %c0_i32, %c0_i32_0 : i32, i32
  }
  func.func @transform_47(%arg0: i32) -> (i32, i32) {
    %c0_i32 = arith.constant 0 : i32
    %c0_i32_0 = arith.constant 0 : i32
    %c0_i32_1 = arith.constant 0 : i32
    return %c0_i32, %c0_i32_0 : i32, i32
  }
  func.func @transform_48(%arg0: i32) -> (i32, i32) {
    %c0_i32 = arith.constant 0 : i32
    %c0_i32_0 = arith.constant 0 : i32
    %c0_i32_1 = arith.constant 0 : i32
    return %c0_i32, %c0_i32_0 : i32, i32
  }
  func.func @transform_49(%arg0: i32) -> (i32, i32) {
    %c0_i32 = arith.constant 0 : i32
    %c0_i32_0 = arith.constant 0 : i32
    %c0_i32_1 = arith.constant 0 : i32
    return %c0_i32, %c0_i32_0 : i32, i32
  }
  func.func @transform_50(%arg0: i32) -> (i32, i32) {
    %c0_i32 = arith.constant 0 : i32
    %c0_i32_0 = arith.constant 0 : i32
    %c0_i32_1 = arith.constant 0 : i32
    return %c0_i32, %c0_i32_0 : i32, i32
  }
  func.func @transform_51(%arg0: i32) -> (i32, i32) {
    %c0_i32 = arith.constant 0 : i32
    %c0_i32_0 = arith.constant 0 : i32
    %c0_i32_1 = arith.constant 0 : i32
    return %c0_i32, %c0_i32_0 : i32, i32
  }
  func.func @transform_52(%arg0: i32) -> (i32, i32) {
    %c0_i32 = arith.constant 0 : i32
    %c0_i32_0 = arith.constant 0 : i32
    %c0_i32_1 = arith.constant 0 : i32
    return %c0_i32, %c0_i32_0 : i32, i32
  }
  func.func @transform_53(%arg0: i32) -> (i32, i32) {
    %c0_i32 = arith.constant 0 : i32
    %c0_i32_0 = arith.constant 0 : i32
    %c0_i32_1 = arith.constant 0 : i32
    return %c0_i32, %c0_i32_0 : i32, i32
  }
  func.func @transform_54(%arg0: i32) -> (i32, i32) {
    %c0_i32 = arith.constant 0 : i32
    %c0_i32_0 = arith.constant 0 : i32
    %c0_i32_1 = arith.constant 0 : i32
    return %c0_i32, %c0_i32_0 : i32, i32
  }
  func.func @transform_55(%arg0: i32) -> (i32, i32) {
    %c0_i32 = arith.constant 0 : i32
    %c0_i32_0 = arith.constant 0 : i32
    %c0_i32_1 = arith.constant 0 : i32
    return %c0_i32, %c0_i32_0 : i32, i32
  }
  func.func @transform_56(%arg0: i32) -> (i32, i32) {
    %c0_i32 = arith.constant 0 : i32
    %c0_i32_0 = arith.constant 0 : i32
    %c0_i32_1 = arith.constant 0 : i32
    return %c0_i32, %c0_i32_0 : i32, i32
  }
  func.func @transform_57(%arg0: i32) -> (i32, i32) {
    %c0_i32 = arith.constant 0 : i32
    %c0_i32_0 = arith.constant 0 : i32
    %c0_i32_1 = arith.constant 0 : i32
    return %c0_i32, %c0_i32_0 : i32, i32
  }
  func.func @transform_58(%arg0: i32) -> (i32, i32) {
    %c0_i32 = arith.constant 0 : i32
    %c0_i32_0 = arith.constant 0 : i32
    %c0_i32_1 = arith.constant 0 : i32
    return %c0_i32, %c0_i32_0 : i32, i32
  }
  func.func @transform_59(%arg0: i32) -> (i32, i32) {
    %c0_i32 = arith.constant 0 : i32
    %c0_i32_0 = arith.constant 0 : i32
    %c0_i32_1 = arith.constant 0 : i32
    return %c0_i32, %c0_i32_0 : i32, i32
  }
  func.func @transform_60(%arg0: i32) -> (i32, i32) {
    %c0_i32 = arith.constant 0 : i32
    %c0_i32_0 = arith.constant 0 : i32
    %c0_i32_1 = arith.constant 0 : i32
    return %c0_i32, %c0_i32_0 : i32, i32
  }
  func.func @transform_61(%arg0: i32) -> (i32, i32) {
    %c0_i32 = arith.constant 0 : i32
    %c0_i32_0 = arith.constant 0 : i32
    %c0_i32_1 = arith.constant 0 : i32
    return %c0_i32, %c0_i32_0 : i32, i32
  }
  func.func @transform_62(%arg0: i32) -> (i32, i32) {
    %c0_i32 = arith.constant 0 : i32
    %c0_i32_0 = arith.constant 0 : i32
    %c0_i32_1 = arith.constant 0 : i32
    return %c0_i32, %c0_i32_0 : i32, i32
  }
  func.func @transform_63(%arg0: i32) -> (i32, i32) {
    %c0_i32 = arith.constant 0 : i32
    %c0_i32_0 = arith.constant 0 : i32
    %c0_i32_1 = arith.constant 0 : i32
    return %c0_i32, %c0_i32_0 : i32, i32
  }
  func.func @transform_64(%arg0: i32) -> (i32, i32) {
    %c0_i32 = arith.constant 0 : i32
    %c0_i32_0 = arith.constant 0 : i32
    %c0_i32_1 = arith.constant 0 : i32
    return %c0_i32, %c0_i32_0 : i32, i32
  }
  func.func @transform_65(%arg0: i32) -> (i32, i32) {
    %c0_i32 = arith.constant 0 : i32
    %c0_i32_0 = arith.constant 0 : i32
    %c0_i32_1 = arith.constant 0 : i32
    return %c0_i32, %c0_i32_0 : i32, i32
  }
  func.func @transform_66(%arg0: i32) -> (i32, i32) {
    %c0_i32 = arith.constant 0 : i32
    %c0_i32_0 = arith.constant 0 : i32
    %c0_i32_1 = arith.constant 0 : i32
    return %c0_i32, %c0_i32_0 : i32, i32
  }
  func.func @transform_67(%arg0: i32) -> (i32, i32) {
    %c0_i32 = arith.constant 0 : i32
    %c0_i32_0 = arith.constant 0 : i32
    %c0_i32_1 = arith.constant 0 : i32
    return %c0_i32, %c0_i32_0 : i32, i32
  }
  func.func @transform_68(%arg0: i32) -> (i32, i32, i32) {
    %c0_i32 = arith.constant 0 : i32
    %c0_i32_0 = arith.constant 0 : i32
    %c0_i32_1 = arith.constant 0 : i32
    return %arg0, %c0_i32, %c0_i32_0 : i32, i32, i32
  }
}

</mosaic_0001>

<bundles_post_ra>
// kernel: tpu_custom_call.1
= control target key start
LH: loop header
LB: loop body
LE: loop exit
PB: predicated region body
PF: predicated region fallthrough
CT: control target
= control target key end

     0   :  { %s8330_s6 = smov 1   ;;  %s8331_s10 = smov 2   ;;  %s9957_s0 = inlined_call_operand.smem [shape: u32[69], index: -1, kind: input, shape index: {}] }
   0x1   :  { %s8467_s5 = sld [smem:[%s9957_s0]]   ;;  %s8332_s14 = smov 3  }
   0x2   :  { %s8472_s9 = sld [smem:[%s9957_s0 + %s8330_s6]]   ;;  %s8333_s18 = smov 4  }
   0x3   :  { %s8477_s13 = sld [smem:[%s9957_s0 + %s8331_s10]]   ;;  %s8334_s22 = smov 5  }
   0x4   :  { %s8482_s17 = sld [smem:[%s9957_s0 + %s8332_s14]]   ;;  %s8335_s26 = smov 6  }
   0x5   :  { %s8487_s21 = sld [smem:[%s9957_s0 + %s8333_s18]]   ;;  %s8336_s30 = smov 7  }
   0x6   :  { %s8492_s25 = sld [smem:[%s9957_s0 + %s8334_s22]]   ;;  %s8337_s4 = smov 8  }
   0x7   :  { %10084 = sst [smem:[#allocation92_spill]] %s8467_s5  ;;  %s8338_s10 = smov 9  }
   0x8   :  { %10085 = sst [smem:[#allocation93_spill]] %s8472_s9  ;;  %s8339_s15 = smov 10  }
   0x9   :  { %10086 = sst [smem:[#allocation94_spill]] %s8477_s13  ;;  %s8340_s20 = smov 11  }
   0xa   :  { %10087 = sst [smem:[#allocation95_spill]] %s8482_s17  ;;  %s8342_s1 = smov 13  }
   0xb   :  { %10088 = sst [smem:[#allocation96_spill]] %s8487_s21  ;;  %s8343_s7 = smov 14  }
   0xc   :  { %s8497_s29 = sld [smem:[%s9957_s0 + %s8335_s26]]   ;;  %s8341_s26 = smov 12  }
   0xd   :  { %s8502_s3 = sld [smem:[%s9957_s0 + %s8336_s30]]   ;;  %s8345_s22 = smov 16  }
   0xe   :  { %s8507_s8 = sld [smem:[%s9957_s0 + %s8337_s4]]   ;;  %s8346_s28 = smov 17  }
   0xf   :  { %s8512_s14 = sld [smem:[%s9957_s0 + %s8338_s10]]  }
  0x10   :  { %s8517_s19 = sld [smem:[%s9957_s0 + %s8339_s15]]   ;;  %s8344_s15 = smov 15  }
  0x11   :  { %s8522_s24 = sld [smem:[%s9957_s0 + %s8340_s20]]  }
  0x12   :  { %10089 = sst [smem:[#allocation97_spill]] %s8497_s29 }
  0x13   :  { %10090 = sst [smem:[#allocation98_spill]] %s8502_s3 }
  0x14   :  { %10091 = sst [smem:[#allocation99_spill]] %s8507_s8 }
  0x15   :  { %10092 = sst [smem:[#allocation100_spill]] %s8512_s14 }
  0x16   :  { %10093 = sst [smem:[#allocation101_spill]] %s8517_s19 }
  0x17   :  { %s8527_s30 = sld [smem:[%s9957_s0 + %s8341_s26]]  }
  0x18   :  { %s8532_s6 = sld [smem:[%s9957_s0 + %s8342_s1]]  }
  0x19   :  { %s8537_s12 = sld [smem:[%s9957_s0 + %s8343_s7]]   ;;  %s8347_s7 = smov 18  }
  0x1a   :  { %s8542_s20 = sld [smem:[%s9957_s0 + %s8344_s15]]   ;;  %s8348_s15 = smov 19  }
  0x1b   :  { %s8547_s27 = sld [smem:[%s9957_s0 + %s8345_s22]]   ;;  %s8349_s22 = smov 20  }
  0x1c   :  { %s8552_s4 = sld [smem:[%s9957_s0 + %s8346_s28]]   ;;  %s8350_s28 = smov 21  }
  0x1d   :  { %10094 = sst [smem:[#allocation102_spill]] %s8527_s30 }
  0x1e   :  { %10095 = sst [smem:[#allocation103_spill]] %s8532_s6 }
  0x1f   :  { %10096 = sst [smem:[#allocation104_spill]] %s8537_s12 }
  0x20   :  { %10097 = sst [smem:[#allocation105_spill]] %s8542_s20 }
  0x21   :  { %10098 = sst [smem:[#allocation106_spill]] %s8547_s27 }
  0x22   :  { %10099 = sst [smem:[#allocation107_spill]] %s8552_s4 }
  0x23   :  { %s8557_s9 = sld [smem:[%s9957_s0 + %s8347_s7]]   ;;  %s8351_s7 = smov 22  }
  0x24   :  { %s8562_s12 = sld [smem:[%s9957_s0 + %s8348_s15]]   ;;  %s8352_s15 = smov 23  }
  0x25   :  { %s8567_s27 = sld [smem:[%s9957_s0 + %s8349_s22]]   ;;  %s8353_s22 = smov 24  }
  0x26   :  { %s8572_s19 = sld [smem:[%s9957_s0 + %s8350_s28]]   ;;  %s8354_s28 = smov 25  }
  0x27   :  { %s8577_s8 = sld [smem:[%s9957_s0 + %s8351_s7]]   ;;  %s8355_s7 = smov 26  }
  0x28   :  { %s8582_s21 = sld [smem:[%s9957_s0 + %s8352_s15]]   ;;  %s8356_s15 = smov 27  }
  0x29   :  { %10100 = sst [smem:[#allocation108_spill]] %s8557_s9 }
  0x2a   :  { %10101 = sst [smem:[#allocation109_spill]] %s8562_s12 }
  0x2b   :  { %10102 = sst [smem:[#allocation110_spill]] %s8567_s27 }
  0x2c   :  { %10103 = sst [smem:[#allocation111_spill]] %s8572_s19 }
  0x2d   :  { %10104 = sst [smem:[#allocation112_spill]] %s8577_s8 }
  0x2e   :  { %s8587_s27 = sld [smem:[%s9957_s0 + %s8353_s22]]   ;;  %s8357_s22 = smov 28  }
  0x2f   :  { %s8592_s13 = sld [smem:[%s9957_s0 + %s8354_s28]]   ;;  %s8358_s28 = smov 29  }
  0x30   :  { %s8597_s8 = sld [smem:[%s9957_s0 + %s8355_s7]]   ;;  %s8359_s7 = smov 30  }
  0x31   :  { %s8602_s5 = sld [smem:[%s9957_s0 + %s8356_s15]]   ;;  %s8360_s15 = smov 31  }
  0x32   :  { %s8612_s19 = sld [smem:[%s9957_s0 + %s8358_s28]]   ;;  %s8362_s28 = smov 33  }
  0x33   :  { %s8632_s9 = sld [smem:[%s9957_s0 + %s8362_s28]]   ;;  %s8366_s28 = smov 37  }
  0x34   :  { %10105 = sst [smem:[#allocation113_spill]] %s8587_s27 }
  0x35   :  { %10106 = sst [smem:[#allocation114_spill]] %s8592_s13 }
  0x36   :  { %10107 = sst [smem:[#allocation115_spill]] %s8597_s8 }
  0x37   :  { %10108 = sst [smem:[#allocation116_spill]] %s8602_s5 }
  0x38   :  { %s8607_s27 = sld [smem:[%s9957_s0 + %s8357_s22]]   ;;  %s8361_s22 = smov 32  }
  0x39   :  { %s8617_s8 = sld [smem:[%s9957_s0 + %s8359_s7]]   ;;  %s8363_s7 = smov 34  }
  0x3a   :  { %s8622_s5 = sld [smem:[%s9957_s0 + %s8360_s15]]   ;;  %s8364_s15 = smov 35  }
  0x3b   :  { %10113 = sst [smem:[#allocation121_spill]] %s8632_s9 }
  0x3c   :  { %s8642_s20 = sld [smem:[%s9957_s0 + %s8364_s15]]   ;;  %s8368_s15 = smov 39  }
  0x3d   :  { %s8652_s30 = sld [smem:[%s9957_s0 + %s8366_s28]]   ;;  %s8370_s28 = smov 41  }
  0x3e   :  { %10109 = sst [smem:[#allocation117_spill]] %s8607_s27 }
  0x3f   :  { %10110 = sst [smem:[#allocation118_spill]] %s8617_s8 }
  0x40   :  { %10111 = sst [smem:[#allocation119_spill]] %s8622_s5 }
  0x41   :  { %s8627_s27 = sld [smem:[%s9957_s0 + %s8361_s22]]   ;;  %s8365_s22 = smov 36  }
  0x42   :  { %s8637_s8 = sld [smem:[%s9957_s0 + %s8363_s7]]   ;;  %s8367_s7 = smov 38  }
  0x43   :  { %10116 = sst [smem:[#allocation124_spill]] %s8652_s30 }
  0x44   :  { %s8662_s14 = sld [smem:[%s9957_s0 + %s8368_s15]]   ;;  %s8372_s15 = smov 43  }
  0x45   :  { %s8672_s30 = sld [smem:[%s9957_s0 + %s8370_s28]]   ;;  %s8374_s28 = smov 45  }
  0x47   :  { %10112 = sst [smem:[#allocation120_spill]] %s8627_s27 }
  0x48   :  { %10114 = sst [smem:[#allocation122_spill]] %s8637_s8 }
  0x49   :  { %s8647_s27 = sld [smem:[%s9957_s0 + %s8365_s22]]   ;;  %s8369_s22 = smov 40  }
  0x4a   :  { %s8657_s8 = sld [smem:[%s9957_s0 + %s8367_s7]]   ;;  %s8371_s7 = smov 42  }
  0x4b   :  { %10118 = sst [smem:[#allocation126_spill]] %s8662_s14 }
  0x4c   :  { %10119 = sst [smem:[#allocation127_spill]] %s8672_s30 }
  0x4d   :  { %s8677_s29 = sld [smem:[%s9957_s0 + %s8371_s7]]   ;;  %s8375_s7 = smov 46  }
  0x4e   :  { %s8682_s14 = sld [smem:[%s9957_s0 + %s8372_s15]]   ;;  %s8376_s15 = smov 47  }
  0x4f   :  { %10115 = sst [smem:[#allocation123_spill]] %s8647_s27 }
  0x50   :  { %10117 = sst [smem:[#allocation125_spill]] %s8657_s8 }
  0x51   :  { %s8667_s27 = sld [smem:[%s9957_s0 + %s8369_s22]]   ;;  %s8373_s22 = smov 44  }
  0x52   :  { %s8687_s17 = sld [smem:[%s9957_s0 + %s8373_s22]]   ;;  %s8377_s22 = smov 48  }
  0x53   :  { %10120 = sst [smem:[#allocation128_spill]] %s8677_s29 }
  0x54   :  { %10121 = sst [smem:[#allocation129_spill]] %s8682_s14 }
  0x55   :  { %s8692_s30 = sld [smem:[%s9957_s0 + %s8374_s28]]   ;;  %s8378_s28 = smov 49  }
  0x56   :  { %s8697_s29 = sld [smem:[%s9957_s0 + %s8375_s7]]   ;;  %s8379_s7 = smov 50  }
  0x57   :  { %s8702_s14 = sld [smem:[%s9957_s0 + %s8376_s15]]   ;;  %s8380_s15 = smov 51  }
  0x58   :  { %10122 = sst [smem:[#allocation130_spill]] %s8687_s17 }
  0x59   :  { %s8707_s17 = sld [smem:[%s9957_s0 + %s8377_s22]]   ;;  %s8381_s22 = smov 52  }
  0x5b   :  { %10123 = sst [smem:[#allocation131_spill]] %s8692_s30 }
  0x5c   :  { %10124 = sst [smem:[#allocation132_spill]] %s8697_s29 }
  0x5d   :  { %10125 = sst [smem:[#allocation133_spill]] %s8702_s14 }
  0x5e   :  { %s8712_s30 = sld [smem:[%s9957_s0 + %s8378_s28]]   ;;  %s8382_s28 = smov 53  }
  0x5f   :  { %10126 = sst [smem:[#allocation134_spill]] %s8707_s17 }
  0x60   :  { %s8717_s29 = sld [smem:[%s9957_s0 + %s8379_s7]]   ;;  %s8383_s7 = smov 54  }
  0x61   :  { %s8722_s14 = sld [smem:[%s9957_s0 + %s8380_s15]]   ;;  %s8384_s15 = smov 55  }
  0x62   :  { %s8727_s17 = sld [smem:[%s9957_s0 + %s8381_s22]]   ;;  %s8385_s22 = smov 56  }
  0x64   :  { %10127 = sst [smem:[#allocation135_spill]] %s8712_s30 }
  0x65   :  { %s8732_s30 = sld [smem:[%s9957_s0 + %s8382_s28]]   ;;  %s8386_s28 = smov 57  }
  0x66   :  { %10128 = sst [smem:[#allocation136_spill]] %s8717_s29 }
  0x67   :  { %10129 = sst [smem:[#allocation137_spill]] %s8722_s14 }
  0x68   :  { %10130 = sst [smem:[#allocation138_spill]] %s8727_s17 }
  0x69   :  { %s8737_s29 = sld [smem:[%s9957_s0 + %s8383_s7]]   ;;  %s8387_s7 = smov 58  }
  0x6a   :  { %s8742_s14 = sld [smem:[%s9957_s0 + %s8384_s15]]   ;;  %s8388_s15 = smov 59  }
  0x6b   :  { %10131 = sst [smem:[#allocation139_spill]] %s8732_s30 }
  0x6c   :  { %s8747_s17 = sld [smem:[%s9957_s0 + %s8385_s22]]   ;;  %s8389_s22 = smov 60  }
  0x6d   :  { %s8752_s30 = sld [smem:[%s9957_s0 + %s8386_s28]]   ;;  %s8390_s28 = smov 61  }
  0x6f   :  { %10132 = sst [smem:[#allocation140_spill]] %s8737_s29 }
  0x70   :  { %10133 = sst [smem:[#allocation141_spill]] %s8742_s14 }
  0x71   :  { %s8757_s29 = sld [smem:[%s9957_s0 + %s8387_s7]]   ;;  %s8391_s7 = smov 62  }
  0x72   :  { %10134 = sst [smem:[#allocation142_spill]] %s8747_s17 }
  0x73   :  { %10135 = sst [smem:[#allocation143_spill]] %s8752_s30 }
  0x74   :  { %s8762_s14 = sld [smem:[%s9957_s0 + %s8388_s15]]   ;;  %s8392_s15 = smov 63  }
  0x75   :  { %s8767_s17 = sld [smem:[%s9957_s0 + %s8389_s22]]   ;;  %s8393_s22 = smov 64  }
  0x76   :  { %s8772_s30 = sld [smem:[%s9957_s0 + %s8390_s28]]   ;;  %s8394_s28 = smov 65  }
  0x77   :  { %10136 = sst [smem:[#allocation144_spill]] %s8757_s29 }
  0x78   :  { %s8777_s29 = sld [smem:[%s9957_s0 + %s8391_s7]]   ;;  %s8395_s7 = smov 66  }
  0x7a   :  { %10137 = sst [smem:[#allocation145_spill]] %s8762_s14 }
  0x7b   :  { %10138 = sst [smem:[#allocation146_spill]] %s8767_s17 }
  0x7c   :  { %10139 = sst [smem:[#allocation147_spill]] %s8772_s30 }
  0x7d   :  { %s8782_s14 = sld [smem:[%s9957_s0 + %s8392_s15]]   ;;  %s8396_s15 = smov 67  }
  0x7e   :  { %10140 = sst [smem:[#allocation148_spill]] %s8777_s29 }
  0x7f   :  { %s8787_s17 = sld [smem:[%s9957_s0 + %s8393_s22]]   ;;  %s8397_s22 = smov 68  }
  0x80   :  { %s8792_s30 = sld [smem:[%s9957_s0 + %s8394_s28]]  }
  0x81   :  { %s8797_s29 = sld [smem:[%s9957_s0 + %s8395_s7]]  }
  0x83   :  { %10141 = sst [smem:[#allocation149_spill]] %s8782_s14 }
  0x84   :  { %s8802_s14 = sld [smem:[%s9957_s0 + %s8396_s15]]  }
  0x85   :  { %10142 = sst [smem:[#allocation150_spill]] %s8787_s17 }
  0x86   :  { %s8807_s17 = sld [smem:[%s9957_s0 + %s8397_s22]]  }
  0x87   :  { %142 = vsyncpa [#allocation3], 0 }
  0x88   :  { %143 = vsyncpa [#allocation6], 0 }
  0x89   :  { %144 = vsyncpa [#allocation9], 0 }
  0x8a   :  { %145 = vsyncpa [#allocation12], 0 }
  0x8b   :  { %146 = vsyncpa [#allocation15], 0 }
  0x8c   :  { %147 = vsyncpa [#allocation18], 0 }
  0x8d   :  { %148 = vsyncpa [#allocation21], 0 }
  0x8e   :  { %149 = vsyncpa [#allocation24], 0 }
  0x8f   :  { %150 = vsyncpa [#allocation27], 0 }
  0x90   :  { %151 = vsyncpa [#allocation30], 0 }
  0x91   :  { %152 = vsyncpa [#allocation33], 0 }
  0x92   :  { %153 = vsyncpa [#allocation36], 0 }
  0x93   :  { %154 = vsyncpa [#allocation39], 0 }
  0x94   :  { %155 = vsyncpa [#allocation42], 0 }
  0x95   :  { %156 = vsyncpa [#allocation45], 0 }
  0x96   :  { %157 = vsyncpa [#allocation48], 0 }
  0x97   :  { %158 = vsyncpa [#allocation51], 0 }
  0x98   :  { %159 = vsyncpa [#allocation54], 0 }
  0x99   :  { %160 = vsyncpa [#allocation57], 0 }
  0x9a   :  { %161 = vsyncpa [#allocation60], 0 }
  0x9b   :  { %162 = vsyncpa [#allocation63], 0 }
  0x9c   :  { %163 = vsyncpa [#allocation66], 0 }
  0x9d   :  { %164 = vsyncpa [#allocation4], 0 }
  0x9e   :  { %166 = vsyncpa [#allocation4 + $0x1], 0  ;;  %s8809_s0 = smov 0   ;;  %s8811_s28 = smov 0  }
  0x9f   :  { %s8813_s1 = smov 0   ;;  %s8815_s2 = smov 0  }
  0xa0 LB: > { %s10143_s13 = sld [smem:[#allocation114_spill]]  ;;  %s8830_s7 = sadd.s32 4294967295, %s8328_s2   ;;  %s8328_s2 = sphi %s8815_s2, %s10240_s2   ;;  %s8324_s1 = sphi %s8813_s1, %s10245_s1   ;;  %s8320_s28 = sphi %s8811_s28, %s10244_s28   ;;  %s8316_s0 = sphi %s8809_s0, %s10243_s0  }
  0xa1   : > { %s10144_s12 = sld [smem:[#allocation109_spill]]  ;;  %s5949_s10 = sadd.s32 4294967294, %s8328_s2  }
  0xa2   : > { %s10145_s9 = sld [smem:[#allocation121_spill]]  ;;  %s8834_s11 = sadd.s32 1, %s8328_s2  }
  0xa3   : > { %s10146_s8 = sld [smem:[#allocation125_spill]]  ;;  %s1617_s15 = sadd.s32 1, %s8324_s1 }
  0xa4   : > { %s10147_s6 = sld [smem:[#allocation103_spill]]  ;;  %s1614_s16 = ssub.s32 %s8328_s2, %s8834_s11 }
  0xa5   : > { %s10148_s5 = sld [smem:[#allocation119_spill]]  ;;  %p1627_p0 = scmp.ne.s32.totalorder %s8324_s1, %s8320_s28 }
  0xa6   : > { %s10149_s4 = sld [smem:[#allocation107_spill]]  ;;  %p1615_p1 = scmp.eq.s32.totalorder %s1614_s16, 0 }
  0xa7   : > { %s10150_s3 = sld [smem:[#allocation98_spill]]  ;;  %p1628_p2 = scmp.eq.s32.totalorder %s8830_s7, 1 }
  0xa8   : > { %10151 = sst [smem:[#allocation151_spill]] %s8316_s0  ;;  %p1633_p3 = scmp.ne.s32.totalorder %s8320_s28, %s8316_s0 }
  0xa9   : > { %10152 = sst [smem:[#allocation152_spill]] %s8324_s1  ;;  %p1634_p4 = scmp.eq.s32.totalorder %s5949_s10, 1 }
  0xaa   : > { %10153 = sst [smem:[#allocation153_spill]] %s8328_s2  ;;  %p8847_p5 = por %p1628_p2, %p1627_p0 }
  0xab   : > { %10154 = sst [smem:[#allocation154_spill]] %s8834_s11  ;;  %p8851_p6 = por %p1634_p4, %p1633_p3 }
  0xac   : > { %s8845_s18 = scalar_select %p1615_p1, %s8324_s1, %s1617_s15  }
  0xad   : > { %s10156_s22 = scalar_select %p8847_p5, 1, 0 }
  0xae   : > { %10155 = sst [smem:[#allocation155_spill]] %s8845_s18  ;;  %p5950_p7 = scmp.ge.s32.totalorder %s8328_s2, 1 }
  0xaf   : > { %10157 = sst [smem:[#allocation156_spill]] %s10156_s22  ;;  %p1641_p8 = scmp.lt.s32.totalorder %s8328_s2, 3 }
  0xb0   : > { %s10158_s23 = scalar_select %p8851_p6, 1, 0 }
  0xb1   : > { %p8857_p9 = pnand %p5950_p7, %p1641_p8 }
  0xb2   : > { %10159 = sst [smem:[#allocation157_spill]] %s10158_s23  ;;  %p6565_p10 = scmp.eq.s32.totalorder (!%p8857_p9), %s8830_s7, 0 }
  0xb3   : > { %1645 = sbr.rel (%p8857_p9) target bundleno = 745 (0x2e9), region = 12  ;;  %s1671_s10 = sshll.u32 (!%p8857_p9), %s8492_s25, 4  ;;  %s1672_s10 = int_to_ptr.hbm [resolvable:$true] %s1671_s10 }
  0xb4   : > { %s8398_s15 = smov (!%p8857_p9), [#allocation5]   ;;  %s1695_s18 = sshll.u32 (!%p8857_p9), %s10150_s3, 4  ;;  %s8866_s18 = int_to_ptr.hbm [resolvable:$true] %s1695_s18 }
  0xb5   : > { %s1673_s16 = sshll.u32 (!%p8857_p9), %s8398_s15, 4  ;;  %s6974_s1 = sshra.s32 (!%p8857_p9), %s1672_s10, 4  ;;  %s1674_s16 = int_to_ptr.vmem [resolvable:$true] %s1673_s16  ;;  %s6975_s1 = int_to_ptr.hbm [resolvable:$true] %s6974_s1 }
  0xb6   : > { %s6976_s11 = scalar_lea.hbm (!%p8857_p9), %s6975_s1, 1  ;;  %s6980_s23 = scalar_lea.hbm (!%p8857_p9), %s8492_s25, 1 }
  0xb7   : > { %p6977_p11 = scmp.ne.s32.totalorder (!%p8857_p9), %s6975_s1, %s6976_s11  ;;  %p6981_p0 = scmp.lt.s32.totalorder (!%p8857_p9), %s6975_s1, %s8492_s25 }
  0xb8   : > { %p6982_p1 = scmp.lt.s32.totalorder %s6980_s23, %s6976_s11 }
  0xb9   : > { %p6978_p12 = pnand %p6977_p11, %p6565_p10 }
  0xba   : > { %p6983_p2 = por %p6982_p1, %p6981_p0 }
  0xbb   : > { %p6979_p13 = pneg %p6978_p12 }
  0xbd   : > { %p6984_p3 = pnand %p6983_p2, %p6979_p13 }
  0xbf   : > { %6987 = shalt.err (!%p6984_p3)
}
  0xc0   : > { %6390 = dma.hbm_to_vmem [thread:$0]  (%p6565_p10), %s1672_s10, 16, %s1674_s16, [#allocation6]  }
  0xc1   : > { %s1725_s15 = sshll.u32 %s8522_s24, 4  ;;  %s8399_s0 = smov [#allocation8]   ;;  %s8875_s15 = int_to_ptr.hbm [resolvable:$true] %s1725_s15 }
  0xc2   : > { %s1697_s2 = sshll.u32 %s8399_s0, 4  ;;  %s7002_s22 = sshra.s32 %s8866_s18, 4  ;;  %s1698_s2 = int_to_ptr.vmem [resolvable:$true] %s1697_s2  ;;  %s7003_s22 = int_to_ptr.hbm [resolvable:$true] %s7002_s22 }
  0xc3   : > { %s7004_s1 = scalar_lea.hbm %s7003_s22, 1  ;;  %s7008_s11 = scalar_lea.hbm %s10150_s3, 1 }
  0xc4   : > { %p7005_p4 = scmp.ne.s32.totalorder %s7003_s22, %s7004_s1  ;;  %p7009_p11 = scmp.lt.s32.totalorder %s7003_s22, %s10150_s3 }
  0xc5   : > { %p7010_p12 = scmp.lt.s32.totalorder %s7008_s11, %s7004_s1 }
  0xc6   : > { %p7006_p7 = pnand %p7005_p4, %p6565_p10 }
  0xc7   : > { %p7011_p13 = por %p7010_p12, %p7009_p11 }
  0xc8   : > { %p7007_p8 = pneg %p7006_p7 }
  0xca   : > { %p7012_p0 = pnand %p7011_p13, %p7007_p8 }
  0xcc   : > { %7015 = shalt.err (!%p7012_p0)
}
  0xcd   : > { %6394 = dma.hbm_to_vmem [thread:$0]  (%p6565_p10), %s8866_s18, 16, %s1698_s2, [#allocation9]  }
  0xce   : > { %s8400_s0 = smov [#allocation11]   ;;  %s1749_s10 = sshll.u32 %s10147_s6, 4  ;;  %s8886_s10 = int_to_ptr.hbm [resolvable:$true] %s1749_s10 }
  0xcf   : > { %s1727_s23 = sshll.u32 %s8400_s0, 4  ;;  %s7030_s22 = sshra.s32 %s8875_s15, 4  ;;  %s1728_s23 = int_to_ptr.vmem [resolvable:$true] %s1727_s23  ;;  %s7031_s22 = int_to_ptr.hbm [resolvable:$true] %s7030_s22 }
  0xd0   : > { %s7032_s16 = scalar_lea.hbm %s7031_s22, 1  ;;  %s7036_s1 = scalar_lea.hbm %s8522_s24, 1 }
  0xd1   : > { %p7033_p1 = scmp.ne.s32.totalorder %s7031_s22, %s7032_s16  ;;  %p7037_p4 = scmp.lt.s32.totalorder %s7031_s22, %s8522_s24 }
  0xd2   : > { %p7038_p7 = scmp.lt.s32.totalorder %s7036_s1, %s7032_s16 }
  0xd3   : > { %p7034_p2 = pnand %p7033_p1, %p6565_p10 }
  0xd4   : > { %p7039_p8 = por %p7038_p7, %p7037_p4 }
  0xd5   : > { %p7035_p3 = pneg %p7034_p2 }
  0xd7   : > { %p7040_p11 = pnand %p7039_p8, %p7035_p3 }
  0xd9   : > { %7043 = shalt.err (!%p7040_p11)
}
  0xda   : > { %6398 = dma.hbm_to_vmem [thread:$0]  (%p6565_p10), %s8875_s15, 16, %s1728_s23, [#allocation12]  }
  0xdb   : > { %s1779_s2 = sshll.u32 %s10149_s4, 4  ;;  %s8401_s18 = smov [#allocation14]   ;;  %s8897_s2 = int_to_ptr.hbm [resolvable:$true] %s1779_s2 }
  0xdc   : > { %s1751_s11 = sshll.u32 %s8401_s18, 4  ;;  %s7058_s0 = sshra.s32 %s8886_s10, 4  ;;  %s1752_s11 = int_to_ptr.vmem [resolvable:$true] %s1751_s11  ;;  %s7059_s0 = int_to_ptr.hbm [resolvable:$true] %s7058_s0 }
  0xdd   : > { %s7060_s22 = scalar_lea.hbm %s7059_s0, 1  ;;  %s7064_s16 = scalar_lea.hbm %s10147_s6, 1 }
  0xde   : > { %p7061_p12 = scmp.ne.s32.totalorder %s7059_s0, %s7060_s22  ;;  %p7065_p1 = scmp.lt.s32.totalorder %s7059_s0, %s10147_s6 }
  0xdf   : > { %p7066_p2 = scmp.lt.s32.totalorder %s7064_s16, %s7060_s22 }
  0xe0   : > { %p7062_p13 = pnand %p7061_p12, %p6565_p10 }
  0xe1   : > { %p7067_p3 = por %p7066_p2, %p7065_p1 }
  0xe2   : > { %p7063_p0 = pneg %p7062_p13 }
  0xe4   : > { %p7068_p4 = pnand %p7067_p3, %p7063_p0 }
  0xe6   : > { %7071 = shalt.err (!%p7068_p4)
}
  0xe7   : > { %6402 = dma.hbm_to_vmem [thread:$0]  (%p6565_p10), %s8886_s10, 16, %s1752_s11, [#allocation15]  }
  0xe8   : > { %s8402_s15 = smov [#allocation17]   ;;  %s1803_s1 = sshll.u32 %s10144_s12, 4  ;;  %s8908_s1 = int_to_ptr.hbm [resolvable:$true] %s1803_s1 }
  0xe9   : > { %s1781_s23 = sshll.u32 %s8402_s15, 4  ;;  %s7086_s18 = sshra.s32 %s8897_s2, 4  ;;  %s1782_s23 = int_to_ptr.vmem [resolvable:$true] %s1781_s23  ;;  %s7087_s18 = int_to_ptr.hbm [resolvable:$true] %s7086_s18 }
  0xea   : > { %s7088_s0 = scalar_lea.hbm %s7087_s18, 1  ;;  %s7092_s22 = scalar_lea.hbm %s10149_s4, 1 }
  0xeb   : > { %p7089_p7 = scmp.ne.s32.totalorder %s7087_s18, %s7088_s0  ;;  %p7093_p12 = scmp.lt.s32.totalorder %s7087_s18, %s10149_s4 }
  0xec   : > { %p7094_p13 = scmp.lt.s32.totalorder %s7092_s22, %s7088_s0 }
  0xed   : > { %p7090_p8 = pnand %p7089_p7, %p6565_p10 }
  0xee   : > { %p7095_p0 = por %p7094_p13, %p7093_p12 }
  0xef   : > { %p7091_p11 = pneg %p7090_p8 }
  0xf1   : > { %p7096_p1 = pnand %p7095_p0, %p7091_p11 }
  0xf3   : > { %7099 = shalt.err (!%p7096_p1)
}
  0xf4   : > { %6406 = dma.hbm_to_vmem [thread:$0]  (%p6565_p10), %s8897_s2, 16, %s1782_s23, [#allocation18]  }
  0xf5   : > { %s1833_s10 = sshll.u32 %s8582_s21, 4  ;;  %s8403_s11 = smov [#allocation20]   ;;  %s8919_s10 = int_to_ptr.hbm [resolvable:$true] %s1833_s10 }
  0xf6   : > { %s1805_s16 = sshll.u32 %s8403_s11, 4  ;;  %s7114_s15 = sshra.s32 %s8908_s1, 4  ;;  %s1806_s16 = int_to_ptr.vmem [resolvable:$true] %s1805_s16  ;;  %s7115_s15 = int_to_ptr.hbm [resolvable:$true] %s7114_s15 }
  0xf7   : > { %s7116_s18 = scalar_lea.hbm %s7115_s15, 1  ;;  %s7120_s0 = scalar_lea.hbm %s10144_s12, 1 }
  0xf8   : > { %p7117_p2 = scmp.ne.s32.totalorder %s7115_s15, %s7116_s18  ;;  %p7121_p7 = scmp.lt.s32.totalorder %s7115_s15, %s10144_s12 }
  0xf9   : > { %p7122_p8 = scmp.lt.s32.totalorder %s7120_s0, %s7116_s18 }
  0xfa   : > { %p7118_p3 = pnand %p7117_p2, %p6565_p10 }
  0xfb   : > { %p7123_p11 = por %p7122_p8, %p7121_p7 }
  0xfc   : > { %p7119_p4 = pneg %p7118_p3 }
  0xfe   : > { %p7124_p12 = pnand %p7123_p11, %p7119_p4 }
 0x100   : > { %7127 = shalt.err (!%p7124_p12)
}
 0x101   : > { %6410 = dma.hbm_to_vmem [thread:$0]  (%p6565_p10), %s8908_s1, 16, %s1806_s16, [#allocation21]  }
 0x102   : > { %s8404_s2 = smov [#allocation23]   ;;  %s1857_s22 = sshll.u32 %s10143_s13, 4  ;;  %s8930_s22 = int_to_ptr.hbm [resolvable:$true] %s1857_s22 }
 0x103   : > { %s1835_s23 = sshll.u32 %s8404_s2, 4  ;;  %s7142_s11 = sshra.s32 %s8919_s10, 4  ;;  %s1836_s23 = int_to_ptr.vmem [resolvable:$true] %s1835_s23  ;;  %s7143_s11 = int_to_ptr.hbm [resolvable:$true] %s7142_s11 }
 0x104   : > { %s7144_s15 = scalar_lea.hbm %s7143_s11, 1  ;;  %s7148_s18 = scalar_lea.hbm %s8582_s21, 1 }
 0x105   : > { %p7145_p13 = scmp.ne.s32.totalorder %s7143_s11, %s7144_s15  ;;  %p7149_p2 = scmp.lt.s32.totalorder %s7143_s11, %s8582_s21 }
 0x106   : > { %p7150_p3 = scmp.lt.s32.totalorder %s7148_s18, %s7144_s15 }
 0x107   : > { %p7146_p0 = pnand %p7145_p13, %p6565_p10 }
 0x108   : > { %p7151_p4 = por %p7150_p3, %p7149_p2 }
 0x109   : > { %p7147_p1 = pneg %p7146_p0 }
 0x10b   : > { %p7152_p7 = pnand %p7151_p4, %p7147_p1 }
 0x10d   : > { %7155 = shalt.err (!%p7152_p7)
}
 0x10e   : > { %6414 = dma.hbm_to_vmem [thread:$0]  (%p6565_p10), %s8919_s10, 16, %s1836_s23, [#allocation24]  }
 0x10f   : > { %s1887_s1 = sshll.u32 %s8612_s19, 4  ;;  %s8405_s16 = smov [#allocation26]   ;;  %s8941_s1 = int_to_ptr.hbm [resolvable:$true] %s1887_s1 }
 0x110   : > { %s1859_s0 = sshll.u32 %s8405_s16, 4  ;;  %s7170_s2 = sshra.s32 %s8930_s22, 4  ;;  %s1860_s0 = int_to_ptr.vmem [resolvable:$true] %s1859_s0  ;;  %s7171_s2 = int_to_ptr.hbm [resolvable:$true] %s7170_s2 }
 0x111   : > { %s7172_s11 = scalar_lea.hbm %s7171_s2, 1  ;;  %s7176_s15 = scalar_lea.hbm %s10143_s13, 1 }
 0x112   : > { %p7173_p8 = scmp.ne.s32.totalorder %s7171_s2, %s7172_s11  ;;  %p7177_p13 = scmp.lt.s32.totalorder %s7171_s2, %s10143_s13 }
 0x113   : > { %p7178_p0 = scmp.lt.s32.totalorder %s7176_s15, %s7172_s11 }
 0x114   : > { %p7174_p11 = pnand %p7173_p8, %p6565_p10 }
 0x115   : > { %p7179_p1 = por %p7178_p0, %p7177_p13 }
 0x116   : > { %p7175_p12 = pneg %p7174_p11 }
 0x118   : > { %p7180_p2 = pnand %p7179_p1, %p7175_p12 }
 0x11a   : > { %7183 = shalt.err (!%p7180_p2)
}
 0x11b   : > { %6418 = dma.hbm_to_vmem [thread:$0]  (%p6565_p10), %s8930_s22, 16, %s1860_s0, [#allocation27]  }
 0x11c   : > { %s8406_s10 = smov [#allocation29]   ;;  %s1911_s18 = sshll.u32 %s10148_s5, 4  ;;  %s8952_s18 = int_to_ptr.hbm [resolvable:$true] %s1911_s18 }
 0x11d   : > { %s1889_s23 = sshll.u32 %s8406_s10, 4  ;;  %s7198_s16 = sshra.s32 %s8941_s1, 4  ;;  %s1890_s23 = int_to_ptr.vmem [resolvable:$true] %s1889_s23  ;;  %s7199_s16 = int_to_ptr.hbm [resolvable:$true] %s7198_s16 }
 0x11e   : > { %s7200_s2 = scalar_lea.hbm %s7199_s16, 1  ;;  %s7204_s11 = scalar_lea.hbm %s8612_s19, 1 }
 0x11f   : > { %p7201_p3 = scmp.ne.s32.totalorder %s7199_s16, %s7200_s2  ;;  %p7205_p8 = scmp.lt.s32.totalorder %s7199_s16, %s8612_s19 }
 0x120   : > { %p7206_p11 = scmp.lt.s32.totalorder %s7204_s11, %s7200_s2 }
 0x121   : > { %p7202_p4 = pnand %p7201_p3, %p6565_p10 }
 0x122   : > { %p7207_p12 = por %p7206_p11, %p7205_p8 }
 0x123   : > { %p7203_p7 = pneg %p7202_p4 }
 0x125   : > { %p7208_p13 = pnand %p7207_p12, %p7203_p7 }
 0x127   : > { %7211 = shalt.err (!%p7208_p13)
}
 0x128   : > { %6422 = dma.hbm_to_vmem [thread:$0]  (%p6565_p10), %s8941_s1, 16, %s1890_s23, [#allocation30]  }
 0x129   : > { %s1937_s22 = sshll.u32 %s10145_s9, 4  ;;  %s8407_s0 = smov [#allocation32]   ;;  %s8963_s22 = int_to_ptr.hbm [resolvable:$true] %s1937_s22 }
 0x12a   : > { %s1913_s15 = sshll.u32 %s8407_s0, 4  ;;  %s7226_s10 = sshra.s32 %s8952_s18, 4  ;;  %s1914_s15 = int_to_ptr.vmem [resolvable:$true] %s1913_s15  ;;  %s7227_s10 = int_to_ptr.hbm [resolvable:$true] %s7226_s10 }
 0x12b   : > { %s7228_s16 = scalar_lea.hbm %s7227_s10, 1  ;;  %s7232_s2 = scalar_lea.hbm %s10148_s5, 1 }
 0x12c   : > { %p7229_p0 = scmp.ne.s32.totalorder %s7227_s10, %s7228_s16  ;;  %p7233_p3 = scmp.lt.s32.totalorder %s7227_s10, %s10148_s5 }
 0x12d   : > { %p7234_p4 = scmp.lt.s32.totalorder %s7232_s2, %s7228_s16 }
 0x12e   : > { %p7230_p1 = pnand %p7229_p0, %p6565_p10 }
 0x12f   : > { %p7235_p7 = por %p7234_p4, %p7233_p3 }
 0x130   : > { %p7231_p2 = pneg %p7230_p1 }
 0x132   : > { %p7236_p8 = pnand %p7235_p7, %p7231_p2 }
 0x134   : > { %7239 = shalt.err (!%p7236_p8)
}
 0x135   : > { %6426 = dma.hbm_to_vmem [thread:$0]  (%p6565_p10), %s8952_s18, 16, %s1914_s15, [#allocation33]  }
 0x136   : > { %s8408_s1 = smov [#allocation35]   ;;  %s1963_s11 = sshll.u32 %s8642_s20, 4  ;;  %s8974_s11 = int_to_ptr.hbm [resolvable:$true] %s1963_s11 }
 0x137   : > { %s1939_s23 = sshll.u32 %s8408_s1, 4  ;;  %s7254_s0 = sshra.s32 %s8963_s22, 4  ;;  %s1940_s23 = int_to_ptr.vmem [resolvable:$true] %s1939_s23  ;;  %s7255_s0 = int_to_ptr.hbm [resolvable:$true] %s7254_s0 }
 0x138   : > { %s7256_s10 = scalar_lea.hbm %s7255_s0, 1  ;;  %s7260_s16 = scalar_lea.hbm %s10145_s9, 1 }
 0x139   : > { %p7257_p11 = scmp.ne.s32.totalorder %s7255_s0, %s7256_s10  ;;  %p7261_p0 = scmp.lt.s32.totalorder %s7255_s0, %s10145_s9 }
 0x13a   : > { %p7262_p1 = scmp.lt.s32.totalorder %s7260_s16, %s7256_s10 }
 0x13b   : > { %p7258_p12 = pnand %p7257_p11, %p6565_p10 }
 0x13c   : > { %p7263_p2 = por %p7262_p1, %p7261_p0 }
 0x13d   : > { %p7259_p13 = pneg %p7258_p12 }
 0x13f   : > { %p7264_p3 = pnand %p7263_p2, %p7259_p13 }
 0x141   : > { %7267 = shalt.err (!%p7264_p3)
}
 0x142   : > { %6430 = dma.hbm_to_vmem [thread:$0]  (%p6565_p10), %s8963_s22, 16, %s1940_s23, [#allocation36]  }
 0x143   : > { %s1990_s18 = sshll.u32 %s10146_s8, 4  ;;  %s8409_s15 = smov [#allocation38]   ;;  %s8985_s18 = int_to_ptr.hbm [resolvable:$true] %s1990_s18 }
 0x144   : > { %s1965_s2 = sshll.u32 %s8409_s15, 4  ;;  %s7282_s1 = sshra.s32 %s8974_s11, 4  ;;  %s1966_s2 = int_to_ptr.vmem [resolvable:$true] %s1965_s2  ;;  %s7283_s1 = int_to_ptr.hbm [resolvable:$true] %s7282_s1 }
 0x145   : > { %s7284_s0 = scalar_lea.hbm %s7283_s1, 1  ;;  %s7288_s10 = scalar_lea.hbm %s8642_s20, 1 }
 0x146   : > { %p7285_p4 = scmp.ne.s32.totalorder %s7283_s1, %s7284_s0  ;;  %p7289_p11 = scmp.lt.s32.totalorder %s7283_s1, %s8642_s20 }
 0x147   : > { %p7290_p12 = scmp.lt.s32.totalorder %s7288_s10, %s7284_s0 }
 0x148   : > { %p7286_p7 = pnand %p7285_p4, %p6565_p10 }
 0x149   : > { %p7291_p13 = por %p7290_p12, %p7289_p11 }
 0x14a   : > { %p7287_p8 = pneg %p7286_p7 }
 0x14c   : > { %p7292_p0 = pnand %p7291_p13, %p7287_p8 }
 0x14e   : > { %7295 = shalt.err (!%p7292_p0)
}
 0x14f   : > { %6434 = dma.hbm_to_vmem [thread:$0]  (%p6565_p10), %s8974_s11, 16, %s1966_s2, [#allocation39]  }
 0x150   : > { %s8410_s22 = smov [#allocation41]   ;;  %s7310_s16 = sshra.s32 %s8985_s18, 4  ;;  %s7311_s16 = int_to_ptr.hbm [resolvable:$true] %s7310_s16 }
 0x151   : > { %s1992_s23 = sshll.u32 %s8410_s22, 4  ;;  %s7312_s15 = scalar_lea.hbm %s7311_s16, 1  ;;  %s1993_s23 = int_to_ptr.vmem [resolvable:$true] %s1992_s23 }
 0x152   : > { %p7313_p1 = scmp.ne.s32.totalorder %s7311_s16, %s7312_s15  ;;  %s7316_s1 = scalar_lea.hbm %s10146_s8, 1 }
 0x153   : > { %p7317_p4 = scmp.lt.s32.totalorder %s7311_s16, %s10146_s8  ;;  %p7318_p7 = scmp.lt.s32.totalorder %s7316_s1, %s7312_s15 }
 0x154   : > { %p7314_p2 = pnand %p7313_p1, %p6565_p10 }
 0x155   : > { %p7319_p8 = por %p7318_p7, %p7317_p4 }
 0x156   : > { %p7315_p3 = pneg %p7314_p2 }
 0x158   : > { %p7320_p11 = pnand %p7319_p8, %p7315_p3 }
 0x15a   : > { %7323 = shalt.err (!%p7320_p11)
}
 0x15b   : > { %s10161_s11 = sld [smem:[#allocation129_spill]]  ;;  %s2013_s2 = sshll.u32 %s8667_s27, 4  ;;  %s2014_s2 = int_to_ptr.hbm [resolvable:$true] %s2013_s2 }
 0x15c   : > { %6438 = dma.hbm_to_vmem [thread:$0]  (%p6565_p10), %s8985_s18, 16, %s1993_s23, [#allocation42]  }
 0x15d   : > { %s8411_s0 = smov [#allocation44]   ;;  %s7338_s16 = sshra.s32 %s2014_s2, 4  ;;  %s7339_s16 = int_to_ptr.hbm [resolvable:$true] %s7338_s16 }
 0x15e   : > { %s2015_s10 = sshll.u32 %s8411_s0, 4  ;;  %s7340_s15 = scalar_lea.hbm %s7339_s16, 16  ;;  %s2016_s10 = int_to_ptr.vmem [resolvable:$true] %s2015_s10 }
 0x15f   : > { %p7341_p12 = scmp.ne.s32.totalorder %s7339_s16, %s7340_s15  ;;  %s7344_s1 = scalar_lea.hbm %s8667_s27, 16 }
 0x160   : > { %p7345_p1 = scmp.lt.s32.totalorder %s7339_s16, %s8667_s27  ;;  %p7346_p2 = scmp.lt.s32.totalorder %s7344_s1, %s7340_s15 }
 0x161   : > { %s2043_s22 = sshll.u32 %s10161_s11, 4  ;;  %p7342_p13 = pnand %p7341_p12, %p6565_p10  ;;  %s2044_s22 = int_to_ptr.hbm [resolvable:$true] %s2043_s22 }
 0x162   : > { %p7347_p3 = por %p7346_p2, %p7345_p1 }
 0x163   : > { %p7343_p0 = pneg %p7342_p13 }
 0x165   : > { %p7348_p4 = pnand %p7347_p3, %p7343_p0 }
 0x167   : > { %7351 = shalt.err (!%p7348_p4)
}
 0x168   : > { %s10011_s18 = smov 64   ;;  %s10162_s23 = sld [smem:[#allocation131_spill]] }
 0x169   : > { %s10013_s0 = smov 4   ;;  %s8414_s3 = smov [#allocation47]  }
 0x16a   : > { %6442 = dma.hbm_to_vmem [thread:$0]  (%p6565_p10), %s2014_s2, 256, %s2016_s10, [#allocation45], %s10011_s18, %s10011_s18, %s10013_s0  }
 0x16b   : > { %s2045_s4 = sshll.u32 %s8414_s3, 4  ;;  %s7366_s15 = sshra.s32 %s2044_s22, 4  ;;  %s2046_s4 = int_to_ptr.vmem [resolvable:$true] %s2045_s4  ;;  %s7367_s15 = int_to_ptr.hbm [resolvable:$true] %s7366_s15 }
 0x16c   : > { %s7368_s1 = scalar_lea.hbm %s7367_s15, 1  ;;  %s7372_s5 = scalar_lea.hbm %s10161_s11, 1 }
 0x16d   : > { %p7369_p7 = scmp.ne.s32.totalorder %s7367_s15, %s7368_s1  ;;  %p7373_p12 = scmp.lt.s32.totalorder %s7367_s15, %s10161_s11 }
 0x16e   : > { %s2067_s16 = sshll.u32 %s10162_s23, 4  ;;  %p7374_p13 = scmp.lt.s32.totalorder %s7372_s5, %s7368_s1  ;;  %s9015_s16 = int_to_ptr.hbm [resolvable:$true] %s2067_s16 }
 0x16f   : > { %p7370_p8 = pnand %p7369_p7, %p6565_p10 }
 0x170   : > { %p7375_p0 = por %p7374_p13, %p7373_p12 }
 0x171   : > { %p7371_p11 = pneg %p7370_p8 }
 0x173   : > { %p7376_p1 = pnand %p7375_p0, %p7371_p11 }
 0x175   : > { %7379 = shalt.err (!%p7376_p1)
}
 0x176   : > { %s10163_s3 = sld [smem:[#allocation133_spill]]  ;;  %s8415_s10 = smov [#allocation50]  }
 0x177   : > { %6446 = dma.hbm_to_vmem [thread:$0]  (%p6565_p10), %s2044_s22, 16, %s2046_s4, [#allocation48]  }
 0x178   : > { %s2069_s18 = sshll.u32 %s8415_s10, 4  ;;  %s7394_s0 = sshra.s32 %s9015_s16, 4  ;;  %s2070_s18 = int_to_ptr.vmem [resolvable:$true] %s2069_s18  ;;  %s7395_s0 = int_to_ptr.hbm [resolvable:$true] %s7394_s0 }
 0x179   : > { %s7396_s5 = scalar_lea.hbm %s7395_s0, 1  ;;  %s7400_s15 = scalar_lea.hbm %s10162_s23, 1 }
 0x17a   : > { %p7397_p2 = scmp.ne.s32.totalorder %s7395_s0, %s7396_s5  ;;  %p7401_p7 = scmp.lt.s32.totalorder %s7395_s0, %s10162_s23 }
 0x17b   : > { %p7402_p8 = scmp.lt.s32.totalorder %s7400_s15, %s7396_s5 }
 0x17c   : > { %s2093_s2 = sshll.u32 %s10163_s3, 4  ;;  %p7398_p3 = pnand %p7397_p2, %p6565_p10  ;;  %s9024_s2 = int_to_ptr.hbm [resolvable:$true] %s2093_s2 }
 0x17d   : > { %p7403_p11 = por %p7402_p8, %p7401_p7 }
 0x17e   : > { %p7399_p4 = pneg %p7398_p3 }
 0x180   : > { %p7404_p12 = pnand %p7403_p11, %p7399_p4 }
 0x182   : > { %7407 = shalt.err (!%p7404_p12)
}
 0x183   : > { %s10164_s4 = sld [smem:[#allocation135_spill]]  ;;  %s8416_s22 = smov [#allocation53]  }
 0x184   : > { %6450 = dma.hbm_to_vmem [thread:$0]  (%p6565_p10), %s9015_s16, 16, %s2070_s18, [#allocation51]  }
 0x185   : > { %s2095_s1 = sshll.u32 %s8416_s22, 4  ;;  %s7422_s0 = sshra.s32 %s9024_s2, 4  ;;  %s2096_s1 = int_to_ptr.vmem [resolvable:$true] %s2095_s1  ;;  %s7423_s0 = int_to_ptr.hbm [resolvable:$true] %s7422_s0 }
 0x186   : > { %s7424_s5 = scalar_lea.hbm %s7423_s0, 1  ;;  %s7428_s15 = scalar_lea.hbm %s10163_s3, 1 }
 0x187   : > { %p7425_p13 = scmp.ne.s32.totalorder %s7423_s0, %s7424_s5  ;;  %p7429_p2 = scmp.lt.s32.totalorder %s7423_s0, %s10163_s3 }
 0x188   : > { %p7430_p3 = scmp.lt.s32.totalorder %s7428_s15, %s7424_s5 }
 0x189   : > { %s2119_s10 = sshll.u32 %s10164_s4, 4  ;;  %p7426_p0 = pnand %p7425_p13, %p6565_p10  ;;  %s9035_s10 = int_to_ptr.hbm [resolvable:$true] %s2119_s10 }
 0x18a   : > { %p7431_p4 = por %p7430_p3, %p7429_p2 }
 0x18b   : > { %p7427_p1 = pneg %p7426_p0 }
 0x18d   : > { %p7432_p7 = pnand %p7431_p4, %p7427_p1 }
 0x18f   : > { %7435 = shalt.err (!%p7432_p7)
}
 0x190   : > { %s10165_s18 = sld [smem:[#allocation137_spill]]  ;;  %s8417_s22 = smov [#allocation56]  }
 0x191   : > { %6454 = dma.hbm_to_vmem [thread:$0]  (%p6565_p10), %s9024_s2, 16, %s2096_s1, [#allocation54]  }
 0x192   : > { %s2121_s6 = sshll.u32 %s8417_s22, 4  ;;  %s7450_s0 = sshra.s32 %s9035_s10, 4  ;;  %s2122_s6 = int_to_ptr.vmem [resolvable:$true] %s2121_s6  ;;  %s7451_s0 = int_to_ptr.hbm [resolvable:$true] %s7450_s0 }
 0x193   : > { %s7452_s5 = scalar_lea.hbm %s7451_s0, 1  ;;  %s7456_s15 = scalar_lea.hbm %s10164_s4, 1 }
 0x194   : > { %p7453_p8 = scmp.ne.s32.totalorder %s7451_s0, %s7452_s5  ;;  %p7457_p13 = scmp.lt.s32.totalorder %s7451_s0, %s10164_s4 }
 0x195   : > { %p7458_p0 = scmp.lt.s32.totalorder %s7456_s15, %s7452_s5 }
 0x196   : > { %s2143_s16 = sshll.u32 %s10165_s18, 4  ;;  %p7454_p11 = pnand %p7453_p8, %p6565_p10  ;;  %s9046_s16 = int_to_ptr.hbm [resolvable:$true] %s2143_s16 }
 0x197   : > { %p7459_p1 = por %p7458_p0, %p7457_p13 }
 0x198   : > { %p7455_p12 = pneg %p7454_p11 }
 0x19a   : > { %p7460_p2 = pnand %p7459_p1, %p7455_p12 }
 0x19c   : > { %7463 = shalt.err (!%p7460_p2)
}
 0x19d   : > { %s10166_s2 = sld [smem:[#allocation140_spill]]  ;;  %s8418_s1 = smov [#allocation59]  }
 0x19e   : > { %6458 = dma.hbm_to_vmem [thread:$0]  (%p6565_p10), %s9035_s10, 16, %s2122_s6, [#allocation57]  }
 0x19f   : > { %s2145_s3 = sshll.u32 %s8418_s1, 4  ;;  %s7478_s0 = sshra.s32 %s9046_s16, 4  ;;  %s2146_s3 = int_to_ptr.vmem [resolvable:$true] %s2145_s3  ;;  %s7479_s0 = int_to_ptr.hbm [resolvable:$true] %s7478_s0 }
 0x1a0   : > { %s7480_s5 = scalar_lea.hbm %s7479_s0, 1  ;;  %s7484_s15 = scalar_lea.hbm %s10165_s18, 1 }
 0x1a1   : > { %p7481_p3 = scmp.ne.s32.totalorder %s7479_s0, %s7480_s5  ;;  %p7485_p8 = scmp.lt.s32.totalorder %s7479_s0, %s10165_s18 }
 0x1a2   : > { %p7486_p11 = scmp.lt.s32.totalorder %s7484_s15, %s7480_s5 }
 0x1a3   : > { %s10167_s22 = smov %s10166_s2  ;;  %s2169_s8 = sshll.u32 %s10166_s2, 4  ;;  %s9057_s8 = int_to_ptr.hbm [resolvable:$true] %s2169_s8 }
 0x1a4   : > { %p7482_p4 = pnand %p7481_p3, %p6565_p10  ;;  %p7487_p12 = por %p7486_p11, %p7485_p8 }
 0x1a6   : > { %p7483_p7 = pneg %p7482_p4 }
 0x1a8   : > { %p7488_p13 = pnand %p7487_p12, %p7483_p7 }
 0x1aa   : > { %7491 = shalt.err (!%p7488_p13)
}
 0x1ab   : > { %s10168_s6 = sld [smem:[#allocation146_spill]]  ;;  %s8419_s2 = smov [#allocation62]  }
 0x1ac   : > { %6462 = dma.hbm_to_vmem [thread:$0]  (%p6565_p10), %s9046_s16, 16, %s2146_s3, [#allocation60]  }
 0x1ad   : > { %s2171_s1 = sshll.u32 %s8419_s2, 4  ;;  %s7506_s0 = sshra.s32 %s9057_s8, 4  ;;  %s2172_s1 = int_to_ptr.vmem [resolvable:$true] %s2171_s1  ;;  %s7507_s0 = int_to_ptr.hbm [resolvable:$true] %s7506_s0 }
 0x1ae   : > { %s7508_s5 = scalar_lea.hbm %s7507_s0, 16  ;;  %s7512_s15 = scalar_lea.hbm %s10167_s22, 16 }
 0x1af   : > { %p7509_p0 = scmp.ne.s32.totalorder %s7507_s0, %s7508_s5  ;;  %p7513_p3 = scmp.lt.s32.totalorder %s7507_s0, %s10167_s22 }
 0x1b0   : > { %p7514_p4 = scmp.lt.s32.totalorder %s7512_s15, %s7508_s5 }
 0x1b1   : > { %s2209_s10 = sshll.u32 %s10168_s6, 4  ;;  %p7510_p1 = pnand %p7509_p0, %p6565_p10  ;;  %s9068_s10 = int_to_ptr.hbm [resolvable:$true] %s2209_s10 }
 0x1b2   : > { %p7515_p7 = por %p7514_p4, %p7513_p3 }
 0x1b3   : > { %p7511_p2 = pneg %p7510_p1 }
 0x1b5   : > { %p7516_p8 = pnand %p7515_p7, %p7511_p2 }
 0x1b7   : > { %7519 = shalt.err (!%p7516_p8)
}
 0x1b8   : > { %s10169_s3 = smov 4   ;;  %s10170_s16 = smov 64  }
 0x1b9   : > { %s10171_s2 = sld [smem:[#allocation95_spill]]  ;;  %s8420_s9 = smov [#allocation65]  }
 0x1ba   : > { %6466 = dma.hbm_to_vmem [thread:$0]  (%p6565_p10), %s9057_s8, 256, %s2172_s1, [#allocation63], %s10170_s16, %s10170_s16, %s10169_s3  }
 0x1bb   : > { %s2211_s11 = sshll.u32 %s8420_s9, 4  ;;  %s7534_s5 = sshra.s32 %s9068_s10, 4  ;;  %s2212_s11 = int_to_ptr.vmem [resolvable:$true] %s2211_s11  ;;  %s7535_s5 = int_to_ptr.hbm [resolvable:$true] %s7534_s5 }
 0x1bc   : > { %s7536_s15 = scalar_lea.hbm %s7535_s5, 16  ;;  %s7540_s12 = scalar_lea.hbm %s10168_s6, 16 }
 0x1bd   : > { %p7537_p11 = scmp.ne.s32.totalorder %s7535_s5, %s7536_s15  ;;  %p7541_p0 = scmp.lt.s32.totalorder %s7535_s5, %s10168_s6 }
 0x1be   : > { %p7542_p1 = scmp.lt.s32.totalorder %s7540_s12, %s7536_s15 }
 0x1bf   : > { %s10172_s4 = smov %s10171_s2  ;;  %s1656_s0 = sshll.u32 %s10171_s2, 4  ;;  %s1657_s0 = int_to_ptr.hbm [resolvable:$true] %s1656_s0 }
 0x1c0   : > { %p7538_p12 = pnand %p7537_p11, %p6565_p10  ;;  %p7543_p2 = por %p7542_p1, %p7541_p0 }
 0x1c2   : > { %p7539_p13 = pneg %p7538_p12 }
 0x1c4   : > { %p7544_p3 = pnand %p7543_p2, %p7539_p13 }
 0x1c6   : > { %7547 = shalt.err (!%p7544_p3)
}
 0x1c7   : > { %s10173_s9 = sld [smem:[#allocation97_spill]]  ;;  %s8421_s8 = smov [#allocation2]  }
 0x1c8   : > { %6470 = dma.hbm_to_vmem [thread:$0]  (%p6565_p10), %s9068_s10, 256, %s2212_s11, [#allocation66], %s10170_s16, %s10170_s16, %s10169_s3  }
 0x1c9   : > { %s1658_s1 = sshll.u32 %s8421_s8, 4  ;;  %s7562_s12 = sshra.s32 %s1657_s0, 4  ;;  %s1659_s1 = int_to_ptr.vmem [resolvable:$true] %s1658_s1  ;;  %s7563_s12 = int_to_ptr.hbm [resolvable:$true] %s7562_s12 }
 0x1ca   : > { %s7564_s5 = scalar_lea.hbm %s7563_s12, 1  ;;  %s7568_s15 = scalar_lea.hbm %s10172_s4, 1 }
 0x1cb   : > { %p7565_p4 = scmp.ne.s32.totalorder %s7563_s12, %s7564_s5  ;;  %p7569_p11 = scmp.lt.s32.totalorder %s7563_s12, %s10172_s4 }
 0x1cc   : > { %p7570_p12 = scmp.lt.s32.totalorder %s7568_s15, %s7564_s5 }
 0x1cd   : > { %s1683_s2 = sshll.u32 %s10173_s9, 4  ;;  %p7566_p7 = pnand %p7565_p4, %p6565_p10  ;;  %s9094_s2 = int_to_ptr.hbm [resolvable:$true] %s1683_s2 }
 0x1ce   : > { %p7571_p13 = por %p7570_p12, %p7569_p11 }
 0x1cf   : > { %p7567_p8 = pneg %p7566_p7 }
 0x1d1   : > { %p7572_p0 = pnand %p7571_p13, %p7567_p8 }
 0x1d3   : > { %7575 = shalt.err (!%p7572_p0)
}
 0x1d4   : > { %s10174_s11 = sld [smem:[#allocation100_spill]]  ;;  %s8422_s8 = smov [#allocation7]  }
 0x1d5   : > { %6388 = dma.hbm_to_vmem [thread:$0]  (%p6565_p10), %s1657_s0, 16, %s1659_s1, [#allocation3]  }
 0x1d6   : > { %s1685_s6 = sshll.u32 %s8422_s8, 4  ;;  %s7590_s13 = sshra.s32 %s9094_s2, 4  ;;  %s1686_s6 = int_to_ptr.vmem [resolvable:$true] %s1685_s6  ;;  %s7591_s13 = int_to_ptr.hbm [resolvable:$true] %s7590_s13 }
 0x1d7   : > { %s7592_s12 = scalar_lea.hbm %s7591_s13, 1  ;;  %s7596_s5 = scalar_lea.hbm %s10173_s9, 1 }
 0x1d8   : > { %p7593_p1 = scmp.ne.s32.totalorder %s7591_s13, %s7592_s12  ;;  %p7597_p4 = scmp.lt.s32.totalorder %s7591_s13, %s10173_s9 }
 0x1d9   : > { %p7598_p7 = scmp.lt.s32.totalorder %s7596_s5, %s7592_s12 }
 0x1da   : > { %s1710_s10 = sshll.u32 %s10174_s11, 4  ;;  %p7594_p2 = pnand %p7593_p1, %p6565_p10  ;;  %s9103_s10 = int_to_ptr.hbm [resolvable:$true] %s1710_s10 }
 0x1db   : > { %p7599_p8 = por %p7598_p7, %p7597_p4 }
 0x1dc   : > { %p7595_p3 = pneg %p7594_p2 }
 0x1de   : > { %p7600_p11 = pnand %p7599_p8, %p7595_p3 }
 0x1e0   : > { %7603 = shalt.err (!%p7600_p11)
}
 0x1e1   : > { %s10175_s0 = sld [smem:[#allocation102_spill]]  ;;  %s8423_s1 = smov [#allocation10]  }
 0x1e2   : > { %6392 = dma.hbm_to_vmem [thread:$0]  (%p6565_p10), %s9094_s2, 16, %s1686_s6, [#allocation6]  }
 0x1e3   : > { %s1712_s8 = sshll.u32 %s8423_s1, 4  ;;  %s7618_s13 = sshra.s32 %s9103_s10, 4  ;;  %s1713_s8 = int_to_ptr.vmem [resolvable:$true] %s1712_s8  ;;  %s7619_s13 = int_to_ptr.hbm [resolvable:$true] %s7618_s13 }
 0x1e4   : > { %s7620_s12 = scalar_lea.hbm %s7619_s13, 1  ;;  %s7624_s5 = scalar_lea.hbm %s10174_s11, 1 }
 0x1e5   : > { %p7621_p12 = scmp.ne.s32.totalorder %s7619_s13, %s7620_s12  ;;  %p7625_p1 = scmp.lt.s32.totalorder %s7619_s13, %s10174_s11 }
 0x1e6   : > { %p7626_p2 = scmp.lt.s32.totalorder %s7624_s5, %s7620_s12 }
 0x1e7   : > { %s10176_s15 = smov %s10175_s0  ;;  %s1737_s4 = sshll.u32 %s10175_s0, 4  ;;  %s9114_s4 = int_to_ptr.hbm [resolvable:$true] %s1737_s4 }
 0x1e8   : > { %p7622_p13 = pnand %p7621_p12, %p6565_p10  ;;  %p7627_p3 = por %p7626_p2, %p7625_p1 }
 0x1ea   : > { %p7623_p0 = pneg %p7622_p13 }
 0x1ec   : > { %p7628_p4 = pnand %p7627_p3, %p7623_p0 }
 0x1ee   : > { %7631 = shalt.err (!%p7628_p4)
}
 0x1ef   : > { %s10177_s6 = sld [smem:[#allocation105_spill]]  ;;  %s8424_s0 = smov [#allocation13]  }
 0x1f0   : > { %6396 = dma.hbm_to_vmem [thread:$0]  (%p6565_p10), %s9103_s10, 16, %s1713_s8, [#allocation9]  }
 0x1f1   : > { %s1739_s1 = sshll.u32 %s8424_s0, 4  ;;  %s7646_s13 = sshra.s32 %s9114_s4, 4  ;;  %s1740_s1 = int_to_ptr.vmem [resolvable:$true] %s1739_s1  ;;  %s7647_s13 = int_to_ptr.hbm [resolvable:$true] %s7646_s13 }
 0x1f2   : > { %s7648_s12 = scalar_lea.hbm %s7647_s13, 1  ;;  %s7652_s5 = scalar_lea.hbm %s10176_s15, 1 }
 0x1f3   : > { %p7649_p7 = scmp.ne.s32.totalorder %s7647_s13, %s7648_s12  ;;  %p7653_p12 = scmp.lt.s32.totalorder %s7647_s13, %s10176_s15 }
 0x1f4   : > { %p7654_p13 = scmp.lt.s32.totalorder %s7652_s5, %s7648_s12 }
 0x1f5   : > { %s1764_s2 = sshll.u32 %s10177_s6, 4  ;;  %p7650_p8 = pnand %p7649_p7, %p6565_p10  ;;  %s9125_s2 = int_to_ptr.hbm [resolvable:$true] %s1764_s2 }
 0x1f6   : > { %p7655_p0 = por %p7654_p13, %p7653_p12 }
 0x1f7   : > { %p7651_p11 = pneg %p7650_p8 }
 0x1f9   : > { %p7656_p1 = pnand %p7655_p0, %p7651_p11 }
 0x1fb   : > { %7659 = shalt.err (!%p7656_p1)
}
 0x1fc   : > { %s10178_s10 = sld [smem:[#allocation108_spill]]  ;;  %s8425_s8 = smov [#allocation16]  }
 0x1fd   : > { %6400 = dma.hbm_to_vmem [thread:$0]  (%p6565_p10), %s9114_s4, 16, %s1740_s1, [#allocation12]  }
 0x1fe   : > { %s1766_s0 = sshll.u32 %s8425_s8, 4  ;;  %s7674_s13 = sshra.s32 %s9125_s2, 4  ;;  %s1767_s0 = int_to_ptr.vmem [resolvable:$true] %s1766_s0  ;;  %s7675_s13 = int_to_ptr.hbm [resolvable:$true] %s7674_s13 }
 0x1ff   : > { %s7676_s12 = scalar_lea.hbm %s7675_s13, 1  ;;  %s7680_s5 = scalar_lea.hbm %s10177_s6, 1 }
 0x200   : > { %p7677_p2 = scmp.ne.s32.totalorder %s7675_s13, %s7676_s12  ;;  %p7681_p7 = scmp.lt.s32.totalorder %s7675_s13, %s10177_s6 }
 0x201   : > { %p7682_p8 = scmp.lt.s32.totalorder %s7680_s5, %s7676_s12 }
 0x202   : > { %s1791_s9 = sshll.u32 %s10178_s10, 4  ;;  %p7678_p3 = pnand %p7677_p2, %p6565_p10  ;;  %s9136_s9 = int_to_ptr.hbm [resolvable:$true] %s1791_s9 }
 0x203   : > { %p7683_p11 = por %p7682_p8, %p7681_p7 }
 0x204   : > { %p7679_p4 = pneg %p7678_p3 }
 0x206   : > { %p7684_p12 = pnand %p7683_p11, %p7679_p4 }
 0x208   : > { %7687 = shalt.err (!%p7684_p12)
}
 0x209   : > { %s10179_s4 = sld [smem:[#allocation111_spill]]  ;;  %s8426_s8 = smov [#allocation19]  }
 0x20a   : > { %6404 = dma.hbm_to_vmem [thread:$0]  (%p6565_p10), %s9125_s2, 16, %s1767_s0, [#allocation15]  }
 0x20b   : > { %s1793_s11 = sshll.u32 %s8426_s8, 4  ;;  %s7702_s13 = sshra.s32 %s9136_s9, 4  ;;  %s1794_s11 = int_to_ptr.vmem [resolvable:$true] %s1793_s11  ;;  %s7703_s13 = int_to_ptr.hbm [resolvable:$true] %s7702_s13 }
 0x20c   : > { %s7704_s12 = scalar_lea.hbm %s7703_s13, 1  ;;  %s7708_s5 = scalar_lea.hbm %s10178_s10, 1 }
 0x20d   : > { %p7705_p13 = scmp.ne.s32.totalorder %s7703_s13, %s7704_s12  ;;  %p7709_p2 = scmp.lt.s32.totalorder %s7703_s13, %s10178_s10 }
 0x20e   : > { %p7710_p3 = scmp.lt.s32.totalorder %s7708_s5, %s7704_s12 }
 0x20f   : > { %s1818_s1 = sshll.u32 %s10179_s4, 4  ;;  %p7706_p0 = pnand %p7705_p13, %p6565_p10  ;;  %s9147_s1 = int_to_ptr.hbm [resolvable:$true] %s1818_s1 }
 0x210   : > { %p7711_p4 = por %p7710_p3, %p7709_p2 }
 0x211   : > { %p7707_p1 = pneg %p7706_p0 }
 0x213   : > { %p7712_p7 = pnand %p7711_p4, %p7707_p1 }
 0x215   : > { %7715 = shalt.err (!%p7712_p7)
}
 0x216   : > { %s10180_s2 = sld [smem:[#allocation113_spill]]  ;;  %s8427_s0 = smov [#allocation22]  }
 0x217   : > { %6408 = dma.hbm_to_vmem [thread:$0]  (%p6565_p10), %s9136_s9, 16, %s1794_s11, [#allocation18]  }
 0x218   : > { %s1820_s6 = sshll.u32 %s8427_s0, 4  ;;  %s7730_s13 = sshra.s32 %s9147_s1, 4  ;;  %s1821_s6 = int_to_ptr.vmem [resolvable:$true] %s1820_s6  ;;  %s7731_s13 = int_to_ptr.hbm [resolvable:$true] %s7730_s13 }
 0x219   : > { %s7732_s12 = scalar_lea.hbm %s7731_s13, 1  ;;  %s7736_s5 = scalar_lea.hbm %s10179_s4, 1 }
 0x21a   : > { %p7733_p8 = scmp.ne.s32.totalorder %s7731_s13, %s7732_s12  ;;  %p7737_p13 = scmp.lt.s32.totalorder %s7731_s13, %s10179_s4 }
 0x21b   : > { %p7738_p0 = scmp.lt.s32.totalorder %s7736_s5, %s7732_s12 }
 0x21c   : > { %s10181_s8 = smov %s10180_s2  ;;  %s1845_s15 = sshll.u32 %s10180_s2, 4  ;;  %s9158_s15 = int_to_ptr.hbm [resolvable:$true] %s1845_s15 }
 0x21d   : > { %p7734_p11 = pnand %p7733_p8, %p6565_p10  ;;  %p7739_p1 = por %p7738_p0, %p7737_p13 }
 0x21f   : > { %p7735_p12 = pneg %p7734_p11 }
 0x221   : > { %p7740_p2 = pnand %p7739_p1, %p7735_p12 }
 0x223   : > { %7743 = shalt.err (!%p7740_p2)
}
 0x224   : > { %s10182_s9 = sld [smem:[#allocation116_spill]]  ;;  %s8428_s2 = smov [#allocation25]  }
 0x225   : > { %6412 = dma.hbm_to_vmem [thread:$0]  (%p6565_p10), %s9147_s1, 16, %s1821_s6, [#allocation21]  }
 0x226   : > { %s1847_s0 = sshll.u32 %s8428_s2, 4  ;;  %s7758_s13 = sshra.s32 %s9158_s15, 4  ;;  %s1848_s0 = int_to_ptr.vmem [resolvable:$true] %s1847_s0  ;;  %s7759_s13 = int_to_ptr.hbm [resolvable:$true] %s7758_s13 }
 0x227   : > { %s7760_s12 = scalar_lea.hbm %s7759_s13, 1  ;;  %s7764_s5 = scalar_lea.hbm %s10181_s8, 1 }
 0x228   : > { %p7761_p3 = scmp.ne.s32.totalorder %s7759_s13, %s7760_s12  ;;  %p7765_p8 = scmp.lt.s32.totalorder %s7759_s13, %s10181_s8 }
 0x229   : > { %p7766_p11 = scmp.lt.s32.totalorder %s7764_s5, %s7760_s12 }
 0x22a   : > { %s1872_s11 = sshll.u32 %s10182_s9, 4  ;;  %p7762_p4 = pnand %p7761_p3, %p6565_p10  ;;  %s9169_s11 = int_to_ptr.hbm [resolvable:$true] %s1872_s11 }
 0x22b   : > { %p7767_p12 = por %p7766_p11, %p7765_p8 }
 0x22c   : > { %p7763_p7 = pneg %p7762_p4 }
 0x22e   : > { %p7768_p13 = pnand %p7767_p12, %p7763_p7 }
 0x230   : > { %7771 = shalt.err (!%p7768_p13)
}
 0x231   : > { %s10183_s6 = sld [smem:[#allocation118_spill]]  ;;  %s8429_s1 = smov [#allocation28]  }
 0x232   : > { %6416 = dma.hbm_to_vmem [thread:$0]  (%p6565_p10), %s9158_s15, 16, %s1848_s0, [#allocation24]  }
 0x233   : > { %s1874_s2 = sshll.u32 %s8429_s1, 4  ;;  %s7786_s13 = sshra.s32 %s9169_s11, 4  ;;  %s1875_s2 = int_to_ptr.vmem [resolvable:$true] %s1874_s2  ;;  %s7787_s13 = int_to_ptr.hbm [resolvable:$true] %s7786_s13 }
 0x234   : > { %s7788_s12 = scalar_lea.hbm %s7787_s13, 1  ;;  %s7792_s5 = scalar_lea.hbm %s10182_s9, 1 }
 0x235   : > { %p7789_p0 = scmp.ne.s32.totalorder %s7787_s13, %s7788_s12  ;;  %p7793_p3 = scmp.lt.s32.totalorder %s7787_s13, %s10182_s9 }
 0x236   : > { %p7794_p4 = scmp.lt.s32.totalorder %s7792_s5, %s7788_s12 }
 0x237   : > { %s1899_s4 = sshll.u32 %s10183_s6, 4  ;;  %p7790_p1 = pnand %p7789_p0, %p6565_p10  ;;  %s9180_s4 = int_to_ptr.hbm [resolvable:$true] %s1899_s4 }
 0x238   : > { %p7795_p7 = por %p7794_p4, %p7793_p3 }
 0x239   : > { %p7791_p2 = pneg %p7790_p1 }
 0x23b   : > { %p7796_p8 = pnand %p7795_p7, %p7791_p2 }
 0x23d   : > { %7799 = shalt.err (!%p7796_p8)
}
 0x23e   : > { %s10184_s15 = sld [smem:[#allocation120_spill]]  ;;  %s8430_s1 = smov [#allocation31]  }
 0x23f   : > { %6420 = dma.hbm_to_vmem [thread:$0]  (%p6565_p10), %s9169_s11, 16, %s1875_s2, [#allocation27]  }
 0x240   : > { %s1901_s8 = sshll.u32 %s8430_s1, 4  ;;  %s7814_s13 = sshra.s32 %s9180_s4, 4  ;;  %s1902_s8 = int_to_ptr.vmem [resolvable:$true] %s1901_s8  ;;  %s7815_s13 = int_to_ptr.hbm [resolvable:$true] %s7814_s13 }
 0x241   : > { %s7816_s12 = scalar_lea.hbm %s7815_s13, 1  ;;  %s7820_s5 = scalar_lea.hbm %s10183_s6, 1 }
 0x242   : > { %p7817_p11 = scmp.ne.s32.totalorder %s7815_s13, %s7816_s12  ;;  %p7821_p0 = scmp.lt.s32.totalorder %s7815_s13, %s10183_s6 }
 0x243   : > { %p7822_p1 = scmp.lt.s32.totalorder %s7820_s5, %s7816_s12 }
 0x244   : > { %s1922_s0 = sshll.u32 %s10184_s15, 4  ;;  %p7818_p12 = pnand %p7817_p11, %p6565_p10  ;;  %s9191_s0 = int_to_ptr.hbm [resolvable:$true] %s1922_s0 }
 0x245   : > { %p7823_p2 = por %p7822_p1, %p7821_p0 }
 0x246   : > { %p7819_p13 = pneg %p7818_p12 }
 0x248   : > { %p7824_p3 = pnand %p7823_p2, %p7819_p13 }
 0x24a   : > { %7827 = shalt.err (!%p7824_p3)
}
 0x24b   : > { %s10185_s11 = sld [smem:[#allocation122_spill]]  ;;  %s8431_s2 = smov [#allocation34]  }
 0x24c   : > { %6424 = dma.hbm_to_vmem [thread:$0]  (%p6565_p10), %s9180_s4, 16, %s1902_s8, [#allocation30]  }
 0x24d   : > { %s1924_s1 = sshll.u32 %s8431_s2, 4  ;;  %s7842_s13 = sshra.s32 %s9191_s0, 4  ;;  %s1925_s1 = int_to_ptr.vmem [resolvable:$true] %s1924_s1  ;;  %s7843_s13 = int_to_ptr.hbm [resolvable:$true] %s7842_s13 }
 0x24e   : > { %s7844_s12 = scalar_lea.hbm %s7843_s13, 16  ;;  %s7848_s5 = scalar_lea.hbm %s10184_s15, 16 }
 0x24f   : > { %p7845_p4 = scmp.ne.s32.totalorder %s7843_s13, %s7844_s12  ;;  %p7849_p11 = scmp.lt.s32.totalorder %s7843_s13, %s10184_s15 }
 0x250   : > { %p7850_p12 = scmp.lt.s32.totalorder %s7848_s5, %s7844_s12 }
 0x251   : > { %s1948_s9 = sshll.u32 %s10185_s11, 4  ;;  %p7846_p7 = pnand %p7845_p4, %p6565_p10  ;;  %s9202_s9 = int_to_ptr.hbm [resolvable:$true] %s1948_s9 }
 0x252   : > { %p7851_p13 = por %p7850_p12, %p7849_p11 }
 0x253   : > { %p7847_p8 = pneg %p7846_p7 }
 0x255   : > { %p7852_p0 = pnand %p7851_p13, %p7847_p8 }
 0x257   : > { %7855 = shalt.err (!%p7852_p0)
}
 0x258   : > { %s10186_s4 = sld [smem:[#allocation124_spill]]  ;;  %s8432_s2 = smov [#allocation37]  }
 0x259   : > { %6428 = dma.hbm_to_vmem [thread:$0]  (%p6565_p10), %s9191_s0, 256, %s1925_s1, [#allocation33], %s10170_s16, %s10170_s16, %s10169_s3  }
 0x25a   : > { %s1950_s6 = sshll.u32 %s8432_s2, 4  ;;  %s7870_s13 = sshra.s32 %s9202_s9, 4  ;;  %s1951_s6 = int_to_ptr.vmem [resolvable:$true] %s1950_s6  ;;  %s7871_s13 = int_to_ptr.hbm [resolvable:$true] %s7870_s13 }
 0x25b   : > { %s7872_s12 = scalar_lea.hbm %s7871_s13, 16  ;;  %s7876_s5 = scalar_lea.hbm %s10185_s11, 16 }
 0x25c   : > { %p7873_p1 = scmp.ne.s32.totalorder %s7871_s13, %s7872_s12  ;;  %p7877_p4 = scmp.lt.s32.totalorder %s7871_s13, %s10185_s11 }
 0x25d   : > { %p7878_p7 = scmp.lt.s32.totalorder %s7876_s5, %s7872_s12 }
 0x25e   : > { %s1978_s8 = sshll.u32 %s10186_s4, 4  ;;  %p7874_p2 = pnand %p7873_p1, %p6565_p10  ;;  %s9216_s8 = int_to_ptr.hbm [resolvable:$true] %s1978_s8 }
 0x25f   : > { %p7879_p8 = por %p7878_p7, %p7877_p4 }
 0x260   : > { %p7875_p3 = pneg %p7874_p2 }
 0x262   : > { %p7880_p11 = pnand %p7879_p8, %p7875_p3 }
 0x264   : > { %7883 = shalt.err (!%p7880_p11)
}
 0x265   : > { %s10187_s0 = sld [smem:[#allocation126_spill]]  ;;  %s8433_s1 = smov [#allocation40]  }
 0x266   : > { %6432 = dma.hbm_to_vmem [thread:$0]  (%p6565_p10), %s9202_s9, 256, %s1951_s6, [#allocation36], %s10170_s16, %s10170_s16, %s10169_s3  }
 0x267   : > { %s1980_s2 = sshll.u32 %s8433_s1, 4  ;;  %s7898_s13 = sshra.s32 %s9216_s8, 4  ;;  %s1981_s2 = int_to_ptr.vmem [resolvable:$true] %s1980_s2  ;;  %s7899_s13 = int_to_ptr.hbm [resolvable:$true] %s7898_s13 }
 0x268   : > { %s7900_s12 = scalar_lea.hbm %s7899_s13, 1  ;;  %s7904_s5 = scalar_lea.hbm %s10186_s4, 1 }
 0x269   : > { %p7901_p12 = scmp.ne.s32.totalorder %s7899_s13, %s7900_s12  ;;  %p7905_p1 = scmp.lt.s32.totalorder %s7899_s13, %s10186_s4 }
 0x26a   : > { %p7906_p2 = scmp.lt.s32.totalorder %s7904_s5, %s7900_s12 }
 0x26b   : > { %s10188_s10 = smov %s10187_s0  ;;  %s2002_s15 = sshll.u32 %s10187_s0, 4  ;;  %s9230_s15 = int_to_ptr.hbm [resolvable:$true] %s2002_s15 }
 0x26c   : > { %p7902_p13 = pnand %p7901_p12, %p6565_p10  ;;  %p7907_p3 = por %p7906_p2, %p7905_p1 }
 0x26e   : > { %p7903_p0 = pneg %p7902_p13 }
 0x270   : > { %p7908_p4 = pnand %p7907_p3, %p7903_p0 }
 0x272   : > { %7911 = shalt.err (!%p7908_p4)
}
 0x273   : > { %s10189_s9 = sld [smem:[#allocation127_spill]]  ;;  %s8434_s0 = smov [#allocation43]  }
 0x274   : > { %6436 = dma.hbm_to_vmem [thread:$0]  (%p6565_p10), %s9216_s8, 16, %s1981_s2, [#allocation39]  }
 0x275   : > { %s2004_s1 = sshll.u32 %s8434_s0, 4  ;;  %s7926_s13 = sshra.s32 %s9230_s15, 4  ;;  %s2005_s1 = int_to_ptr.vmem [resolvable:$true] %s2004_s1  ;;  %s7927_s13 = int_to_ptr.hbm [resolvable:$true] %s7926_s13 }
 0x276   : > { %s7928_s12 = scalar_lea.hbm %s7927_s13, 1  ;;  %s7932_s5 = scalar_lea.hbm %s10188_s10, 1 }
 0x277   : > { %p7929_p7 = scmp.ne.s32.totalorder %s7927_s13, %s7928_s12  ;;  %p7933_p12 = scmp.lt.s32.totalorder %s7927_s13, %s10188_s10 }
 0x278   : > { %p7934_p13 = scmp.lt.s32.totalorder %s7932_s5, %s7928_s12 }
 0x279   : > { %s2028_s6 = sshll.u32 %s10189_s9, 4  ;;  %p7930_p8 = pnand %p7929_p7, %p6565_p10  ;;  %s9241_s6 = int_to_ptr.hbm [resolvable:$true] %s2028_s6 }
 0x27a   : > { %p7935_p0 = por %p7934_p13, %p7933_p12 }
 0x27b   : > { %p7931_p11 = pneg %p7930_p8 }
 0x27d   : > { %p7936_p1 = pnand %p7935_p0, %p7931_p11 }
 0x27f   : > { %7939 = shalt.err (!%p7936_p1)
}
 0x280   : > { %s10190_s8 = sld [smem:[#allocation130_spill]]  ;;  %s8435_s2 = smov [#allocation46]  }
 0x281   : > { %6440 = dma.hbm_to_vmem [thread:$0]  (%p6565_p10), %s9230_s15, 16, %s2005_s1, [#allocation42]  }
 0x282   : > { %s2030_s0 = sshll.u32 %s8435_s2, 4  ;;  %s7954_s13 = sshra.s32 %s9241_s6, 4  ;;  %s2031_s0 = int_to_ptr.vmem [resolvable:$true] %s2030_s0  ;;  %s7955_s13 = int_to_ptr.hbm [resolvable:$true] %s7954_s13 }
 0x283   : > { %s7956_s12 = scalar_lea.hbm %s7955_s13, 1  ;;  %s7960_s5 = scalar_lea.hbm %s10189_s9, 1 }
 0x284   : > { %p7957_p2 = scmp.ne.s32.totalorder %s7955_s13, %s7956_s12  ;;  %p7961_p7 = scmp.lt.s32.totalorder %s7955_s13, %s10189_s9 }
 0x285   : > { %p7962_p8 = scmp.lt.s32.totalorder %s7960_s5, %s7956_s12 }
 0x286   : > { %s2055_s4 = sshll.u32 %s10190_s8, 4  ;;  %p7958_p3 = pnand %p7957_p2, %p6565_p10  ;;  %s9252_s4 = int_to_ptr.hbm [resolvable:$true] %s2055_s4 }
 0x287   : > { %p7963_p11 = por %p7962_p8, %p7961_p7 }
 0x288   : > { %p7959_p4 = pneg %p7958_p3 }
 0x28a   : > { %p7964_p12 = pnand %p7963_p11, %p7959_p4 }
 0x28c   : > { %7967 = shalt.err (!%p7964_p12)
}
 0x28d   : > { %s10191_s15 = sld [smem:[#allocation132_spill]]  ;;  %s8436_s2 = smov [#allocation49]  }
 0x28e   : > { %6444 = dma.hbm_to_vmem [thread:$0]  (%p6565_p10), %s9241_s6, 16, %s2031_s0, [#allocation45]  }
 0x28f   : > { %s2057_s10 = sshll.u32 %s8436_s2, 4  ;;  %s7982_s13 = sshra.s32 %s9252_s4, 4  ;;  %s2058_s10 = int_to_ptr.vmem [resolvable:$true] %s2057_s10  ;;  %s7983_s13 = int_to_ptr.hbm [resolvable:$true] %s7982_s13 }
 0x290   : > { %s7984_s12 = scalar_lea.hbm %s7983_s13, 1  ;;  %s7988_s5 = scalar_lea.hbm %s10190_s8, 1 }
 0x291   : > { %p7985_p13 = scmp.ne.s32.totalorder %s7983_s13, %s7984_s12  ;;  %p7989_p2 = scmp.lt.s32.totalorder %s7983_s13, %s10190_s8 }
 0x292   : > { %p7990_p3 = scmp.lt.s32.totalorder %s7988_s5, %s7984_s12 }
 0x293   : > { %s2078_s1 = sshll.u32 %s10191_s15, 4  ;;  %p7986_p0 = pnand %p7985_p13, %p6565_p10  ;;  %s9263_s1 = int_to_ptr.hbm [resolvable:$true] %s2078_s1 }
 0x294   : > { %p7991_p4 = por %p7990_p3, %p7989_p2 }
 0x295   : > { %p7987_p1 = pneg %p7986_p0 }
 0x297   : > { %p7992_p7 = pnand %p7991_p4, %p7987_p1 }
 0x299   : > { %7995 = shalt.err (!%p7992_p7)
}
 0x29a   : > { %s10192_s6 = sld [smem:[#allocation134_spill]]  ;;  %s8437_s0 = smov [#allocation52]  }
 0x29b   : > { %6448 = dma.hbm_to_vmem [thread:$0]  (%p6565_p10), %s9252_s4, 16, %s2058_s10, [#allocation48]  }
 0x29c   : > { %s2080_s2 = sshll.u32 %s8437_s0, 4  ;;  %s8010_s13 = sshra.s32 %s9263_s1, 4  ;;  %s2081_s2 = int_to_ptr.vmem [resolvable:$true] %s2080_s2  ;;  %s8011_s13 = int_to_ptr.hbm [resolvable:$true] %s8010_s13 }
 0x29d   : > { %s8012_s12 = scalar_lea.hbm %s8011_s13, 16  ;;  %s8016_s5 = scalar_lea.hbm %s10191_s15, 16 }
 0x29e   : > { %p8013_p8 = scmp.ne.s32.totalorder %s8011_s13, %s8012_s12  ;;  %p8017_p13 = scmp.lt.s32.totalorder %s8011_s13, %s10191_s15 }
 0x29f   : > { %p8018_p0 = scmp.lt.s32.totalorder %s8016_s5, %s8012_s12 }
 0x2a0   : > { %s2104_s9 = sshll.u32 %s10192_s6, 4  ;;  %p8014_p11 = pnand %p8013_p8, %p6565_p10  ;;  %s9274_s9 = int_to_ptr.hbm [resolvable:$true] %s2104_s9 }
 0x2a1   : > { %p8019_p1 = por %p8018_p0, %p8017_p13 }
 0x2a2   : > { %p8015_p12 = pneg %p8014_p11 }
 0x2a4   : > { %p8020_p2 = pnand %p8019_p1, %p8015_p12 }
 0x2a6   : > { %8023 = shalt.err (!%p8020_p2)
}
 0x2a7   : > { %s10193_s10 = sld [smem:[#allocation136_spill]]  ;;  %s8438_s0 = smov [#allocation55]  }
 0x2a8   : > { %6452 = dma.hbm_to_vmem [thread:$0]  (%p6565_p10), %s9263_s1, 256, %s2081_s2, [#allocation51], %s10170_s16, %s10170_s16, %s10169_s3  }
 0x2a9   : > { %s2106_s8 = sshll.u32 %s8438_s0, 4  ;;  %s8038_s13 = sshra.s32 %s9274_s9, 4  ;;  %s2107_s8 = int_to_ptr.vmem [resolvable:$true] %s2106_s8  ;;  %s8039_s13 = int_to_ptr.hbm [resolvable:$true] %s8038_s13 }
 0x2aa   : > { %s8040_s12 = scalar_lea.hbm %s8039_s13, 16  ;;  %s8044_s5 = scalar_lea.hbm %s10192_s6, 16 }
 0x2ab   : > { %p8041_p3 = scmp.ne.s32.totalorder %s8039_s13, %s8040_s12  ;;  %p8045_p8 = scmp.lt.s32.totalorder %s8039_s13, %s10192_s6 }
 0x2ac   : > { %p8046_p11 = scmp.lt.s32.totalorder %s8044_s5, %s8040_s12 }
 0x2ad   : > { %s2131_s4 = sshll.u32 %s10193_s10, 4  ;;  %p8042_p4 = pnand %p8041_p3, %p6565_p10  ;;  %s9288_s4 = int_to_ptr.hbm [resolvable:$true] %s2131_s4 }
 0x2ae   : > { %p8047_p12 = por %p8046_p11, %p8045_p8 }
 0x2af   : > { %p8043_p7 = pneg %p8042_p4 }
 0x2b1   : > { %p8048_p13 = pnand %p8047_p12, %p8043_p7 }
 0x2b3   : > { %8051 = shalt.err (!%p8048_p13)
}
 0x2b4   : > { %s10194_s1 = sld [smem:[#allocation139_spill]]  ;;  %s8439_s2 = smov [#allocation58]  }
 0x2b5   : > { %6456 = dma.hbm_to_vmem [thread:$0]  (%p6565_p10), %s9274_s9, 256, %s2107_s8, [#allocation54], %s10170_s16, %s10170_s16, %s10169_s3  }
 0x2b6   : > { %s2133_s0 = sshll.u32 %s8439_s2, 4  ;;  %s8066_s13 = sshra.s32 %s9288_s4, 4  ;;  %s2134_s0 = int_to_ptr.vmem [resolvable:$true] %s2133_s0  ;;  %s8067_s13 = int_to_ptr.hbm [resolvable:$true] %s8066_s13 }
 0x2b7   : > { %s8068_s12 = scalar_lea.hbm %s8067_s13, 1  ;;  %s8072_s5 = scalar_lea.hbm %s10193_s10, 1 }
 0x2b8   : > { %p8069_p0 = scmp.ne.s32.totalorder %s8067_s13, %s8068_s12  ;;  %p8073_p3 = scmp.lt.s32.totalorder %s8067_s13, %s10193_s10 }
 0x2b9   : > { %p8074_p4 = scmp.lt.s32.totalorder %s8072_s5, %s8068_s12 }
 0x2ba   : > { %s10195_s11 = smov %s10194_s1  ;;  %s2158_s15 = sshll.u32 %s10194_s1, 4  ;;  %s9302_s15 = int_to_ptr.hbm [resolvable:$true] %s2158_s15 }
 0x2bb   : > { %p8070_p1 = pnand %p8069_p0, %p6565_p10  ;;  %p8075_p7 = por %p8074_p4, %p8073_p3 }
 0x2bd   : > { %p8071_p2 = pneg %p8070_p1 }
 0x2bf   : > { %p8076_p8 = pnand %p8075_p7, %p8071_p2 }
 0x2c1   : > { %8079 = shalt.err (!%p8076_p8)
}
 0x2c2   : > { %s10196_s9 = sld [smem:[#allocation142_spill]]  ;;  %s8440_s1 = smov [#allocation61]  }
 0x2c3   : > { %6460 = dma.hbm_to_vmem [thread:$0]  (%p6565_p10), %s9288_s4, 16, %s2134_s0, [#allocation57]  }
 0x2c4   : > { %s2160_s2 = sshll.u32 %s8440_s1, 4  ;;  %s8094_s13 = sshra.s32 %s9302_s15, 4  ;;  %s2161_s2 = int_to_ptr.vmem [resolvable:$true] %s2160_s2  ;;  %s8095_s13 = int_to_ptr.hbm [resolvable:$true] %s8094_s13 }
 0x2c5   : > { %s8096_s12 = scalar_lea.hbm %s8095_s13, 1  ;;  %s8100_s5 = scalar_lea.hbm %s10195_s11, 1 }
 0x2c6   : > { %p8097_p11 = scmp.ne.s32.totalorder %s8095_s13, %s8096_s12  ;;  %p8101_p0 = scmp.lt.s32.totalorder %s8095_s13, %s10195_s11 }
 0x2c7   : > { %p8102_p1 = scmp.lt.s32.totalorder %s8100_s5, %s8096_s12 }
 0x2c8   : > { %s2186_s8 = sshll.u32 %s10196_s9, 4  ;;  %p8098_p12 = pnand %p8097_p11, %p6565_p10  ;;  %s9313_s8 = int_to_ptr.hbm [resolvable:$true] %s2186_s8 }
 0x2c9   : > { %p8103_p2 = por %p8102_p1, %p8101_p0 }
 0x2ca   : > { %p8099_p13 = pneg %p8098_p12 }
 0x2cc   : > { %p8104_p3 = pnand %p8103_p2, %p8099_p13 }
 0x2ce   : > { %8107 = shalt.err (!%p8104_p3)
}
 0x2cf   : > { %6464 = dma.hbm_to_vmem [thread:$0]  (%p6565_p10), %s9302_s15, 16, %s2161_s2, [#allocation60]  }
 0x2d0   : > { %s8441_s4 = smov [#allocation64]   ;;  %s2238_s1 = sshll.u32 %s8797_s29, 4  ;;  %s2239_s1 = int_to_ptr.hbm [resolvable:$true] %s2238_s1 }
 0x2d1   : > { %s2188_s0 = sshll.u32 %s8441_s4, 4  ;;  %s8122_s6 = sshra.s32 %s9313_s8, 4  ;;  %s2189_s0 = int_to_ptr.vmem [resolvable:$true] %s2188_s0  ;;  %s8123_s6 = int_to_ptr.hbm [resolvable:$true] %s8122_s6 }
 0x2d2   : > { %s8124_s13 = scalar_lea.hbm %s8123_s6, 16  ;;  %s8128_s12 = scalar_lea.hbm %s10196_s9, 16 }
 0x2d3   : > { %p8125_p4 = scmp.ne.s32.totalorder %s8123_s6, %s8124_s13  ;;  %p8129_p11 = scmp.lt.s32.totalorder %s8123_s6, %s10196_s9 }
 0x2d4   : > { %p8130_p12 = scmp.lt.s32.totalorder %s8128_s12, %s8124_s13 }
 0x2d5   : > { %p8126_p7 = pnand %p8125_p4, %p6565_p10 }
 0x2d6   : > { %p8131_p13 = por %p8130_p12, %p8129_p11 }
 0x2d7   : > { %p8127_p8 = pneg %p8126_p7 }
 0x2d9   : > { %p8132_p0 = pnand %p8131_p13, %p8127_p8 }
 0x2db   : > { %8135 = shalt.err (!%p8132_p0)
}
 0x2dc   : > { %6468 = dma.hbm_to_vmem [thread:$0]  (%p6565_p10), %s9313_s8, 256, %s2189_s0, [#allocation63], %s10170_s16, %s10170_s16, %s10169_s3  }
 0x2dd   : > { %s8442_s15 = smov [#allocation67]   ;;  %s8150_s5 = sshra.s32 %s2239_s1, 4  ;;  %s8151_s5 = int_to_ptr.hbm [resolvable:$true] %s8150_s5 }
 0x2de   : > { %s2240_s2 = sshll.u32 %s8442_s15, 4  ;;  %s8152_s6 = scalar_lea.hbm %s8151_s5, 16  ;;  %s2241_s2 = int_to_ptr.vmem [resolvable:$true] %s2240_s2 }
 0x2df   : > { %p8153_p1 = scmp.ne.s32.totalorder %s8151_s5, %s8152_s6  ;;  %s8156_s4 = scalar_lea.hbm %s8797_s29, 16 }
 0x2e0   : > { %p8157_p4 = scmp.lt.s32.totalorder %s8151_s5, %s8797_s29  ;;  %p8158_p7 = scmp.lt.s32.totalorder %s8156_s4, %s8152_s6 }
 0x2e1   : > { %p8154_p2 = pnand %p8153_p1, %p6565_p10 }
 0x2e2   : > { %p8159_p8 = por %p8158_p7, %p8157_p4 }
 0x2e3   : > { %p8155_p3 = pneg %p8154_p2 }
 0x2e5   : > { %p8160_p11 = pnand %p8159_p8, %p8155_p3 }
 0x2e7   : > { %8163 = shalt.err (!%p8160_p11)
}
 0x2e8   : > { %6472 = dma.hbm_to_vmem [thread:$0]  (%p6565_p10), %s2239_s1, 256, %s2241_s2, [#allocation66], %s10170_s16, %s10170_s16, %s10169_s3  }
 0x2e9 PF: > { %2273 = sbr.rel (%p8857_p9) target bundleno = 10307 (0x2843), region = 292  ;;  %p6608_p12 = scmp.eq.s32.totalorder (!%p8857_p9), %s8830_s7, 0 }
 0x2ee   : > { %8223 = dma.done.wait (%p6608_p12), [#allocation3], 16  }
 0x2ef   : > { %8225 = vsyncadd (%p6608_p12), [#allocation3], 4294967280 }
 0x2f0   : > { %8227 = dma.done.wait (%p6608_p12), [#allocation6], 32  }
 0x2f1   : > { %8229 = vsyncadd (%p6608_p12), [#allocation6], 4294967264 }
 0x2f2   : > { %8231 = dma.done.wait (%p6608_p12), [#allocation9], 32  }
 0x2f3   : > { %8233 = vsyncadd (%p6608_p12), [#allocation9], 4294967264 }
 0x2f4   : > { %8235 = dma.done.wait (%p6608_p12), [#allocation12], 32  }
 0x2f5   : > { %8237 = vsyncadd (%p6608_p12), [#allocation12], 4294967264 }
 0x2f6   : > { %8239 = dma.done.wait (%p6608_p12), [#allocation15], 32  }
 0x2f7   : > { %8241 = vsyncadd (%p6608_p12), [#allocation15], 4294967264 }
 0x2f8   : > { %8243 = dma.done.wait (%p6608_p12), [#allocation18], 32  }
 0x2f9   : > { %8245 = vsyncadd (%p6608_p12), [#allocation18], 4294967264 }
 0x2fa   : > { %8247 = dma.done.wait (%p6608_p12), [#allocation21], 32  }
 0x2fb   : > { %8249 = vsyncadd (%p6608_p12), [#allocation21], 4294967264 }
 0x2fc   : > { %8251 = dma.done.wait (%p6608_p12), [#allocation24], 32  }
 0x2fd   : > { %8253 = vsyncadd (%p6608_p12), [#allocation24], 4294967264 }
 0x2fe   : > { %8255 = dma.done.wait (%p6608_p12), [#allocation27], 32  }
 0x2ff   : > { %8257 = vsyncadd (%p6608_p12), [#allocation27], 4294967264 }
 0x300   : > { %8259 = dma.done.wait (%p6608_p12), [#allocation30], 32  }
 0x301   : > { %8261 = vsyncadd (%p6608_p12), [#allocation30], 4294967264 }
 0x302   : > { %8263 = dma.done.wait (%p6608_p12), [#allocation33], 272  }
 0x303   : > { %8265 = vsyncadd (%p6608_p12), [#allocation33], 4294967024 }
 0x304   : > { %8267 = dma.done.wait (%p6608_p12), [#allocation36], 272  }
 0x305   : > { %8269 = vsyncadd (%p6608_p12), [#allocation36], 4294967024 }
 0x306   : > { %8271 = dma.done.wait (%p6608_p12), [#allocation39], 32  }
 0x307   : > { %8273 = vsyncadd (%p6608_p12), [#allocation39], 4294967264 }
 0x308   : > { %8275 = dma.done.wait (%p6608_p12), [#allocation42], 32  }
 0x309   : > { %8277 = vsyncadd (%p6608_p12), [#allocation42], 4294967264 }
 0x30a   : > { %8279 = dma.done.wait (%p6608_p12), [#allocation45], 272  }
 0x30b   : > { %8281 = vsyncadd (%p6608_p12), [#allocation45], 4294967024 }
 0x30c   : > { %8283 = dma.done.wait (%p6608_p12), [#allocation48], 32  }
 0x30d   : > { %8285 = vsyncadd (%p6608_p12), [#allocation48], 4294967264 }
 0x30e   : > { %8287 = dma.done.wait (%p6608_p12), [#allocation51], 272  }
 0x30f   : > { %8289 = vsyncadd (%p6608_p12), [#allocation51], 4294967024 }
 0x310   : > { %8291 = dma.done.wait (%p6608_p12), [#allocation54], 272  }
 0x311   : > { %8293 = vsyncadd (%p6608_p12), [#allocation54], 4294967024 }
 0x312   : > { %8295 = dma.done.wait (%p6608_p12), [#allocation57], 32  }
 0x313   : > { %8297 = vsyncadd (%p6608_p12), [#allocation57], 4294967264 }
 0x314   : > { %8299 = dma.done.wait (%p6608_p12), [#allocation60], 32  }
 0x315   : > { %8301 = vsyncadd (%p6608_p12), [#allocation60], 4294967264 }
 0x316   : > { %8303 = dma.done.wait (%p6608_p12), [#allocation63], 512  }
 0x317   : > { %8305 = vsyncadd (%p6608_p12), [#allocation63], 4294966784 }
 0x318   : > { %8307 = dma.done.wait (%p6608_p12), [#allocation66], 512  }
 0x319   : > { %8309 = vsyncadd (%p6608_p12), [#allocation66], 4294966784  ;;  %s10197_s26 = sld [smem:[#allocation92_spill]]  ;;  %p2641_p9 = scmp.lt.s32.totalorder %s8830_s7, 1  ;;  %vm2819_vm0 = vcmask 261120   ;;  %vm2840_vm1 = vcmask 64512  }
 0x31a   : > { %s10198_s3 = sld [smem:[#allocation94_spill]]  ;;  %v6813_v4 = vld [vmem:[#allocation2] ss:$0 sm:$0xff]  ;;  %s10065_s1 = smov 72   ;;  %vm2983_vm2 = vcmask 1043456   ;;  %vm3079_vm3 = vcmask 130048  }
 0x31b   : > { %s9437_s16 = scalar_select %p2641_p9, %s8830_s7, 1  ;;  %vm3081_vm4 = vcmask 195584   ;;  %vm3214_vm9 = vcmask 523264  }
 0x31c   : > { %s10067_s13 = smov 120   ;;  %s10069_s12 = smov 88  }
 0x31d   : > { %s10042_s8 = sshll.u32 %s9437_s16, 3  ;;  %s10063_s15 = smov 104  }
 0x31e   : > { %s10059_s2 = smov 112   ;;  %s10061_s5 = smov 80  }
 0x31f   : > { %s2644_s0 = scalar_lea.vmem %s10197_s26, %s10042_s8  ;;  %s10057_s6 = smov 96  }
 0x320   : > { %v6334_v0 = vld [vmem:[%s10198_s3 + $0x8] sm:$0xff]  ;;  %v6333_v1 = vld [vmem:[%s10198_s3] sm:$0xff]  ;;  %s10045_s4 = smov 40   ;;  %s10043_s26 = smov 64  }
 0x321   : > { %v9445_v2 = vld [vmem:[%s2644_s0] sm:$0xff]  ;;  %2829 = vmatpush.bf16.msra.mxu0 %v6334_v0  ;;  %s10047_s0 = smov 56   ;;  %s10049_s8 = smov 48  }
 0x322   : > { %v2803_v3 = vpack.c.bf16 %v9445_v2, %v9445_v2  ;;  %s10211_s3 = smov 8   ;;  %s10215_s9 = sshll.u32 %s9437_s16, 3 }
 0x323   : > { %s10218_s16 = smov 72   ;;  %s10221_s11 = sld [smem:[#allocation110_spill]] }
 0x324   : > { %s10223_s18 = sld [smem:[#allocation112_spill]] }
 0x325   : > { %2830 = vmatpush.bf16.msra.mxu0 %v6333_v1 }
 0x328   : > { %6050 = vmatmul.msk.bf16.vlgmr.msra.gmra.mxu0 %vm2819_vm0, %v2803_v3 }
 0x3a5   : > { %v2832_v5 = vpop.f32.mrf.mxu0 }
 0x3a6   : > { %v2833_v6 = vadd.f32 %v6813_v4, %v2832_v5 }
 0x3a8   : > { %v9450_v7 = vpack.c.bf16 %v2833_v6, %v2833_v6 }
 0x3aa   : > { %2908 = vrot.lane.b32.xlu2 %v9450_v7, %s10065_s1  ;;  %2860 = vrot.lane.b32.xlu1 %v9450_v7, %s10067_s13 }
 0x3ab   : > { %2862 = vrot.lane.b32.xlu0 %v9450_v7, %s10069_s12 }
 0x3ad   : > { %v2834_v8 = vpop.f32.mrf.mxu0 }
 0x3b2   : > { %2906 = vrot.lane.b32.xlu2 %v9450_v7, %s10063_s15  ;;  %2883 = vrot.lane.b32.xlu1 %v9450_v7, %s10059_s2 }
 0x3b3   : > { %2885 = vrot.lane.b32.xlu0 %v9450_v7, %s10061_s5 }
 0x3bb   : > { %2838 = vrot.lane.b32.xlu0 %v9450_v7, %s10057_s6 }
 0x404   : > { %v2909_v9 = vpop.permute.xlu2 %2908 }
 0x405   : > { %v2914_v10 = vsel %vm2840_vm1, %v2909_v9, 0 }
 0x406   : > { %2923 = vmatpush.bf16.xpose.msrb.mxu0 %v2914_v10 }
 0x40c   : > { %v2907_v11 = vpop.permute.xlu2 %2906 }
 0x40d   : > { %6054 = vmatmul.msk.bf16.vlgmr.msrb.gmra.mxu0 %vm2840_vm1, %v2907_v11 }
 0x41c   : > { %v2861_v14 = vpop.permute.xlu1 %2860 }
 0x41d   : > { %v2863_v12 = vpop.permute.xlu0 %2862 }
 0x41e   : > { %v2868_v13 = vsel %vm2840_vm1, %v2863_v12, 0 }
 0x41f   : > { %2877 = vmatpush.bf16.xpose.msra.mxu2 %v2868_v13 }
 0x424   : > { %v2884_v17 = vpop.permute.xlu1 %2883 }
 0x425   : > { %v2886_v15 = vpop.permute.xlu0 %2885 }
 0x426   : > { %6052 = vmatmul.msk.bf16.vlgmr.msra.gmra.mxu2 %vm2840_vm1, %v2861_v14  ;;  %v2891_v16 = vsel %vm2840_vm1, %v2886_v15, 0 }
 0x427   : > { %2900 = vmatpush.bf16.xpose.msra.mxu3 %v2891_v16 }
 0x42d   : > { %v2839_v18 = vpop.permute.xlu0 %2838 }
 0x42e   : > { %6053 = vmatmul.msk.bf16.vlgmr.msra.gmra.mxu3 %vm2840_vm1, %v2884_v17  ;;  %v2845_v19 = vsel %vm2840_vm1, %v2839_v18, 0 }
 0x42f   : > { %2854 = vmatpush.bf16.xpose.msra.mxu1 %v2845_v19 }
 0x436   : > { %6051 = vmatmul.msk.bf16.vlgmr.msra.gmra.mxu1 %vm2840_vm1, %v9450_v7 }
 0x48a   : > { %v2925_v20 = vpop.f32.mrf.mxu0 }
 0x48b   : > { %v2932_v21 = vmul.f32 0.35355338, %v2925_v20 }
 0x48d   : > { %v2942_v22 = vsel %vm2840_vm1, %v2932_v21, -inf }
 0x48e   : > { %2943 = vmax.xlane.f32.xlu0 %v2942_v22 }
 0x492   : > { %v2927_v23 = vpop.f32.mrf.mxu0 }
 0x4a9   : > { %v2879_v24 = vpop.f32.mrf.mxu2 }
 0x4aa   : > { %v2930_v25 = vmul.f32 0.35355338, %v2879_v24 }
 0x4ac   : > { %v2936_v26 = vsel %vm2840_vm1, %v2930_v25, -inf }
 0x4ad   : > { %2937 = vmax.xlane.f32.xlu1 %v2936_v26 }
 0x4b1   : > { %v2881_v27 = vpop.f32.mrf.mxu2  ;;  %v2902_v28 = vpop.f32.mrf.mxu3 }
 0x4b2   : > { %v2931_v29 = vmul.f32 0.35355338, %v2902_v28 }
 0x4b3   : > { %v2856_v30 = vpop.f32.mrf.mxu1 }
 0x4b4   : > { %v2939_v31 = vsel %vm2840_vm1, %v2931_v29, -inf  ;;  %v2929_v32 = vmul.f32 0.35355338, %v2856_v30 }
 0x4b5   : > { %2940 = vmax.xlane.f32.xlu2 %v2939_v31 }
 0x4b6   : > { %v2933_v35 = vsel %vm2840_vm1, %v2929_v32, -inf }
 0x4b9   : > { %v2904_v33 = vpop.f32.mrf.mxu3 }
 0x4bb   : > { %v2858_v34 = vpop.f32.mrf.mxu1 }
 0x4bc   : > { %v6814_v34 = vld [vmem:[#allocation5] ss:$0 sm:$0xff] }
 0x4bd   : > { %2934 = vmax.xlane.f32.xlu2 %v2933_v35 }
 0x501   : > { %v2944_v36 = vpop.xlane.xlu0 %2943 }
 0x502   : > { %v2948_v37 = vsub.f32 %v2932_v21, %v2944_v36 }
 0x504   : > { %v2955_v38 = vmul.f32 1.442695, %v2948_v37 }
 0x506   : > { %6856 = vpow2.f32 %v2955_v38 }
 0x50c   : > { %v6857_v39 = vpop.eup %6856 }
 0x50d   : > { %v2966_v40 = vsel %vm2840_vm1, %v6857_v39, 0.0 }
 0x50e   : > { %2967 = vadd.xlane.f32.xlu0 %v2966_v40  ;;  %v8457_v40 = vmov 32.0  }
 0x520   : > { %v2938_v41 = vpop.xlane.xlu1 %2937 }
 0x521   : > { %v2946_v42 = vsub.f32 %v2930_v25, %v2938_v41 }
 0x522   : > { %3045 = vrot.lane.b32.xlu0 %v9450_v7, %s10045_s4  ;;  %s10053_s4 = smov 16  }
 0x523   : > { %v2951_v43 = vmul.f32 1.442695, %v2946_v42 }
 0x525   : > { %6858 = vpow2.f32 %v2951_v43 }
 0x528   : > { %v2941_v44 = vpop.xlane.xlu2 %2940 }
 0x529   : > { %v2947_v45 = vsub.f32 %v2931_v29, %v2941_v44 }
 0x52a   : > { %2978 = vrot.lane.b32.xlu0 %v9450_v7, %s10043_s26  ;;  %s10199_s26 = sld [smem:[#allocation96_spill]] }
 0x52b   : > { %v6859_v46 = vpop.eup %6858  ;;  %v2953_v47 = vmul.f32 1.442695, %v2947_v45 }
 0x52c   : > { %v2960_v48 = vsel %vm2840_vm1, %v6859_v46, 0.0 }
 0x52d   : > { %6860 = vpow2.f32 %v2953_v47  ;;  %2961 = vadd.xlane.f32.xlu1 %v2960_v48 }
 0x530   : > { %v2935_v51 = vpop.xlane.xlu2 %2934  ;;  %v6336_v25 = vld [vmem:[%s10199_s26 + $0x8] sm:$0xff]  ;;  %v6335_v26 = vld [vmem:[%s10199_s26] sm:$0xff] }
 0x531   : > { %v2945_v52 = vsub.f32 %v2929_v32, %v2935_v51 }
 0x533   : > { %v6861_v49 = vpop.eup %6860  ;;  %v2949_v53 = vmul.f32 1.442695, %v2945_v52 }
 0x534   : > { %v2963_v50 = vsel %vm2840_vm1, %v6861_v49, 0.0 }
 0x535   : > { %2964 = vadd.xlane.f32.xlu2 %v2963_v50  ;;  %6862 = vpow2.f32 %v2949_v53 }
 0x53b   : > { %v6863_v54 = vpop.eup %6862 }
 0x53c   : > { %v2957_v55 = vsel %vm2840_vm1, %v6863_v54, 0.0 }
 0x546   : > { %3001 = vrot.lane.b32.xlu1 %v9450_v7, %s10047_s0  ;;  %s10055_s0 = smov 8  }
 0x54d   : > { %3023 = vrot.lane.b32.xlu2 %v9450_v7, %s10049_s8  ;;  %s10051_s8 = smov 24  }
 0x570   : > { %2958 = vadd.xlane.f32.xlu1 %v2957_v55 }
 0x581   : > { %v2968_v56 = vpop.xlane.xlu0 %2967 }
 0x582   : > { %6864 = vrcp.f32 %v2968_v56 }
 0x588   : > { %v6865_v57 = vpop.eup %6864 }
 0x589   : > { %v2976_v58 = vmul.f32 %v6865_v57, %v6857_v39 }
 0x58b   : > { %v3044_v61 = vpack.c.bf16 %v2976_v58, %v2976_v58 }
 0x594   : > { %v3046_v59 = vpop.permute.xlu0 %3045 }
 0x595   : > { %v3051_v60 = vsel %vm2983_vm2, %v3046_v59, 0 }
 0x596   : > { %3060 = vmatpush.bf16.msra.mxu0 %v3051_v60 }
 0x599   : > { %6058 = vmatmul.msk.bf16.vlgmr.msra.gmra.mxu0 %vm2840_vm1, %v3044_v61 }
 0x59c   : > { %v2979_v62 = vpop.permute.xlu0 %2978 }
 0x59d   : > { %v2985_v63 = vsel %vm2983_vm2, %v2979_v62, 0 }
 0x59e   : > { %2994 = vmatpush.bf16.msrb.mxu1 %v2985_v63 }
 0x5a0   : > { %v2962_v1 = vpop.xlane.xlu1 %2961 }
 0x5a2   : > { %3108 = vmatpush.bf16.msra.mxu1 %v6336_v25 }
 0x5a6   : > { %3109 = vmatpush.bf16.msra.mxu1 %v6335_v26 }
 0x5a8   : > { %v2965_v0 = vpop.xlane.xlu2 %2964 }
 0x5a9   : > { %6866 = vrcp.f32 %v2965_v0  ;;  %v6815_v0 = vld [vmem:[#allocation7] ss:$0 sm:$0xff] }
 0x5aa   : > { %6868 = vrcp.f32 %v2962_v1 }
 0x5af   : > { %v6867_v3 = vpop.eup %6866 }
 0x5b0   : > { %v2975_v4 = vmul.f32 %v6867_v3, %v6861_v49  ;;  %v3024_v5 = vpop.permute.xlu2 %3023  ;;  %v6869_v8 = vpop.eup %6868  ;;  %v6816_v3 = vld [vmem:[#allocation8] ss:$0 sm:$0xff] }
 0x5b1   : > { %v3029_v6 = vsel %vm2983_vm2, %v3024_v5, 0  ;;  %v2974_v9 = vmul.f32 %v6869_v8, %v6859_v46 }
 0x5b2   : > { %3038 = vmatpush.bf16.msrb.mxu3 %v3029_v6  ;;  %v3022_v7 = vpack.c.bf16 %v2975_v4, %v2975_v4 }
 0x5b3   : > { %v3000_v12 = vpack.c.bf16 %v2974_v9, %v2974_v9 }
 0x5b5   : > { %6057 = vmatmul.msk.bf16.vlgmr.msrb.gmra.mxu3 %vm2840_vm1, %v3022_v7 }
 0x5b8   : > { %v3002_v10 = vpop.permute.xlu1 %3001 }
 0x5b9   : > { %v3007_v11 = vsel %vm2983_vm2, %v3002_v10, 0  ;;  %v6817_v10 = vld [vmem:[#allocation10] ss:$0 sm:$0xff] }
 0x5ba   : > { %3016 = vmatpush.bf16.msrb.mxu2 %v3007_v11 }
 0x5bd   : > { %6056 = vmatmul.msk.bf16.vlgmr.msrb.gmra.mxu2 %vm2840_vm1, %v3000_v12 }
 0x5e3   : > { %v2959_v13 = vpop.xlane.xlu1 %2958 }
 0x5e4   : > { %6870 = vrcp.f32 %v2959_v13 }
 0x5e5   : > { %6872 = vrcp.f32 %v8457_v40  ;;  %v6820_v40 = vld [vmem:[#allocation14] ss:$0 sm:$0xff] }
 0x5ea   : > { %v6871_v14 = vpop.eup %6870 }
 0x5eb   : > { %v2973_v15 = vmul.f32 %v6871_v14, %v6863_v54  ;;  %v6873_v41 = vpop.eup %6872 }
 0x5ec   : > { %v3120_v42 = vmul.f32 32.0, %v6873_v41  ;;  %vm3124_vm5 = vweird.f32 %v6873_v41 }
 0x5ed   : > { %v2977_v16 = vpack.c.bf16 %v2973_v15, %v2973_v15 }
 0x5ee   : > { %v3121_v43 = vsub.f32 1.0, %v3120_v42 }
 0x5ef   : > { %6055 = vmatmul.msk.bf16.vlgmr.msrb.gmra.mxu1 %vm2840_vm1, %v2977_v16  ;;  %v6818_v16 = vld [vmem:[#allocation11] ss:$0 sm:$0xff] }
 0x5f0   : > { %v3122_v44 = vmul.f32 %v6873_v41, %v3121_v43 }
 0x5f2   : > { %v3123_v45 = vadd.f32 %v6873_v41, %v3122_v44 }
 0x5f4   : > { %v9510_v46 = vsel %vm3124_vm5, %v6873_v41, %v3123_v45  ;;  %v6821_v45 = vld [vmem:[#allocation16] ss:$0 sm:$0xff] }
 0x616   : > { %v3062_v17 = vpop.f32.mrf.mxu0 }
 0x61e   : > { %v3064_v18 = vpop.f32.mrf.mxu0 }
 0x638   : > { %v3040_v19 = vpop.f32.mrf.mxu3 }
 0x639   : > { %3071 = vrot.lane.b32.xlu0 %v3040_v19, %s10053_s4  ;;  %s10201_s4 = sld [smem:[#allocation101_spill]] }
 0x63f   : > { %v6342_v53 = vld [vmem:[%s10201_s4 + $0x18] sm:$0xff]  ;;  %v6341_v56 = vld [vmem:[%s10201_s4 + $0x10] sm:$0xff]  ;;  %v6340_v8 = vld [vmem:[%s10201_s4 + $0x8] sm:$0xff] }
 0x640   : > { %v3018_v20 = vpop.f32.mrf.mxu2  ;;  %v3042_v21 = vpop.f32.mrf.mxu3  ;;  %3222 = vmatpush.bf16.msra.mxu3 %v6342_v53  ;;  %v6339_v9 = vld [vmem:[%s10201_s4] sm:$0xff]  ;;  %s10212_s4 = sld [smem:[#allocation115_spill]] }
 0x641   : > { %3067 = vrot.lane.b32.xlu2 %v3018_v20, %s10055_s0  ;;  %s10202_s0 = sld [smem:[#allocation104_spill]] }
 0x644   : > { %3223 = vmatpush.bf16.msra.mxu3 %v6341_v56 }
 0x647   : > { %s10203_s6 = smov %s10202_s0 }
 0x648   : > { %v3020_v22 = vpop.f32.mrf.mxu2  ;;  %3224 = vmatpush.bf16.msra.mxu3 %v6340_v8 }
 0x649   : > { %3075 = vrot.lane.b32.xlu2 %v3062_v17, %s10051_s8  ;;  %s10200_s8 = sld [smem:[#allocation99_spill]] }
 0x64c   : > { %3225 = vmatpush.bf16.msra.mxu3 %v6339_v9 }
 0x64f   : > { %v6338_v51 = vld [vmem:[%s10200_s8 + $0x8] sm:$0xff]  ;;  %v6337_v52 = vld [vmem:[%s10200_s8] sm:$0xff]  ;;  %s10214_s8 = smov 24  }
 0x650   : > { %3178 = vmatpush.bf16.msra.mxu2 %v6338_v51 }
 0x654   : > { %3179 = vmatpush.bf16.msra.mxu2 %v6337_v52 }
 0x66c   : > { %v2996_v23 = vpop.f32.mrf.mxu1 }
 0x674   : > { %v2998_v24 = vpop.f32.mrf.mxu1 }
 0x69b   : > { %v3068_v27 = vpop.permute.xlu2 %3067 }
 0x69c   : > { %v3078_v28 = vsel %vm2840_vm1, %v2996_v23, %v3068_v27  ;;  %v6344_v27 = vld [vmem:[%s10202_s0 + $0x8] sm:$0xff]  ;;  %s10204_s0 = smov 96  }
 0x69d   : > { %3287 = vmatpush.bf16.msrb.mxu0 %v6344_v27 }
 0x6a3   : > { %v3076_v30 = vpop.permute.xlu2 %3075 }
 0x6ab   : > { %v3072_v29 = vpop.permute.xlu0 %3071 }
 0x6ac   : > { %v3080_v31 = vsel %vm3079_vm3, %v3078_v28, %v3072_v29  ;;  %v6343_v28 = vld [vmem:[%s10203_s6] sm:$0xff]  ;;  %s10213_s6 = smov 16  }
 0x6ad   : > { %v3082_v32 = vsel %vm3081_vm4, %v3080_v31, %v3076_v30  ;;  %3288 = vmatpush.bf16.msrb.mxu0 %v6343_v28 }
 0x6ae   : > { %v3083_v33 = vpack.c.bf16 %v3082_v32, %v3082_v32 }
 0x6b0   : > { %6067 = vmatmul.msk.bf16.vlgmr.msra.gmra.mxu1 %vm2819_vm0, %v3083_v33 }
 0x72d   : > { %v3111_v35 = vpop.f32.mrf.mxu1 }
 0x72e   : > { %v3112_v36 = vadd.f32 %v6814_v34, %v3111_v35 }
 0x730   : > { %v3115_v37 = vadd.f32 %v3112_v36, %v9445_v2 }
 0x732   : > { %v3116_v38 = vsel %vm2819_vm0, %v3115_v37, 0.0 }
 0x733   : > { %3117 = vadd.xlane.f32.xlu0 %v3116_v38  ;;  %v6819_v38 = vld [vmem:[#allocation13] ss:$0 sm:$0xff] }
 0x735   : > { %v3113_v39 = vpop.f32.mrf.mxu1 }
 0x7a6   : > { %v3118_v47 = vpop.xlane.xlu0 %3117 }
 0x7a7   : > { %v3126_v2 = vmul.f32 %v9510_v46, %v3118_v47 }
 0x7a9   : > { %v3127_v48 = vsub.f32 %v3115_v37, %v3126_v2 }
 0x7ab   : > { %v3128_v49 = vmul.f32 %v3127_v48, %v3127_v48 }
 0x7ad   : > { %v3129_v50 = vsel %vm2819_vm0, %v3128_v49, 0.0 }
 0x7ae   : > { %3130 = vadd.xlane.f32.xlu2 %v3129_v50 }
 0x821   : > { %v3131_v54 = vpop.xlane.xlu2 %3130 }
 0x822   : > { %v3132_v55 = vmul.f32 %v3131_v54, %v9510_v46 }
 0x824   : > { %v3133_v57 = vadd.f32 1e-05, %v3132_v55 }
 0x826   : > { %6874 = vrsqrt.f32 %v3133_v57  ;;  %vm3140_vm7 = vweird.f32 %v3133_v57 }
 0x82c   : > { %v6875_v58 = vpop.eup %6874 }
 0x82d   : > { %v3135_v59 = vmul.f32 %v6875_v58, %v3133_v57  ;;  %vm3141_vm6 = vweird.f32 %v6875_v58 }
 0x82e   : > { %vm3142_vm8 = vmor %vm3140_vm7, %vm3141_vm6 }
 0x82f   : > { %v3136_v60 = vmul.f32 %v6875_v58, %v3135_v59 }
 0x831   : > { %v3137_v61 = vmul.f32 0.5, %v3136_v60 }
 0x833   : > { %v3138_v62 = vsub.f32 1.5, %v3137_v61 }
 0x835   : > { %v3139_v63 = vmul.f32 %v6875_v58, %v3138_v62 }
 0x837   : > { %v3143_v1 = vsel %vm3142_vm8, %v6875_v58, %v3139_v63 }
 0x838   : > { %v3144_v4 = vmul.f32 %v3143_v1, %v3127_v48 }
 0x83a   : > { %v3148_v5 = vmul.f32 %v6815_v0, %v3144_v4 }
 0x83c   : > { %v3152_v6 = vadd.f32 %v6816_v3, %v3148_v5 }
 0x83e   : > { %v3153_v7 = vpack.c.bf16 %v3152_v6, %v3152_v6 }
 0x840   : > { %6076 = vmatmul.msk.bf16.vlgmr.msra.gmra.mxu2 %vm2819_vm0, %v3153_v7 }
 0x8c3   : > { %v3181_v11 = vpop.f32.mrf.mxu2 }
 0x8c4   : > { %v3182_v12 = vadd.f32 %v6817_v10, %v3181_v11 }
 0x8c6   : > { %v3185_v13 = vmax.f32 %v3182_v12, 0.0 }
 0x8c8   : > { %v3186_v14 = vpack.c.bf16 %v3185_v13, %v3185_v13 }
 0x8ca   : > { %6093 = vmatmul.msk.bf16.vlgmr.msra.gmra.mxu3 %vm3214_vm9, %v3186_v14 }
 0x8cb   : > { %v3183_v15 = vpop.f32.mrf.mxu2 }
 0x94d   : > { %v3227_v17 = vpop.f32.mrf.mxu3 }
 0x94e   : > { %v3228_v18 = vadd.f32 %v6818_v16, %v3227_v17 }
 0x950   : > { %v3231_v19 = vadd.f32 %v3228_v18, %v3152_v6 }
 0x952   : > { %v3232_v20 = vsel %vm2819_vm0, %v3231_v19, 0.0 }
 0x953   : > { %3233 = vadd.xlane.f32.xlu1 %v3232_v20 }
 0x955   : > { %v3229_v21 = vpop.f32.mrf.mxu3 }
 0x9c6   : > { %v3234_v22 = vpop.xlane.xlu1 %3233 }
 0x9c7   : > { %v3235_v23 = vmul.f32 %v3234_v22, %v9510_v46 }
 0x9c9   : > { %v3236_v24 = vsub.f32 %v3231_v19, %v3235_v23 }
 0x9cb   : > { %v3237_v25 = vmul.f32 %v3236_v24, %v3236_v24 }
 0x9cd   : > { %v3238_v26 = vsel %vm2819_vm0, %v3237_v25, 0.0 }
 0x9ce   : > { %3239 = vadd.xlane.f32.xlu1 %v3238_v26 }
 0xa41   : > { %v3240_v29 = vpop.xlane.xlu1 %3239 }
 0xa42   : > { %v3241_v30 = vmul.f32 %v3240_v29, %v9510_v46 }
 0xa44   : > { %v3242_v31 = vadd.f32 1e-05, %v3241_v30 }
 0xa46   : > { %6876 = vrsqrt.f32 %v3242_v31  ;;  %vm3249_vm11 = vweird.f32 %v3242_v31 }
 0xa4c   : > { %v6877_v32 = vpop.eup %6876 }
 0xa4d   : > { %v3244_v33 = vmul.f32 %v6877_v32, %v3242_v31  ;;  %vm3250_vm10 = vweird.f32 %v6877_v32 }
 0xa4e   : > { %vm3251_vm12 = vmor %vm3249_vm11, %vm3250_vm10 }
 0xa4f   : > { %v3245_v34 = vmul.f32 %v6877_v32, %v3244_v33 }
 0xa51   : > { %v3246_v35 = vmul.f32 0.5, %v3245_v34 }
 0xa53   : > { %v3247_v36 = vsub.f32 1.5, %v3246_v35 }
 0xa55   : > { %v3248_v37 = vmul.f32 %v6877_v32, %v3247_v36 }
 0xa57   : > { %v3252_v39 = vsel %vm3251_vm12, %v6877_v32, %v3248_v37 }
 0xa58   : > { %v3253_v41 = vmul.f32 %v3252_v39, %v3236_v24 }
 0xa5a   : > { %v3257_v42 = vmul.f32 %v6819_v38, %v3253_v41 }
 0xa5c   : > { %v9529_v43 = vadd.f32 %v6820_v40, %v3257_v42 }
 0xa5e   : > { %v3262_v44 = vpack.c.bf16 %v9529_v43, %v9529_v43 }
 0xa60   : > { %6102 = vmatmul.msk.bf16.vlgmr.msrb.gmra.mxu0 %vm2819_vm0, %v3262_v44 }
 0xadd   : > { %v3290_v47 = vpop.f32.mrf.mxu0 }
 0xade   : > { %v3291_v2 = vadd.f32 %v6821_v45, %v3290_v47 }
 0xae0   : > { %v9534_v48 = vpack.c.bf16 %v3291_v2, %v3291_v2 }
 0xae2   : > { %3317 = vrot.lane.b32.xlu2 %v9534_v48, %s10067_s13  ;;  %3342 = vrot.lane.b32.xlu0 %v9534_v48, %s10061_s5  ;;  %s10206_s5 = smov 56   ;;  %s10209_s13 = sld [smem:[#allocation106_spill]] }
 0xae3   : > { %3319 = vrot.lane.b32.xlu1 %v9534_v48, %s10069_s12  ;;  %s10210_s12 = sld [smem:[#allocation93_spill]] }
 0xae5   : > { %v3292_v49 = vpop.f32.mrf.mxu0 }
 0xae9   : > { %s2648_s10 = scalar_lea.vmem %s10210_s12, %s10215_s9  ;;  %s10217_s9 = smov 120  }
 0xaea   : > { %3363 = vrot.lane.b32.xlu2 %v9534_v48, %s10063_s15  ;;  %3340 = vrot.lane.b32.xlu0 %v9534_v48, %s10059_s2  ;;  %s10205_s2 = smov 48   ;;  %s10207_s15 = smov 40  }
 0xaeb   : > { %3365 = vrot.lane.b32.xlu1 %v9534_v48, %s10065_s1  ;;  %s10208_s1 = smov 64   ;;  %s10219_s12 = smov 104  }
 0xaf2   : > { %3296 = vrot.lane.b32.xlu0 %v9534_v48, %s10204_s0 }
 0xb3c   : > { %v3318_v54 = vpop.permute.xlu2 %3317 }
 0xb44   : > { %v3364_v59 = vpop.permute.xlu2 %3363 }
 0xb54   : > { %v3343_v50 = vpop.permute.xlu0 %3342 }
 0xb55   : > { %v3348_v51 = vsel %vm2840_vm1, %v3343_v50, 0  ;;  %v3320_v52 = vpop.permute.xlu1 %3319 }
 0xb56   : > { %v3325_v53 = vsel %vm2840_vm1, %v3320_v52, 0  ;;  %3357 = vmatpush.bf16.xpose.msrb.mxu3 %v3348_v51 }
 0xb57   : > { %3334 = vmatpush.bf16.xpose.msrb.mxu2 %v3325_v53 }
 0xb5c   : > { %v3341_v55 = vpop.permute.xlu0 %3340 }
 0xb5d   : > { %v3366_v56 = vpop.permute.xlu1 %3365  ;;  %6105 = vmatmul.msk.bf16.vlgmr.msrb.gmra.mxu3 %vm2840_vm1, %v3341_v55 }
 0xb5e   : > { %v3371_v57 = vsel %vm2840_vm1, %v3366_v56, 0  ;;  %6104 = vmatmul.msk.bf16.vlgmr.msrb.gmra.mxu2 %vm2840_vm1, %v3318_v54 }
 0xb5f   : > { %3380 = vmatpush.bf16.xpose.msra.mxu0 %v3371_v57 }
 0xb64   : > { %v3297_v58 = vpop.permute.xlu0 %3296 }
 0xb65   : > { %v3302_v60 = vsel %vm2840_vm1, %v3297_v58, 0 }
 0xb66   : > { %6106 = vmatmul.msk.bf16.vlgmr.msra.gmra.mxu0 %vm2840_vm1, %v3364_v59  ;;  %3311 = vmatpush.bf16.xpose.msrb.mxu1 %v3302_v60 }
 0xb6d   : > { %6103 = vmatmul.msk.bf16.vlgmr.msrb.gmra.mxu1 %vm2840_vm1, %v9534_v48 }
 0xbe0   : > { %v3359_v61 = vpop.f32.mrf.mxu3 }
 0xbe1   : > { %v3336_v62 = vpop.f32.mrf.mxu2  ;;  %v3388_v63 = vmul.f32 0.35355338, %v3359_v61 }
 0xbe2   : > { %v3387_v0 = vmul.f32 0.35355338, %v3336_v62 }
 0xbe3   : > { %v3382_v1 = vpop.f32.mrf.mxu0  ;;  %v3396_v3 = vsel %vm2840_vm1, %v3388_v63, -inf }
 0xbe4   : > { %v3389_v4 = vmul.f32 0.35355338, %v3382_v1  ;;  %3397 = vmax.xlane.f32.xlu2 %v3396_v3  ;;  %v3393_v5 = vsel %vm2840_vm1, %v3387_v0, -inf }
 0xbe5   : > { %3394 = vmax.xlane.f32.xlu1 %v3393_v5  ;;  %v6345_v5 = vld [vmem:[%s10209_s13] sm:$0xff] }
 0xbe6   : > { %v3399_v6 = vsel %vm2840_vm1, %v3389_v4, -inf }
 0xbe7   : > { %3400 = vmax.xlane.f32.xlu0 %v3399_v6  ;;  %v6354_v6 = vld [vmem:[%s10212_s4 + $0x8] sm:$0xff] }
 0xbe8   : > { %v3361_v7 = vpop.f32.mrf.mxu3 }
 0xbe9   : > { %v3338_v8 = vpop.f32.mrf.mxu2  ;;  %v9592_v7 = vld [vmem:[%s2648_s10] sm:$0xff]  ;;  %s10216_s10 = smov 88  }
 0xbea   : > { %v3313_v9 = vpop.f32.mrf.mxu1  ;;  %v6353_v8 = vld [vmem:[%s10212_s4] sm:$0xff]  ;;  %s10220_s4 = smov 80  }
 0xbeb   : > { %v3386_v10 = vmul.f32 0.35355338, %v3313_v9  ;;  %v3384_v11 = vpop.f32.mrf.mxu0  ;;  %v3708_v9 = vpack.c.bf16 %v9592_v7, %v9592_v7 }
 0xbed   : > { %v3390_v12 = vsel %vm2840_vm1, %v3386_v10, -inf }
 0xbee   : > { %3391 = vmax.xlane.f32.xlu1 %v3390_v12 }
 0xbf2   : > { %v3315_v13 = vpop.f32.mrf.mxu1 }
 0xc57   : > { %v3398_v14 = vpop.xlane.xlu2 %3397 }
 0xc58   : > { %v3404_v15 = vsub.f32 %v3388_v63, %v3398_v14  ;;  %v3395_v16 = vpop.xlane.xlu1 %3394 }
 0xc59   : > { %v3403_v17 = vsub.f32 %v3387_v0, %v3395_v16 }
 0xc5a   : > { %v3410_v18 = vmul.f32 1.442695, %v3404_v15  ;;  %v3401_v19 = vpop.xlane.xlu0 %3400 }
 0xc5b   : > { %v3408_v20 = vmul.f32 1.442695, %v3403_v17  ;;  %v3405_v21 = vsub.f32 %v3389_v4, %v3401_v19  ;;  %v6346_v4 = vld [vmem:[%s10209_s13 + $0x8] sm:$0xff]  ;;  %v6823_v17 = vld [vmem:[#allocation28] ss:$0 sm:$0xff]  ;;  %s10222_s13 = smov 112  }
 0xc5c   : > { %6878 = vpow2.f32 %v3410_v18 }
 0xc5d   : > { %6880 = vpow2.f32 %v3408_v20  ;;  %v3412_v22 = vmul.f32 1.442695, %v3405_v21 }
 0xc5f   : > { %6882 = vpow2.f32 %v3412_v22  ;;  %v6822_v22 = vld [vmem:[#allocation17] ss:$0 sm:$0xff] }
 0xc61   : > { %v3392_v29 = vpop.xlane.xlu1 %3391 }
 0xc62   : > { %v6879_v23 = vpop.eup %6878  ;;  %v3402_v30 = vsub.f32 %v3386_v10, %v3392_v29 }
 0xc63   : > { %v6881_v24 = vpop.eup %6880  ;;  %v3420_v25 = vsel %vm2840_vm1, %v6879_v23, 0.0 }
 0xc64   : > { %3421 = vadd.xlane.f32.xlu0 %v3420_v25  ;;  %v3417_v26 = vsel %vm2840_vm1, %v6881_v24, 0.0  ;;  %v3406_v31 = vmul.f32 1.442695, %v3402_v30 }
 0xc65   : > { %v6883_v27 = vpop.eup %6882  ;;  %3418 = vadd.xlane.f32.xlu2 %v3417_v26 }
 0xc66   : > { %v3423_v28 = vsel %vm2840_vm1, %v6883_v27, 0.0  ;;  %6884 = vpow2.f32 %v3406_v31 }
 0xc67   : > { %3424 = vadd.xlane.f32.xlu1 %v3423_v28 }
 0xc6c   : > { %v6885_v32 = vpop.eup %6884 }
 0xc6d   : > { %v3414_v33 = vsel %vm2840_vm1, %v6885_v32, 0.0 }
 0xc78   : > { %3479 = vrot.lane.b32.xlu0 %v9534_v48, %s10205_s2 }
 0xc7d   : > { %3457 = vrot.lane.b32.xlu2 %v9534_v48, %s10206_s5 }
 0xc80   : > { %3501 = vrot.lane.b32.xlu1 %v9534_v48, %s10207_s15 }
 0xc85   : > { %3435 = vrot.lane.b32.xlu2 %v9534_v48, %s10208_s1 }
 0xca2   : > { %3415 = vadd.xlane.f32.xlu0 %v3414_v33 }
 0xcd7   : > { %v3422_v35 = vpop.xlane.xlu0 %3421 }
 0xcd8   : > { %v3419_v34 = vpop.xlane.xlu2 %3418 }
 0xcd9   : > { %6886 = vrcp.f32 %v3419_v34 }
 0xcda   : > { %6888 = vrcp.f32 %v3422_v35  ;;  %v3425_v41 = vpop.xlane.xlu1 %3424 }
 0xcdb   : > { %6890 = vrcp.f32 %v3425_v41 }
 0xcdf   : > { %v6887_v36 = vpop.eup %6886 }
 0xce0   : > { %v3431_v37 = vmul.f32 %v6887_v36, %v6881_v24  ;;  %v3458_v38 = vpop.permute.xlu2 %3457  ;;  %v6889_v42 = vpop.eup %6888 }
 0xce1   : > { %v3463_v39 = vsel %vm2983_vm2, %v3458_v38, 0  ;;  %v3432_v45 = vmul.f32 %v6889_v42, %v6879_v23  ;;  %v6891_v50 = vpop.eup %6890 }
 0xce2   : > { %v3456_v40 = vpack.c.bf16 %v3431_v37, %v3431_v37  ;;  %3472 = vmatpush.bf16.msra.mxu2 %v3463_v39  ;;  %v3433_v51 = vmul.f32 %v6891_v50, %v6883_v27  ;;  %v6348_v37 = vld [vmem:[%s10221_s11 + $0x8] sm:$0xff]  ;;  %v6347_v39 = vld [vmem:[%s10221_s11] sm:$0xff]  ;;  %v3836_v50 = vlaneseq  ;;  %s10224_s11 = sld [smem:[#allocation117_spill]] }
 0xce3   : > { %v3478_v49 = vpack.c.bf16 %v3432_v45, %v3432_v45 }
 0xce4   : > { %v3500_v54 = vpack.c.bf16 %v3433_v51, %v3433_v51  ;;  %v6352_v51 = vld [vmem:[%s10223_s18 + $0x18] sm:$0xff] }
 0xce5   : > { %6108 = vmatmul.msk.bf16.vlgmr.msra.gmra.mxu2 %vm2840_vm1, %v3456_v40 }
 0xce6   : > { %3625 = vmatpush.bf16.msrb.mxu2 %v6348_v37 }
 0xce8   : > { %v3436_v44 = vpop.permute.xlu2 %3435 }
 0xce9   : > { %v3441_v47 = vsel %vm2983_vm2, %v3436_v44, 0 }
 0xcea   : > { %3450 = vmatpush.bf16.msra.mxu1 %v3441_v47  ;;  %v3480_v2 = vpop.permute.xlu0 %3479  ;;  %3626 = vmatpush.bf16.msrb.mxu2 %v6347_v39 }
 0xceb   : > { %v3485_v48 = vsel %vm2983_vm2, %v3480_v2, 0 }
 0xcec   : > { %3494 = vmatpush.bf16.msra.mxu3 %v3485_v48 }
 0xcee   : > { %3562 = vmatpush.bf16.msrb.mxu1 %v6346_v4 }
 0xcef   : > { %6109 = vmatmul.msk.bf16.vlgmr.msra.gmra.mxu3 %vm2840_vm1, %v3478_v49 }
 0xcf0   : > { %3668 = vmatpush.bf16.msrb.mxu3 %v6352_v51 }
 0xcf2   : > { %v3502_v52 = vpop.permute.xlu1 %3501  ;;  %3563 = vmatpush.bf16.msrb.mxu1 %v6345_v5 }
 0xcf3   : > { %v3507_v53 = vsel %vm2983_vm2, %v3502_v52, 0 }
 0xcf4   : > { %3516 = vmatpush.bf16.msrb.mxu0 %v3507_v53 }
 0xcf7   : > { %6110 = vmatmul.msk.bf16.vlgmr.msrb.gmra.mxu0 %vm2840_vm1, %v3500_v54 }
 0xcf8   : > { %3733 = vmatpush.bf16.msra.mxu0 %v6354_v6 }
 0xcfc   : > { %3734 = vmatpush.bf16.msra.mxu0 %v6353_v8 }
 0xd07   : > { %6154 = vmatmul.msk.bf16.vlgmr.msra.gmra.mxu0 %vm2819_vm0, %v3708_v9  ;;  %v6349_v9 = vld [vmem:[%s10223_s18] sm:$0xff] }
 0xd15   : > { %v3416_v55 = vpop.xlane.xlu0 %3415 }
 0xd16   : > { %6892 = vrcp.f32 %v3416_v55  ;;  %v3837_v55 = vshrl.u32 %v3836_v50, 7 }
 0xd1c   : > { %v6893_v56 = vpop.eup %6892 }
 0xd1d   : > { %v3430_v57 = vmul.f32 %v6893_v56, %v6885_v32  ;;  %v3839_v56 = vand.u32 127, %v3836_v50 }
 0xd1f   : > { %v3434_v58 = vpack.c.bf16 %v3430_v57, %v3430_v57  ;;  %v6351_v57 = vld [vmem:[%s10223_s18 + $0x10] sm:$0xff]  ;;  %vm3840_vm14 = vcmp.gt.s32.totalorder %v3839_v56, %v3837_v55 }
 0xd20   : > { %3669 = vmatpush.bf16.msrb.mxu3 %v6351_v57 }
 0xd21   : > { %6107 = vmatmul.msk.bf16.vlgmr.msra.gmra.mxu1 %vm2840_vm1, %v3434_v58 }
 0xd68   : > { %v3474_v59 = vpop.f32.mrf.mxu2 }
 0xd69   : > { %3523 = vrot.lane.b32.xlu1 %v3474_v59, %s10211_s3 }
 0xd70   : > { %v3476_v60 = vpop.f32.mrf.mxu2 }
 0xd71   : > { %v8458_v60 = vmov 0.0  }
 0xd72   : > { %v3496_v61 = vpop.f32.mrf.mxu3 }
 0xd73   : > { %3527 = vrot.lane.b32.xlu2 %v3496_v61, %s10213_s6  ;;  %v9633_v61 = vsel %vm3840_vm14, -1e+30, %v8458_v60 }
 0xd74   : > { %v3518_v62 = vpop.f32.mrf.mxu0 }
 0xd75   : > { %3531 = vrot.lane.b32.xlu1 %v3518_v62, %s10214_s8  ;;  %v6824_v62 = vld [vmem:[#allocation19] ss:$0 sm:$0xff] }
 0xd7a   : > { %v3498_v63 = vpop.f32.mrf.mxu3 }
 0xd7c   : > { %v3520_v0 = vpop.f32.mrf.mxu0 }
 0xd7d   : > { %v6350_v0 = vld [vmem:[%s10223_s18 + $0x8] sm:$0xff]  ;;  %s10226_s18 = sld [smem:[#allocation128_spill]] }
 0xd7e   : > { %3670 = vmatpush.bf16.msrb.mxu3 %v6350_v0 }
 0xd82   : > { %3671 = vmatpush.bf16.msrb.mxu3 %v6349_v9 }
 0xd84   : > { %v3736_v18 = vpop.f32.mrf.mxu0 }
 0xd85   : > { %v3737_v19 = vadd.f32 %v6823_v17, %v3736_v18 }
 0xd87   : > { %v9602_v20 = vpack.c.bf16 %v3737_v19, %v3737_v19 }
 0xd89   : > { %3765 = vrot.lane.b32.xlu0 %v9602_v20, %s10216_s10 }
 0xd8c   : > { %v3738_v21 = vpop.f32.mrf.mxu0 }
 0xd91   : > { %3763 = vrot.lane.b32.xlu0 %v9602_v20, %s10217_s9 }
 0xd99   : > { %3811 = vrot.lane.b32.xlu0 %v9602_v20, %s10218_s16 }
 0xd9e   : > { %v3452_v1 = vpop.f32.mrf.mxu1 }
 0xda1   : > { %3809 = vrot.lane.b32.xlu0 %v9602_v20, %s10219_s12 }
 0xda6   : > { %v3454_v3 = vpop.f32.mrf.mxu1 }
 0xda7   : > { %v6825_v3 = vld [vmem:[#allocation20] ss:$0 sm:$0xff] }
 0xdcd   : > { %v3528_v12 = vpop.permute.xlu2 %3527 }
 0xddb   : > { %v3524_v10 = vpop.permute.xlu1 %3523 }
 0xddc   : > { %v3534_v11 = vsel %vm2840_vm1, %v3452_v1, %v3524_v10 }
 0xddd   : > { %v3535_v13 = vsel %vm3079_vm3, %v3534_v11, %v3528_v12 }
 0xde7   : > { %v3532_v14 = vpop.permute.xlu1 %3531 }
 0xde8   : > { %v3536_v15 = vsel %vm3081_vm4, %v3535_v13, %v3532_v14 }
 0xde9   : > { %v3537_v16 = vpack.c.bf16 %v3536_v15, %v3536_v15  ;;  %v6826_v15 = vld [vmem:[#allocation22] ss:$0 sm:$0xff] }
 0xdeb   : > { %6119 = vmatmul.msk.bf16.vlgmr.msrb.gmra.mxu1 %vm2819_vm0, %v3537_v16 }
 0xdfb   : > { %v3766_v28 = vpop.permute.xlu0 %3765 }
 0xdfc   : > { %v3771_v38 = vsel %vm2840_vm1, %v3766_v28, 0 }
 0xdfd   : > { %3780 = vmatpush.bf16.xpose.msra.mxu2 %v3771_v38 }
 0xe03   : > { %v9618_v29 = vpop.permute.xlu0 %3763 }
 0xe0b   : > { %v3812_v30 = vpop.permute.xlu0 %3811 }
 0xe13   : > { %v3810_v32 = vpop.permute.xlu0 %3809 }
 0xe68   : > { %v3565_v23 = vpop.f32.mrf.mxu1 }
 0xe69   : > { %v3566_v24 = vadd.f32 %v6822_v22, %v3565_v23 }
 0xe6b   : > { %v3569_v25 = vadd.f32 %v3566_v24, %v9529_v43  ;;  %v3817_v43 = vsel %vm2840_vm1, %v3812_v30, 0 }
 0xe6c   : > { %3826 = vmatpush.bf16.xpose.msrb.mxu0 %v3817_v43 }
 0xe6d   : > { %v3570_v26 = vsel %vm2819_vm0, %v3569_v25, 0.0 }
 0xe6e   : > { %3571 = vadd.xlane.f32.xlu2 %v3570_v26 }
 0xe70   : > { %v3567_v27 = vpop.f32.mrf.mxu1 }
 0xe73   : > { %6158 = vmatmul.msk.bf16.vlgmr.msrb.gmra.mxu0 %vm2840_vm1, %v3810_v32 }
 0xe86   : > { %3788 = vrot.lane.b32.xlu2 %v9602_v20, %s10220_s4 }
 0xe8e   : > { %3742 = vrot.lane.b32.xlu2 %v9602_v20, %s10204_s0 }
 0xee1   : > { %v3572_v31 = vpop.xlane.xlu2 %3571 }
 0xee2   : > { %v3573_v33 = vmul.f32 %v3572_v31, %v9510_v46 }
 0xee4   : > { %v3574_v34 = vsub.f32 %v3569_v25, %v3573_v33 }
 0xee6   : > { %v3575_v35 = vmul.f32 %v3574_v34, %v3574_v34 }
 0xee8   : > { %v3576_v36 = vsel %vm2819_vm0, %v3575_v35, 0.0 }
 0xee9   : > { %3577 = vadd.xlane.f32.xlu1 %v3576_v36  ;;  %v3789_v44 = vpop.permute.xlu2 %3788 }
 0xeea   : > { %v3794_v11 = vsel %vm2840_vm1, %v3789_v44, 0 }
 0xeeb   : > { %3803 = vmatpush.bf16.xpose.msra.mxu3 %v3794_v11 }
 0xef0   : > { %v3828_v49 = vpop.f32.mrf.mxu0 }
 0xef1   : > { %v3743_v48 = vpop.permute.xlu2 %3742  ;;  %v3835_v54 = vmul.f32 0.35355338, %v3828_v49 }
 0xef2   : > { %v3748_v53 = vsel %vm2840_vm1, %v3743_v48, 0 }
 0xef3   : > { %3757 = vmatpush.bf16.xpose.msra.mxu1 %v3748_v53  ;;  %v3845_v63 = vadd.f32 %v9633_v61, %v3835_v54 }
 0xef5   : > { %v3855_v5 = vsel %vm2840_vm1, %v3845_v63, -inf }
 0xef6   : > { %3856 = vmax.xlane.f32.xlu2 %v3855_v5 }
 0xef8   : > { %v3830_v6 = vpop.f32.mrf.mxu0 }
 0xefa   : > { %6155 = vmatmul.msk.bf16.vlgmr.msra.gmra.mxu1 %vm2840_vm1, %v9602_v20 }
 0xf02   : > { %3786 = vrot.lane.b32.xlu1 %v9602_v20, %s10222_s13 }
 0xf5c   : > { %v3578_v40 = vpop.xlane.xlu1 %3577 }
 0xf5d   : > { %v3579_v41 = vmul.f32 %v3578_v40, %v9510_v46 }
 0xf5f   : > { %v3580_v42 = vadd.f32 1e-05, %v3579_v41 }
 0xf61   : > { %6894 = vrsqrt.f32 %v3580_v42  ;;  %vm3587_vm15 = vweird.f32 %v3580_v42 }
 0xf67   : > { %v6895_v45 = vpop.eup %6894 }
 0xf68   : > { %v3582_v47 = vmul.f32 %v6895_v45, %v3580_v42  ;;  %vm3588_vm13 = vweird.f32 %v6895_v45 }
 0xf69   : > { %vm3589_vm5 = vmor %vm3587_vm15, %vm3588_vm13  ;;  %v3857_v22 = vpop.xlane.xlu2 %3856 }
 0xf6a   : > { %v3583_v2 = vmul.f32 %v6895_v45, %v3582_v47  ;;  %v3861_v25 = vsub.f32 %v3845_v63, %v3857_v22 }
 0xf6c   : > { %v3584_v52 = vmul.f32 0.5, %v3583_v2  ;;  %v3868_v30 = vmul.f32 1.442695, %v3861_v25 }
 0xf6e   : > { %v3585_v58 = vsub.f32 1.5, %v3584_v52  ;;  %6896 = vpow2.f32 %v3868_v30  ;;  %v6356_v30 = vld [vmem:[%s10224_s11 + $0x8] sm:$0xff] }
 0xf70   : > { %v3586_v59 = vmul.f32 %v6895_v45, %v3585_v58 }
 0xf72   : > { %v3590_v1 = vsel %vm3589_vm5, %v6895_v45, %v3586_v59 }
 0xf73   : > { %v3591_v4 = vmul.f32 %v3590_v1, %v3574_v34 }
 0xf74   : > { %v6897_v33 = vpop.eup %6896 }
 0xf75   : > { %v3595_v8 = vmul.f32 %v6824_v62, %v3591_v4  ;;  %v3879_v34 = vsel %vm2840_vm1, %v6897_v33, 0.0 }
 0xf77   : > { %v9641_v10 = vadd.f32 %v6825_v3, %v3595_v8  ;;  %v3759_v13 = vpop.f32.mrf.mxu1 }
 0xf78   : > { %v3832_v26 = vmul.f32 0.35355338, %v3759_v13 }
 0xf79   : > { %v3600_v12 = vpack.c.bf16 %v9641_v10, %v9641_v10 }
 0xf7a   : > { %v3842_v43 = vadd.f32 %v9633_v61, %v3832_v26 }
 0xf7b   : > { %6128 = vmatmul.msk.bf16.vlgmr.msrb.gmra.mxu2 %vm2819_vm0, %v3600_v12 }
 0xf7c   : > { %v3846_v32 = vsel %vm2840_vm1, %v3842_v43, -inf }
 0xf7f   : > { %v3761_v14 = vpop.f32.mrf.mxu1 }
 0xf8b   : > { %6156 = vmatmul.msk.bf16.vlgmr.msra.gmra.mxu2 %vm2840_vm1, %v9618_v29  ;;  %v3787_v29 = vpop.permute.xlu1 %3786 }
 0xffe   : > { %v3628_v16 = vpop.f32.mrf.mxu2 }
 0xfff   : > { %v3629_v17 = vadd.f32 %v6826_v15, %v3628_v16 }
0x1001   : > { %v3632_v18 = vmax.f32 %v3629_v17, 0.0 }
0x1003   : > { %v3633_v19 = vpack.c.bf16 %v3632_v18, %v3632_v18 }
0x1005   : > { %6145 = vmatmul.msk.bf16.vlgmr.msrb.gmra.mxu3 %vm3214_vm9, %v3633_v19 }
0x1006   : > { %v3630_v21 = vpop.f32.mrf.mxu2 }
0x100e   : > { %v3782_v23 = vpop.f32.mrf.mxu2 }
0x100f   : > { %v3833_v24 = vmul.f32 0.35355338, %v3782_v23 }
0x1011   : > { %v3843_v27 = vadd.f32 %v9633_v61, %v3833_v24 }
0x1013   : > { %v3849_v28 = vsel %vm2840_vm1, %v3843_v27, -inf }
0x1014   : > { %3850 = vmax.xlane.f32.xlu0 %v3849_v28 }
0x1015   : > { %6157 = vmatmul.msk.bf16.vlgmr.msra.gmra.mxu3 %vm2840_vm1, %v3787_v29 }
0x1016   : > { %v3784_v31 = vpop.f32.mrf.mxu2 }
0x101c   : > { %3847 = vmax.xlane.f32.xlu0 %v3846_v32 }
0x1024   : > { %3880 = vadd.xlane.f32.xlu0 %v3879_v34  ;;  %v6355_v34 = vld [vmem:[%s10224_s11] sm:$0xff]  ;;  %s10225_s11 = sld [smem:[#allocation123_spill]] }
0x1038   : > { %3957 = vrot.lane.b32.xlu0 %v9602_v20, %s10207_s15 }
0x1040   : > { %3891 = vrot.lane.b32.xlu0 %v9602_v20, %s10208_s1 }
0x1087   : > { %v3851_v35 = vpop.xlane.xlu0 %3850 }
0x1088   : > { %v3859_v36 = vsub.f32 %v3843_v27, %v3851_v35  ;;  %v9660_v37 = vpop.f32.mrf.mxu3 }
0x108a   : > { %v3864_v38 = vmul.f32 1.442695, %v3859_v36 }
0x108c   : > { %6898 = vpow2.f32 %v3864_v38 }
0x108f   : > { %v3848_v41 = vpop.xlane.xlu0 %3847 }
0x1090   : > { %v3675_v39 = vpop.f32.mrf.mxu3  ;;  %v3858_v57 = vsub.f32 %v3842_v43, %v3848_v41  ;;  %v6827_v43 = vld [vmem:[#allocation23] ss:$0 sm:$0xff] }
0x1091   : > { %v3674_v31 = vadd.f32 %v6827_v43, %v9660_v37 }
0x1092   : > { %v6899_v40 = vpop.eup %6898  ;;  %v3862_v58 = vmul.f32 1.442695, %v3858_v57 }
0x1093   : > { %v3873_v42 = vsel %vm2840_vm1, %v6899_v40, 0.0  ;;  %v3677_v32 = vadd.f32 %v3674_v31, %v9641_v10  ;;  %v6832_v31 = vld [vmem:[#allocation31] ss:$0 sm:$0xff] }
0x1094   : > { %3874 = vadd.xlane.f32.xlu2 %v3873_v42 }
0x1097   : > { %v3881_v2 = vpop.xlane.xlu0 %3880 }
0x1098   : > { %v3805_v44 = vpop.f32.mrf.mxu3  ;;  %6900 = vrcp.f32 %v3881_v2  ;;  %v6828_v2 = vld [vmem:[#allocation29] ss:$0 sm:$0xff] }
0x1099   : > { %v3834_v45 = vmul.f32 0.35355338, %v3805_v44  ;;  %6902 = vpow2.f32 %v3862_v58 }
0x109b   : > { %v3844_v47 = vadd.f32 %v9633_v61, %v3834_v45 }
0x109d   : > { %v3852_v48 = vsel %vm2840_vm1, %v3844_v47, -inf }
0x109e   : > { %3853 = vmax.xlane.f32.xlu1 %v3852_v48  ;;  %v6901_v50 = vpop.eup %6900 }
0x109f   : > { %v3889_v51 = vmul.f32 %v6901_v50, %v6897_v33  ;;  %v6903_v59 = vpop.eup %6902  ;;  %v3678_v33 = vsel %vm2819_vm0, %v3677_v32, 0.0 }
0x10a0   : > { %v3807_v49 = vpop.f32.mrf.mxu3  ;;  %v3870_v60 = vsel %vm2840_vm1, %v6903_v59, 0.0 }
0x10a1   : > { %v3956_v54 = vpack.c.bf16 %v3889_v51, %v3889_v51 }
0x10aa   : > { %v3958_v52 = vpop.permute.xlu0 %3957 }
0x10ab   : > { %v3963_v53 = vsel %vm2983_vm2, %v3958_v52, 0 }
0x10ac   : > { %3913 = vrot.lane.b32.xlu2 %v9602_v20, %s10206_s5  ;;  %3972 = vmatpush.bf16.msra.mxu0 %v3963_v53  ;;  %v6360_v53 = vld [vmem:[#allocation37 + $0x8] sm:$0xff] }
0x10af   : > { %6162 = vmatmul.msk.bf16.vlgmr.msra.gmra.mxu0 %vm2840_vm1, %v3956_v54  ;;  %v6359_v54 = vld [vmem:[#allocation37] sm:$0xff] }
0x10b2   : > { %v3892_v55 = vpop.permute.xlu0 %3891 }
0x10b3   : > { %v3897_v56 = vsel %vm2983_vm2, %v3892_v55, 0 }
0x10b4   : > { %3906 = vmatpush.bf16.msrb.mxu1 %v3897_v56 }
0x10b8   : > { %4018 = vmatpush.bf16.msra.mxu1 %v6356_v30 }
0x10bc   : > { %4019 = vmatpush.bf16.msra.mxu1 %v6355_v34 }
0x10d5   : > { %3871 = vadd.xlane.f32.xlu2 %v3870_v60 }
0x1107   : > { %v3875_v62 = vpop.xlane.xlu2 %3874 }
0x1108   : > { %6904 = vrcp.f32 %v3875_v62 }
0x110e   : > { %v6905_v63 = vpop.eup %6904 }
0x110f   : > { %v3887_v0 = vmul.f32 %v6905_v63, %v6899_v40  ;;  %v3914_v1 = vpop.permute.xlu2 %3913 }
0x1110   : > { %v3919_v3 = vsel %vm2983_vm2, %v3914_v1, 0 }
0x1111   : > { %v3912_v4 = vpack.c.bf16 %v3887_v0, %v3887_v0  ;;  %v3854_v5 = vpop.xlane.xlu1 %3853  ;;  %3928 = vmatpush.bf16.msrb.mxu2 %v3919_v3  ;;  %v6829_v0 = vld [vmem:[#allocation25] ss:$0 sm:$0xff] }
0x1112   : > { %v3860_v6 = vsub.f32 %v3844_v47, %v3854_v5 }
0x1114   : > { %v3866_v8 = vmul.f32 1.442695, %v3860_v6  ;;  %6160 = vmatmul.msk.bf16.vlgmr.msrb.gmra.mxu2 %vm2840_vm1, %v3912_v4  ;;  %v6830_v4 = vld [vmem:[#allocation26] ss:$0 sm:$0xff] }
0x1116   : > { %6906 = vpow2.f32 %v3866_v8 }
0x111c   : > { %v6907_v9 = vpop.eup %6906 }
0x111d   : > { %v3876_v11 = vsel %vm2840_vm1, %v6907_v9, 0.0 }
0x111e   : > { %3877 = vadd.xlane.f32.xlu1 %v3876_v11 }
0x112c   : > { %v3974_v12 = vpop.f32.mrf.mxu0 }
0x1134   : > { %v3976_v13 = vpop.f32.mrf.mxu0 }
0x1137   : > { %3935 = vrot.lane.b32.xlu1 %v9602_v20, %s10205_s2 }
0x1148   : > { %v3872_v14 = vpop.xlane.xlu2 %3871 }
0x1149   : > { %6908 = vrcp.f32 %v3872_v14 }
0x114f   : > { %v6909_v15 = vpop.eup %6908 }
0x1150   : > { %v3886_v16 = vmul.f32 %v6909_v15, %v6903_v59  ;;  %v6831_v15 = vld [vmem:[#allocation38] ss:$0 sm:$0xff] }
0x1152   : > { %v3890_v17 = vpack.c.bf16 %v3886_v16, %v3886_v16 }
0x1154   : > { %6159 = vmatmul.msk.bf16.vlgmr.msrb.gmra.mxu1 %vm2840_vm1, %v3890_v17 }
0x1191   : > { %v3878_v19 = vpop.xlane.xlu1 %3877 }
0x1192   : > { %6910 = vrcp.f32 %v3878_v19 }
0x1197   : > { %v3930_v18 = vpop.f32.mrf.mxu2 }
0x1198   : > { %3979 = vrot.lane.b32.xlu1 %v3930_v18, %s10211_s3  ;;  %v6911_v22 = vpop.eup %6910 }
0x1199   : > { %v3888_v23 = vmul.f32 %v6911_v22, %v6907_v9  ;;  %v6358_v22 = vld [vmem:[#allocation34 + $0x8] sm:$0xff] }
0x119a   : > { %4081 = vmatpush.bf16.msra.mxu2 %v6358_v22 }
0x119b   : > { %v3934_v25 = vpack.c.bf16 %v3888_v23, %v3888_v23  ;;  %v6357_v23 = vld [vmem:[#allocation34] sm:$0xff] }
0x119e   : > { %4082 = vmatpush.bf16.msra.mxu2 %v6357_v23 }
0x119f   : > { %v3932_v21 = vpop.f32.mrf.mxu2 }
0x11a0   : > { %3987 = vrot.lane.b32.xlu1 %v3974_v12, %s10214_s8 }
0x11a9   : > { %v3936_v24 = vpop.permute.xlu1 %3935 }
0x11aa   : > { %v3941_v20 = vsel %vm2983_vm2, %v3936_v24, 0 }
0x11ab   : > { %3950 = vmatpush.bf16.msrb.mxu3 %v3941_v20 }
0x11ae   : > { %6161 = vmatmul.msk.bf16.vlgmr.msrb.gmra.mxu3 %vm2840_vm1, %v3934_v25 }
0x11af   : > { %4113 = vmatpush.bf16.msra.mxu3 %v6360_v53 }
0x11b3   : > { %4114 = vmatpush.bf16.msra.mxu3 %v6359_v54 }
0x11d1   : > { %v3908_v26 = vpop.f32.mrf.mxu1 }
0x11d9   : > { %v3910_v27 = vpop.f32.mrf.mxu1 }
0x120a   : > { %v3980_v35 = vpop.permute.xlu1 %3979 }
0x120b   : > { %v3990_v36 = vsel %vm2840_vm1, %v3908_v26, %v3980_v35 }
0x1212   : > { %v3988_v39 = vpop.permute.xlu1 %3987 }
0x1231   : > { %v3952_v28 = vpop.f32.mrf.mxu3 }
0x1232   : > { %3983 = vrot.lane.b32.xlu0 %v3952_v28, %s10213_s6 }
0x1239   : > { %v3954_v29 = vpop.f32.mrf.mxu3 }
0x125c   : > { %3679 = vadd.xlane.f32.xlu0 %v3678_v33  ;;  %v6833_v33 = vld [vmem:[#allocation32] ss:$0 sm:$0xff] }
0x12a4   : > { %v3984_v38 = vpop.permute.xlu0 %3983 }
0x12a5   : > { %v3991_v40 = vsel %vm3079_vm3, %v3990_v36, %v3984_v38 }
0x12a6   : > { %v3992_v41 = vsel %vm3081_vm4, %v3991_v40, %v3988_v39 }
0x12a7   : > { %v3993_v42 = vpack.c.bf16 %v3992_v41, %v3992_v41 }
0x12a9   : > { %6171 = vmatmul.msk.bf16.vlgmr.msra.gmra.mxu1 %vm2819_vm0, %v3993_v42 }
0x12cf   : > { %v3680_v37 = vpop.xlane.xlu0 %3679 }
0x12d0   : > { %v3681_v10 = vmul.f32 %v3680_v37, %v9510_v46 }
0x12d2   : > { %v3682_v44 = vsub.f32 %v3677_v32, %v3681_v10 }
0x12d4   : > { %v3683_v45 = vmul.f32 %v3682_v44, %v3682_v44 }
0x12d6   : > { %v3684_v47 = vsel %vm2819_vm0, %v3683_v45, 0.0 }
0x12d7   : > { %3685 = vadd.xlane.f32.xlu2 %v3684_v47 }
0x1326   : > { %v4021_v48 = vpop.f32.mrf.mxu1 }
0x1327   : > { %v4022_v49 = vadd.f32 %v6828_v2, %v4021_v48 }
0x1329   : > { %v4025_v50 = vadd.f32 %v4022_v49, %v9592_v7 }
0x132b   : > { %v4026_v51 = vsel %vm2819_vm0, %v4025_v50, 0.0 }
0x132c   : > { %4027 = vadd.xlane.f32.xlu1 %v4026_v51 }
0x132e   : > { %v4023_v52 = vpop.f32.mrf.mxu1 }
0x134a   : > { %v3686_v55 = vpop.xlane.xlu2 %3685 }
0x134b   : > { %v3687_v56 = vmul.f32 %v3686_v55, %v9510_v46 }
0x134d   : > { %v3688_v57 = vadd.f32 1e-05, %v3687_v56 }
0x134f   : > { %6912 = vrsqrt.f32 %v3688_v57  ;;  %vm3695_vm7 = vweird.f32 %v3688_v57 }
0x1355   : > { %v6913_v58 = vpop.eup %6912 }
0x1356   : > { %v3690_v59 = vmul.f32 %v6913_v58, %v3688_v57  ;;  %vm3696_vm6 = vweird.f32 %v6913_v58 }
0x1357   : > { %vm3697_vm8 = vmor %vm3695_vm7, %vm3696_vm6 }
0x1358   : > { %v3691_v60 = vmul.f32 %v6913_v58, %v3690_v59 }
0x135a   : > { %v3692_v62 = vmul.f32 0.5, %v3691_v60 }
0x135c   : > { %v3693_v63 = vsub.f32 1.5, %v3692_v62 }
0x135e   : > { %v3694_v7 = vmul.f32 %v6913_v58, %v3693_v63 }
0x1360   : > { %v3698_v1 = vsel %vm3697_vm8, %v6913_v58, %v3694_v7 }
0x1361   : > { %v3699_v3 = vmul.f32 %v3698_v1, %v3682_v44  ;;  %v6834_v44 = vld [vmem:[#allocation35] ss:$0 sm:$0xff] }
0x1363   : > { %v3703_v5 = vmul.f32 %v6829_v0, %v3699_v3 }
0x1365   : > { %v3707_v6 = vadd.f32 %v6830_v4, %v3703_v5 }
0x1367   : > { %v9696_v8 = vpack.c.bf16 %v3707_v6, %v3707_v6 }
0x1369   : > { %6189 = vmatmul.msk.bf16.vlgmr.msra.gmra.mxu3 %vm2819_vm0, %v9696_v8 }
0x139f   : > { %v4028_v9 = vpop.xlane.xlu1 %4027 }
0x13a0   : > { %v4029_v11 = vmul.f32 %v4028_v9, %v9510_v46 }
0x13a2   : > { %v4030_v12 = vsub.f32 %v4025_v50, %v4029_v11 }
0x13a4   : > { %v4031_v13 = vmul.f32 %v4030_v12, %v4030_v12 }
0x13a6   : > { %v4032_v14 = vsel %vm2819_vm0, %v4031_v13, 0.0 }
0x13a7   : > { %4033 = vadd.xlane.f32.xlu2 %v4032_v14 }
0x13ec   : > { %v4116_v16 = vpop.f32.mrf.mxu3 }
0x13ed   : > { %v4117_v17 = vadd.f32 %v6831_v15, %v4116_v16 }
0x13ef   : > { %v9702_v18 = vpack.c.bf16 %v4117_v17, %v4117_v17 }
0x13f1   : > { %4191 = vrot.lane.b32.xlu0 %v9702_v18, %s10219_s12  ;;  %4168 = vrot.lane.b32.xlu2 %v9702_v18, %s10222_s13  ;;  %v4126_v19 = vsel %vm2840_vm1, %v9702_v18, 0 }
0x13f2   : > { %4135 = vmatpush.bf16.xpose.msrb.mxu0 %v4126_v19 }
0x13f4   : > { %v4118_v21 = vpop.f32.mrf.mxu3 }
0x13f9   : > { %4145 = vrot.lane.b32.xlu2 %v9702_v18, %s10217_s9 }
0x141a   : > { %v4034_v24 = vpop.xlane.xlu2 %4033 }
0x141b   : > { %v4035_v20 = vmul.f32 %v4034_v24, %v9510_v46 }
0x141d   : > { %v4036_v25 = vadd.f32 1e-05, %v4035_v20 }
0x141f   : > { %6914 = vrsqrt.f32 %v4036_v25  ;;  %vm4043_vm11 = vweird.f32 %v4036_v25 }
0x1425   : > { %v6915_v26 = vpop.eup %6914 }
0x1426   : > { %v4038_v27 = vmul.f32 %v6915_v26, %v4036_v25  ;;  %vm4044_vm10 = vweird.f32 %v6915_v26 }
0x1427   : > { %vm4045_vm12 = vmor %vm4043_vm11, %vm4044_vm10 }
0x1428   : > { %v4039_v28 = vmul.f32 %v6915_v26, %v4038_v27 }
0x142a   : > { %v4040_v29 = vmul.f32 0.5, %v4039_v28 }
0x142c   : > { %v4041_v30 = vsub.f32 1.5, %v4040_v29 }
0x142e   : > { %v4042_v43 = vmul.f32 %v6915_v26, %v4041_v30 }
0x1430   : > { %v4046_v32 = vsel %vm4045_vm12, %v6915_v26, %v4042_v43 }
0x1431   : > { %v4047_v34 = vmul.f32 %v4046_v32, %v4030_v12 }
0x1433   : > { %v4051_v35 = vmul.f32 %v6832_v31, %v4047_v34 }
0x1435   : > { %v9713_v36 = vadd.f32 %v6833_v33, %v4051_v35 }
0x1437   : > { %v4056_v38 = vpack.c.bf16 %v9713_v36, %v9713_v36 }
0x1439   : > { %6180 = vmatmul.msk.bf16.vlgmr.msra.gmra.mxu2 %vm2819_vm0, %v4056_v38 }
0x144b   : > { %v4169_v39 = vpop.permute.xlu2 %4168 }
0x144c   : > { %v4174_v40 = vsel %vm2840_vm1, %v4169_v39, 0 }
0x144d   : > { %4183 = vmatpush.bf16.xpose.msrb.mxu2 %v4174_v40 }
0x1453   : > { %v4146_v41 = vpop.permute.xlu2 %4145 }
0x1454   : > { %v4151_v42 = vsel %vm2840_vm1, %v4146_v41, 0 }
0x1455   : > { %4160 = vmatpush.bf16.xpose.msrb.mxu1 %v4151_v42 }
0x1463   : > { %v4192_v37 = vpop.permute.xlu0 %4191 }
0x1464   : > { %v4197_v10 = vsel %vm2840_vm1, %v4192_v37, 0 }
0x1465   : > { %4206 = vmatpush.bf16.xpose.msrb.mxu3 %v4197_v10 }
0x14bc   : > { %v4084_v45 = vpop.f32.mrf.mxu2 }
0x14bd   : > { %v4085_v47 = vadd.f32 %v6834_v44, %v4084_v45 }
0x14bf   : > { %v4120_v2 = vpack.c.bf16 %v4085_v47, %v4085_v47 }
0x14c1   : > { %4189 = vrot.lane.b32.xlu0 %v4120_v2, %s10219_s12  ;;  %4166 = vrot.lane.b32.xlu1 %v4120_v2, %s10222_s13 }
0x14c2   : > { %6190 = vmatmul.msk.bf16.vlgmr.msrb.gmra.mxu0 %vm2840_vm1, %v4120_v2 }
0x14c4   : > { %v4086_v48 = vpop.f32.mrf.mxu2 }
0x14c9   : > { %4142 = vrot.lane.b32.xlu1 %v4120_v2, %s10217_s9 }
0x1533   : > { %v4190_v49 = vpop.permute.xlu0 %4189  ;;  %v4167_v50 = vpop.permute.xlu1 %4166 }
0x1534   : > { %6192 = vmatmul.msk.bf16.vlgmr.msrb.gmra.mxu2 %vm2840_vm1, %v4167_v50  ;;  %6193 = vmatmul.msk.bf16.vlgmr.msrb.gmra.mxu3 %vm2840_vm1, %v4190_v49 }
0x153b   : > { %v4143_v51 = vpop.permute.xlu1 %4142 }
0x153c   : > { %6191 = vmatmul.msk.bf16.vlgmr.msrb.gmra.mxu1 %vm2840_vm1, %v4143_v51 }
0x153f   : > { %v4137_v52 = vpop.f32.mrf.mxu0 }
0x1540   : > { %v4212_v7 = vmul.f32 0.35355338, %v4137_v52 }
0x1542   : > { %v4216_v4 = vsel %vm2840_vm1, %v4212_v7, -inf }
0x1547   : > { %v4139_v53 = vpop.f32.mrf.mxu0 }
0x15b7   : > { %v4185_v54 = vpop.f32.mrf.mxu2  ;;  %v4208_v55 = vpop.f32.mrf.mxu3 }
0x15b8   : > { %v4214_v56 = vmul.f32 0.35355338, %v4185_v54  ;;  %v4215_v57 = vmul.f32 0.35355338, %v4208_v55 }
0x15b9   : > { %v4162_v58 = vpop.f32.mrf.mxu1 }
0x15ba   : > { %v4213_v59 = vmul.f32 0.35355338, %v4162_v58  ;;  %v4225_v60 = vsel %vm2840_vm1, %v4215_v57, -inf  ;;  %v4222_v62 = vsel %vm2840_vm1, %v4214_v56, -inf }
0x15bb   : > { %4226 = vmax.xlane.f32.xlu2 %v4225_v60  ;;  %4223 = vmax.xlane.f32.xlu0 %v4222_v62  ;;  %v6362_v60 = vld [vmem:[%s10225_s11 + $0x8] sm:$0xff]  ;;  %v6361_v62 = vld [vmem:[%s10225_s11] sm:$0xff] }
0x15bc   : > { %v4219_v63 = vsel %vm2840_vm1, %v4213_v59, -inf }
0x15bd   : > { %4220 = vmax.xlane.f32.xlu1 %v4219_v63 }
0x15bf   : > { %v4187_v0 = vpop.f32.mrf.mxu2  ;;  %v4210_v1 = vpop.f32.mrf.mxu3 }
0x15c1   : > { %v4164_v3 = vpop.f32.mrf.mxu1 }
0x15c3   : > { %4217 = vmax.xlane.f32.xlu0 %v4216_v4 }
0x162e   : > { %v4224_v5 = vpop.xlane.xlu0 %4223  ;;  %v4227_v6 = vpop.xlane.xlu2 %4226 }
0x162f   : > { %v4230_v9 = vsub.f32 %v4214_v56, %v4224_v5  ;;  %v4231_v11 = vsub.f32 %v4215_v57, %v4227_v6  ;;  %v6835_v6 = vld [vmem:[#allocation40] ss:$0 sm:$0xff] }
0x1630   : > { %v4221_v12 = vpop.xlane.xlu1 %4220 }
0x1631   : > { %v4236_v13 = vmul.f32 1.442695, %v4230_v9  ;;  %v4238_v14 = vmul.f32 1.442695, %v4231_v11  ;;  %v4229_v15 = vsub.f32 %v4213_v59, %v4221_v12 }
0x1633   : > { %6916 = vpow2.f32 %v4236_v13  ;;  %v4234_v16 = vmul.f32 1.442695, %v4229_v15 }
0x1634   : > { %6918 = vpow2.f32 %v4238_v14 }
0x1635   : > { %6920 = vpow2.f32 %v4234_v16 }
0x1636   : > { %v4218_v20 = vpop.xlane.xlu0 %4217 }
0x1637   : > { %v4228_v25 = vsub.f32 %v4212_v7, %v4218_v20 }
0x1639   : > { %v6917_v17 = vpop.eup %6916  ;;  %v4232_v26 = vmul.f32 1.442695, %v4228_v25  ;;  %v6367_v25 = vld [vmem:[%s10226_s18 + $0x10] sm:$0xff] }
0x163a   : > { %v6919_v19 = vpop.eup %6918  ;;  %v4246_v21 = vsel %vm2840_vm1, %v6917_v17, 0.0 }
0x163b   : > { %v6921_v22 = vpop.eup %6920  ;;  %4247 = vadd.xlane.f32.xlu2 %v4246_v21  ;;  %v4249_v23 = vsel %vm2840_vm1, %v6919_v19, 0.0  ;;  %6922 = vpow2.f32 %v4232_v26 }
0x163c   : > { %4250 = vadd.xlane.f32.xlu1 %v4249_v23  ;;  %v4243_v24 = vsel %vm2840_vm1, %v6921_v22, 0.0  ;;  %v6363_v23 = vld [vmem:[#allocation44] sm:$0xff] }
0x163d   : > { %4244 = vadd.xlane.f32.xlu0 %v4243_v24  ;;  %v6368_v24 = vld [vmem:[%s10226_s18 + $0x18] sm:$0xff] }
0x1641   : > { %v6923_v27 = vpop.eup %6922 }
0x1642   : > { %v4240_v28 = vsel %vm2840_vm1, %v6923_v27, 0.0 }
0x1651   : > { %4283 = vrot.lane.b32.xlu0 %v9702_v18, %s10216_s10 }
0x1653   : > { %4305 = vrot.lane.b32.xlu2 %v9702_v18, %s10220_s4 }
0x1655   : > { %4327 = vrot.lane.b32.xlu1 %v9702_v18, %s10218_s16 }
0x1659   : > { %4261 = vrot.lane.b32.xlu0 %v9702_v18, %s10204_s0 }
0x167c   : > { %4241 = vadd.xlane.f32.xlu2 %v4240_v28 }
0x16ae   : > { %v4248_v29 = vpop.xlane.xlu2 %4247 }
0x16af   : > { %6924 = vrcp.f32 %v4248_v29  ;;  %v4251_v18 = vpop.xlane.xlu1 %4250 }
0x16b0   : > { %v4245_v31 = vpop.xlane.xlu0 %4244 }
0x16b1   : > { %6926 = vrcp.f32 %v4245_v31 }
0x16b2   : > { %6928 = vrcp.f32 %v4251_v18 }
0x16b5   : > { %v6925_v30 = vpop.eup %6924 }
0x16b6   : > { %v4258_v43 = vmul.f32 %v6925_v30, %v6917_v17  ;;  %v4306_v32 = vpop.permute.xlu2 %4305 }
0x16b7   : > { %v4311_v33 = vsel %vm2983_vm2, %v4306_v32, 0  ;;  %v6927_v35 = vpop.eup %6926  ;;  %v6836_v32 = vld [vmem:[#allocation41] ss:$0 sm:$0xff] }
0x16b8   : > { %v4304_v34 = vpack.c.bf16 %v4258_v43, %v4258_v43  ;;  %4320 = vmatpush.bf16.msra.mxu2 %v4311_v33  ;;  %v4257_v38 = vmul.f32 %v6927_v35, %v6921_v22  ;;  %v6929_v39 = vpop.eup %6928  ;;  %v6364_v22 = vld [vmem:[#allocation44 + $0x8] sm:$0xff] }
0x16b9   : > { %v4259_v42 = vmul.f32 %v6929_v39, %v6919_v19 }
0x16ba   : > { %v4282_v37 = vpack.c.bf16 %v4257_v38, %v4257_v38 }
0x16bb   : > { %6196 = vmatmul.msk.bf16.vlgmr.msra.gmra.mxu2 %vm2840_vm1, %v4304_v34  ;;  %v4326_v45 = vpack.c.bf16 %v4259_v42, %v4259_v42  ;;  %v6837_v34 = vld [vmem:[#allocation43] ss:$0 sm:$0xff]  ;;  %v6838_v42 = vld [vmem:[#allocation46] ss:$0 sm:$0xff] }
0x16bc   : > { %4494 = vmatpush.bf16.msrb.mxu2 %v6368_v24 }
0x16c0   : > { %4495 = vmatpush.bf16.msrb.mxu2 %v6367_v25 }
0x16c3   : > { %v4284_v40 = vpop.permute.xlu0 %4283 }
0x16c4   : > { %v4289_v41 = vsel %vm2983_vm2, %v4284_v40, 0  ;;  %v6366_v40 = vld [vmem:[%s10226_s18 + $0x8] sm:$0xff] }
0x16c5   : > { %4298 = vmatpush.bf16.msra.mxu1 %v4289_v41  ;;  %4496 = vmatpush.bf16.msrb.mxu2 %v6366_v40  ;;  %v6365_v41 = vld [vmem:[%s10226_s18] sm:$0xff] }
0x16c7   : > { %v4328_v10 = vpop.permute.xlu1 %4327 }
0x16c8   : > { %v4333_v44 = vsel %vm2983_vm2, %v4328_v10, 0  ;;  %6195 = vmatmul.msk.bf16.vlgmr.msra.gmra.mxu1 %vm2840_vm1, %v4282_v37 }
0x16c9   : > { %4342 = vmatpush.bf16.msra.mxu3 %v4333_v44  ;;  %4451 = vmatpush.bf16.msrb.mxu1 %v6364_v22 }
0x16ca   : > { %4497 = vmatpush.bf16.msrb.mxu2 %v6365_v41 }
0x16cb   : > { %v4262_v47 = vpop.permute.xlu0 %4261 }
0x16cc   : > { %v4267_v2 = vsel %vm2983_vm2, %v4262_v47, 0  ;;  %6197 = vmatmul.msk.bf16.vlgmr.msra.gmra.mxu3 %vm2840_vm1, %v4326_v45 }
0x16cd   : > { %4276 = vmatpush.bf16.msra.mxu0 %v4267_v2  ;;  %4452 = vmatpush.bf16.msrb.mxu1 %v6363_v23  ;;  %v6839_v2 = vld [vmem:[#allocation47] ss:$0 sm:$0xff] }
0x16d1   : > { %4388 = vmatpush.bf16.msrb.mxu0 %v6362_v60 }
0x16d5   : > { %4389 = vmatpush.bf16.msrb.mxu0 %v6361_v62 }
0x16ef   : > { %v4242_v48 = vpop.xlane.xlu2 %4241 }
0x16f0   : > { %6930 = vrcp.f32 %v4242_v48 }
0x16f6   : > { %v6931_v49 = vpop.eup %6930 }
0x16f7   : > { %v4256_v50 = vmul.f32 %v6931_v49, %v6923_v27 }
0x16f9   : > { %v4260_v51 = vpack.c.bf16 %v4256_v50, %v4256_v50 }
0x16fb   : > { %6194 = vmatmul.msk.bf16.vlgmr.msra.gmra.mxu0 %vm2840_vm1, %v4260_v51 }
0x173e   : > { %v4322_v52 = vpop.f32.mrf.mxu2 }
0x173f   : > { %4353 = vrot.lane.b32.xlu0 %v4322_v52, %s10213_s6 }
0x1745   : > { %v4300_v53 = vpop.f32.mrf.mxu1 }
0x1746   : > { %4349 = vrot.lane.b32.xlu1 %v4300_v53, %s10211_s3  ;;  %v4324_v54 = vpop.f32.mrf.mxu2 }
0x174d   : > { %v4302_v55 = vpop.f32.mrf.mxu1 }
0x174f   : > { %v4344_v56 = vpop.f32.mrf.mxu3 }
0x1750   : > { %4357 = vrot.lane.b32.xlu1 %v4344_v56, %s10214_s8 }
0x1757   : > { %v4346_v57 = vpop.f32.mrf.mxu3 }
0x1778   : > { %v4278_v58 = vpop.f32.mrf.mxu0 }
0x1780   : > { %v4280_v59 = vpop.f32.mrf.mxu0 }
0x1781   : > { %v6369_v59 = vld [vmem:[#allocation52] sm:$0xff] }
0x17b1   : > { %v4354_v0 = vpop.permute.xlu0 %4353 }
0x17b8   : > { %v4350_v63 = vpop.permute.xlu1 %4349 }
0x17b9   : > { %v4360_v7 = vsel %vm2840_vm1, %v4278_v58, %v4350_v63  ;;  %v6370_v58 = vld [vmem:[#allocation52 + $0x8] sm:$0xff] }
0x17ba   : > { %v4361_v3 = vsel %vm3079_vm3, %v4360_v7, %v4354_v0  ;;  %4559 = vmatpush.bf16.msrb.mxu3 %v6370_v58 }
0x17be   : > { %4560 = vmatpush.bf16.msrb.mxu3 %v6369_v59 }
0x17c2   : > { %v4358_v1 = vpop.permute.xlu1 %4357 }
0x17c3   : > { %v4362_v4 = vsel %vm3081_vm4, %v4361_v3, %v4358_v1 }
0x17c4   : > { %v4363_v5 = vpack.c.bf16 %v4362_v4, %v4362_v4 }
0x17c6   : > { %6206 = vmatmul.msk.bf16.vlgmr.msrb.gmra.mxu0 %vm2819_vm0, %v4363_v5 }
0x1843   : > { %v4391_v9 = vpop.f32.mrf.mxu0 }
0x1844   : > { %v4392_v11 = vadd.f32 %v6835_v6, %v4391_v9  ;;  %v6840_v6 = vld [vmem:[#allocation49] ss:$0 sm:$0xff] }
0x1846   : > { %v4395_v12 = vadd.f32 %v4392_v11, %v9713_v36  ;;  %v6841_v11 = vld [vmem:[#allocation50] ss:$0 sm:$0xff] }
0x1848   : > { %v4396_v13 = vsel %vm2819_vm0, %v4395_v12, 0.0 }
0x1849   : > { %4397 = vadd.xlane.f32.xlu0 %v4396_v13 }
0x184b   : > { %v4393_v14 = vpop.f32.mrf.mxu0 }
0x18bc   : > { %v4398_v15 = vpop.xlane.xlu0 %4397 }
0x18bd   : > { %v4399_v16 = vmul.f32 %v4398_v15, %v9510_v46 }
0x18bf   : > { %v4400_v17 = vsub.f32 %v4395_v12, %v4399_v16  ;;  %v6842_v16 = vld [vmem:[#allocation53] ss:$0 sm:$0xff] }
0x18c1   : > { %v4401_v19 = vmul.f32 %v4400_v17, %v4400_v17 }
0x18c3   : > { %v4402_v21 = vsel %vm2819_vm0, %v4401_v19, 0.0 }
0x18c4   : > { %4403 = vadd.xlane.f32.xlu1 %v4402_v21 }
0x1937   : > { %v4404_v20 = vpop.xlane.xlu1 %4403 }
0x1938   : > { %v4405_v36 = vmul.f32 %v4404_v20, %v9510_v46 }
0x193a   : > { %v4406_v26 = vadd.f32 1e-05, %v4405_v36 }
0x193c   : > { %6932 = vrsqrt.f32 %v4406_v26  ;;  %vm4413_vm14 = vweird.f32 %v4406_v26 }
0x1942   : > { %v6933_v27 = vpop.eup %6932 }
0x1943   : > { %v4408_v28 = vmul.f32 %v6933_v27, %v4406_v26  ;;  %vm4414_vm13 = vweird.f32 %v6933_v27 }
0x1944   : > { %vm4415_vm15 = vmor %vm4413_vm14, %vm4414_vm13 }
0x1945   : > { %v4409_v29 = vmul.f32 %v6933_v27, %v4408_v28 }
0x1947   : > { %v4410_v30 = vmul.f32 0.5, %v4409_v29 }
0x1949   : > { %v4411_v43 = vsub.f32 1.5, %v4410_v30 }
0x194b   : > { %v4412_v31 = vmul.f32 %v6933_v27, %v4411_v43 }
0x194d   : > { %v4416_v33 = vsel %vm4415_vm15, %v6933_v27, %v4412_v31 }
0x194e   : > { %v4417_v18 = vmul.f32 %v4416_v33, %v4400_v17 }
0x1950   : > { %v4421_v35 = vmul.f32 %v6836_v32, %v4417_v18 }
0x1952   : > { %v4425_v38 = vadd.f32 %v6837_v34, %v4421_v35 }
0x1954   : > { %v4426_v39 = vpack.c.bf16 %v4425_v38, %v4425_v38 }
0x1956   : > { %6215 = vmatmul.msk.bf16.vlgmr.msrb.gmra.mxu1 %vm2819_vm0, %v4426_v39 }
0x19d3   : > { %v4454_v37 = vpop.f32.mrf.mxu1 }
0x19d4   : > { %v4455_v10 = vadd.f32 %v6838_v42, %v4454_v37 }
0x19d6   : > { %v4458_v44 = vmax.f32 %v4455_v10, 0.0 }
0x19d8   : > { %v4459_v45 = vpack.c.bf16 %v4458_v44, %v4458_v44 }
0x19da   : > { %6232 = vmatmul.msk.bf16.vlgmr.msrb.gmra.mxu2 %vm3214_vm9, %v4459_v45 }
0x19db   : > { %v4456_v47 = vpop.f32.mrf.mxu1 }
0x1a5d   : > { %v4499_v48 = vpop.f32.mrf.mxu2 }
0x1a5e   : > { %v4500_v49 = vadd.f32 %v6839_v2, %v4499_v48 }
0x1a60   : > { %v4503_v50 = vadd.f32 %v4500_v49, %v4425_v38 }
0x1a62   : > { %v4504_v51 = vsel %vm2819_vm0, %v4503_v50, 0.0 }
0x1a63   : > { %4505 = vadd.xlane.f32.xlu2 %v4504_v51 }
0x1a65   : > { %v4501_v52 = vpop.f32.mrf.mxu2 }
0x1ad6   : > { %v4506_v53 = vpop.xlane.xlu2 %4505 }
0x1ad7   : > { %v4507_v54 = vmul.f32 %v4506_v53, %v9510_v46 }
0x1ad9   : > { %v4508_v55 = vsub.f32 %v4503_v50, %v4507_v54 }
0x1adb   : > { %v4509_v56 = vmul.f32 %v4508_v55, %v4508_v55 }
0x1add   : > { %v4510_v57 = vsel %vm2819_vm0, %v4509_v56, 0.0 }
0x1ade   : > { %4511 = vadd.xlane.f32.xlu2 %v4510_v57 }
0x1b51   : > { %v4512_v60 = vpop.xlane.xlu2 %4511 }
0x1b52   : > { %v4513_v62 = vmul.f32 %v4512_v60, %v9510_v46 }
0x1b54   : > { %v4514_v63 = vadd.f32 1e-05, %v4513_v62 }
0x1b56   : > { %6934 = vrsqrt.f32 %v4514_v63  ;;  %vm4521_vm6 = vweird.f32 %v4514_v63 }
0x1b5c   : > { %v6935_v7 = vpop.eup %6934 }
0x1b5d   : > { %v4516_v0 = vmul.f32 %v6935_v7, %v4514_v63  ;;  %vm4522_vm5 = vweird.f32 %v6935_v7 }
0x1b5e   : > { %vm4523_vm7 = vmor %vm4521_vm6, %vm4522_vm5 }
0x1b5f   : > { %v4517_v1 = vmul.f32 %v6935_v7, %v4516_v0 }
0x1b61   : > { %v4518_v3 = vmul.f32 0.5, %v4517_v1 }
0x1b63   : > { %v4519_v4 = vsub.f32 1.5, %v4518_v3 }
0x1b65   : > { %v4520_v5 = vmul.f32 %v6935_v7, %v4519_v4 }
0x1b67   : > { %v4524_v9 = vsel %vm4523_vm7, %v6935_v7, %v4520_v5 }
0x1b68   : > { %v4525_v12 = vmul.f32 %v4524_v9, %v4508_v55 }
0x1b6a   : > { %v4529_v13 = vmul.f32 %v6840_v6, %v4525_v12  ;;  %v6376_v12 = vld [vmem:[#allocation62 + $0x8] sm:$0xff] }
0x1b6c   : > { %v9776_v14 = vadd.f32 %v6841_v11, %v4529_v13 }
0x1b6e   : > { %v4534_v15 = vpack.c.bf16 %v9776_v14, %v9776_v14 }
0x1b70   : > { %6241 = vmatmul.msk.bf16.vlgmr.msrb.gmra.mxu3 %vm2819_vm0, %v4534_v15 }
0x1bf3   : > { %v4562_v17 = vpop.f32.mrf.mxu3 }
0x1bf4   : > { %v4563_v19 = vadd.f32 %v6842_v16, %v4562_v17 }
0x1bf6   : > { %v9781_v21 = vpack.c.bf16 %v4563_v19, %v4563_v19  ;;  %v6375_v19 = vld [vmem:[#allocation62] sm:$0xff] }
0x1bf8   : > { %4612 = vrot.lane.b32.xlu1 %v9781_v21, %s10222_s13  ;;  %4637 = vrot.lane.b32.xlu0 %v9781_v21, %s10218_s16 }
0x1bf9   : > { %4614 = vrot.lane.b32.xlu2 %v9781_v21, %s10220_s4 }
0x1bfb   : > { %v4564_v22 = vpop.f32.mrf.mxu3 }
0x1c00   : > { %4568 = vrot.lane.b32.xlu1 %v9781_v21, %s10204_s0  ;;  %4635 = vrot.lane.b32.xlu0 %v9781_v21, %s10219_s12 }
0x1c01   : > { %4591 = vrot.lane.b32.xlu2 %v9781_v21, %s10216_s10 }
0x1c08   : > { %4589 = vrot.lane.b32.xlu0 %v9781_v21, %s10217_s9 }
0x1c53   : > { %v4615_v23 = vpop.permute.xlu2 %4614 }
0x1c54   : > { %v4620_v24 = vsel %vm2840_vm1, %v4615_v23, 0 }
0x1c55   : > { %4629 = vmatpush.bf16.xpose.msra.mxu2 %v4620_v24 }
0x1c5b   : > { %v4592_v20 = vpop.permute.xlu2 %4591 }
0x1c5c   : > { %v4597_v36 = vsel %vm2840_vm1, %v4592_v20, 0 }
0x1c5d   : > { %4606 = vmatpush.bf16.xpose.msra.mxu1 %v4597_v36 }
0x1c6a   : > { %v4613_v25 = vpop.permute.xlu1 %4612  ;;  %v4638_v26 = vpop.permute.xlu0 %4637 }
0x1c6b   : > { %v4643_v27 = vsel %vm2840_vm1, %v4638_v26, 0  ;;  %6244 = vmatmul.msk.bf16.vlgmr.msra.gmra.mxu2 %vm2840_vm1, %v4613_v25 }
0x1c6c   : > { %4652 = vmatpush.bf16.xpose.msra.mxu3 %v4643_v27 }
0x1c72   : > { %v4569_v28 = vpop.permute.xlu1 %4568  ;;  %v4636_v29 = vpop.permute.xlu0 %4635 }
0x1c73   : > { %v4574_v30 = vsel %vm2840_vm1, %v4569_v28, 0  ;;  %6245 = vmatmul.msk.bf16.vlgmr.msra.gmra.mxu3 %vm2840_vm1, %v4636_v29 }
0x1c74   : > { %4583 = vmatpush.bf16.xpose.msra.mxu0 %v4574_v30 }
0x1c7a   : > { %v4590_v43 = vpop.permute.xlu0 %4589 }
0x1c7b   : > { %6242 = vmatmul.msk.bf16.vlgmr.msra.gmra.mxu0 %vm2840_vm1, %v9781_v21  ;;  %6243 = vmatmul.msk.bf16.vlgmr.msra.gmra.mxu1 %vm2840_vm1, %v4590_v43 }
0x1cee   : > { %v4631_v31 = vpop.f32.mrf.mxu2 }
0x1cef   : > { %v4660_v32 = vmul.f32 0.35355338, %v4631_v31 }
0x1cf1   : > { %v4664_v33 = vadd.f32 %v4660_v32, %v9633_v61 }
0x1cf3   : > { %v4672_v34 = vsel %vm2840_vm1, %v4664_v33, -inf }
0x1cf4   : > { %4673 = vmax.xlane.f32.xlu2 %v4672_v34 }
0x1cf6   : > { %v4633_v18 = vpop.f32.mrf.mxu2  ;;  %v4654_v35 = vpop.f32.mrf.mxu3 }
0x1cf7   : > { %v4661_v38 = vmul.f32 0.35355338, %v4654_v35 }
0x1cf8   : > { %v4585_v39 = vpop.f32.mrf.mxu0  ;;  %v4608_v40 = vpop.f32.mrf.mxu1 }
0x1cf9   : > { %v4658_v41 = vmul.f32 0.35355338, %v4585_v39  ;;  %v4659_v42 = vmul.f32 0.35355338, %v4608_v40  ;;  %v4665_v37 = vadd.f32 %v4661_v38, %v9633_v61 }
0x1cfb   : > { %v4675_v10 = vsel %vm2840_vm1, %v4665_v37, -inf  ;;  %v4662_v44 = vadd.f32 %v4658_v41, %v9633_v61  ;;  %v4663_v45 = vadd.f32 %v4659_v42, %v9633_v61 }
0x1cfc   : > { %4676 = vmax.xlane.f32.xlu0 %v4675_v10 }
0x1cfd   : > { %v4666_v47 = vsel %vm2840_vm1, %v4662_v44, -inf  ;;  %v4669_v2 = vsel %vm2840_vm1, %v4663_v45, -inf }
0x1cfe   : > { %v4656_v48 = vpop.f32.mrf.mxu3  ;;  %4667 = vmax.xlane.f32.xlu2 %v4666_v47  ;;  %4670 = vmax.xlane.f32.xlu1 %v4669_v2 }
0x1d00   : > { %v4587_v49 = vpop.f32.mrf.mxu0  ;;  %v4610_v50 = vpop.f32.mrf.mxu1 }
0x1d01   : > { %v6372_v49 = vld [vmem:[#allocation55 + $0x8] sm:$0xff]  ;;  %v6371_v50 = vld [vmem:[#allocation55] sm:$0xff] }
0x1d67   : > { %v4674_v51 = vpop.xlane.xlu2 %4673 }
0x1d68   : > { %v4680_v52 = vsub.f32 %v4664_v33, %v4674_v51 }
0x1d6a   : > { %v4686_v53 = vmul.f32 1.442695, %v4680_v52 }
0x1d6c   : > { %6936 = vpow2.f32 %v4686_v53 }
0x1d6f   : > { %v4677_v54 = vpop.xlane.xlu0 %4676 }
0x1d70   : > { %v4681_v55 = vsub.f32 %v4665_v37, %v4677_v54 }
0x1d71   : > { %v4671_v56 = vpop.xlane.xlu1 %4670  ;;  %v4668_v1 = vpop.xlane.xlu2 %4667 }
0x1d72   : > { %v6937_v57 = vpop.eup %6936  ;;  %v4688_v58 = vmul.f32 1.442695, %v4681_v55  ;;  %v4679_v61 = vsub.f32 %v4663_v45, %v4671_v56  ;;  %v4678_v3 = vsub.f32 %v4662_v44, %v4668_v1 }
0x1d73   : > { %v4696_v59 = vsel %vm2840_vm1, %v6937_v57, 0.0 }
0x1d74   : > { %6938 = vpow2.f32 %v4688_v58  ;;  %v4684_v60 = vmul.f32 1.442695, %v4679_v61  ;;  %4697 = vadd.xlane.f32.xlu2 %v4696_v59  ;;  %v4682_v4 = vmul.f32 1.442695, %v4678_v3 }
0x1d76   : > { %6940 = vpow2.f32 %v4684_v60 }
0x1d77   : > { %6942 = vpow2.f32 %v4682_v4 }
0x1d7a   : > { %v6939_v62 = vpop.eup %6938 }
0x1d7b   : > { %v4699_v63 = vsel %vm2840_vm1, %v6939_v62, 0.0 }
0x1d7c   : > { %v6941_v7 = vpop.eup %6940  ;;  %4700 = vadd.xlane.f32.xlu0 %v4699_v63 }
0x1d7d   : > { %v4693_v0 = vsel %vm2840_vm1, %v6941_v7, 0.0  ;;  %v6943_v5 = vpop.eup %6942 }
0x1d7e   : > { %4694 = vadd.xlane.f32.xlu1 %v4693_v0  ;;  %v4690_v6 = vsel %vm2840_vm1, %v6943_v5, 0.0 }
0x1d8c   : > { %4755 = vrot.lane.b32.xlu2 %v9781_v21, %s10205_s2  ;;  %s10232_s2 = sld [smem:[#allocation145_spill]] }
0x1d90   : > { %4777 = vrot.lane.b32.xlu0 %v9781_v21, %s10207_s15  ;;  %s10228_s15 = sld [smem:[#allocation138_spill]] }
0x1d94   : > { %4711 = vrot.lane.b32.xlu2 %v9781_v21, %s10208_s1  ;;  %s10227_s1 = sld [smem:[#allocation141_spill]] }
0x1d97   : > { %4733 = vrot.lane.b32.xlu1 %v9781_v21, %s10206_s5  ;;  %s10233_s5 = sld [smem:[#allocation147_spill]] }
0x1d9a   : > { %v6843_v38 = vld [vmem:[%s10227_s1] ss:$0 sm:$0xff] }
0x1dba   : > { %4691 = vadd.xlane.f32.xlu0 %v4690_v6 }
0x1de7   : > { %v4698_v9 = vpop.xlane.xlu2 %4697 }
0x1de8   : > { %6944 = vrcp.f32 %v4698_v9 }
0x1dee   : > { %v6945_v11 = vpop.eup %6944 }
0x1def   : > { %v4708_v13 = vmul.f32 %v6945_v11, %v6937_v57  ;;  %v4756_v15 = vpop.permute.xlu2 %4755  ;;  %v4701_v21 = vpop.xlane.xlu0 %4700 }
0x1df0   : > { %v4761_v16 = vsel %vm2983_vm2, %v4756_v15, 0  ;;  %6946 = vrcp.f32 %v4701_v21 }
0x1df1   : > { %v4754_v17 = vpack.c.bf16 %v4708_v13, %v4708_v13  ;;  %4770 = vmatpush.bf16.msrb.mxu2 %v4761_v16  ;;  %v4695_v24 = vpop.xlane.xlu1 %4694  ;;  %v6373_v13 = vld [vmem:[%s10228_s15] sm:$0xff] }
0x1df2   : > { %6948 = vrcp.f32 %v4695_v24 }
0x1df4   : > { %6248 = vmatmul.msk.bf16.vlgmr.msrb.gmra.mxu2 %vm2840_vm1, %v4754_v17 }
0x1df5   : > { %4929 = vmatpush.bf16.msra.mxu2 %v6376_v12  ;;  %v6374_v12 = vld [vmem:[%s10228_s15 + $0x8] sm:$0xff] }
0x1df6   : > { %v6947_v20 = vpop.eup %6946 }
0x1df7   : > { %v4712_v22 = vpop.permute.xlu2 %4711  ;;  %v4709_v36 = vmul.f32 %v6947_v20, %v6939_v62  ;;  %v6844_v62 = vld [vmem:[#allocation56] ss:$0 sm:$0xff]  ;;  %v6845_v20 = vld [vmem:[#allocation58] ss:$0 sm:$0xff] }
0x1df8   : > { %v4717_v23 = vsel %vm2983_vm2, %v4712_v22, 0  ;;  %v6949_v27 = vpop.eup %6948 }
0x1df9   : > { %4930 = vmatpush.bf16.msra.mxu2 %v6375_v19  ;;  %4726 = vmatpush.bf16.msrb.mxu0 %v4717_v23  ;;  %v4776_v28 = vpack.c.bf16 %v4709_v36, %v4709_v36  ;;  %v4707_v29 = vmul.f32 %v6949_v27, %v6941_v7 }
0x1dfb   : > { %v4732_v31 = vpack.c.bf16 %v4707_v29, %v4707_v29 }
0x1dfd   : > { %4838 = vmatpush.bf16.msra.mxu0 %v6372_v49 }
0x1e01   : > { %4839 = vmatpush.bf16.msra.mxu0 %v6371_v50 }
0x1e02   : > { %v4778_v25 = vpop.permute.xlu0 %4777 }
0x1e03   : > { %v4783_v26 = vsel %vm2983_vm2, %v4778_v25, 0  ;;  %v6846_v25 = vld [vmem:[#allocation59] ss:$0 sm:$0xff] }
0x1e04   : > { %4792 = vmatpush.bf16.msrb.mxu3 %v4783_v26  ;;  %6276 = vmatmul.msk.bf16.vlgmr.msra.gmra.mxu2 %vm2819_vm0, %v9696_v8 }
0x1e07   : > { %6249 = vmatmul.msk.bf16.vlgmr.msrb.gmra.mxu3 %vm2840_vm1, %v4776_v28 }
0x1e09   : > { %v4734_v30 = vpop.permute.xlu1 %4733 }
0x1e0a   : > { %v4739_v43 = vsel %vm2983_vm2, %v4734_v30, 0 }
0x1e0b   : > { %4748 = vmatpush.bf16.msrb.mxu1 %v4739_v43 }
0x1e0e   : > { %6247 = vmatmul.msk.bf16.vlgmr.msrb.gmra.mxu1 %vm2840_vm1, %v4732_v31  ;;  %v6847_v31 = vld [vmem:[#allocation61] ss:$0 sm:$0xff] }
0x1e0f   : > { %4901 = vmatpush.bf16.msra.mxu1 %v6374_v12 }
0x1e13   : > { %4902 = vmatpush.bf16.msra.mxu1 %v6373_v13 }
0x1e2d   : > { %v4692_v32 = vpop.xlane.xlu0 %4691 }
0x1e2e   : > { %6950 = vrcp.f32 %v4692_v32 }
0x1e34   : > { %v6951_v33 = vpop.eup %6950 }
0x1e35   : > { %v4706_v34 = vmul.f32 %v6951_v33, %v6943_v5 }
0x1e37   : > { %v4710_v18 = vpack.c.bf16 %v4706_v34, %v4706_v34 }
0x1e39   : > { %6246 = vmatmul.msk.bf16.vlgmr.msrb.gmra.mxu0 %vm2840_vm1, %v4710_v18 }
0x1e77   : > { %v4772_v8 = vpop.f32.mrf.mxu2 }
0x1e78   : > { %4803 = vrot.lane.b32.xlu2 %v4772_v8, %s10213_s6 }
0x1e7f   : > { %v4774_v35 = vpop.f32.mrf.mxu2 }
0x1e87   : > { %v4932_v39 = vpop.f32.mrf.mxu2 }
0x1e88   : > { %v4933_v40 = vadd.f32 %v6843_v38, %v4932_v39 }
0x1e8a   : > { %v9838_v41 = vpack.c.bf16 %v4933_v40, %v4933_v40  ;;  %v4794_v42 = vpop.f32.mrf.mxu3 }
0x1e8b   : > { %v4750_v37 = vpop.f32.mrf.mxu1 }
0x1e8c   : > { %4799 = vrot.lane.b32.xlu1 %v4750_v37, %s10211_s3  ;;  %5007 = vrot.lane.b32.xlu0 %v9838_v41, %s10219_s12  ;;  %v4942_v10 = vsel %vm2840_vm1, %v9838_v41, 0 }
0x1e8d   : > { %4951 = vmatpush.bf16.xpose.msra.mxu3 %v4942_v10 }
0x1e8f   : > { %v4934_v44 = vpop.f32.mrf.mxu2 }
0x1e92   : > { %v4796_v45 = vpop.f32.mrf.mxu3 }
0x1e93   : > { %v4752_v47 = vpop.f32.mrf.mxu1 }
0x1e94   : > { %4807 = vrot.lane.b32.xlu1 %v4794_v42, %s10214_s8  ;;  %4961 = vrot.lane.b32.xlu0 %v9838_v41, %s10217_s9 }
0x1eb6   : > { %v4728_v2 = vpop.f32.mrf.mxu0 }
0x1ebe   : > { %v4730_v48 = vpop.f32.mrf.mxu0 }
0x1ed2   : > { %v4804_v55 = vpop.permute.xlu2 %4803 }
0x1efe   : > { %v4800_v51 = vpop.permute.xlu1 %4799  ;;  %v5008_v52 = vpop.permute.xlu0 %5007 }
0x1eff   : > { %v5013_v53 = vsel %vm2840_vm1, %v5008_v52, 0  ;;  %v4810_v54 = vsel %vm2840_vm1, %v4728_v2, %v4800_v51 }
0x1f00   : > { %5022 = vmatpush.bf16.xpose.msrb.mxu2 %v5013_v53  ;;  %v4811_v57 = vsel %vm3079_vm3, %v4810_v54, %v4804_v55 }
0x1f06   : > { %v4808_v56 = vpop.permute.xlu1 %4807  ;;  %v4962_v58 = vpop.permute.xlu0 %4961 }
0x1f07   : > { %v4812_v61 = vsel %vm3081_vm4, %v4811_v57, %v4808_v56  ;;  %v4967_v59 = vsel %vm2840_vm1, %v4962_v58, 0 }
0x1f08   : > { %v4813_v60 = vpack.c.bf16 %v4812_v61, %v4812_v61  ;;  %4976 = vmatpush.bf16.xpose.msrb.mxu0 %v4967_v59 }
0x1f0a   : > { %6258 = vmatmul.msk.bf16.vlgmr.msra.gmra.mxu0 %vm2819_vm0, %v4813_v60 }
0x1f87   : > { %v4841_v63 = vpop.f32.mrf.mxu0 }
0x1f88   : > { %v4842_v7 = vadd.f32 %v6844_v62, %v4841_v63 }
0x1f8a   : > { %v4845_v0 = vadd.f32 %v4842_v7, %v9776_v14 }
0x1f8c   : > { %v4846_v1 = vsel %vm2819_vm0, %v4845_v0, 0.0 }
0x1f8d   : > { %4847 = vadd.xlane.f32.xlu2 %v4846_v1 }
0x1f8f   : > { %v4843_v3 = vpop.f32.mrf.mxu0 }
0x2000   : > { %v4848_v4 = vpop.xlane.xlu2 %4847 }
0x2001   : > { %v4849_v5 = vmul.f32 %v4848_v4, %v9510_v46 }
0x2003   : > { %v4850_v6 = vsub.f32 %v4845_v0, %v4849_v5 }
0x2005   : > { %v4851_v9 = vmul.f32 %v4850_v6, %v4850_v6 }
0x2007   : > { %v4852_v11 = vsel %vm2819_vm0, %v4851_v9, 0.0 }
0x2008   : > { %4853 = vadd.xlane.f32.xlu1 %v4852_v11 }
0x2021   : > { %4984 = vrot.lane.b32.xlu1 %v9838_v41, %s10222_s13 }
0x207b   : > { %v4854_v14 = vpop.xlane.xlu1 %4853 }
0x207c   : > { %v4855_v15 = vmul.f32 %v4854_v14, %v9510_v46 }
0x207e   : > { %v4856_v16 = vadd.f32 1e-05, %v4855_v15 }
0x2080   : > { %6952 = vrsqrt.f32 %v4856_v16  ;;  %vm4863_vm10 = vweird.f32 %v4856_v16 }
0x2086   : > { %v6953_v17 = vpop.eup %6952 }
0x2087   : > { %v4858_v19 = vmul.f32 %v6953_v17, %v4856_v16  ;;  %vm4864_vm8 = vweird.f32 %v6953_v17 }
0x2088   : > { %vm4865_vm11 = vmor %vm4863_vm10, %vm4864_vm8 }
0x2089   : > { %v4859_v21 = vmul.f32 %v6953_v17, %v4858_v19 }
0x208b   : > { %v4860_v22 = vmul.f32 0.5, %v4859_v21 }
0x208d   : > { %v4861_v23 = vsub.f32 1.5, %v4860_v22 }
0x208f   : > { %v4862_v24 = vmul.f32 %v6953_v17, %v4861_v23 }
0x2091   : > { %v4866_v36 = vsel %vm4865_vm11, %v6953_v17, %v4862_v24 }
0x2092   : > { %v4867_v26 = vmul.f32 %v4866_v36, %v4850_v6 }
0x2093   : > { %v4985_v27 = vpop.permute.xlu1 %4984 }
0x2094   : > { %v4871_v28 = vmul.f32 %v6845_v20, %v4867_v26  ;;  %v4990_v29 = vsel %vm2840_vm1, %v4985_v27, 0 }
0x2095   : > { %4999 = vmatpush.bf16.xpose.msrb.mxu1 %v4990_v29 }
0x2096   : > { %v9864_v30 = vadd.f32 %v6846_v25, %v4871_v28 }
0x2098   : > { %v4876_v43 = vpack.c.bf16 %v9864_v30, %v9864_v30 }
0x209a   : > { %6267 = vmatmul.msk.bf16.vlgmr.msra.gmra.mxu1 %vm2819_vm0, %v4876_v43 }
0x2117   : > { %v4904_v32 = vpop.f32.mrf.mxu1 }
0x2118   : > { %v4905_v33 = vadd.f32 %v6847_v31, %v4904_v32 }
0x211a   : > { %v4936_v34 = vpack.c.bf16 %v4905_v33, %v4905_v33 }
0x211c   : > { %4958 = vrot.lane.b32.xlu0 %v4936_v34, %s10217_s9  ;;  %5005 = vrot.lane.b32.xlu2 %v4936_v34, %s10219_s12 }
0x211d   : > { %6277 = vmatmul.msk.bf16.vlgmr.msra.gmra.mxu3 %vm2840_vm1, %v4936_v34 }
0x211f   : > { %v4906_v18 = vpop.f32.mrf.mxu1 }
0x2124   : > { %4982 = vrot.lane.b32.xlu0 %v4936_v34, %s10222_s13  ;;  %s10229_s13 = sld [smem:[#allocation143_spill]] }
0x2176   : > { %v5006_v8 = vpop.permute.xlu2 %5005 }
0x2177   : > { %6280 = vmatmul.msk.bf16.vlgmr.msrb.gmra.mxu2 %vm2840_vm1, %v5006_v8 }
0x218e   : > { %v4959_v35 = vpop.permute.xlu0 %4958 }
0x218f   : > { %6278 = vmatmul.msk.bf16.vlgmr.msrb.gmra.mxu0 %vm2840_vm1, %v4959_v35 }
0x2196   : > { %v4983_v38 = vpop.permute.xlu0 %4982 }
0x2197   : > { %6279 = vmatmul.msk.bf16.vlgmr.msrb.gmra.mxu1 %vm2840_vm1, %v4983_v38 }
0x21a0   : > { %v4953_v39 = vpop.f32.mrf.mxu3 }
0x21a1   : > { %v5028_v44 = vmul.f32 0.35355338, %v4953_v39 }
0x21a3   : > { %v5032_v47 = vsel %vm2840_vm1, %v5028_v44, -inf }
0x21a8   : > { %v4955_v40 = vpop.f32.mrf.mxu3 }
0x21fa   : > { %v5024_v42 = vpop.f32.mrf.mxu2 }
0x21fb   : > { %v5031_v37 = vmul.f32 0.35355338, %v5024_v42 }
0x21fd   : > { %v5041_v10 = vsel %vm2840_vm1, %v5031_v37, -inf }
0x21fe   : > { %5042 = vmax.xlane.f32.xlu2 %v5041_v10 }
0x2202   : > { %v5026_v45 = vpop.f32.mrf.mxu2 }
0x2203   : > { %v6378_v45 = vld [vmem:[#allocation64 + $0x8] sm:$0xff] }
0x2206   : > { %5033 = vmax.xlane.f32.xlu2 %v5032_v47  ;;  %v6377_v47 = vld [vmem:[#allocation64] sm:$0xff] }
0x220c   : > { %v4978_v2 = vpop.f32.mrf.mxu0 }
0x220d   : > { %v5029_v48 = vmul.f32 0.35355338, %v4978_v2 }
0x220f   : > { %v5035_v49 = vsel %vm2840_vm1, %v5029_v48, -inf }
0x2210   : > { %5036 = vmax.xlane.f32.xlu0 %v5035_v49 }
0x2214   : > { %v4980_v50 = vpop.f32.mrf.mxu0  ;;  %v5001_v51 = vpop.f32.mrf.mxu1 }
0x2215   : > { %v5030_v52 = vmul.f32 0.35355338, %v5001_v51 }
0x2217   : > { %v5038_v53 = vsel %vm2840_vm1, %v5030_v52, -inf }
0x2218   : > { %5039 = vmax.xlane.f32.xlu1 %v5038_v53 }
0x221c   : > { %v5003_v54 = vpop.f32.mrf.mxu1 }
0x221d   : > { %v6848_v54 = vld [vmem:[%s10229_s13] ss:$0 sm:$0xff] }
0x2271   : > { %v5043_v55 = vpop.xlane.xlu2 %5042 }
0x2272   : > { %v5047_v56 = vsub.f32 %v5031_v37, %v5043_v55 }
0x2274   : > { %v5054_v57 = vmul.f32 1.442695, %v5047_v56 }
0x2276   : > { %6954 = vpow2.f32 %v5054_v57 }
0x2279   : > { %v5034_v6 = vpop.xlane.xlu2 %5033 }
0x227a   : > { %v5044_v9 = vsub.f32 %v5028_v44, %v5034_v6 }
0x227c   : > { %v6955_v58 = vpop.eup %6954  ;;  %v5048_v11 = vmul.f32 1.442695, %v5044_v9 }
0x227d   : > { %v5065_v61 = vsel %vm2840_vm1, %v6955_v58, 0.0 }
0x227e   : > { %5066 = vadd.xlane.f32.xlu0 %v5065_v61 }
0x2283   : > { %v5037_v59 = vpop.xlane.xlu0 %5036 }
0x2284   : > { %v5045_v60 = vsub.f32 %v5029_v48, %v5037_v59 }
0x2286   : > { %v5050_v62 = vmul.f32 1.442695, %v5045_v60 }
0x2288   : > { %6956 = vpow2.f32 %v5050_v62 }
0x228b   : > { %v5040_v63 = vpop.xlane.xlu1 %5039 }
0x228c   : > { %v5046_v7 = vsub.f32 %v5030_v52, %v5040_v63 }
0x228e   : > { %v6957_v0 = vpop.eup %6956  ;;  %v5052_v1 = vmul.f32 1.442695, %v5046_v7 }
0x228f   : > { %v5059_v3 = vsel %vm2840_vm1, %v6957_v0, 0.0 }
0x2290   : > { %6958 = vpow2.f32 %v5052_v1  ;;  %5060 = vadd.xlane.f32.xlu1 %v5059_v3  ;;  %v6379_v1 = vld [vmem:[#allocation65] sm:$0xff] }
0x2291   : > { %6960 = vpow2.f32 %v5048_v11 }
0x2292   : > { %5143 = vrot.lane.b32.xlu0 %v9838_v41, %s10218_s16 }
0x2296   : > { %v6959_v4 = vpop.eup %6958 }
0x2297   : > { %v5062_v5 = vsel %vm2840_vm1, %v6959_v4, 0.0  ;;  %v6961_v12 = vpop.eup %6960 }
0x2298   : > { %5063 = vadd.xlane.f32.xlu2 %v5062_v5  ;;  %v5056_v13 = vsel %vm2840_vm1, %v6961_v12, 0.0 }
0x22a9   : > { %5099 = vrot.lane.b32.xlu1 %v9838_v41, %s10216_s10  ;;  %s6330_s10 = sshll.u32 %s8830_s7, 3  ;;  %s8198_s7 = scalar_lea.hbm %s8807_s17, 16 }
0x22aa   : > { %s5394_s12 = scalar_lea.hbm %s8807_s17, %s6330_s10 }
0x22b0   : > { %5121 = vrot.lane.b32.xlu2 %v9838_v41, %s10220_s4  ;;  %s10235_s4 = sld [smem:[#allocation150_spill]] }
0x22b1   : > { %5077 = vrot.lane.b32.xlu1 %v9838_v41, %s10204_s0  ;;  %s2638_s0 = sand.u32 1, %s8320_s28  }
0x22b2   : > { %s6039_s9 = sshll.u32 %s2638_s0, 3 }
0x22b3   : > { %s2640_s1 = scalar_lea.vmem [#allocation68], %s6039_s9 }
0x22b4   : > { %s5396_s13 = sshll.u32 %s2640_s1, 4  ;;  %s5397_s13 = int_to_ptr.vmem [resolvable:$true] %s5396_s13 }
0x22bc   : > { %5057 = vadd.xlane.f32.xlu0 %v5056_v13 }
0x22f1   : > { %v5067_v14 = vpop.xlane.xlu0 %5066 }
0x22f2   : > { %6962 = vrcp.f32 %v5067_v14 }
0x22f8   : > { %v6963_v15 = vpop.eup %6962 }
0x22f9   : > { %v5075_v16 = vmul.f32 %v6963_v15, %v6955_v58 }
0x22fb   : > { %v5142_v21 = vpack.c.bf16 %v5075_v16, %v5075_v16 }
0x2303   : > { %v5061_v23 = vpop.xlane.xlu1 %5060 }
0x2304   : > { %v5144_v17 = vpop.permute.xlu0 %5143 }
0x2305   : > { %v5149_v19 = vsel %vm2983_vm2, %v5144_v17, 0 }
0x2306   : > { %5158 = vmatpush.bf16.msra.mxu2 %v5149_v19  ;;  %v6850_v19 = vld [vmem:[%s10232_s2] ss:$0 sm:$0xff]  ;;  %s5384_s2 = scalar_lea.sflag [#allocation4], %s2638_s0 }
0x2309   : > { %6284 = vmatmul.msk.bf16.vlgmr.msra.gmra.mxu2 %vm2840_vm1, %v5142_v21 }
0x230b   : > { %v5064_v22 = vpop.xlane.xlu2 %5063 }
0x230c   : > { %6964 = vrcp.f32 %v5064_v22 }
0x230d   : > { %6966 = vrcp.f32 %v5061_v23 }
0x2312   : > { %v6965_v41 = vpop.eup %6964 }
0x2313   : > { %v5074_v24 = vmul.f32 %v6965_v41, %v6959_v4  ;;  %v5122_v20 = vpop.permute.xlu2 %5121  ;;  %v6967_v26 = vpop.eup %6966 }
0x2314   : > { %v5127_v36 = vsel %vm2983_vm2, %v5122_v20, 0  ;;  %v5073_v27 = vmul.f32 %v6967_v26, %v6957_v0  ;;  %v6380_v0 = vld [vmem:[#allocation65 + $0x8] sm:$0xff] }
0x2315   : > { %v5120_v25 = vpack.c.bf16 %v5074_v24, %v5074_v24  ;;  %5136 = vmatpush.bf16.msra.mxu1 %v5127_v36  ;;  %v6851_v36 = vld [vmem:[%s10233_s5] ss:$0 sm:$0xff] }
0x2316   : > { %v5098_v43 = vpack.c.bf16 %v5073_v27, %v5073_v27 }
0x2318   : > { %6283 = vmatmul.msk.bf16.vlgmr.msra.gmra.mxu1 %vm2840_vm1, %v5120_v25 }
0x231b   : > { %v5100_v28 = vpop.permute.xlu1 %5099 }
0x231c   : > { %v5105_v29 = vsel %vm2983_vm2, %v5100_v28, 0 }
0x231d   : > { %5114 = vmatpush.bf16.msra.mxu0 %v5105_v29 }
0x2320   : > { %6282 = vmatmul.msk.bf16.vlgmr.msra.gmra.mxu0 %vm2840_vm1, %v5098_v43 }
0x2321   : > { %5267 = vmatpush.bf16.msrb.mxu0 %v6380_v0 }
0x2323   : > { %v5078_v31 = vpop.permute.xlu1 %5077 }
0x2324   : > { %v5083_v32 = vsel %vm2983_vm2, %v5078_v31, 0 }
0x2325   : > { %5092 = vmatpush.bf16.msrb.mxu3 %v5083_v32  ;;  %5268 = vmatpush.bf16.msrb.mxu0 %v6379_v1 }
0x2329   : > { %5204 = vmatpush.bf16.msra.mxu3 %v6378_v45 }
0x232d   : > { %5205 = vmatpush.bf16.msra.mxu3 %v6377_v47 }
0x232f   : > { %v5058_v33 = vpop.xlane.xlu0 %5057 }
0x2330   : > { %6968 = vrcp.f32 %v5058_v33 }
0x2336   : > { %v6969_v34 = vpop.eup %6968 }
0x2337   : > { %v5072_v18 = vmul.f32 %v6969_v34, %v6961_v12 }
0x2339   : > { %v5076_v8 = vpack.c.bf16 %v5072_v18, %v5072_v18 }
0x233b   : > { %6281 = vmatmul.msk.bf16.vlgmr.msrb.gmra.mxu3 %vm2840_vm1, %v5076_v8 }
0x238c   : > { %v5160_v35 = vpop.f32.mrf.mxu2 }
0x2394   : > { %v5162_v38 = vpop.f32.mrf.mxu2 }
0x2395   : > { %v5138_v39 = vpop.f32.mrf.mxu1 }
0x2396   : > { %5169 = vrot.lane.b32.xlu1 %v5138_v39, %s10213_s6  ;;  %s10234_s6 = sld [smem:[#allocation149_spill]] }
0x239c   : > { %v6852_v43 = vld [vmem:[%s10234_s6] ss:$0 sm:$0xff] }
0x239d   : > { %v5116_v40 = vpop.f32.mrf.mxu0  ;;  %v5140_v42 = vpop.f32.mrf.mxu1 }
0x239e   : > { %5165 = vrot.lane.b32.xlu2 %v5116_v40, %s10211_s3  ;;  %s10230_s3 = sld [smem:[#allocation148_spill]]  ;;  %v6386_v42 = vld [vmem:[#allocation67 + $0x8] sm:$0xff] }
0x239f   : > { %5375 = vmatpush.bf16.msrb.mxu2 %v6386_v42 }
0x23a4   : > { %v6384_v3 = vld [vmem:[%s10230_s3 + $0x18] sm:$0xff]  ;;  %v6383_v5 = vld [vmem:[%s10230_s3 + $0x10] sm:$0xff]  ;;  %v6382_v24 = vld [vmem:[%s10230_s3 + $0x8] sm:$0xff] }
0x23a5   : > { %v5118_v37 = vpop.f32.mrf.mxu0  ;;  %5310 = vmatpush.bf16.msrb.mxu1 %v6384_v3  ;;  %v6381_v20 = vld [vmem:[%s10230_s3] sm:$0xff] }
0x23a6   : > { %5173 = vrot.lane.b32.xlu2 %v5160_v35, %s10214_s8  ;;  %s10231_s8 = sld [smem:[#allocation144_spill]]  ;;  %v6385_v37 = vld [vmem:[#allocation67] sm:$0xff] }
0x23a7   : > { %5376 = vmatpush.bf16.msrb.mxu2 %v6385_v37 }
0x23a9   : > { %5311 = vmatpush.bf16.msrb.mxu1 %v6383_v5 }
0x23ac   : > { %v6849_v16 = vld [vmem:[%s10231_s8] ss:$0 sm:$0xff]  ;;  %s5398_s8 = sshll.u32 %s5394_s12, 4  ;;  %s5399_s8 = int_to_ptr.hbm [resolvable:$true] %s5398_s8 }
0x23ad   : > { %5312 = vmatpush.bf16.msrb.mxu1 %v6382_v24  ;;  %s8192_s5 = sshra.s32 %s5399_s8, 4  ;;  %s8193_s5 = int_to_ptr.hbm [resolvable:$true] %s8192_s5 }
0x23ae   : > { %s8194_s6 = scalar_lea.hbm %s8193_s5, 8  ;;  %p8199_p1 = scmp.lt.s32.totalorder %s8193_s5, %s8807_s17 }
0x23af   : > { %p8195_p10 = scmp.ne.s32.totalorder %s8193_s5, %s8194_s6  ;;  %p8200_p2 = scmp.lt.s32.totalorder %s8198_s7, %s8194_s6 }
0x23b1   : > { %5313 = vmatpush.bf16.msrb.mxu1 %v6381_v20  ;;  %p8196_p13 = pnand %p8195_p10, %p8847_p5  ;;  %p8201_p3 = por %p8200_p2, %p8199_p1 }
0x23b3   : > { %p8197_p0 = pneg %p8196_p13 }
0x23b5   : > { %p8202_p4 = pnand %p8201_p3, %p8197_p0 }
0x23be   : > { %v5094_v10 = vpop.f32.mrf.mxu3 }
0x23c6   : > { %v5096_v44 = vpop.f32.mrf.mxu3 }
0x23f8   : > { %v5166_v2 = vpop.permute.xlu2 %5165 }
0x23f9   : > { %v5176_v48 = vsel %vm2840_vm1, %v5094_v10, %v5166_v2 }
0x2400   : > { %v5174_v50 = vpop.permute.xlu2 %5173 }
0x2408   : > { %v5170_v49 = vpop.permute.xlu1 %5169 }
0x2409   : > { %v5177_v51 = vsel %vm3079_vm3, %v5176_v48, %v5170_v49 }
0x240a   : > { %v5178_v52 = vsel %vm3081_vm4, %v5177_v51, %v5174_v50 }
0x240b   : > { %v5179_v53 = vpack.c.bf16 %v5178_v52, %v5178_v52  ;;  %v6853_v52 = vld [vmem:[%s10235_s4] ss:$0 sm:$0xff] }
0x240d   : > { %6293 = vmatmul.msk.bf16.vlgmr.msra.gmra.mxu3 %vm2819_vm0, %v5179_v53 }
0x2490   : > { %v5207_v55 = vpop.f32.mrf.mxu3 }
0x2491   : > { %v5208_v56 = vadd.f32 %v6848_v54, %v5207_v55  ;;  %v6854_v54 = vld [vmem:[%s8792_s30] ss:$0 sm:$0xff] }
0x2493   : > { %v5211_v57 = vadd.f32 %v5208_v56, %v9864_v30 }
0x2495   : > { %v5212_v58 = vsel %vm2819_vm0, %v5211_v57, 0.0 }
0x2496   : > { %5213 = vadd.xlane.f32.xlu1 %v5212_v58  ;;  %v6855_v58 = vld [vmem:[%s8802_s14] ss:$0 sm:$0xff] }
0x2498   : > { %v5209_v61 = vpop.f32.mrf.mxu3 }
0x2509   : > { %v5214_v59 = vpop.xlane.xlu1 %5213 }
0x250a   : > { %v5215_v60 = vmul.f32 %v5214_v59, %v9510_v46 }
0x250c   : > { %v5216_v62 = vsub.f32 %v5211_v57, %v5215_v60 }
0x250e   : > { %v5217_v63 = vmul.f32 %v5216_v62, %v5216_v62 }
0x2510   : > { %v5218_v7 = vsel %vm2819_vm0, %v5217_v63, 0.0 }
0x2511   : > { %5219 = vadd.xlane.f32.xlu2 %v5218_v7 }
0x2584   : > { %v5220_v30 = vpop.xlane.xlu2 %5219 }
0x2585   : > { %v5221_v4 = vmul.f32 %v5220_v30, %v9510_v46 }
0x2587   : > { %v5222_v6 = vadd.f32 1e-05, %v5221_v4 }
0x2589   : > { %6970 = vrsqrt.f32 %v5222_v6  ;;  %vm5229_vm2 = vweird.f32 %v5222_v6 }
0x258f   : > { %v6971_v9 = vpop.eup %6970 }
0x2590   : > { %v5224_v11 = vmul.f32 %v6971_v9, %v5222_v6  ;;  %vm5230_vm1 = vweird.f32 %v6971_v9 }
0x2591   : > { %vm5231_vm3 = vmor %vm5229_vm2, %vm5230_vm1 }
0x2592   : > { %v5225_v12 = vmul.f32 %v6971_v9, %v5224_v11 }
0x2594   : > { %v5226_v13 = vmul.f32 0.5, %v5225_v12 }
0x2596   : > { %v5227_v14 = vsub.f32 1.5, %v5226_v13 }
0x2598   : > { %v5228_v15 = vmul.f32 %v6971_v9, %v5227_v14 }
0x259a   : > { %v5232_v17 = vsel %vm5231_vm3, %v6971_v9, %v5228_v15 }
0x259b   : > { %v5233_v21 = vmul.f32 %v5232_v17, %v5216_v62 }
0x259d   : > { %v5237_v22 = vmul.f32 %v6849_v16, %v5233_v21 }
0x259f   : > { %v5241_v23 = vadd.f32 %v6850_v19, %v5237_v22 }
0x25a1   : > { %v5242_v41 = vpack.c.bf16 %v5241_v23, %v5241_v23 }
0x25a3   : > { %6302 = vmatmul.msk.bf16.vlgmr.msrb.gmra.mxu0 %vm2819_vm0, %v5242_v41 }
0x2620   : > { %v5270_v25 = vpop.f32.mrf.mxu0 }
0x2621   : > { %v5271_v26 = vadd.f32 %v6851_v36, %v5270_v25 }
0x2623   : > { %v5274_v27 = vmax.f32 %v5271_v26, 0.0 }
0x2625   : > { %v5275_v28 = vpack.c.bf16 %v5274_v27, %v5274_v27 }
0x2627   : > { %6319 = vmatmul.msk.bf16.vlgmr.msrb.gmra.mxu1 %vm3214_vm9, %v5275_v28 }
0x2628   : > { %v5272_v29 = vpop.f32.mrf.mxu0 }
0x26a4   : > { %v5315_v31 = vpop.f32.mrf.mxu1 }
0x26a5   : > { %v5316_v32 = vadd.f32 %v6852_v43, %v5315_v31 }
0x26a7   : > { %v5319_v33 = vadd.f32 %v5316_v32, %v5241_v23 }
0x26a9   : > { %v5320_v34 = vsel %vm2819_vm0, %v5319_v33, 0.0 }
0x26aa   : > { %5321 = vadd.xlane.f32.xlu0 %v5320_v34 }
0x26ac   : > { %v5317_v18 = vpop.f32.mrf.mxu1 }
0x271d   : > { %v5322_v8 = vpop.xlane.xlu0 %5321 }
0x271e   : > { %v5323_v35 = vmul.f32 %v5322_v8, %v9510_v46 }
0x2720   : > { %v5324_v38 = vsub.f32 %v5319_v33, %v5323_v35 }
0x2722   : > { %v5325_v39 = vmul.f32 %v5324_v38, %v5324_v38 }
0x2724   : > { %v5326_v40 = vsel %vm2819_vm0, %v5325_v39, 0.0 }
0x2725   : > { %5327 = vadd.xlane.f32.xlu0 %v5326_v40 }
0x2798   : > { %v5328_v10 = vpop.xlane.xlu0 %5327 }
0x2799   : > { %v5329_v44 = vmul.f32 %v5328_v10, %v9510_v46 }
0x279b   : > { %v5330_v45 = vadd.f32 1e-05, %v5329_v44 }
0x279d   : > { %6972 = vrsqrt.f32 %v5330_v45  ;;  %vm5337_vm9 = vweird.f32 %v5330_v45 }
0x27a3   : > { %v6973_v47 = vpop.eup %6972 }
0x27a4   : > { %v5332_v2 = vmul.f32 %v6973_v47, %v5330_v45  ;;  %vm5338_vm4 = vweird.f32 %v6973_v47 }
0x27a5   : > { %vm5339_vm12 = vmor %vm5337_vm9, %vm5338_vm4 }
0x27a6   : > { %v5333_v48 = vmul.f32 %v6973_v47, %v5332_v2 }
0x27a8   : > { %v5334_v49 = vmul.f32 0.5, %v5333_v48 }
0x27aa   : > { %v5335_v50 = vsub.f32 1.5, %v5334_v49 }
0x27ac   : > { %v5336_v51 = vmul.f32 %v6973_v47, %v5335_v50 }
0x27ae   : > { %v5340_v53 = vsel %vm5339_vm12, %v6973_v47, %v5336_v51 }
0x27af   : > { %v5341_v55 = vmul.f32 %v5340_v53, %v5324_v38 }
0x27b1   : > { %v5345_v46 = vmul.f32 %v6853_v52, %v5341_v55 }
0x27b3   : > { %v5349_v56 = vadd.f32 %v6854_v54, %v5345_v46 }
0x27b5   : > { %v5350_v57 = vpack.c.bf16 %v5349_v56, %v5349_v56 }
0x27b7   : > { %6328 = vmatmul.msk.bf16.vlgmr.msrb.gmra.mxu2 %vm2819_vm0, %v5350_v57 }
0x283a   : > { %v5378_v61 = vpop.f32.mrf.mxu2 }
0x283b   : > { %v5379_v59 = vadd.f32 %v6855_v58, %v5378_v61 }
0x283d   : > { %5382 = vst [vmem:[%s2640_s1] sm:$0xff] %v5379_v59 }
0x283e   : > { %8205 = shalt.err (!%p8202_p4)
}
0x283f   : > { %6559 = dma.vmem_to_hbm [thread:$0]  (%p8847_p5), %s5397_s13, 128, %s5399_s8, %s5384_s2  }
0x2842   : > { %v5380_v60 = vpop.f32.mrf.mxu2 }
0x2843 PF: > { %s10237_s4 = sld [smem:[#allocation153_spill]] }
0x2844   : > { %s10238_s0 = sld [smem:[#allocation151_spill]] }
0x2849   : > { %p6651_p7 = scmp.ge.s32.totalorder %s10237_s4, 2 }
0x284a   : > { %s5410_s9 = sand.u32 1, %s10238_s0  }
0x284b   : > { %p6562_p8 = pnand %p6651_p7, %p8851_p6  ;;  %s5411_s12 = scalar_lea.sflag [#allocation4], %s5410_s9 }
0x284d   : > { %p6563_p11 = pneg %p6562_p8 }
0x284f   : > { %8311 = dma.done.wait (%p6563_p11), %s5411_s12, 128  }
0x2850   : > { %8313 = vsyncadd (%p6563_p11), %s5411_s12, 4294967168  ;;  %s10240_s2 = sld [smem:[#allocation154_spill]]  ;;  %s10243_s0 = smov %s8320_s28 }
0x2851   : > { %s10241_s1 = sld [smem:[#allocation152_spill]] }
0x2852   : > { %s10242_s5 = sld [smem:[#allocation155_spill]] }
0x2856   : > { %p169_p12 = scmp.ge.s32.totalorder %s10240_s2, 4  }
0x2857   : > { %s10244_s28 = smov %s10241_s1 }
0x2858   : > { %s10245_s1 = smov %s10242_s5  ;;  %171 = sbr.rel (!%p169_p12) target bundleno = 160 (0xa0), region = 571 }
0x285d   :  { %5417 = vsyncpa [#allocation3], 1 }
0x285e   :  { %5419 = vsyncpa [#allocation3 + $0x1], 1 }
0x285f   :  { %5420 = vsyncpa [#allocation6], 1 }
0x2860   :  { %5421 = vsyncpa [#allocation9], 1 }
0x2861   :  { %5422 = vsyncpa [#allocation12], 1 }
0x2862   :  { %5423 = vsyncpa [#allocation15], 1 }
0x2863   :  { %5424 = vsyncpa [#allocation18], 1 }
0x2864   :  { %5425 = vsyncpa [#allocation21], 1 }
0x2865   :  { %5426 = vsyncpa [#allocation24], 1 }
0x2866   :  { %5427 = vsyncpa [#allocation27], 1 }
0x2867   :  { %5428 = vsyncpa [#allocation30], 1 }
0x2868   :  { %5429 = vsyncpa [#allocation33], 1 }
0x2869   :  { %5430 = vsyncpa [#allocation36], 1 }
0x286a   :  { %5431 = vsyncpa [#allocation39], 1 }
0x286b   :  { %5432 = vsyncpa [#allocation42], 1 }
0x286c   :  { %5433 = vsyncpa [#allocation45], 1 }
0x286d   :  { %5434 = vsyncpa [#allocation48], 1 }
0x286e   :  { %5435 = vsyncpa [#allocation51], 1 }
0x286f   :  { %5436 = vsyncpa [#allocation54], 1 }
0x2870   :  { %5437 = vsyncpa [#allocation57], 1 }
0x2871   :  { %5438 = vsyncpa [#allocation60], 1 }
0x2872   :  { %5439 = vsyncpa [#allocation63], 1 }
0x2873   :  { %5440 = vsyncpa [#allocation66], 1 }
0x2874   :  { %5441 = vsyncpa [#allocation4], 1 }
0x2875   :  { %5443 = vsyncpa [#allocation4 + $0x1], 1 }

</bundles_post_ra>
